<compile_context>
chip_gen: v6e
topology: v6e:2x2x1
jax: 0.10.0
libtpu: 0.0.40
codegen_flags: <defaults>
</compile_context>

<pallas_src>
import functools
import math

import jax
import jax.numpy as jnp
from jax.experimental import pallas as pl
from jax.experimental.pallas import tpu as pltpu

BN_EPS = 1e-5


# ----------------------------------------------------------------------------
# Pallas kernels
# ----------------------------------------------------------------------------
def _conv_mm_kernel(*refs, relu, has_res):
    """o = [relu]((w @ p) * scale + bias [+ res]); MXU matmul, f32 epilogue."""
    if has_res:
        w_ref, p_ref, s_ref, b_ref, r_ref, o_ref = refs
    else:
        w_ref, p_ref, s_ref, b_ref, o_ref = refs
        r_ref = None
    acc = jnp.dot(w_ref[...], p_ref[...], preferred_element_type=jnp.float32)
    y = acc * s_ref[...] + b_ref[...]
    if r_ref is not None:
        y = y + r_ref[...]
    if relu:
        y = jnp.maximum(y, 0.0)
    o_ref[...] = y


def _col_tile(m):
    """Largest lane tile (multiple of 128, <=1024) dividing m with >=2 steps."""
    if m % 128 != 0:
        return m  # full-extent block is always legal
    for t in (1024, 512, 256, 128):
        if m % t == 0 and m // t >= 2:
            return t
    return m


def conv_matmul(wmat, patches, scale, bias, res=None, relu=True):
    """(Cout, M) = relu?((wmat @ patches) * scale + bias (+ res)).

    wmat: (Cout, K) bf16, patches: (K, M) bf16, scale/bias: (Cout, 1) f32,
    res: optional (Cout, M) f32.  Output last dim is M = N*Ho*Wo (lane-dense).
    """
    cout, k = wmat.shape
    m = patches.shape[1]
    tn = _col_tile(m)
    grid = (m // tn,)
    in_specs = [
        pl.BlockSpec((cout, k), lambda i: (0, 0)),    # weights resident
        pl.BlockSpec((k, tn), lambda i: (0, i)),
        pl.BlockSpec((cout, 1), lambda i: (0, 0)),
        pl.BlockSpec((cout, 1), lambda i: (0, 0)),
    ]
    args = [wmat, patches, scale, bias]
    if res is not None:
        in_specs.append(pl.BlockSpec((cout, tn), lambda i: (0, i)))
        args.append(res)
    return pl.pallas_call(
        functools.partial(_conv_mm_kernel, relu=relu, has_res=res is not None),
        out_shape=jax.ShapeDtypeStruct((cout, m), jnp.float32),
        grid=grid,
        in_specs=in_specs,
        out_specs=pl.BlockSpec((cout, tn), lambda i: (0, i)),
        compiler_params=pltpu.CompilerParams(dimension_semantics=("parallel",)),
    )(*args)


def _pool_fc_kernel(x_ref, pool_ref, w_ref, b_ref, o_ref):
    # x: (C, N*HW) f32, pool: (N*HW, N), w: (nc, C), b: (nc, 1) -> o: (nc, N)
    pooled = jnp.dot(x_ref[...], pool_ref[...],
                     preferred_element_type=jnp.float32)        # (C, N)
    o_ref[...] = jnp.dot(w_ref[...], pooled,
                         preferred_element_type=jnp.float32) + b_ref[...]


def pool_fc(x_slab, n, hw, fc_w, fc_b):
    """Fused global-average-pool + FC head.  x_slab: (C, N*HW) f32."""
    nc = fc_w.shape[0]
    pool_mat = jnp.kron(jnp.eye(n, dtype=jnp.float32),
                        jnp.full((hw, 1), 1.0 / hw, jnp.float32))  # (N*HW, N)
    out = pl.pallas_call(
        _pool_fc_kernel,
        out_shape=jax.ShapeDtypeStruct((nc, n), jnp.float32),
    )(x_slab, pool_mat, fc_w, fc_b.reshape(nc, 1))
    return out.T  # (N, nc)


# ----------------------------------------------------------------------------
# Plain-JAX glue: channel-major im2col, conv+BN wrappers, model definition
# ----------------------------------------------------------------------------
def im2col_cm(x_slab, n, h, w, kh, kw, stride, pad):
    """Channel-major im2col.  x_slab: (C, N*H*W) -> patches (kh*kw*C, N*Ho*Wo).

    Column (row-of-patch) ordering is k = (i*kw + j)*C + c, matching the
    weight reshape below.  Patches are cast to bf16 for the MXU.
    """
    c = x_slab.shape[0]
    xi = x_slab.reshape(c, n, h, w).astype(jnp.bfloat16)
    xp = jnp.pad(xi, ((0, 0), (0, 0), (pad, pad), (pad, pad)))
    ho = (h + 2 * pad - kh) // stride + 1
    wo = (w + 2 * pad - kw) // stride + 1
    taps = []
    for i in range(kh):
        for j in range(kw):
            taps.append(
                xp[:, :, i:i + stride * ho:stride, j:j + stride * wo:stride])
    patches = jnp.stack(taps, axis=0)          # (kh*kw, C, N, Ho, Wo)
    return patches.reshape(kh * kw * c, n * ho * wo), ho, wo


def conv_bn_cm(x_slab, shape_nhw, conv_w, bn, stride, pad, relu, res=None):
    """Conv2d (no bias) + folded BN (+ residual) (+ ReLU), channel-major."""
    n, h, w = shape_nhw
    cout, cin, kh, kw = conv_w.shape
    gamma, beta, mean, var = bn
    scale = (gamma / jnp.sqrt(var + BN_EPS)).reshape(cout, 1)
    bias = (beta.reshape(cout, 1) - mean.reshape(cout, 1) * scale)
    patches, ho, wo = im2col_cm(x_slab, n, h, w, kh, kw, stride, pad)
    # torch weight (Cout,Cin,kh,kw) -> (Cout, kh*kw*Cin), matching patch order.
    wmat = jnp.transpose(conv_w, (0, 2, 3, 1)).reshape(cout, kh * kw * cin)
    y = conv_matmul(wmat.astype(jnp.bfloat16), patches, scale, bias,
                    res=res, relu=relu)
    return y, (n, ho, wo)


def basic_block_cm(x_slab, shape_nhw, p, stride):
    out1, shape1 = conv_bn_cm(x_slab, shape_nhw, p["conv1"], p["bn1"],
                              stride=stride, pad=1, relu=True)
    if "ds_conv" in p:
        identity, _ = conv_bn_cm(x_slab, shape_nhw, p["ds_conv"], p["ds_bn"],
                                 stride=stride, pad=0, relu=False)
    else:
        identity = x_slab
    # conv2 + BN + residual add + ReLU fused in one kernel.
    out2, shape2 = conv_bn_cm(out1, shape1, p["conv2"], p["bn2"],
                              stride=1, pad=1, relu=True, res=identity)
    return out2, shape2


def resnet20_forward(params, x_nchw):
    n, c, h, w = x_nchw.shape
    # NCHW -> channel-major slab (C, N*H*W)
    x = jnp.transpose(x_nchw, (1, 0, 2, 3)).reshape(c, n * h * w)
    x, shape_nhw = conv_bn_cm(x, (n, h, w), params["stem_conv"],
                              params["stem_bn"], stride=1, pad=1, relu=True)
    for s, stage in enumerate(params["stages"]):
        for b, blk in enumerate(stage):
            stride = 2 if (s > 0 and b == 0) else 1
            x, shape_nhw = basic_block_cm(x, shape_nhw, blk, stride)
    n_, h_, w_ = shape_nhw
    return pool_fc(x, n_, h_ * w_, params["fc_w"], params["fc_b"])


# ----------------------------------------------------------------------------
# Deterministic synthetic parameters (shapes from resnet20's __init__)
# ----------------------------------------------------------------------------
def init_params(key, num_classes=10):
    keys = iter(jax.random.split(key, 256))

    def conv(cout, cin, kh, kw):
        fan_in = cin * kh * kw
        return jax.random.normal(next(keys), (cout, cin, kh, kw),
                                 jnp.float32) / math.sqrt(fan_in)

    def bn(c):
        k1, k2, k3, k4 = jax.random.split(next(keys), 4)
        gamma = 1.0 + 0.1 * jax.random.normal(k1, (c,), jnp.float32)
        beta = 0.1 * jax.random.normal(k2, (c,), jnp.float32)
        mean = 0.1 * jax.random.normal(k3, (c,), jnp.float32)
        var = 1.0 + 0.1 * jnp.abs(jax.random.normal(k4, (c,), jnp.float32))
        return (gamma, beta, mean, var)

    params = {"stem_conv": conv(16, 3, 3, 3), "stem_bn": bn(16)}
    stages = []
    in_c = 16
    for stage_idx, out_c in enumerate([16, 32, 64]):
        blocks = []
        for b in range(3):
            stride = 2 if (stage_idx > 0 and b == 0) else 1
            blk = {
                "conv1": conv(out_c, in_c, 3, 3), "bn1": bn(out_c),
                "conv2": conv(out_c, out_c, 3, 3), "bn2": bn(out_c),
            }
            if stride != 1 or in_c != out_c:
                blk["ds_conv"] = conv(out_c, in_c, 1, 1)
                blk["ds_bn"] = bn(out_c)
            blocks.append(blk)
            in_c = out_c
        stages.append(blocks)
    params["stages"] = stages
    params["fc_w"] = jax.random.normal(next(keys), (num_classes, 64),
                                       jnp.float32) / math.sqrt(64)
    params["fc_b"] = 0.01 * jax.random.normal(next(keys), (num_classes,),
                                              jnp.float32)
    return params


if __name__ == "__main__":
    key = jax.random.PRNGKey(0)
    pkey, xkey = jax.random.split(key)
    params = init_params(pkey, num_classes=10)
    # CIFAR-10 style input, small batch: NCHW as the PyTorch module expects.
    x = jax.random.normal(xkey, (2, 3, 32, 32), jnp.float32)
    logits = jax.jit(resnet20_forward)(params, x)
    jax.block_until_ready(logits)
    assert logits.shape == (2, 10) and logits.dtype == jnp.float32
    print("KERNEL_OK")
</pallas_src>

<mosaic_0001>
module attributes {stable_mosaic.version = 11 : i64} {
  func.func @_conv_mm_kernel(%arg0: i32, %arg1: memref<16x27xbf16, #tpu.memory_space<vmem>>, %arg2: memref<27x1024xbf16, #tpu.memory_space<vmem>>, %arg3: memref<16x1xf32, #tpu.memory_space<vmem>>, %arg4: memref<16x1xf32, #tpu.memory_space<vmem>>, %arg5: memref<16x1024xf32, #tpu.memory_space<vmem>>) attributes {dimension_semantics = [#tpu.dimension_semantics<parallel>], iteration_bounds = array<i64: 2>, scalar_prefetch = 0 : i64, scratch_operands = 0 : i64, tpu.core_type = #tpu.core_type<tc>, window_params = [{pipeline_mode = #tpu.pipeline_mode<synchronous>, transform_indices = @transform_0, window_bounds = array<i64: 16, 27>}, {transform_indices = @transform_1, window_bounds = array<i64: 27, 1024>}, {pipeline_mode = #tpu.pipeline_mode<synchronous>, transform_indices = @transform_2, window_bounds = array<i64: 16, 1>}, {pipeline_mode = #tpu.pipeline_mode<synchronous>, transform_indices = @transform_3, window_bounds = array<i64: 16, 1>}, {transform_indices = @transform_4, window_bounds = array<i64: 16, 1024>}]} {
    %c0 = arith.constant 0 : index
    %c0_0 = arith.constant 0 : index
    %0 = vector.load %arg1[%c0, %c0_0] : memref<16x27xbf16, #tpu.memory_space<vmem>>, vector<16x27xbf16>
    %c0_1 = arith.constant 0 : index
    %c0_2 = arith.constant 0 : index
    %1 = vector.load %arg2[%c0_1, %c0_2] : memref<27x1024xbf16, #tpu.memory_space<vmem>>, vector<27x1024xbf16>
    %cst = arith.constant dense<0.000000e+00> : vector<16x1024xf32>
    %2 = tpu.matmul %0, %1, %cst {dimension_numbers = #tpu.dot_dimension_numbers<[1], [0], [0], [1], [0, 0, 1, 1], [], []>} : vector<16x27xbf16>, vector<27x1024xbf16>, vector<16x1024xf32> -> vector<16x1024xf32>
    %c0_3 = arith.constant 0 : index
    %c0_4 = arith.constant 0 : index
    %3 = vector.load %arg3[%c0_3, %c0_4] : memref<16x1xf32, #tpu.memory_space<vmem>>, vector<16x1xf32>
    %4 = vector.broadcast %3 : vector<16x1xf32> to vector<16x1024xf32>
    %5 = arith.mulf %2, %4 : vector<16x1024xf32>
    %c0_5 = arith.constant 0 : index
    %c0_6 = arith.constant 0 : index
    %6 = vector.load %arg4[%c0_5, %c0_6] : memref<16x1xf32, #tpu.memory_space<vmem>>, vector<16x1xf32>
    %7 = vector.broadcast %6 : vector<16x1xf32> to vector<16x1024xf32>
    %8 = arith.addf %5, %7 : vector<16x1024xf32>
    %cst_7 = arith.constant 0.000000e+00 : f32
    %9 = vector.broadcast %cst_7 : f32 to vector<16x1024xf32>
    %10 = arith.maximumf %8, %9 : vector<16x1024xf32>
    %c0_8 = arith.constant 0 : index
    %c0_9 = arith.constant 0 : index
    %11 = vector.load %arg5[%c0_8, %c0_9] : memref<16x1024xf32, #tpu.memory_space<vmem>>, vector<16x1024xf32>
    tpu.vector_store %arg5[%c0_8, %c0_9], %10 {strides = array<i32>} : memref<16x1024xf32, #tpu.memory_space<vmem>>, vector<16x1024xf32>,
    return
  }
  func.func @transform_0(%arg0: i32) -> (i32, i32) {
    %c0_i32 = arith.constant 0 : i32
    %c0_i32_0 = arith.constant 0 : i32
    %c0_i32_1 = arith.constant 0 : i32
    return %c0_i32, %c0_i32_0 : i32, i32
  }
  func.func @transform_1(%arg0: i32) -> (i32, i32) {
    %c0_i32 = arith.constant 0 : i32
    %c0_i32_0 = arith.constant 0 : i32
    return %c0_i32, %arg0 : i32, i32
  }
  func.func @transform_2(%arg0: i32) -> (i32, i32) {
    %c0_i32 = arith.constant 0 : i32
    %c0_i32_0 = arith.constant 0 : i32
    %c0_i32_1 = arith.constant 0 : i32
    return %c0_i32, %c0_i32_0 : i32, i32
  }
  func.func @transform_3(%arg0: i32) -> (i32, i32) {
    %c0_i32 = arith.constant 0 : i32
    %c0_i32_0 = arith.constant 0 : i32
    %c0_i32_1 = arith.constant 0 : i32
    return %c0_i32, %c0_i32_0 : i32, i32
  }
  func.func @transform_4(%arg0: i32) -> (i32, i32) {
    %c0_i32 = arith.constant 0 : i32
    %c0_i32_0 = arith.constant 0 : i32
    return %c0_i32, %arg0 : i32, i32
  }
}

module attributes {stable_mosaic.version = 11 : i64} {
  func.func @_conv_mm_kernel(%arg0: i32, %arg1: memref<16x144xbf16, #tpu.memory_space<vmem>>, %arg2: memref<144x1024xbf16, #tpu.memory_space<vmem>>, %arg3: memref<16x1xf32, #tpu.memory_space<vmem>>, %arg4: memref<16x1xf32, #tpu.memory_space<vmem>>, %arg5: memref<16x1024xf32, #tpu.memory_space<vmem>>, %arg6: memref<16x1024xf32, #tpu.memory_space<vmem>>) attributes {dimension_semantics = [#tpu.dimension_semantics<parallel>], iteration_bounds = array<i64: 2>, scalar_prefetch = 0 : i64, scratch_operands = 0 : i64, tpu.core_type = #tpu.core_type<tc>, window_params = [{pipeline_mode = #tpu.pipeline_mode<synchronous>, transform_indices = @transform_0, window_bounds = array<i64: 16, 144>}, {transform_indices = @transform_1, window_bounds = array<i64: 144, 1024>}, {pipeline_mode = #tpu.pipeline_mode<synchronous>, transform_indices = @transform_2, window_bounds = array<i64: 16, 1>}, {pipeline_mode = #tpu.pipeline_mode<synchronous>, transform_indices = @transform_3, window_bounds = array<i64: 16, 1>}, {transform_indices = @transform_4, window_bounds = array<i64: 16, 1024>}, {transform_indices = @transform_5, window_bounds = array<i64: 16, 1024>}]} {
    %c0 = arith.constant 0 : index
    %c0_0 = arith.constant 0 : index
    %0 = vector.load %arg1[%c0, %c0_0] : memref<16x144xbf16, #tpu.memory_space<vmem>>, vector<16x144xbf16>
    %c0_1 = arith.constant 0 : index
    %c0_2 = arith.constant 0 : index
    %1 = vector.load %arg2[%c0_1, %c0_2] : memref<144x1024xbf16, #tpu.memory_space<vmem>>, vector<144x1024xbf16>
    %cst = arith.constant dense<0.000000e+00> : vector<16x1024xf32>
    %2 = tpu.matmul %0, %1, %cst {dimension_numbers = #tpu.dot_dimension_numbers<[1], [0], [0], [1], [0, 0, 1, 1], [], []>} : vector<16x144xbf16>, vector<144x1024xbf16>, vector<16x1024xf32> -> vector<16x1024xf32>
    %c0_3 = arith.constant 0 : index
    %c0_4 = arith.constant 0 : index
    %3 = vector.load %arg3[%c0_3, %c0_4] : memref<16x1xf32, #tpu.memory_space<vmem>>, vector<16x1xf32>
    %4 = vector.broadcast %3 : vector<16x1xf32> to vector<16x1024xf32>
    %5 = arith.mulf %2, %4 : vector<16x1024xf32>
    %c0_5 = arith.constant 0 : index
    %c0_6 = arith.constant 0 : index
    %6 = vector.load %arg4[%c0_5, %c0_6] : memref<16x1xf32, #tpu.memory_space<vmem>>, vector<16x1xf32>
    %7 = vector.broadcast %6 : vector<16x1xf32> to vector<16x1024xf32>
    %8 = arith.addf %5, %7 : vector<16x1024xf32>
    %c0_7 = arith.constant 0 : index
    %c0_8 = arith.constant 0 : index
    %9 = vector.load %arg5[%c0_7, %c0_8] : memref<16x1024xf32, #tpu.memory_space<vmem>>, vector<16x1024xf32>
    %10 = arith.addf %8, %9 : vector<16x1024xf32>
    %cst_9 = arith.constant 0.000000e+00 : f32
    %11 = vector.broadcast %cst_9 : f32 to vector<16x1024xf32>
    %12 = arith.maximumf %10, %11 : vector<16x1024xf32>
    %c0_10 = arith.constant 0 : index
    %c0_11 = arith.constant 0 : index
    %13 = vector.load %arg6[%c0_10, %c0_11] : memref<16x1024xf32, #tpu.memory_space<vmem>>, vector<16x1024xf32>
    tpu.vector_store %arg6[%c0_10, %c0_11], %12 {strides = array<i32>} : memref<16x1024xf32, #tpu.memory_space<vmem>>, vector<16x1024xf32>,
    return
  }
  func.func @transform_0(%arg0: i32) -> (i32, i32) {
    %c0_i32 = arith.constant 0 : i32
    %c0_i32_0 = arith.constant 0 : i32
    %c0_i32_1 = arith.constant 0 : i32
    return %c0_i32, %c0_i32_0 : i32, i32
  }
  func.func @transform_1(%arg0: i32) -> (i32, i32) {
    %c0_i32 = arith.constant 0 : i32
    %c0_i32_0 = arith.constant 0 : i32
    return %c0_i32, %arg0 : i32, i32
  }
  func.func @transform_2(%arg0: i32) -> (i32, i32) {
    %c0_i32 = arith.constant 0 : i32
    %c0_i32_0 = arith.constant 0 : i32
    %c0_i32_1 = arith.constant 0 : i32
    return %c0_i32, %c0_i32_0 : i32, i32
  }
  func.func @transform_3(%arg0: i32) -> (i32, i32) {
    %c0_i32 = arith.constant 0 : i32
    %c0_i32_0 = arith.constant 0 : i32
    %c0_i32_1 = arith.constant 0 : i32
    return %c0_i32, %c0_i32_0 : i32, i32
  }
  func.func @transform_4(%arg0: i32) -> (i32, i32) {
    %c0_i32 = arith.constant 0 : i32
    %c0_i32_0 = arith.constant 0 : i32
    return %c0_i32, %arg0 : i32, i32
  }
  func.func @transform_5(%arg0: i32) -> (i32, i32) {
    %c0_i32 = arith.constant 0 : i32
    %c0_i32_0 = arith.constant 0 : i32
    return %c0_i32, %arg0 : i32, i32
  }
}

module attributes {stable_mosaic.version = 11 : i64} {
  func.func @_conv_mm_kernel(%arg0: i32, %arg1: memref<16x144xbf16, #tpu.memory_space<vmem>>, %arg2: memref<144x1024xbf16, #tpu.memory_space<vmem>>, %arg3: memref<16x1xf32, #tpu.memory_space<vmem>>, %arg4: memref<16x1xf32, #tpu.memory_space<vmem>>, %arg5: memref<16x1024xf32, #tpu.memory_space<vmem>>) attributes {dimension_semantics = [#tpu.dimension_semantics<parallel>], iteration_bounds = array<i64: 2>, scalar_prefetch = 0 : i64, scratch_operands = 0 : i64, tpu.core_type = #tpu.core_type<tc>, window_params = [{pipeline_mode = #tpu.pipeline_mode<synchronous>, transform_indices = @transform_0, window_bounds = array<i64: 16, 144>}, {transform_indices = @transform_1, window_bounds = array<i64: 144, 1024>}, {pipeline_mode = #tpu.pipeline_mode<synchronous>, transform_indices = @transform_2, window_bounds = array<i64: 16, 1>}, {pipeline_mode = #tpu.pipeline_mode<synchronous>, transform_indices = @transform_3, window_bounds = array<i64: 16, 1>}, {transform_indices = @transform_4, window_bounds = array<i64: 16, 1024>}]} {
    %c0 = arith.constant 0 : index
    %c0_0 = arith.constant 0 : index
    %0 = vector.load %arg1[%c0, %c0_0] : memref<16x144xbf16, #tpu.memory_space<vmem>>, vector<16x144xbf16>
    %c0_1 = arith.constant 0 : index
    %c0_2 = arith.constant 0 : index
    %1 = vector.load %arg2[%c0_1, %c0_2] : memref<144x1024xbf16, #tpu.memory_space<vmem>>, vector<144x1024xbf16>
    %cst = arith.constant dense<0.000000e+00> : vector<16x1024xf32>
    %2 = tpu.matmul %0, %1, %cst {dimension_numbers = #tpu.dot_dimension_numbers<[1], [0], [0], [1], [0, 0, 1, 1], [], []>} : vector<16x144xbf16>, vector<144x1024xbf16>, vector<16x1024xf32> -> vector<16x1024xf32>
    %c0_3 = arith.constant 0 : index
    %c0_4 = arith.constant 0 : index
    %3 = vector.load %arg3[%c0_3, %c0_4] : memref<16x1xf32, #tpu.memory_space<vmem>>, vector<16x1xf32>
    %4 = vector.broadcast %3 : vector<16x1xf32> to vector<16x1024xf32>
    %5 = arith.mulf %2, %4 : vector<16x1024xf32>
    %c0_5 = arith.constant 0 : index
    %c0_6 = arith.constant 0 : index
    %6 = vector.load %arg4[%c0_5, %c0_6] : memref<16x1xf32, #tpu.memory_space<vmem>>, vector<16x1xf32>
    %7 = vector.broadcast %6 : vector<16x1xf32> to vector<16x1024xf32>
    %8 = arith.addf %5, %7 : vector<16x1024xf32>
    %cst_7 = arith.constant 0.000000e+00 : f32
    %9 = vector.broadcast %cst_7 : f32 to vector<16x1024xf32>
    %10 = arith.maximumf %8, %9 : vector<16x1024xf32>
    %c0_8 = arith.constant 0 : index
    %c0_9 = arith.constant 0 : index
    %11 = vector.load %arg5[%c0_8, %c0_9] : memref<16x1024xf32, #tpu.memory_space<vmem>>, vector<16x1024xf32>
    tpu.vector_store %arg5[%c0_8, %c0_9], %10 {strides = array<i32>} : memref<16x1024xf32, #tpu.memory_space<vmem>>, vector<16x1024xf32>,
    return
  }
  func.func @transform_0(%arg0: i32) -> (i32, i32) {
    %c0_i32 = arith.constant 0 : i32
    %c0_i32_0 = arith.constant 0 : i32
    %c0_i32_1 = arith.constant 0 : i32
    return %c0_i32, %c0_i32_0 : i32, i32
  }
  func.func @transform_1(%arg0: i32) -> (i32, i32) {
    %c0_i32 = arith.constant 0 : i32
    %c0_i32_0 = arith.constant 0 : i32
    return %c0_i32, %arg0 : i32, i32
  }
  func.func @transform_2(%arg0: i32) -> (i32, i32) {
    %c0_i32 = arith.constant 0 : i32
    %c0_i32_0 = arith.constant 0 : i32
    %c0_i32_1 = arith.constant 0 : i32
    return %c0_i32, %c0_i32_0 : i32, i32
  }
  func.func @transform_3(%arg0: i32) -> (i32, i32) {
    %c0_i32 = arith.constant 0 : i32
    %c0_i32_0 = arith.constant 0 : i32
    %c0_i32_1 = arith.constant 0 : i32
    return %c0_i32, %c0_i32_0 : i32, i32
  }
  func.func @transform_4(%arg0: i32) -> (i32, i32) {
    %c0_i32 = arith.constant 0 : i32
    %c0_i32_0 = arith.constant 0 : i32
    return %c0_i32, %arg0 : i32, i32
  }
}

module attributes {stable_mosaic.version = 11 : i64} {
  func.func @_conv_mm_kernel(%arg0: i32, %arg1: memref<32x144xbf16, #tpu.memory_space<vmem>>, %arg2: memref<144x256xbf16, #tpu.memory_space<vmem>>, %arg3: memref<32x1xf32, #tpu.memory_space<vmem>>, %arg4: memref<32x1xf32, #tpu.memory_space<vmem>>, %arg5: memref<32x256xf32, #tpu.memory_space<vmem>>) attributes {dimension_semantics = [#tpu.dimension_semantics<parallel>], iteration_bounds = array<i64: 2>, scalar_prefetch = 0 : i64, scratch_operands = 0 : i64, tpu.core_type = #tpu.core_type<tc>, window_params = [{pipeline_mode = #tpu.pipeline_mode<synchronous>, transform_indices = @transform_0, window_bounds = array<i64: 32, 144>}, {transform_indices = @transform_1, window_bounds = array<i64: 144, 256>}, {pipeline_mode = #tpu.pipeline_mode<synchronous>, transform_indices = @transform_2, window_bounds = array<i64: 32, 1>}, {pipeline_mode = #tpu.pipeline_mode<synchronous>, transform_indices = @transform_3, window_bounds = array<i64: 32, 1>}, {transform_indices = @transform_4, window_bounds = array<i64: 32, 256>}]} {
    %c0 = arith.constant 0 : index
    %c0_0 = arith.constant 0 : index
    %0 = vector.load %arg1[%c0, %c0_0] : memref<32x144xbf16, #tpu.memory_space<vmem>>, vector<32x144xbf16>
    %c0_1 = arith.constant 0 : index
    %c0_2 = arith.constant 0 : index
    %1 = vector.load %arg2[%c0_1, %c0_2] : memref<144x256xbf16, #tpu.memory_space<vmem>>, vector<144x256xbf16>
    %cst = arith.constant dense<0.000000e+00> : vector<32x256xf32>
    %2 = tpu.matmul %0, %1, %cst {dimension_numbers = #tpu.dot_dimension_numbers<[1], [0], [0], [1], [0, 0, 1, 1], [], []>} : vector<32x144xbf16>, vector<144x256xbf16>, vector<32x256xf32> -> vector<32x256xf32>
    %c0_3 = arith.constant 0 : index
    %c0_4 = arith.constant 0 : index
    %3 = vector.load %arg3[%c0_3, %c0_4] : memref<32x1xf32, #tpu.memory_space<vmem>>, vector<32x1xf32>
    %4 = vector.broadcast %3 : vector<32x1xf32> to vector<32x256xf32>
    %5 = arith.mulf %2, %4 : vector<32x256xf32>
    %c0_5 = arith.constant 0 : index
    %c0_6 = arith.constant 0 : index
    %6 = vector.load %arg4[%c0_5, %c0_6] : memref<32x1xf32, #tpu.memory_space<vmem>>, vector<32x1xf32>
    %7 = vector.broadcast %6 : vector<32x1xf32> to vector<32x256xf32>
    %8 = arith.addf %5, %7 : vector<32x256xf32>
    %cst_7 = arith.constant 0.000000e+00 : f32
    %9 = vector.broadcast %cst_7 : f32 to vector<32x256xf32>
    %10 = arith.maximumf %8, %9 : vector<32x256xf32>
    %c0_8 = arith.constant 0 : index
    %c0_9 = arith.constant 0 : index
    %11 = vector.load %arg5[%c0_8, %c0_9] : memref<32x256xf32, #tpu.memory_space<vmem>>, vector<32x256xf32>
    tpu.vector_store %arg5[%c0_8, %c0_9], %10 {strides = array<i32>} : memref<32x256xf32, #tpu.memory_space<vmem>>, vector<32x256xf32>,
    return
  }
  func.func @transform_0(%arg0: i32) -> (i32, i32) {
    %c0_i32 = arith.constant 0 : i32
    %c0_i32_0 = arith.constant 0 : i32
    %c0_i32_1 = arith.constant 0 : i32
    return %c0_i32, %c0_i32_0 : i32, i32
  }
  func.func @transform_1(%arg0: i32) -> (i32, i32) {
    %c0_i32 = arith.constant 0 : i32
    %c0_i32_0 = arith.constant 0 : i32
    return %c0_i32, %arg0 : i32, i32
  }
  func.func @transform_2(%arg0: i32) -> (i32, i32) {
    %c0_i32 = arith.constant 0 : i32
    %c0_i32_0 = arith.constant 0 : i32
    %c0_i32_1 = arith.constant 0 : i32
    return %c0_i32, %c0_i32_0 : i32, i32
  }
  func.func @transform_3(%arg0: i32) -> (i32, i32) {
    %c0_i32 = arith.constant 0 : i32
    %c0_i32_0 = arith.constant 0 : i32
    %c0_i32_1 = arith.constant 0 : i32
    return %c0_i32, %c0_i32_0 : i32, i32
  }
  func.func @transform_4(%arg0: i32) -> (i32, i32) {
    %c0_i32 = arith.constant 0 : i32
    %c0_i32_0 = arith.constant 0 : i32
    return %c0_i32, %arg0 : i32, i32
  }
}

module attributes {stable_mosaic.version = 11 : i64} {
  func.func @_conv_mm_kernel(%arg0: i32, %arg1: memref<32x16xbf16, #tpu.memory_space<vmem>>, %arg2: memref<16x256xbf16, #tpu.memory_space<vmem>>, %arg3: memref<32x1xf32, #tpu.memory_space<vmem>>, %arg4: memref<32x1xf32, #tpu.memory_space<vmem>>, %arg5: memref<32x256xf32, #tpu.memory_space<vmem>>) attributes {dimension_semantics = [#tpu.dimension_semantics<parallel>], iteration_bounds = array<i64: 2>, scalar_prefetch = 0 : i64, scratch_operands = 0 : i64, tpu.core_type = #tpu.core_type<tc>, window_params = [{pipeline_mode = #tpu.pipeline_mode<synchronous>, transform_indices = @transform_0, window_bounds = array<i64: 32, 16>}, {transform_indices = @transform_1, window_bounds = array<i64: 16, 256>}, {pipeline_mode = #tpu.pipeline_mode<synchronous>, transform_indices = @transform_2, window_bounds = array<i64: 32, 1>}, {pipeline_mode = #tpu.pipeline_mode<synchronous>, transform_indices = @transform_3, window_bounds = array<i64: 32, 1>}, {transform_indices = @transform_4, window_bounds = array<i64: 32, 256>}]} {
    %c0 = arith.constant 0 : index
    %c0_0 = arith.constant 0 : index
    %0 = vector.load %arg1[%c0, %c0_0] : memref<32x16xbf16, #tpu.memory_space<vmem>>, vector<32x16xbf16>
    %c0_1 = arith.constant 0 : index
    %c0_2 = arith.constant 0 : index
    %1 = vector.load %arg2[%c0_1, %c0_2] : memref<16x256xbf16, #tpu.memory_space<vmem>>, vector<16x256xbf16>
    %cst = arith.constant dense<0.000000e+00> : vector<32x256xf32>
    %2 = tpu.matmul %0, %1, %cst {dimension_numbers = #tpu.dot_dimension_numbers<[1], [0], [0], [1], [0, 0, 1, 1], [], []>} : vector<32x16xbf16>, vector<16x256xbf16>, vector<32x256xf32> -> vector<32x256xf32>
    %c0_3 = arith.constant 0 : index
    %c0_4 = arith.constant 0 : index
    %3 = vector.load %arg3[%c0_3, %c0_4] : memref<32x1xf32, #tpu.memory_space<vmem>>, vector<32x1xf32>
    %4 = vector.broadcast %3 : vector<32x1xf32> to vector<32x256xf32>
    %5 = arith.mulf %2, %4 : vector<32x256xf32>
    %c0_5 = arith.constant 0 : index
    %c0_6 = arith.constant 0 : index
    %6 = vector.load %arg4[%c0_5, %c0_6] : memref<32x1xf32, #tpu.memory_space<vmem>>, vector<32x1xf32>
    %7 = vector.broadcast %6 : vector<32x1xf32> to vector<32x256xf32>
    %8 = arith.addf %5, %7 : vector<32x256xf32>
    %c0_7 = arith.constant 0 : index
    %c0_8 = arith.constant 0 : index
    %9 = vector.load %arg5[%c0_7, %c0_8] : memref<32x256xf32, #tpu.memory_space<vmem>>, vector<32x256xf32>
    tpu.vector_store %arg5[%c0_7, %c0_8], %8 {strides = array<i32>} : memref<32x256xf32, #tpu.memory_space<vmem>>, vector<32x256xf32>,
    return
  }
  func.func @transform_0(%arg0: i32) -> (i32, i32) {
    %c0_i32 = arith.constant 0 : i32
    %c0_i32_0 = arith.constant 0 : i32
    %c0_i32_1 = arith.constant 0 : i32
    return %c0_i32, %c0_i32_0 : i32, i32
  }
  func.func @transform_1(%arg0: i32) -> (i32, i32) {
    %c0_i32 = arith.constant 0 : i32
    %c0_i32_0 = arith.constant 0 : i32
    return %c0_i32, %arg0 : i32, i32
  }
  func.func @transform_2(%arg0: i32) -> (i32, i32) {
    %c0_i32 = arith.constant 0 : i32
    %c0_i32_0 = arith.constant 0 : i32
    %c0_i32_1 = arith.constant 0 : i32
    return %c0_i32, %c0_i32_0 : i32, i32
  }
  func.func @transform_3(%arg0: i32) -> (i32, i32) {
    %c0_i32 = arith.constant 0 : i32
    %c0_i32_0 = arith.constant 0 : i32
    %c0_i32_1 = arith.constant 0 : i32
    return %c0_i32, %c0_i32_0 : i32, i32
  }
  func.func @transform_4(%arg0: i32) -> (i32, i32) {
    %c0_i32 = arith.constant 0 : i32
    %c0_i32_0 = arith.constant 0 : i32
    return %c0_i32, %arg0 : i32, i32
  }
}

module attributes {stable_mosaic.version = 11 : i64} {
  func.func @_conv_mm_kernel(%arg0: i32, %arg1: memref<32x288xbf16, #tpu.memory_space<vmem>>, %arg2: memref<288x256xbf16, #tpu.memory_space<vmem>>, %arg3: memref<32x1xf32, #tpu.memory_space<vmem>>, %arg4: memref<32x1xf32, #tpu.memory_space<vmem>>, %arg5: memref<32x256xf32, #tpu.memory_space<vmem>>, %arg6: memref<32x256xf32, #tpu.memory_space<vmem>>) attributes {dimension_semantics = [#tpu.dimension_semantics<parallel>], iteration_bounds = array<i64: 2>, scalar_prefetch = 0 : i64, scratch_operands = 0 : i64, tpu.core_type = #tpu.core_type<tc>, window_params = [{pipeline_mode = #tpu.pipeline_mode<synchronous>, transform_indices = @transform_0, window_bounds = array<i64: 32, 288>}, {transform_indices = @transform_1, window_bounds = array<i64: 288, 256>}, {pipeline_mode = #tpu.pipeline_mode<synchronous>, transform_indices = @transform_2, window_bounds = array<i64: 32, 1>}, {pipeline_mode = #tpu.pipeline_mode<synchronous>, transform_indices = @transform_3, window_bounds = array<i64: 32, 1>}, {transform_indices = @transform_4, window_bounds = array<i64: 32, 256>}, {transform_indices = @transform_5, window_bounds = array<i64: 32, 256>}]} {
    %c0 = arith.constant 0 : index
    %c0_0 = arith.constant 0 : index
    %0 = vector.load %arg1[%c0, %c0_0] : memref<32x288xbf16, #tpu.memory_space<vmem>>, vector<32x288xbf16>
    %c0_1 = arith.constant 0 : index
    %c0_2 = arith.constant 0 : index
    %1 = vector.load %arg2[%c0_1, %c0_2] : memref<288x256xbf16, #tpu.memory_space<vmem>>, vector<288x256xbf16>
    %cst = arith.constant dense<0.000000e+00> : vector<32x256xf32>
    %2 = tpu.matmul %0, %1, %cst {dimension_numbers = #tpu.dot_dimension_numbers<[1], [0], [0], [1], [0, 0, 1, 1], [], []>} : vector<32x288xbf16>, vector<288x256xbf16>, vector<32x256xf32> -> vector<32x256xf32>
    %c0_3 = arith.constant 0 : index
    %c0_4 = arith.constant 0 : index
    %3 = vector.load %arg3[%c0_3, %c0_4] : memref<32x1xf32, #tpu.memory_space<vmem>>, vector<32x1xf32>
    %4 = vector.broadcast %3 : vector<32x1xf32> to vector<32x256xf32>
    %5 = arith.mulf %2, %4 : vector<32x256xf32>
    %c0_5 = arith.constant 0 : index
    %c0_6 = arith.constant 0 : index
    %6 = vector.load %arg4[%c0_5, %c0_6] : memref<32x1xf32, #tpu.memory_space<vmem>>, vector<32x1xf32>
    %7 = vector.broadcast %6 : vector<32x1xf32> to vector<32x256xf32>
    %8 = arith.addf %5, %7 : vector<32x256xf32>
    %c0_7 = arith.constant 0 : index
    %c0_8 = arith.constant 0 : index
    %9 = vector.load %arg5[%c0_7, %c0_8] : memref<32x256xf32, #tpu.memory_space<vmem>>, vector<32x256xf32>
    %10 = arith.addf %8, %9 : vector<32x256xf32>
    %cst_9 = arith.constant 0.000000e+00 : f32
    %11 = vector.broadcast %cst_9 : f32 to vector<32x256xf32>
    %12 = arith.maximumf %10, %11 : vector<32x256xf32>
    %c0_10 = arith.constant 0 : index
    %c0_11 = arith.constant 0 : index
    %13 = vector.load %arg6[%c0_10, %c0_11] : memref<32x256xf32, #tpu.memory_space<vmem>>, vector<32x256xf32>
    tpu.vector_store %arg6[%c0_10, %c0_11], %12 {strides = array<i32>} : memref<32x256xf32, #tpu.memory_space<vmem>>, vector<32x256xf32>,
    return
  }
  func.func @transform_0(%arg0: i32) -> (i32, i32) {
    %c0_i32 = arith.constant 0 : i32
    %c0_i32_0 = arith.constant 0 : i32
    %c0_i32_1 = arith.constant 0 : i32
    return %c0_i32, %c0_i32_0 : i32, i32
  }
  func.func @transform_1(%arg0: i32) -> (i32, i32) {
    %c0_i32 = arith.constant 0 : i32
    %c0_i32_0 = arith.constant 0 : i32
    return %c0_i32, %arg0 : i32, i32
  }
  func.func @transform_2(%arg0: i32) -> (i32, i32) {
    %c0_i32 = arith.constant 0 : i32
    %c0_i32_0 = arith.constant 0 : i32
    %c0_i32_1 = arith.constant 0 : i32
    return %c0_i32, %c0_i32_0 : i32, i32
  }
  func.func @transform_3(%arg0: i32) -> (i32, i32) {
    %c0_i32 = arith.constant 0 : i32
    %c0_i32_0 = arith.constant 0 : i32
    %c0_i32_1 = arith.constant 0 : i32
    return %c0_i32, %c0_i32_0 : i32, i32
  }
  func.func @transform_4(%arg0: i32) -> (i32, i32) {
    %c0_i32 = arith.constant 0 : i32
    %c0_i32_0 = arith.constant 0 : i32
    return %c0_i32, %arg0 : i32, i32
  }
  func.func @transform_5(%arg0: i32) -> (i32, i32) {
    %c0_i32 = arith.constant 0 : i32
    %c0_i32_0 = arith.constant 0 : i32
    return %c0_i32, %arg0 : i32, i32
  }
}

module attributes {stable_mosaic.version = 11 : i64} {
  func.func @_conv_mm_kernel(%arg0: i32, %arg1: memref<32x288xbf16, #tpu.memory_space<vmem>>, %arg2: memref<288x256xbf16, #tpu.memory_space<vmem>>, %arg3: memref<32x1xf32, #tpu.memory_space<vmem>>, %arg4: memref<32x1xf32, #tpu.memory_space<vmem>>, %arg5: memref<32x256xf32, #tpu.memory_space<vmem>>) attributes {dimension_semantics = [#tpu.dimension_semantics<parallel>], iteration_bounds = array<i64: 2>, scalar_prefetch = 0 : i64, scratch_operands = 0 : i64, tpu.core_type = #tpu.core_type<tc>, window_params = [{pipeline_mode = #tpu.pipeline_mode<synchronous>, transform_indices = @transform_0, window_bounds = array<i64: 32, 288>}, {transform_indices = @transform_1, window_bounds = array<i64: 288, 256>}, {pipeline_mode = #tpu.pipeline_mode<synchronous>, transform_indices = @transform_2, window_bounds = array<i64: 32, 1>}, {pipeline_mode = #tpu.pipeline_mode<synchronous>, transform_indices = @transform_3, window_bounds = array<i64: 32, 1>}, {transform_indices = @transform_4, window_bounds = array<i64: 32, 256>}]} {
    %c0 = arith.constant 0 : index
    %c0_0 = arith.constant 0 : index
    %0 = vector.load %arg1[%c0, %c0_0] : memref<32x288xbf16, #tpu.memory_space<vmem>>, vector<32x288xbf16>
    %c0_1 = arith.constant 0 : index
    %c0_2 = arith.constant 0 : index
    %1 = vector.load %arg2[%c0_1, %c0_2] : memref<288x256xbf16, #tpu.memory_space<vmem>>, vector<288x256xbf16>
    %cst = arith.constant dense<0.000000e+00> : vector<32x256xf32>
    %2 = tpu.matmul %0, %1, %cst {dimension_numbers = #tpu.dot_dimension_numbers<[1], [0], [0], [1], [0, 0, 1, 1], [], []>} : vector<32x288xbf16>, vector<288x256xbf16>, vector<32x256xf32> -> vector<32x256xf32>
    %c0_3 = arith.constant 0 : index
    %c0_4 = arith.constant 0 : index
    %3 = vector.load %arg3[%c0_3, %c0_4] : memref<32x1xf32, #tpu.memory_space<vmem>>, vector<32x1xf32>
    %4 = vector.broadcast %3 : vector<32x1xf32> to vector<32x256xf32>
    %5 = arith.mulf %2, %4 : vector<32x256xf32>
    %c0_5 = arith.constant 0 : index
    %c0_6 = arith.constant 0 : index
    %6 = vector.load %arg4[%c0_5, %c0_6] : memref<32x1xf32, #tpu.memory_space<vmem>>, vector<32x1xf32>
    %7 = vector.broadcast %6 : vector<32x1xf32> to vector<32x256xf32>
    %8 = arith.addf %5, %7 : vector<32x256xf32>
    %cst_7 = arith.constant 0.000000e+00 : f32
    %9 = vector.broadcast %cst_7 : f32 to vector<32x256xf32>
    %10 = arith.maximumf %8, %9 : vector<32x256xf32>
    %c0_8 = arith.constant 0 : index
    %c0_9 = arith.constant 0 : index
    %11 = vector.load %arg5[%c0_8, %c0_9] : memref<32x256xf32, #tpu.memory_space<vmem>>, vector<32x256xf32>
    tpu.vector_store %arg5[%c0_8, %c0_9], %10 {strides = array<i32>} : memref<32x256xf32, #tpu.memory_space<vmem>>, vector<32x256xf32>,
    return
  }
  func.func @transform_0(%arg0: i32) -> (i32, i32) {
    %c0_i32 = arith.constant 0 : i32
    %c0_i32_0 = arith.constant 0 : i32
    %c0_i32_1 = arith.constant 0 : i32
    return %c0_i32, %c0_i32_0 : i32, i32
  }
  func.func @transform_1(%arg0: i32) -> (i32, i32) {
    %c0_i32 = arith.constant 0 : i32
    %c0_i32_0 = arith.constant 0 : i32
    return %c0_i32, %arg0 : i32, i32
  }
  func.func @transform_2(%arg0: i32) -> (i32, i32) {
    %c0_i32 = arith.constant 0 : i32
    %c0_i32_0 = arith.constant 0 : i32
    %c0_i32_1 = arith.constant 0 : i32
    return %c0_i32, %c0_i32_0 : i32, i32
  }
  func.func @transform_3(%arg0: i32) -> (i32, i32) {
    %c0_i32 = arith.constant 0 : i32
    %c0_i32_0 = arith.constant 0 : i32
    %c0_i32_1 = arith.constant 0 : i32
    return %c0_i32, %c0_i32_0 : i32, i32
  }
  func.func @transform_4(%arg0: i32) -> (i32, i32) {
    %c0_i32 = arith.constant 0 : i32
    %c0_i32_0 = arith.constant 0 : i32
    return %c0_i32, %arg0 : i32, i32
  }
}

module attributes {stable_mosaic.version = 11 : i64} {
  func.func @_conv_mm_kernel(%arg0: i32, %arg1: memref<64x288xbf16, #tpu.memory_space<vmem>>, %arg2: memref<288x128xbf16, #tpu.memory_space<vmem>>, %arg3: memref<64x1xf32, #tpu.memory_space<vmem>>, %arg4: memref<64x1xf32, #tpu.memory_space<vmem>>, %arg5: memref<64x128xf32, #tpu.memory_space<vmem>>) attributes {dimension_semantics = [#tpu.dimension_semantics<parallel>], iteration_bounds = array<i64: 1>, scalar_prefetch = 0 : i64, scratch_operands = 0 : i64, tpu.core_type = #tpu.core_type<tc>, window_params = [{pipeline_mode = #tpu.pipeline_mode<synchronous>, transform_indices = @transform_0, window_bounds = array<i64: 64, 288>}, {transform_indices = @transform_1, window_bounds = array<i64: 288, 128>}, {pipeline_mode = #tpu.pipeline_mode<synchronous>, transform_indices = @transform_2, window_bounds = array<i64: 64, 1>}, {pipeline_mode = #tpu.pipeline_mode<synchronous>, transform_indices = @transform_3, window_bounds = array<i64: 64, 1>}, {transform_indices = @transform_4, window_bounds = array<i64: 64, 128>}]} {
    %c0 = arith.constant 0 : index
    %c0_0 = arith.constant 0 : index
    %0 = vector.load %arg1[%c0, %c0_0] : memref<64x288xbf16, #tpu.memory_space<vmem>>, vector<64x288xbf16>
    %c0_1 = arith.constant 0 : index
    %c0_2 = arith.constant 0 : index
    %1 = vector.load %arg2[%c0_1, %c0_2] : memref<288x128xbf16, #tpu.memory_space<vmem>>, vector<288x128xbf16>
    %cst = arith.constant dense<0.000000e+00> : vector<64x128xf32>
    %2 = tpu.matmul %0, %1, %cst {dimension_numbers = #tpu.dot_dimension_numbers<[1], [0], [0], [1], [0, 0, 1, 1], [], []>} : vector<64x288xbf16>, vector<288x128xbf16>, vector<64x128xf32> -> vector<64x128xf32>
    %c0_3 = arith.constant 0 : index
    %c0_4 = arith.constant 0 : index
    %3 = vector.load %arg3[%c0_3, %c0_4] : memref<64x1xf32, #tpu.memory_space<vmem>>, vector<64x1xf32>
    %4 = vector.broadcast %3 : vector<64x1xf32> to vector<64x128xf32>
    %5 = arith.mulf %2, %4 : vector<64x128xf32>
    %c0_5 = arith.constant 0 : index
    %c0_6 = arith.constant 0 : index
    %6 = vector.load %arg4[%c0_5, %c0_6] : memref<64x1xf32, #tpu.memory_space<vmem>>, vector<64x1xf32>
    %7 = vector.broadcast %6 : vector<64x1xf32> to vector<64x128xf32>
    %8 = arith.addf %5, %7 : vector<64x128xf32>
    %cst_7 = arith.constant 0.000000e+00 : f32
    %9 = vector.broadcast %cst_7 : f32 to vector<64x128xf32>
    %10 = arith.maximumf %8, %9 : vector<64x128xf32>
    %c0_8 = arith.constant 0 : index
    %c0_9 = arith.constant 0 : index
    %11 = vector.load %arg5[%c0_8, %c0_9] : memref<64x128xf32, #tpu.memory_space<vmem>>, vector<64x128xf32>
    tpu.vector_store %arg5[%c0_8, %c0_9], %10 {strides = array<i32>} : memref<64x128xf32, #tpu.memory_space<vmem>>, vector<64x128xf32>,
    return
  }
  func.func @transform_0(%arg0: i32) -> (i32, i32) {
    %c0_i32 = arith.constant 0 : i32
    %c0_i32_0 = arith.constant 0 : i32
    %c0_i32_1 = arith.constant 0 : i32
    return %c0_i32, %c0_i32_0 : i32, i32
  }
  func.func @transform_1(%arg0: i32) -> (i32, i32) {
    %c0_i32 = arith.constant 0 : i32
    %c0_i32_0 = arith.constant 0 : i32
    return %c0_i32, %arg0 : i32, i32
  }
  func.func @transform_2(%arg0: i32) -> (i32, i32) {
    %c0_i32 = arith.constant 0 : i32
    %c0_i32_0 = arith.constant 0 : i32
    %c0_i32_1 = arith.constant 0 : i32
    return %c0_i32, %c0_i32_0 : i32, i32
  }
  func.func @transform_3(%arg0: i32) -> (i32, i32) {
    %c0_i32 = arith.constant 0 : i32
    %c0_i32_0 = arith.constant 0 : i32
    %c0_i32_1 = arith.constant 0 : i32
    return %c0_i32, %c0_i32_0 : i32, i32
  }
  func.func @transform_4(%arg0: i32) -> (i32, i32) {
    %c0_i32 = arith.constant 0 : i32
    %c0_i32_0 = arith.constant 0 : i32
    return %c0_i32, %arg0 : i32, i32
  }
}

module attributes {stable_mosaic.version = 11 : i64} {
  func.func @_conv_mm_kernel(%arg0: i32, %arg1: memref<64x32xbf16, #tpu.memory_space<vmem>>, %arg2: memref<32x128xbf16, #tpu.memory_space<vmem>>, %arg3: memref<64x1xf32, #tpu.memory_space<vmem>>, %arg4: memref<64x1xf32, #tpu.memory_space<vmem>>, %arg5: memref<64x128xf32, #tpu.memory_space<vmem>>) attributes {dimension_semantics = [#tpu.dimension_semantics<parallel>], iteration_bounds = array<i64: 1>, scalar_prefetch = 0 : i64, scratch_operands = 0 : i64, tpu.core_type = #tpu.core_type<tc>, window_params = [{pipeline_mode = #tpu.pipeline_mode<synchronous>, transform_indices = @transform_0, window_bounds = array<i64: 64, 32>}, {transform_indices = @transform_1, window_bounds = array<i64: 32, 128>}, {pipeline_mode = #tpu.pipeline_mode<synchronous>, transform_indices = @transform_2, window_bounds = array<i64: 64, 1>}, {pipeline_mode = #tpu.pipeline_mode<synchronous>, transform_indices = @transform_3, window_bounds = array<i64: 64, 1>}, {transform_indices = @transform_4, window_bounds = array<i64: 64, 128>}]} {
    %c0 = arith.constant 0 : index
    %c0_0 = arith.constant 0 : index
    %0 = vector.load %arg1[%c0, %c0_0] : memref<64x32xbf16, #tpu.memory_space<vmem>>, vector<64x32xbf16>
    %c0_1 = arith.constant 0 : index
    %c0_2 = arith.constant 0 : index
    %1 = vector.load %arg2[%c0_1, %c0_2] : memref<32x128xbf16, #tpu.memory_space<vmem>>, vector<32x128xbf16>
    %cst = arith.constant dense<0.000000e+00> : vector<64x128xf32>
    %2 = tpu.matmul %0, %1, %cst {dimension_numbers = #tpu.dot_dimension_numbers<[1], [0], [0], [1], [0, 0, 1, 1], [], []>} : vector<64x32xbf16>, vector<32x128xbf16>, vector<64x128xf32> -> vector<64x128xf32>
    %c0_3 = arith.constant 0 : index
    %c0_4 = arith.constant 0 : index
    %3 = vector.load %arg3[%c0_3, %c0_4] : memref<64x1xf32, #tpu.memory_space<vmem>>, vector<64x1xf32>
    %4 = vector.broadcast %3 : vector<64x1xf32> to vector<64x128xf32>
    %5 = arith.mulf %2, %4 : vector<64x128xf32>
    %c0_5 = arith.constant 0 : index
    %c0_6 = arith.constant 0 : index
    %6 = vector.load %arg4[%c0_5, %c0_6] : memref<64x1xf32, #tpu.memory_space<vmem>>, vector<64x1xf32>
    %7 = vector.broadcast %6 : vector<64x1xf32> to vector<64x128xf32>
    %8 = arith.addf %5, %7 : vector<64x128xf32>
    %c0_7 = arith.constant 0 : index
    %c0_8 = arith.constant 0 : index
    %9 = vector.load %arg5[%c0_7, %c0_8] : memref<64x128xf32, #tpu.memory_space<vmem>>, vector<64x128xf32>
    tpu.vector_store %arg5[%c0_7, %c0_8], %8 {strides = array<i32>} : memref<64x128xf32, #tpu.memory_space<vmem>>, vector<64x128xf32>,
    return
  }
  func.func @transform_0(%arg0: i32) -> (i32, i32) {
    %c0_i32 = arith.constant 0 : i32
    %c0_i32_0 = arith.constant 0 : i32
    %c0_i32_1 = arith.constant 0 : i32
    return %c0_i32, %c0_i32_0 : i32, i32
  }
  func.func @transform_1(%arg0: i32) -> (i32, i32) {
    %c0_i32 = arith.constant 0 : i32
    %c0_i32_0 = arith.constant 0 : i32
    return %c0_i32, %arg0 : i32, i32
  }
  func.func @transform_2(%arg0: i32) -> (i32, i32) {
    %c0_i32 = arith.constant 0 : i32
    %c0_i32_0 = arith.constant 0 : i32
    %c0_i32_1 = arith.constant 0 : i32
    return %c0_i32, %c0_i32_0 : i32, i32
  }
  func.func @transform_3(%arg0: i32) -> (i32, i32) {
    %c0_i32 = arith.constant 0 : i32
    %c0_i32_0 = arith.constant 0 : i32
    %c0_i32_1 = arith.constant 0 : i32
    return %c0_i32, %c0_i32_0 : i32, i32
  }
  func.func @transform_4(%arg0: i32) -> (i32, i32) {
    %c0_i32 = arith.constant 0 : i32
    %c0_i32_0 = arith.constant 0 : i32
    return %c0_i32, %arg0 : i32, i32
  }
}

module attributes {stable_mosaic.version = 11 : i64} {
  func.func @_conv_mm_kernel(%arg0: i32, %arg1: memref<64x576xbf16, #tpu.memory_space<vmem>>, %arg2: memref<576x128xbf16, #tpu.memory_space<vmem>>, %arg3: memref<64x1xf32, #tpu.memory_space<vmem>>, %arg4: memref<64x1xf32, #tpu.memory_space<vmem>>, %arg5: memref<64x128xf32, #tpu.memory_space<vmem>>, %arg6: memref<64x128xf32, #tpu.memory_space<vmem>>) attributes {dimension_semantics = [#tpu.dimension_semantics<parallel>], iteration_bounds = array<i64: 1>, scalar_prefetch = 0 : i64, scratch_operands = 0 : i64, tpu.core_type = #tpu.core_type<tc>, window_params = [{pipeline_mode = #tpu.pipeline_mode<synchronous>, transform_indices = @transform_0, window_bounds = array<i64: 64, 576>}, {transform_indices = @transform_1, window_bounds = array<i64: 576, 128>}, {pipeline_mode = #tpu.pipeline_mode<synchronous>, transform_indices = @transform_2, window_bounds = array<i64: 64, 1>}, {pipeline_mode = #tpu.pipeline_mode<synchronous>, transform_indices = @transform_3, window_bounds = array<i64: 64, 1>}, {transform_indices = @transform_4, window_bounds = array<i64: 64, 128>}, {transform_indices = @transform_5, window_bounds = array<i64: 64, 128>}]} {
    %c0 = arith.constant 0 : index
    %c0_0 = arith.constant 0 : index
    %0 = vector.load %arg1[%c0, %c0_0] : memref<64x576xbf16, #tpu.memory_space<vmem>>, vector<64x576xbf16>
    %c0_1 = arith.constant 0 : index
    %c0_2 = arith.constant 0 : index
    %1 = vector.load %arg2[%c0_1, %c0_2] : memref<576x128xbf16, #tpu.memory_space<vmem>>, vector<576x128xbf16>
    %cst = arith.constant dense<0.000000e+00> : vector<64x128xf32>
    %2 = tpu.matmul %0, %1, %cst {dimension_numbers = #tpu.dot_dimension_numbers<[1], [0], [0], [1], [0, 0, 1, 1], [], []>} : vector<64x576xbf16>, vector<576x128xbf16>, vector<64x128xf32> -> vector<64x128xf32>
    %c0_3 = arith.constant 0 : index
    %c0_4 = arith.constant 0 : index
    %3 = vector.load %arg3[%c0_3, %c0_4] : memref<64x1xf32, #tpu.memory_space<vmem>>, vector<64x1xf32>
    %4 = vector.broadcast %3 : vector<64x1xf32> to vector<64x128xf32>
    %5 = arith.mulf %2, %4 : vector<64x128xf32>
    %c0_5 = arith.constant 0 : index
    %c0_6 = arith.constant 0 : index
    %6 = vector.load %arg4[%c0_5, %c0_6] : memref<64x1xf32, #tpu.memory_space<vmem>>, vector<64x1xf32>
    %7 = vector.broadcast %6 : vector<64x1xf32> to vector<64x128xf32>
    %8 = arith.addf %5, %7 : vector<64x128xf32>
    %c0_7 = arith.constant 0 : index
    %c0_8 = arith.constant 0 : index
    %9 = vector.load %arg5[%c0_7, %c0_8] : memref<64x128xf32, #tpu.memory_space<vmem>>, vector<64x128xf32>
    %10 = arith.addf %8, %9 : vector<64x128xf32>
    %cst_9 = arith.constant 0.000000e+00 : f32
    %11 = vector.broadcast %cst_9 : f32 to vector<64x128xf32>
    %12 = arith.maximumf %10, %11 : vector<64x128xf32>
    %c0_10 = arith.constant 0 : index
    %c0_11 = arith.constant 0 : index
    %13 = vector.load %arg6[%c0_10, %c0_11] : memref<64x128xf32, #tpu.memory_space<vmem>>, vector<64x128xf32>
    tpu.vector_store %arg6[%c0_10, %c0_11], %12 {strides = array<i32>} : memref<64x128xf32, #tpu.memory_space<vmem>>, vector<64x128xf32>,
    return
  }
  func.func @transform_0(%arg0: i32) -> (i32, i32) {
    %c0_i32 = arith.constant 0 : i32
    %c0_i32_0 = arith.constant 0 : i32
    %c0_i32_1 = arith.constant 0 : i32
    return %c0_i32, %c0_i32_0 : i32, i32
  }
  func.func @transform_1(%arg0: i32) -> (i32, i32) {
    %c0_i32 = arith.constant 0 : i32
    %c0_i32_0 = arith.constant 0 : i32
    return %c0_i32, %arg0 : i32, i32
  }
  func.func @transform_2(%arg0: i32) -> (i32, i32) {
    %c0_i32 = arith.constant 0 : i32
    %c0_i32_0 = arith.constant 0 : i32
    %c0_i32_1 = arith.constant 0 : i32
    return %c0_i32, %c0_i32_0 : i32, i32
  }
  func.func @transform_3(%arg0: i32) -> (i32, i32) {
    %c0_i32 = arith.constant 0 : i32
    %c0_i32_0 = arith.constant 0 : i32
    %c0_i32_1 = arith.constant 0 : i32
    return %c0_i32, %c0_i32_0 : i32, i32
  }
  func.func @transform_4(%arg0: i32) -> (i32, i32) {
    %c0_i32 = arith.constant 0 : i32
    %c0_i32_0 = arith.constant 0 : i32
    return %c0_i32, %arg0 : i32, i32
  }
  func.func @transform_5(%arg0: i32) -> (i32, i32) {
    %c0_i32 = arith.constant 0 : i32
    %c0_i32_0 = arith.constant 0 : i32
    return %c0_i32, %arg0 : i32, i32
  }
}

module attributes {stable_mosaic.version = 11 : i64} {
  func.func @_conv_mm_kernel(%arg0: i32, %arg1: memref<64x576xbf16, #tpu.memory_space<vmem>>, %arg2: memref<576x128xbf16, #tpu.memory_space<vmem>>, %arg3: memref<64x1xf32, #tpu.memory_space<vmem>>, %arg4: memref<64x1xf32, #tpu.memory_space<vmem>>, %arg5: memref<64x128xf32, #tpu.memory_space<vmem>>) attributes {dimension_semantics = [#tpu.dimension_semantics<parallel>], iteration_bounds = array<i64: 1>, scalar_prefetch = 0 : i64, scratch_operands = 0 : i64, tpu.core_type = #tpu.core_type<tc>, window_params = [{pipeline_mode = #tpu.pipeline_mode<synchronous>, transform_indices = @transform_0, window_bounds = array<i64: 64, 576>}, {transform_indices = @transform_1, window_bounds = array<i64: 576, 128>}, {pipeline_mode = #tpu.pipeline_mode<synchronous>, transform_indices = @transform_2, window_bounds = array<i64: 64, 1>}, {pipeline_mode = #tpu.pipeline_mode<synchronous>, transform_indices = @transform_3, window_bounds = array<i64: 64, 1>}, {transform_indices = @transform_4, window_bounds = array<i64: 64, 128>}]} {
    %c0 = arith.constant 0 : index
    %c0_0 = arith.constant 0 : index
    %0 = vector.load %arg1[%c0, %c0_0] : memref<64x576xbf16, #tpu.memory_space<vmem>>, vector<64x576xbf16>
    %c0_1 = arith.constant 0 : index
    %c0_2 = arith.constant 0 : index
    %1 = vector.load %arg2[%c0_1, %c0_2] : memref<576x128xbf16, #tpu.memory_space<vmem>>, vector<576x128xbf16>
    %cst = arith.constant dense<0.000000e+00> : vector<64x128xf32>
    %2 = tpu.matmul %0, %1, %cst {dimension_numbers = #tpu.dot_dimension_numbers<[1], [0], [0], [1], [0, 0, 1, 1], [], []>} : vector<64x576xbf16>, vector<576x128xbf16>, vector<64x128xf32> -> vector<64x128xf32>
    %c0_3 = arith.constant 0 : index
    %c0_4 = arith.constant 0 : index
    %3 = vector.load %arg3[%c0_3, %c0_4] : memref<64x1xf32, #tpu.memory_space<vmem>>, vector<64x1xf32>
    %4 = vector.broadcast %3 : vector<64x1xf32> to vector<64x128xf32>
    %5 = arith.mulf %2, %4 : vector<64x128xf32>
    %c0_5 = arith.constant 0 : index
    %c0_6 = arith.constant 0 : index
    %6 = vector.load %arg4[%c0_5, %c0_6] : memref<64x1xf32, #tpu.memory_space<vmem>>, vector<64x1xf32>
    %7 = vector.broadcast %6 : vector<64x1xf32> to vector<64x128xf32>
    %8 = arith.addf %5, %7 : vector<64x128xf32>
    %cst_7 = arith.constant 0.000000e+00 : f32
    %9 = vector.broadcast %cst_7 : f32 to vector<64x128xf32>
    %10 = arith.maximumf %8, %9 : vector<64x128xf32>
    %c0_8 = arith.constant 0 : index
    %c0_9 = arith.constant 0 : index
    %11 = vector.load %arg5[%c0_8, %c0_9] : memref<64x128xf32, #tpu.memory_space<vmem>>, vector<64x128xf32>
    tpu.vector_store %arg5[%c0_8, %c0_9], %10 {strides = array<i32>} : memref<64x128xf32, #tpu.memory_space<vmem>>, vector<64x128xf32>,
    return
  }
  func.func @transform_0(%arg0: i32) -> (i32, i32) {
    %c0_i32 = arith.constant 0 : i32
    %c0_i32_0 = arith.constant 0 : i32
    %c0_i32_1 = arith.constant 0 : i32
    return %c0_i32, %c0_i32_0 : i32, i32
  }
  func.func @transform_1(%arg0: i32) -> (i32, i32) {
    %c0_i32 = arith.constant 0 : i32
    %c0_i32_0 = arith.constant 0 : i32
    return %c0_i32, %arg0 : i32, i32
  }
  func.func @transform_2(%arg0: i32) -> (i32, i32) {
    %c0_i32 = arith.constant 0 : i32
    %c0_i32_0 = arith.constant 0 : i32
    %c0_i32_1 = arith.constant 0 : i32
    return %c0_i32, %c0_i32_0 : i32, i32
  }
  func.func @transform_3(%arg0: i32) -> (i32, i32) {
    %c0_i32 = arith.constant 0 : i32
    %c0_i32_0 = arith.constant 0 : i32
    %c0_i32_1 = arith.constant 0 : i32
    return %c0_i32, %c0_i32_0 : i32, i32
  }
  func.func @transform_4(%arg0: i32) -> (i32, i32) {
    %c0_i32 = arith.constant 0 : i32
    %c0_i32_0 = arith.constant 0 : i32
    return %c0_i32, %arg0 : i32, i32
  }
}

module attributes {stable_mosaic.version = 11 : i64} {
  func.func @_pool_fc_kernel(%arg0: memref<64x128xf32, #tpu.memory_space<vmem>>, %arg1: memref<128x2xf32, #tpu.memory_space<vmem>>, %arg2: memref<10x64xf32, #tpu.memory_space<vmem>>, %arg3: memref<10x1xf32, #tpu.memory_space<vmem>>, %arg4: memref<10x2xf32, #tpu.memory_space<vmem>>) attributes {dimension_semantics = [], scalar_prefetch = 0 : i64, scratch_operands = 0 : i64, tpu.core_type = #tpu.core_type<tc>} {
    %c0 = arith.constant 0 : index
    %c0_0 = arith.constant 0 : index
    %0 = vector.load %arg0[%c0, %c0_0] : memref<64x128xf32, #tpu.memory_space<vmem>>, vector<64x128xf32>
    %c0_1 = arith.constant 0 : index
    %c0_2 = arith.constant 0 : index
    %1 = vector.load %arg1[%c0_1, %c0_2] : memref<128x2xf32, #tpu.memory_space<vmem>>, vector<128x2xf32>
    %cst = arith.constant dense<0.000000e+00> : vector<64x2xf32>
    %2 = tpu.matmul %0, %1, %cst {dimension_numbers = #tpu.dot_dimension_numbers<[1], [0], [0], [1], [0, 0, 1, 1], [], []>} : vector<64x128xf32>, vector<128x2xf32>, vector<64x2xf32> -> vector<64x2xf32>
    %c0_3 = arith.constant 0 : index
    %c0_4 = arith.constant 0 : index
    %3 = vector.load %arg2[%c0_3, %c0_4] : memref<10x64xf32, #tpu.memory_space<vmem>>, vector<10x64xf32>
    %cst_5 = arith.constant dense<0.000000e+00> : vector<10x2xf32>
    %4 = tpu.matmul %3, %2, %cst_5 {dimension_numbers = #tpu.dot_dimension_numbers<[1], [0], [0], [1], [0, 0, 1, 1], [], []>} : vector<10x64xf32>, vector<64x2xf32>, vector<10x2xf32> -> vector<10x2xf32>
    %c0_6 = arith.constant 0 : index
    %c0_7 = arith.constant 0 : index
    %5 = vector.load %arg3[%c0_6, %c0_7] : memref<10x1xf32, #tpu.memory_space<vmem>>, vector<10x1xf32>
    %6 = vector.broadcast %5 : vector<10x1xf32> to vector<10x2xf32>
    %7 = arith.addf %4, %6 : vector<10x2xf32>
    %c0_8 = arith.constant 0 : index
    %c0_9 = arith.constant 0 : index
    %8 = vector.load %arg4[%c0_8, %c0_9] : memref<10x2xf32, #tpu.memory_space<vmem>>, vector<10x2xf32>
    tpu.vector_store %arg4[%c0_8, %c0_9], %7 {strides = array<i32>} : memref<10x2xf32, #tpu.memory_space<vmem>>, vector<10x2xf32>,
    return
  }
}

</mosaic_0001>

<bundles_post_ra>
// kernel: resnet20_forward.22
= control target key start
LH: loop header
LB: loop body
LE: loop exit
PB: predicated region body
PF: predicated region fallthrough
CT: control target
= control target key end

     0   :  { %s863_s15 = smov 0   ;;  %s865_s16 = smov 0   ;;  %s1042_s0 = inlined_call_operand.vmem [shape: bf16[16,27], index: 0, kind: input, shape index: {}]   ;;  %s1043_s1 = inlined_call_operand.vmem [shape: bf16[27,2048], index: 1, kind: input, shape index: {}]   ;;  %s1044_s2 = inlined_call_operand.vmem [shape: f32[16,1], index: 2, kind: input, shape index: {}]   ;;  %s1045_s3 = inlined_call_operand.vmem [shape: f32[16,1], index: 3, kind: input, shape index: {}]   ;;  %s1046_s4 = inlined_call_operand.vmem [shape: f32[16,2048], index: 4, kind: output, shape index: {}]  }
   0x1   :  { %s867_s17 = smov 0  }
   0x2 LB: > { %s745_s18 = sadd.s32 4294967295, %s834_s17   ;;  %s880_s19 = sadd.s32 1, %s834_s17   ;;  %s834_s17 = sphi %s867_s17, %s1050_s17   ;;  %s830_s16 = sphi %s865_s16, %s1049_s16   ;;  %s826_s15 = sphi %s863_s15, %s1048_s15  }
   0x3   : > { %s39_s20 = ssub.s32 %s834_s17, %s880_s19  ;;  %s42_s21 = sadd.s32 1, %s830_s16 }
   0x4   : > { %p40_p0 = scmp.eq.s32.totalorder %s39_s20, 0  ;;  %p49_p1 = scmp.ne.s32.totalorder %s830_s16, %s826_s15 }
   0x5   : > { %p50_p2 = scmp.eq.s32.totalorder %s834_s17, 0  ;;  %p121_p3 = scmp.eq.s32.totalorder %s745_s18, 1 }
   0x6   : > { %s891_s22 = scalar_select %p40_p0, %s830_s16, %s42_s21  }
   0x7   : > { %p51_p4 = por %p50_p2, %p49_p1  ;;  %p893_p5 = por %p121_p3, %p49_p1 }
   0x8   : > { %p748_p6 = scmp.ge.s32.totalorder %s834_s17, 2 }
   0xa   : > { %152 = sbr.rel (%p748_p6) target bundleno = 27 (0x1b), region = 28 }
   0xf   : > { %155 = sbr.rel (!%p51_p4) target bundleno = 27 (0x1b), region = 32  ;;  %s157_s24 = sand.u32 (%p51_p4), 1, %s830_s16  }
  0x10   : > { %s781_s25 = sshll.u32 (%p51_p4), %s834_s17, 5  ;;  %s749_s26 = sshll.u32 (%p51_p4), %s157_s24, 7 }
  0x11   : > { %s903_s29 = scalar_lea.vmem (%p51_p4), %s1043_s1, %s781_s25  ;;  %s159_s30 = scalar_lea.vmem (%p51_p4), [#allocation2], %s749_s26 }
  0x12   : > { %v175_v0 = vld [vmem:[%s903_s29] sm:$0xff] (%p51_p4)  ;;  %v177_v1 = vld [vmem:[%s903_s29 + $0x8] sm:$0xff] (%p51_p4)  ;;  %v179_v2 = vld [vmem:[%s903_s29 + $0x10] sm:$0xff] (%p51_p4) }
  0x13   : > { %176 = vst [vmem:[%s159_s30] sm:$0xff] (%p51_p4), %v175_v0  ;;  %178 = vst [vmem:[%s159_s30 + $0x8] sm:$0xff] (%p51_p4), %v177_v1  ;;  %v181_v3 = vld [vmem:[%s903_s29 + $0x18] sm:$0xff] (%p51_p4)  ;;  %v183_v4 = vld [vmem:[%s903_s29 + $0x40] sm:$0xff] (%p51_p4) }
  0x14   : > { %180 = vst [vmem:[%s159_s30 + $0x10] sm:$0xff] %v179_v2  ;;  %v185_v5 = vld [vmem:[%s903_s29 + $0x48] sm:$0xff]  ;;  %182 = vst [vmem:[%s159_s30 + $0x18] sm:$0xff] %v181_v3  ;;  %v187_v6 = vld [vmem:[%s903_s29 + $0x50] sm:$0xff] }
  0x15   : > { %184 = vst [vmem:[%s159_s30 + $0x20] sm:$0xff] %v183_v4  ;;  %186 = vst [vmem:[%s159_s30 + $0x28] sm:$0xff] %v185_v5  ;;  %v189_v7 = vld [vmem:[%s903_s29 + $0x58] sm:$0xff]  ;;  %v191_v8 = vld [vmem:[%s903_s29 + $0x80] sm:$0xff] }
  0x16   : > { %188 = vst [vmem:[%s159_s30 + $0x30] sm:$0xff] %v187_v6  ;;  %190 = vst [vmem:[%s159_s30 + $0x38] sm:$0xff] %v189_v7  ;;  %v193_v9 = vld [vmem:[%s903_s29 + $0x88] sm:$0xff]  ;;  %v195_v10 = vld [vmem:[%s903_s29 + $0x90] sm:$0xff] }
  0x17   : > { %192 = vst [vmem:[%s159_s30 + $0x40] sm:$0xff] %v191_v8  ;;  %v197_v11 = vld [vmem:[%s903_s29 + $0x98] sm:$0xff]  ;;  %194 = vst [vmem:[%s159_s30 + $0x48] sm:$0xff] %v193_v9  ;;  %v199_v12 = vld [vmem:[%s903_s29 + $0xc0] sm:$0xff] }
  0x18   : > { %196 = vst [vmem:[%s159_s30 + $0x50] sm:$0xff] %v195_v10  ;;  %198 = vst [vmem:[%s159_s30 + $0x58] sm:$0xff] %v197_v11  ;;  %v201_v13 = vld [vmem:[%s903_s29 + $0xc8] sm:$0xff]  ;;  %v203_v14 = vld [vmem:[%s903_s29 + $0xd0] sm:$0xff] }
  0x19   : > { %200 = vst [vmem:[%s159_s30 + $0x60] sm:$0xff] %v199_v12  ;;  %202 = vst [vmem:[%s159_s30 + $0x68] sm:$0xff] %v201_v13  ;;  %v205_v15 = vld [vmem:[%s903_s29 + $0xd8] sm:$0xff] }
  0x1a   : > { %204 = vst [vmem:[%s159_s30 + $0x70] sm:$0xff] %v203_v14  ;;  %206 = vst [vmem:[%s159_s30 + $0x78] sm:$0xff] %v205_v15 }
  0x1b PF: > { %p752_p7 = scmp.ge.s32.totalorder %s834_s17, 1  ;;  %p211_p8 = scmp.lt.s32.totalorder %s834_s17, 3 }
  0x1d   : > { %p212_p9 = pnand %p752_p7, %p211_p8 }
  0x1e   : > { %s218_s5 = sand.u32 (!%p212_p9), 1, %s826_s15  }
  0x1f   : > { %215 = sbr.rel (%p212_p9) target bundleno = 274 (0x112), region = 55  ;;  %s924_s6 = sshll.u32 (!%p212_p9), %s218_s5, 7 }
  0x20   : > { %s937_s11 = scalar_lea.vmem (!%p212_p9), [#allocation2], %s924_s6  ;;  %s977_s24 = scalar_lea.vmem (!%p212_p9), [#allocation3], %s924_s6 }
  0x24   : > { %vm344_vm0 = vcmask 1044480   ;;  %vm345_vm1 = vcmask 1045504   ;;  %v836_v16 = vmov 65535   ;;  %v837_v18 = vmov 0   ;;  %v544_v19 = vld [vmem:[%s1044_s2] sm:$0xff]  ;;  %v256_v24 = vld [vmem:[%s937_s11 + $0x48] sm:$0xff] }
  0x25   : > { %v346_v17 = vsel %vm344_vm0, 4294967295, %v836_v16  ;;  %404 = vmatprep.mubr.bf16.mxu0 %v837_v18  ;;  %447 = vmatprep.mubr.bf16.mxu1 %v837_v18  ;;  %v572_v20 = vld [vmem:[%s1045_s3] sm:$0xff]  ;;  %v260_v26 = vld [vmem:[%s937_s11 + $0x68] sm:$0x33]  ;;  %v257_v34 = vld [vmem:[%s937_s11 + $0x50] sm:$0xff]  ;;  %vm340_vm2 = vcmask 220160  }
  0x26   : > { %809 = vset.pattern.permute.xlu0 %v837_v18  ;;  %810 = vset.pattern.permute.xlu1 %v837_v18  ;;  %v255_v21 = vld [vmem:[%s937_s11 + $0x40] sm:$0xff]  ;;  %v347_v23 = vsel %vm345_vm1, %v346_v17, 0  ;;  %v767_v30 = vcombine.high %v256_v24, %v260_v26  ;;  %v766_v31 = vcombine.low %v256_v24, %v260_v26  ;;  %v248_v32 = vld [vmem:[%s937_s11 + $0x8] sm:$0xff]  ;;  %v261_v38 = vld [vmem:[%s937_s11 + $0x70] sm:$0x33]  ;;  %s782_s25 = sshll.u32 (%p893_p5), %s745_s18, 6 }
  0x27   : > { %v259_v22 = vld [vmem:[%s937_s11 + $0x60] sm:$0x33]  ;;  %548 = vperm.xlu0 %809, %v544_v19   ;;  %576 = vperm.xlu1 %810, %v572_v20   ;;  %v252_v33 = vld [vmem:[%s937_s11 + $0x28] sm:$0xff]  ;;  %v258_v39 = vld [vmem:[%s937_s11 + $0x58] sm:$0xff]  ;;  %v769_v44 = vcombine.high %v257_v34, %v261_v38  ;;  %v768_v48 = vcombine.low %v257_v34, %v261_v38  ;;  %s641_s23 = scalar_lea.vmem (%p893_p5), %s1046_s4, %s782_s25 }
  0x28   : > { %v765_v25 = vcombine.high %v255_v21, %v259_v22  ;;  %v764_v27 = vcombine.low %v255_v21, %v259_v22  ;;  %v247_v28 = vld [vmem:[%s937_s11] sm:$0xff]  ;;  %v262_v40 = vld [vmem:[%s937_s11 + $0x78] sm:$0x33]  ;;  %v358_v41 = vand.u32 %v767_v30, %v347_v23  ;;  %v355_v42 = vand.u32 %v766_v31, %v347_v23  ;;  %v545_v46 = vld [vmem:[%s1044_s2 + $0x8] sm:$0xff] }
  0x29   : > { %v251_v29 = vld [vmem:[%s937_s11 + $0x20] sm:$0xff]  ;;  %v759_v43 = vcombine.high %v248_v32, %v252_v33  ;;  %v771_v45 = vcombine.high %v258_v39, %v262_v40  ;;  %v573_v49 = vld [vmem:[%s1045_s3 + $0x8] sm:$0xff]  ;;  %v758_v50 = vcombine.low %v248_v32, %v252_v33  ;;  %v364_v51 = vand.u32 %v769_v44, %v347_v23  ;;  %v249_v54 = vld [vmem:[%s937_s11 + $0x10] sm:$0xff] }
  0x2a   : > { %v352_v35 = vand.u32 %v765_v25, %v347_v23  ;;  %v349_v36 = vand.u32 %v764_v27, %v347_v23  ;;  %v757_v37 = vcombine.high %v247_v28, %v251_v29  ;;  %427 = vmatprep.subr.bf16.mxu1 %v358_v41  ;;  %v756_v47 = vcombine.low %v247_v28, %v251_v29  ;;  %v253_v55 = vld [vmem:[%s937_s11 + $0x30] sm:$0xff]  ;;  %v811_v56 = vld [vmem:[%s1042_s0] sm:$0xff]   ;;  %v250_v57 = vld [vmem:[%s937_s11 + $0x18] sm:$0xff] }
  0x2b   : > { %428 = vmatpush1.bf16.msra.mxu1 %v355_v42  ;;  %v770_v52 = vcombine.low %v258_v39, %v262_v40  ;;  %v370_v53 = vand.u32 %v771_v45, %v347_v23  ;;  %553 = vperm.xlu0 %809, %v545_v46   ;;  %v254_v58 = vld [vmem:[%s937_s11 + $0x38] sm:$0xff]  ;;  %v361_v59 = vand.u32 %v768_v48, %v347_v23 }
  0x2c   : > { %384 = vmatprep.subr.bf16.mxu0 %v352_v35  ;;  %429 = vmatprep.subr.bf16.mxu1 %v759_v43  ;;  %v761_v61 = vcombine.high %v249_v54, %v253_v55  ;;  %v763_v62 = vcombine.high %v250_v57, %v254_v58  ;;  %v760_v63 = vcombine.low %v249_v54, %v253_v55 }
  0x2d   : > { %385 = vmatpush1.bf16.msra.mxu0 %v349_v36  ;;  %581 = vperm.xlu1 %810, %v573_v49   ;;  %v367_v60 = vand.u32 %v770_v52, %v347_v23  ;;  %v762_v0 = vcombine.low %v250_v57, %v254_v58 }
  0x2e   : > { %386 = vmatprep.subr.bf16.mxu0 %v757_v37 }
  0x2f   : > { %430 = vmatpush1.bf16.msra.mxu1 %v758_v50 }
  0x30   : > { %513 = vmatprep.subr.bf16.mxu1 %v370_v53 }
  0x31   : > { %387 = vmatpush1.bf16.msra.mxu0 %v756_v47 }
  0x32   : > { %470 = vmatprep.subr.bf16.mxu0 %v364_v51  ;;  %773 = vmatmul.mubr.msk.bf16.vlgmr.msra.gmra.mxu1 %vm340_vm2, %v811_v56 }
  0x33   : > { %514 = vmatpush1.bf16.msra.mxu1 %v367_v60  ;;  %533 = vmatprep.mubr.bf16.mxu1 %v837_v18 }
  0x34   : > { %772 = vmatmul.mubr.msk.bf16.vlgmr.msra.gmra.mxu0 %vm340_vm2, %v811_v56  ;;  %515 = vmatprep.subr.bf16.mxu1 %v763_v62 }
  0x35   : > { %471 = vmatpush1.bf16.msra.mxu0 %v361_v59  ;;  %490 = vmatprep.mubr.bf16.mxu0 %v837_v18 }
  0x36   : > { %472 = vmatprep.subr.bf16.mxu0 %v761_v61 }
  0x37   : > { %516 = vmatpush1.bf16.msra.mxu1 %v762_v0 }
  0x39   : > { %473 = vmatpush1.bf16.msra.mxu0 %v760_v63 }
  0x3a   : > { %775 = vmatmul.mubr.msk.bf16.vlgmr.msra.gmra.mxu1 %vm340_vm2, %v811_v56 }
  0x3c   : > { %774 = vmatmul.mubr.msk.bf16.vlgmr.msra.gmra.mxu0 %vm340_vm2, %v811_v56 }
  0xa2   : > { %v549_v1 = vpop.permute.xlu0 %548  ;;  %v577_v2 = vpop.permute.xlu1 %576 }
  0xa6   : > { %v970_v8 = vpop.permute.xlu0 %553 }
  0xa8   : > { %v972_v15 = vpop.permute.xlu1 %581 }
  0xf2   : > { %v449_v5 = vpop.f32.mrf.mxu1 }
  0xf3   : > { %v558_v6 = vmul.f32 %v549_v1, %v449_v5 }
  0xf4   : > { %v406_v3 = vpop.f32.mrf.mxu0  ;;  %v451_v11 = vpop.f32.mrf.mxu1 }
  0xf5   : > { %v556_v4 = vmul.f32 %v549_v1, %v406_v3  ;;  %v586_v12 = vadd.f32 %v577_v2, %v558_v6  ;;  %v559_v13 = vmul.f32 %v549_v1, %v451_v11 }
  0xf6   : > { %v408_v7 = vpop.f32.mrf.mxu0  ;;  %v453_v19 = vpop.f32.mrf.mxu1 }
  0xf7   : > { %v584_v9 = vadd.f32 %v577_v2, %v556_v4  ;;  %v557_v10 = vmul.f32 %v549_v1, %v408_v7  ;;  %v602_v20 = vmax.f32 %v586_v12, 0.0  ;;  %v587_v21 = vadd.f32 %v577_v2, %v559_v13 }
  0xf8   : > { %v410_v14 = vpop.f32.mrf.mxu0  ;;  %v566_v22 = vmul.f32 %v970_v8, %v453_v19  ;;  %v455_v27 = vpop.f32.mrf.mxu1 }
  0xf9   : > { %v600_v16 = vmax.f32 %v584_v9, 0.0  ;;  %v585_v17 = vadd.f32 %v577_v2, %v557_v10  ;;  %v564_v18 = vmul.f32 %v970_v8, %v410_v14  ;;  %618 = vst [vmem:[%s977_s24 + $0x10] sm:$0xff] %v602_v20  ;;  %v603_v28 = vmax.f32 %v587_v21, 0.0 }
  0xfa   : > { %v412_v23 = vpop.f32.mrf.mxu0  ;;  %v594_v29 = vadd.f32 %v972_v15, %v566_v22  ;;  %v567_v30 = vmul.f32 %v970_v8, %v455_v27  ;;  %v535_v35 = vpop.f32.mrf.mxu1 }
  0xfb   : > { %616 = vst [vmem:[%s977_s24] sm:$0xff] %v600_v16  ;;  %v601_v24 = vmax.f32 %v585_v17, 0.0  ;;  %v592_v25 = vadd.f32 %v972_v15, %v564_v18  ;;  %v565_v26 = vmul.f32 %v970_v8, %v412_v23  ;;  %619 = vst [vmem:[%s977_s24 + $0x18] sm:$0xff] %v603_v28  ;;  %v562_v38 = vmul.f32 %v549_v1, %v535_v35 }
  0xfc   : > { %v492_v31 = vpop.f32.mrf.mxu0  ;;  %v610_v36 = vmax.f32 %v594_v29, 0.0  ;;  %v595_v37 = vadd.f32 %v972_v15, %v567_v30  ;;  %v537_v43 = vpop.f32.mrf.mxu1 }
  0xfd   : > { %617 = vst [vmem:[%s977_s24 + $0x8] sm:$0xff] %v601_v24  ;;  %v608_v32 = vmax.f32 %v592_v25, 0.0  ;;  %v593_v33 = vadd.f32 %v972_v15, %v565_v26  ;;  %v560_v34 = vmul.f32 %v549_v1, %v492_v31  ;;  %v590_v45 = vadd.f32 %v577_v2, %v562_v38 }
  0xfe   : > { %v494_v39 = vpop.f32.mrf.mxu0  ;;  %626 = vst [vmem:[%s977_s24 + $0x50] sm:$0xff] %v610_v36  ;;  %v611_v44 = vmax.f32 %v595_v37, 0.0  ;;  %v563_v46 = vmul.f32 %v549_v1, %v537_v43  ;;  %v539_v51 = vpop.f32.mrf.mxu1 }
  0xff   : > { %624 = vst [vmem:[%s977_s24 + $0x40] sm:$0xff] %v608_v32  ;;  %v609_v40 = vmax.f32 %v593_v33, 0.0  ;;  %v588_v41 = vadd.f32 %v577_v2, %v560_v34  ;;  %v561_v42 = vmul.f32 %v549_v1, %v494_v39  ;;  %v606_v52 = vmax.f32 %v590_v45, 0.0 }
 0x100   : > { %v496_v47 = vpop.f32.mrf.mxu0  ;;  %627 = vst [vmem:[%s977_s24 + $0x58] sm:$0xff] %v611_v44  ;;  %v591_v53 = vadd.f32 %v577_v2, %v563_v46  ;;  %v570_v54 = vmul.f32 %v970_v8, %v539_v51  ;;  %v541_v59 = vpop.f32.mrf.mxu1  ;;  %v658_v7 = vld [vmem:[%s977_s24 + $0x10] sm:$0xff] (%p893_p5) }
 0x101   : > { %625 = vst [vmem:[%s977_s24 + $0x48] sm:$0xff] %v609_v40  ;;  %v604_v48 = vmax.f32 %v588_v41, 0.0  ;;  %v589_v49 = vadd.f32 %v577_v2, %v561_v42  ;;  %v568_v50 = vmul.f32 %v970_v8, %v496_v47  ;;  %622 = vst [vmem:[%s977_s24 + $0x30] sm:$0xff] %v606_v52  ;;  %v571_v62 = vmul.f32 %v970_v8, %v541_v59 }
 0x102   : > { %v498_v55 = vpop.f32.mrf.mxu0  ;;  %v607_v60 = vmax.f32 %v591_v53, 0.0  ;;  %v598_v61 = vadd.f32 %v972_v15, %v570_v54  ;;  %v654_v5 = vld [vmem:[%s977_s24] sm:$0xff] (%p893_p5)  ;;  %659 = vst [vmem:[%s641_s23 + $0x10] sm:$0xff] (%p893_p5), %v658_v7 }
 0x103   : > { %620 = vst [vmem:[%s977_s24 + $0x20] sm:$0xff] %v604_v48  ;;  %v605_v56 = vmax.f32 %v589_v49, 0.0  ;;  %v596_v57 = vadd.f32 %v972_v15, %v568_v50  ;;  %v569_v58 = vmul.f32 %v970_v8, %v498_v55  ;;  %v599_v2 = vadd.f32 %v972_v15, %v571_v62  ;;  %v660_v8 = vld [vmem:[%s977_s24 + $0x18] sm:$0xff] (%p893_p5)  ;;  %655 = vst [vmem:[%s641_s23] sm:$0xff] (%p893_p5), %v654_v5 }
 0x104   : > { %623 = vst [vmem:[%s977_s24 + $0x38] sm:$0xff] %v607_v60  ;;  %v614_v1 = vmax.f32 %v598_v61, 0.0  ;;  %v656_v6 = vld [vmem:[%s977_s24 + $0x8] sm:$0xff] (%p893_p5)  ;;  %661 = vst [vmem:[%s641_s23 + $0x18] sm:$0xff] (%p893_p5), %v660_v8 }
 0x105   : > { %621 = vst [vmem:[%s977_s24 + $0x28] sm:$0xff] %v605_v56  ;;  %v612_v63 = vmax.f32 %v596_v57, 0.0  ;;  %v597_v0 = vadd.f32 %v972_v15, %v569_v58  ;;  %v615_v4 = vmax.f32 %v599_v2, 0.0  ;;  %638 = sbr.rel (!%p893_p5) target bundleno = 274 (0x112), region = 63  ;;  %657 = vst [vmem:[%s641_s23 + $0x8] sm:$0xff] (%p893_p5), %v656_v6  ;;  %v674_v15 = vld [vmem:[%s977_s24 + $0x50] sm:$0xff] (%p893_p5) }
 0x106   : > { %630 = vst [vmem:[%s977_s24 + $0x70] sm:$0xff] %v614_v1  ;;  %v670_v13 = vld [vmem:[%s977_s24 + $0x40] sm:$0xff] (%p893_p5)  ;;  %675 = vst [vmem:[%s641_s23 + $0x90] sm:$0xff] (%p893_p5), %v674_v15 }
 0x107   : > { %628 = vst [vmem:[%s977_s24 + $0x60] sm:$0xff] %v612_v63  ;;  %v613_v3 = vmax.f32 %v597_v0, 0.0  ;;  %631 = vst [vmem:[%s977_s24 + $0x78] sm:$0xff] %v615_v4  ;;  %v676_v16 = vld [vmem:[%s977_s24 + $0x58] sm:$0xff] (%p893_p5) }
 0x108   : > { %v666_v11 = vld [vmem:[%s977_s24 + $0x30] sm:$0xff] (%p893_p5)  ;;  %671 = vst [vmem:[%s641_s23 + $0x80] sm:$0xff] (%p893_p5), %v670_v13  ;;  %v672_v14 = vld [vmem:[%s977_s24 + $0x48] sm:$0xff] (%p893_p5)  ;;  %677 = vst [vmem:[%s641_s23 + $0x98] sm:$0xff] (%p893_p5), %v676_v16 }
 0x109   : > { %629 = vst [vmem:[%s977_s24 + $0x68] sm:$0xff] %v613_v3  ;;  %667 = vst [vmem:[%s641_s23 + $0x30] sm:$0xff] (%p893_p5), %v666_v11 }
 0x10a   : > { %v662_v9 = vld [vmem:[%s977_s24 + $0x20] sm:$0xff]  ;;  %673 = vst [vmem:[%s641_s23 + $0x88] sm:$0xff] %v672_v14 }
 0x10b   : > { %663 = vst [vmem:[%s641_s23 + $0x20] sm:$0xff] %v662_v9  ;;  %v668_v12 = vld [vmem:[%s977_s24 + $0x38] sm:$0xff] }
 0x10c   : > { %v664_v10 = vld [vmem:[%s977_s24 + $0x28] sm:$0xff]  ;;  %669 = vst [vmem:[%s641_s23 + $0x38] sm:$0xff] %v668_v12 }
 0x10d   : > { %665 = vst [vmem:[%s641_s23 + $0x28] sm:$0xff] %v664_v10  ;;  %v682_v19 = vld [vmem:[%s977_s24 + $0x70] sm:$0xff] }
 0x10e   : > { %v678_v17 = vld [vmem:[%s977_s24 + $0x60] sm:$0xff]  ;;  %683 = vst [vmem:[%s641_s23 + $0xb0] sm:$0xff] %v682_v19  ;;  %v684_v20 = vld [vmem:[%s977_s24 + $0x78] sm:$0xff] }
 0x10f   : > { %679 = vst [vmem:[%s641_s23 + $0xa0] sm:$0xff] %v678_v17  ;;  %685 = vst [vmem:[%s641_s23 + $0xb8] sm:$0xff] %v684_v20 }
 0x110   : > { %v680_v18 = vld [vmem:[%s977_s24 + $0x68] sm:$0xff] }
 0x111   : > { %681 = vst [vmem:[%s641_s23 + $0xa8] sm:$0xff] %v680_v18 }
 0x112 PF: > { %p11_p10 = scmp.ge.s32.totalorder %s880_s19, 4   ;;  %s1048_s15 = smov %s830_s16 }
 0x113   : > { %s1049_s16 = smov %s891_s22  ;;  %s1050_s17 = smov %s880_s19 }
 0x114   :  { %13 = sbr.rel (!%p11_p10) target bundleno = 2 (0x2), region = 117 }

// kernel: resnet20_forward.24
= control target key start
LH: loop header
LB: loop body
LE: loop exit
PB: predicated region body
PF: predicated region fallthrough
CT: control target
= control target key end

     0   :  { %s1510_s18 = smov 0   ;;  %s1512_s19 = smov 0   ;;  %s1957_s0 = inlined_call_operand.vmem [shape: bf16[16,144], index: 0, kind: input, shape index: {}]   ;;  %s1958_s1 = inlined_call_operand.vmem [shape: bf16[144,2048], index: 1, kind: input, shape index: {}]   ;;  %s1959_s2 = inlined_call_operand.vmem [shape: f32[16,1], index: 2, kind: input, shape index: {}]   ;;  %s1960_s3 = inlined_call_operand.vmem [shape: f32[16,1], index: 3, kind: input, shape index: {}]   ;;  %s1961_s4 = inlined_call_operand.vmem [shape: f32[16,2048], index: 4, kind: input, shape index: {}]   ;;  %s1962_s5 = inlined_call_operand.vmem [shape: f32[16,2048], index: 5, kind: output, shape index: {}]  }
   0x1   :  { %s1514_s20 = smov 0  }
   0x2 LB: > { %s1325_s21 = sadd.s32 4294967295, %s1477_s20   ;;  %s1527_s22 = sadd.s32 1, %s1477_s20   ;;  %s1477_s20 = sphi %s1514_s20, %s1967_s20   ;;  %s1473_s19 = sphi %s1512_s19, %s1966_s19   ;;  %s1469_s18 = sphi %s1510_s18, %s1965_s18  }
   0x3   : > { %s40_s23 = ssub.s32 %s1477_s20, %s1527_s22  ;;  %s43_s24 = sadd.s32 1, %s1473_s19 }
   0x4   : > { %p41_p0 = scmp.eq.s32.totalorder %s40_s23, 0  ;;  %p50_p1 = scmp.ne.s32.totalorder %s1473_s19, %s1469_s18 }
   0x5   : > { %p51_p2 = scmp.eq.s32.totalorder %s1477_s20, 0  ;;  %p148_p3 = scmp.eq.s32.totalorder %s1325_s21, 1 }
   0x6   : > { %s1538_s25 = scalar_select %p41_p0, %s1473_s19, %s43_s24  }
   0x7   : > { %p1540_p4 = por %p51_p2, %p50_p1  ;;  %p1544_p5 = por %p148_p3, %p50_p1 }
   0x8   : > { %p1328_p6 = scmp.ge.s32.totalorder %s1477_s20, 2 }
   0xa   : > { %179 = sbr.rel (%p1328_p6) target bundleno = 68 (0x44), region = 28 }
   0xf   : > { %182 = sbr.rel (!%p1540_p4) target bundleno = 56 (0x38), region = 32  ;;  %s184_s28 = sand.u32 (%p1540_p4), 1, %s1473_s19  }
  0x10   : > { %s1420_s29 = sshll.u32 (%p1540_p4), %s1477_s20, 5  ;;  %s1423_s30 = smul.u32 (%p1540_p4), 576, %s184_s28 }
  0x11   : > { %s1556_s8 = scalar_lea.vmem (%p1540_p4), %s1958_s1, %s1420_s29 }
  0x12   : > { %v202_v0 = vld [vmem:[%s1556_s8] sm:$0xff] (%p1540_p4)  ;;  %v204_v1 = vld [vmem:[%s1556_s8 + $0x8] sm:$0xff] (%p1540_p4)  ;;  %v206_v2 = vld [vmem:[%s1556_s8 + $0x10] sm:$0xff] (%p1540_p4)  ;;  %s1564_s9 = scalar_lea.vmem (%p1540_p4), [#allocation2], %s1423_s30 }
  0x13   : > { %v208_v3 = vld [vmem:[%s1556_s8 + $0x18] sm:$0xff] (%p1540_p4)  ;;  %v210_v4 = vld [vmem:[%s1556_s8 + $0x40] sm:$0xff] (%p1540_p4)  ;;  %v212_v5 = vld [vmem:[%s1556_s8 + $0x48] sm:$0xff] (%p1540_p4)  ;;  %203 = vst [vmem:[%s1564_s9] sm:$0xff] (%p1540_p4), %v202_v0 }
  0x14   : > { %205 = vst [vmem:[%s1564_s9 + $0x8] sm:$0xff] %v204_v1  ;;  %207 = vst [vmem:[%s1564_s9 + $0x10] sm:$0xff] %v206_v2  ;;  %v214_v6 = vld [vmem:[%s1556_s8 + $0x50] sm:$0xff]  ;;  %v216_v7 = vld [vmem:[%s1556_s8 + $0x58] sm:$0xff] }
  0x15   : > { %209 = vst [vmem:[%s1564_s9 + $0x18] sm:$0xff] %v208_v3  ;;  %211 = vst [vmem:[%s1564_s9 + $0x20] sm:$0xff] %v210_v4  ;;  %v218_v8 = vld [vmem:[%s1556_s8 + $0x80] sm:$0xff]  ;;  %v220_v9 = vld [vmem:[%s1556_s8 + $0x88] sm:$0xff] }
  0x16   : > { %213 = vst [vmem:[%s1564_s9 + $0x28] sm:$0xff] %v212_v5  ;;  %215 = vst [vmem:[%s1564_s9 + $0x30] sm:$0xff] %v214_v6  ;;  %v222_v10 = vld [vmem:[%s1556_s8 + $0x90] sm:$0xff]  ;;  %v224_v11 = vld [vmem:[%s1556_s8 + $0x98] sm:$0xff] }
  0x17   : > { %217 = vst [vmem:[%s1564_s9 + $0x38] sm:$0xff] %v216_v7  ;;  %219 = vst [vmem:[%s1564_s9 + $0x40] sm:$0xff] %v218_v8  ;;  %v226_v12 = vld [vmem:[%s1556_s8 + $0xc0] sm:$0xff]  ;;  %v228_v13 = vld [vmem:[%s1556_s8 + $0xc8] sm:$0xff] }
  0x18   : > { %221 = vst [vmem:[%s1564_s9 + $0x48] sm:$0xff] %v220_v9  ;;  %223 = vst [vmem:[%s1564_s9 + $0x50] sm:$0xff] %v222_v10  ;;  %v230_v14 = vld [vmem:[%s1556_s8 + $0xd0] sm:$0xff]  ;;  %v232_v15 = vld [vmem:[%s1556_s8 + $0xd8] sm:$0xff] }
  0x19   : > { %225 = vst [vmem:[%s1564_s9 + $0x58] sm:$0xff] %v224_v11  ;;  %227 = vst [vmem:[%s1564_s9 + $0x60] sm:$0xff] %v226_v12  ;;  %v234_v16 = vld [vmem:[%s1556_s8 + $0x100] sm:$0xff]  ;;  %v236_v17 = vld [vmem:[%s1556_s8 + $0x108] sm:$0xff] }
  0x1a   : > { %229 = vst [vmem:[%s1564_s9 + $0x68] sm:$0xff] %v228_v13  ;;  %231 = vst [vmem:[%s1564_s9 + $0x70] sm:$0xff] %v230_v14  ;;  %v238_v18 = vld [vmem:[%s1556_s8 + $0x110] sm:$0xff]  ;;  %v240_v19 = vld [vmem:[%s1556_s8 + $0x118] sm:$0xff] }
  0x1b   : > { %233 = vst [vmem:[%s1564_s9 + $0x78] sm:$0xff] %v232_v15  ;;  %235 = vst [vmem:[%s1564_s9 + $0x80] sm:$0xff] %v234_v16  ;;  %v242_v20 = vld [vmem:[%s1556_s8 + $0x140] sm:$0xff]  ;;  %v244_v21 = vld [vmem:[%s1556_s8 + $0x148] sm:$0xff] }
  0x1c   : > { %237 = vst [vmem:[%s1564_s9 + $0x88] sm:$0xff] %v236_v17  ;;  %239 = vst [vmem:[%s1564_s9 + $0x90] sm:$0xff] %v238_v18  ;;  %v246_v22 = vld [vmem:[%s1556_s8 + $0x150] sm:$0xff]  ;;  %v248_v23 = vld [vmem:[%s1556_s8 + $0x158] sm:$0xff] }
  0x1d   : > { %241 = vst [vmem:[%s1564_s9 + $0x98] sm:$0xff] %v240_v19  ;;  %243 = vst [vmem:[%s1564_s9 + $0xa0] sm:$0xff] %v242_v20  ;;  %v250_v24 = vld [vmem:[%s1556_s8 + $0x180] sm:$0xff]  ;;  %v252_v25 = vld [vmem:[%s1556_s8 + $0x188] sm:$0xff] }
  0x1e   : > { %245 = vst [vmem:[%s1564_s9 + $0xa8] sm:$0xff] %v244_v21  ;;  %247 = vst [vmem:[%s1564_s9 + $0xb0] sm:$0xff] %v246_v22  ;;  %v254_v26 = vld [vmem:[%s1556_s8 + $0x190] sm:$0xff]  ;;  %v256_v27 = vld [vmem:[%s1556_s8 + $0x198] sm:$0xff] }
  0x1f   : > { %249 = vst [vmem:[%s1564_s9 + $0xb8] sm:$0xff] %v248_v23  ;;  %251 = vst [vmem:[%s1564_s9 + $0xc0] sm:$0xff] %v250_v24  ;;  %v258_v28 = vld [vmem:[%s1556_s8 + $0x1c0] sm:$0xff]  ;;  %v260_v29 = vld [vmem:[%s1556_s8 + $0x1c8] sm:$0xff] }
  0x20   : > { %253 = vst [vmem:[%s1564_s9 + $0xc8] sm:$0xff] %v252_v25  ;;  %255 = vst [vmem:[%s1564_s9 + $0xd0] sm:$0xff] %v254_v26  ;;  %v262_v30 = vld [vmem:[%s1556_s8 + $0x1d0] sm:$0xff]  ;;  %v264_v31 = vld [vmem:[%s1556_s8 + $0x1d8] sm:$0xff] }
  0x21   : > { %257 = vst [vmem:[%s1564_s9 + $0xd8] sm:$0xff] %v256_v27  ;;  %259 = vst [vmem:[%s1564_s9 + $0xe0] sm:$0xff] %v258_v28  ;;  %v266_v32 = vld [vmem:[%s1556_s8 + $0x200] sm:$0xff]  ;;  %v268_v33 = vld [vmem:[%s1556_s8 + $0x208] sm:$0xff] }
  0x22   : > { %261 = vst [vmem:[%s1564_s9 + $0xe8] sm:$0xff] %v260_v29  ;;  %263 = vst [vmem:[%s1564_s9 + $0xf0] sm:$0xff] %v262_v30  ;;  %v270_v34 = vld [vmem:[%s1556_s8 + $0x210] sm:$0xff]  ;;  %v272_v35 = vld [vmem:[%s1556_s8 + $0x218] sm:$0xff] }
  0x23   : > { %265 = vst [vmem:[%s1564_s9 + $0xf8] sm:$0xff] %v264_v31  ;;  %267 = vst [vmem:[%s1564_s9 + $0x100] sm:$0xff] %v266_v32  ;;  %v274_v36 = vld [vmem:[%s1556_s8 + $0x240] sm:$0xff]  ;;  %v276_v37 = vld [vmem:[%s1556_s8 + $0x248] sm:$0xff] }
  0x24   : > { %269 = vst [vmem:[%s1564_s9 + $0x108] sm:$0xff] %v268_v33  ;;  %271 = vst [vmem:[%s1564_s9 + $0x110] sm:$0xff] %v270_v34  ;;  %v278_v38 = vld [vmem:[%s1556_s8 + $0x250] sm:$0xff]  ;;  %v280_v39 = vld [vmem:[%s1556_s8 + $0x258] sm:$0xff] }
  0x25   : > { %273 = vst [vmem:[%s1564_s9 + $0x118] sm:$0xff] %v272_v35  ;;  %275 = vst [vmem:[%s1564_s9 + $0x120] sm:$0xff] %v274_v36  ;;  %v282_v40 = vld [vmem:[%s1556_s8 + $0x280] sm:$0xff]  ;;  %v284_v41 = vld [vmem:[%s1556_s8 + $0x288] sm:$0xff] }
  0x26   : > { %277 = vst [vmem:[%s1564_s9 + $0x128] sm:$0xff] %v276_v37  ;;  %279 = vst [vmem:[%s1564_s9 + $0x130] sm:$0xff] %v278_v38  ;;  %v286_v42 = vld [vmem:[%s1556_s8 + $0x290] sm:$0xff]  ;;  %v288_v43 = vld [vmem:[%s1556_s8 + $0x298] sm:$0xff] }
  0x27   : > { %281 = vst [vmem:[%s1564_s9 + $0x138] sm:$0xff] %v280_v39  ;;  %283 = vst [vmem:[%s1564_s9 + $0x140] sm:$0xff] %v282_v40  ;;  %v290_v44 = vld [vmem:[%s1556_s8 + $0x2c0] sm:$0xff]  ;;  %v292_v45 = vld [vmem:[%s1556_s8 + $0x2c8] sm:$0xff] }
  0x28   : > { %285 = vst [vmem:[%s1564_s9 + $0x148] sm:$0xff] %v284_v41  ;;  %287 = vst [vmem:[%s1564_s9 + $0x150] sm:$0xff] %v286_v42  ;;  %v294_v46 = vld [vmem:[%s1556_s8 + $0x2d0] sm:$0xff]  ;;  %v296_v47 = vld [vmem:[%s1556_s8 + $0x2d8] sm:$0xff] }
  0x29   : > { %289 = vst [vmem:[%s1564_s9 + $0x158] sm:$0xff] %v288_v43  ;;  %291 = vst [vmem:[%s1564_s9 + $0x160] sm:$0xff] %v290_v44  ;;  %v298_v48 = vld [vmem:[%s1556_s8 + $0x300] sm:$0xff]  ;;  %v300_v49 = vld [vmem:[%s1556_s8 + $0x308] sm:$0xff] }
  0x2a   : > { %293 = vst [vmem:[%s1564_s9 + $0x168] sm:$0xff] %v292_v45  ;;  %295 = vst [vmem:[%s1564_s9 + $0x170] sm:$0xff] %v294_v46  ;;  %v302_v50 = vld [vmem:[%s1556_s8 + $0x310] sm:$0xff]  ;;  %v304_v51 = vld [vmem:[%s1556_s8 + $0x318] sm:$0xff] }
  0x2b   : > { %297 = vst [vmem:[%s1564_s9 + $0x178] sm:$0xff] %v296_v47  ;;  %299 = vst [vmem:[%s1564_s9 + $0x180] sm:$0xff] %v298_v48  ;;  %v306_v52 = vld [vmem:[%s1556_s8 + $0x340] sm:$0xff]  ;;  %v308_v53 = vld [vmem:[%s1556_s8 + $0x348] sm:$0xff] }
  0x2c   : > { %301 = vst [vmem:[%s1564_s9 + $0x188] sm:$0xff] %v300_v49  ;;  %303 = vst [vmem:[%s1564_s9 + $0x190] sm:$0xff] %v302_v50  ;;  %v310_v54 = vld [vmem:[%s1556_s8 + $0x350] sm:$0xff]  ;;  %v312_v55 = vld [vmem:[%s1556_s8 + $0x358] sm:$0xff] }
  0x2d   : > { %305 = vst [vmem:[%s1564_s9 + $0x198] sm:$0xff] %v304_v51  ;;  %307 = vst [vmem:[%s1564_s9 + $0x1a0] sm:$0xff] %v306_v52  ;;  %v314_v56 = vld [vmem:[%s1556_s8 + $0x380] sm:$0xff]  ;;  %v316_v57 = vld [vmem:[%s1556_s8 + $0x388] sm:$0xff] }
  0x2e   : > { %309 = vst [vmem:[%s1564_s9 + $0x1a8] sm:$0xff] %v308_v53  ;;  %311 = vst [vmem:[%s1564_s9 + $0x1b0] sm:$0xff] %v310_v54  ;;  %v318_v58 = vld [vmem:[%s1556_s8 + $0x390] sm:$0xff]  ;;  %v320_v59 = vld [vmem:[%s1556_s8 + $0x398] sm:$0xff] }
  0x2f   : > { %313 = vst [vmem:[%s1564_s9 + $0x1b8] sm:$0xff] %v312_v55  ;;  %315 = vst [vmem:[%s1564_s9 + $0x1c0] sm:$0xff] %v314_v56  ;;  %v322_v60 = vld [vmem:[%s1556_s8 + $0x3c0] sm:$0xff]  ;;  %v324_v61 = vld [vmem:[%s1556_s8 + $0x3c8] sm:$0xff] }
  0x30   : > { %317 = vst [vmem:[%s1564_s9 + $0x1c8] sm:$0xff] %v316_v57  ;;  %319 = vst [vmem:[%s1564_s9 + $0x1d0] sm:$0xff] %v318_v58  ;;  %v326_v62 = vld [vmem:[%s1556_s8 + $0x3d0] sm:$0xff]  ;;  %v328_v63 = vld [vmem:[%s1556_s8 + $0x3d8] sm:$0xff] }
  0x31   : > { %321 = vst [vmem:[%s1564_s9 + $0x1d8] sm:$0xff] %v320_v59  ;;  %323 = vst [vmem:[%s1564_s9 + $0x1e0] sm:$0xff] %v322_v60  ;;  %v330_v0 = vld [vmem:[%s1556_s8 + $0x400] sm:$0xff]  ;;  %v332_v1 = vld [vmem:[%s1556_s8 + $0x408] sm:$0xff] }
  0x32   : > { %325 = vst [vmem:[%s1564_s9 + $0x1e8] sm:$0xff] %v324_v61  ;;  %327 = vst [vmem:[%s1564_s9 + $0x1f0] sm:$0xff] %v326_v62  ;;  %v334_v2 = vld [vmem:[%s1556_s8 + $0x410] sm:$0xff]  ;;  %v336_v3 = vld [vmem:[%s1556_s8 + $0x418] sm:$0xff] }
  0x33   : > { %329 = vst [vmem:[%s1564_s9 + $0x1f8] sm:$0xff] %v328_v63  ;;  %331 = vst [vmem:[%s1564_s9 + $0x200] sm:$0xff] %v330_v0  ;;  %v338_v4 = vld [vmem:[%s1556_s8 + $0x440] sm:$0xff]  ;;  %v340_v5 = vld [vmem:[%s1556_s8 + $0x448] sm:$0xff] }
  0x34   : > { %333 = vst [vmem:[%s1564_s9 + $0x208] sm:$0xff] %v332_v1  ;;  %335 = vst [vmem:[%s1564_s9 + $0x210] sm:$0xff] %v334_v2  ;;  %v342_v6 = vld [vmem:[%s1556_s8 + $0x450] sm:$0xff]  ;;  %v344_v7 = vld [vmem:[%s1556_s8 + $0x458] sm:$0xff] }
  0x35   : > { %337 = vst [vmem:[%s1564_s9 + $0x218] sm:$0xff] %v336_v3  ;;  %339 = vst [vmem:[%s1564_s9 + $0x220] sm:$0xff] %v338_v4 }
  0x36   : > { %341 = vst [vmem:[%s1564_s9 + $0x228] sm:$0xff] %v340_v5  ;;  %343 = vst [vmem:[%s1564_s9 + $0x230] sm:$0xff] %v342_v6 }
  0x37   : > { %345 = vst [vmem:[%s1564_s9 + $0x238] sm:$0xff] %v344_v7 }
  0x38 PF: > { %351 = sbr.rel (!%p1540_p4) target bundleno = 68 (0x44), region = 55  ;;  %s353_s10 = sand.u32 (%p1540_p4), 1, %s1473_s19  }
  0x39   : > { %s1421_s11 = sshll.u32 (%p1540_p4), %s1477_s20, 6  ;;  %s1331_s12 = sshll.u32 (%p1540_p4), %s353_s10, 7 }
  0x3a   : > { %s1711_s15 = scalar_lea.vmem (%p1540_p4), %s1961_s4, %s1421_s11  ;;  %s355_s16 = scalar_lea.vmem (%p1540_p4), [#allocation3], %s1331_s12 }
  0x3b   : > { %v371_v8 = vld [vmem:[%s1711_s15] sm:$0xff] (%p1540_p4)  ;;  %v373_v9 = vld [vmem:[%s1711_s15 + $0x8] sm:$0xff] (%p1540_p4)  ;;  %v375_v10 = vld [vmem:[%s1711_s15 + $0x10] sm:$0xff] (%p1540_p4) }
  0x3c   : > { %372 = vst [vmem:[%s355_s16] sm:$0xff] (%p1540_p4), %v371_v8  ;;  %374 = vst [vmem:[%s355_s16 + $0x8] sm:$0xff] (%p1540_p4), %v373_v9  ;;  %v377_v11 = vld [vmem:[%s1711_s15 + $0x18] sm:$0xff] (%p1540_p4)  ;;  %v379_v12 = vld [vmem:[%s1711_s15 + $0x20] sm:$0xff] (%p1540_p4) }
  0x3d   : > { %376 = vst [vmem:[%s355_s16 + $0x10] sm:$0xff] %v375_v10  ;;  %v381_v13 = vld [vmem:[%s1711_s15 + $0x28] sm:$0xff]  ;;  %378 = vst [vmem:[%s355_s16 + $0x18] sm:$0xff] %v377_v11  ;;  %v383_v14 = vld [vmem:[%s1711_s15 + $0x30] sm:$0xff] }
  0x3e   : > { %380 = vst [vmem:[%s355_s16 + $0x20] sm:$0xff] %v379_v12  ;;  %382 = vst [vmem:[%s355_s16 + $0x28] sm:$0xff] %v381_v13  ;;  %v385_v15 = vld [vmem:[%s1711_s15 + $0x38] sm:$0xff]  ;;  %v387_v16 = vld [vmem:[%s1711_s15 + $0x80] sm:$0xff] }
  0x3f   : > { %384 = vst [vmem:[%s355_s16 + $0x30] sm:$0xff] %v383_v14  ;;  %386 = vst [vmem:[%s355_s16 + $0x38] sm:$0xff] %v385_v15  ;;  %v389_v17 = vld [vmem:[%s1711_s15 + $0x88] sm:$0xff]  ;;  %v391_v18 = vld [vmem:[%s1711_s15 + $0x90] sm:$0xff] }
  0x40   : > { %388 = vst [vmem:[%s355_s16 + $0x40] sm:$0xff] %v387_v16  ;;  %v393_v19 = vld [vmem:[%s1711_s15 + $0x98] sm:$0xff]  ;;  %390 = vst [vmem:[%s355_s16 + $0x48] sm:$0xff] %v389_v17  ;;  %v395_v20 = vld [vmem:[%s1711_s15 + $0xa0] sm:$0xff] }
  0x41   : > { %392 = vst [vmem:[%s355_s16 + $0x50] sm:$0xff] %v391_v18  ;;  %394 = vst [vmem:[%s355_s16 + $0x58] sm:$0xff] %v393_v19  ;;  %v397_v21 = vld [vmem:[%s1711_s15 + $0xa8] sm:$0xff]  ;;  %v399_v22 = vld [vmem:[%s1711_s15 + $0xb0] sm:$0xff] }
  0x42   : > { %396 = vst [vmem:[%s355_s16 + $0x60] sm:$0xff] %v395_v20  ;;  %398 = vst [vmem:[%s355_s16 + $0x68] sm:$0xff] %v397_v21  ;;  %v401_v23 = vld [vmem:[%s1711_s15 + $0xb8] sm:$0xff] }
  0x43   : > { %400 = vst [vmem:[%s355_s16 + $0x70] sm:$0xff] %v399_v22  ;;  %402 = vst [vmem:[%s355_s16 + $0x78] sm:$0xff] %v401_v23 }
  0x44 PF: > { %p1334_p7 = scmp.ge.s32.totalorder %s1477_s20, 1  ;;  %p407_p8 = scmp.lt.s32.totalorder %s1477_s20, 3 }
  0x46   : > { %p408_p9 = pnand %p1334_p7, %p407_p8 }
  0x47   : > { %s414_s17 = sand.u32 (!%p408_p9), 1, %s1469_s18  }
  0x48   : > { %411 = sbr.rel (%p408_p9) target bundleno = 372 (0x174), region = 78  ;;  %s1846_s14 = sshll.u32 (!%p408_p9), %s414_s17, 7 }
  0x49   : > { %s1424_s26 = smul.u32 (!%p408_p9), 576, %s414_s17  ;;  %s1853_s15 = scalar_lea.vmem (!%p408_p9), [#allocation3], %s1846_s14 }
  0x4a   : > { %s1879_s18 = scalar_lea.vmem (!%p408_p9), [#allocation4], %s1846_s14 }
  0x4b   : > { %s1749_s7 = scalar_lea.vmem (!%p408_p9), [#allocation2], %s1424_s26 }
  0x4d   : > { %v1735_v24 = vld [vmem:[%s1957_s0 + $0x4] ss:$8 sps:$4 sm:$0xff]   ;;  %vm898_vm0 = vcmask 130048   ;;  %v1479_v27 = vmov 0   ;;  %s1422_s16 = sshll.u32 (%p1544_p5), %s1325_s21, 6 }
  0x4e   : > { %v1074_v25 = vld [vmem:[%s1959_s2] sm:$0xff]  ;;  %1411 = vmatprep.mubr.msk.bf16.mxu0 %vm898_vm0, %v1735_v24  ;;  %1412 = vmatprep.mubr.msk.bf16.mxu1 %vm898_vm0, %v1735_v24  ;;  %v514_v30 = vld [vmem:[%s1749_s7 + $0x1c8] sm:$0xff]  ;;  %s1203_s27 = scalar_lea.vmem (%p1544_p5), %s1962_s5, %s1422_s16 }
  0x4f   : > { %v1102_v26 = vld [vmem:[%s1960_s3] sm:$0xff]  ;;  %1450 = vset.pattern.permute.xlu0 %v1479_v27  ;;  %1451 = vset.pattern.permute.xlu1 %v1479_v27  ;;  %v518_v32 = vld [vmem:[%s1749_s7 + $0x1e8] sm:$0xff] }
  0x50   : > { %v513_v28 = vld [vmem:[%s1749_s7 + $0x1c0] sm:$0xff]  ;;  %1078 = vperm.xlu0 %1450, %v1074_v25   ;;  %1106 = vperm.xlu1 %1451, %v1102_v26   ;;  %v1398_v36 = vcombine.high %v514_v30, %v518_v32  ;;  %v1397_v37 = vcombine.low %v514_v30, %v518_v32  ;;  %v506_v39 = vld [vmem:[%s1749_s7 + $0x188] sm:$0xff] }
  0x51   : > { %v517_v29 = vld [vmem:[%s1749_s7 + $0x1e0] sm:$0xff]  ;;  %v510_v40 = vld [vmem:[%s1749_s7 + $0x1a8] sm:$0xff] }
  0x52   : > { %v1396_v31 = vcombine.high %v513_v28, %v517_v29  ;;  %v1395_v33 = vcombine.low %v513_v28, %v517_v29  ;;  %v505_v34 = vld [vmem:[%s1749_s7 + $0x180] sm:$0xff]  ;;  %v1390_v42 = vcombine.high %v506_v39, %v510_v40  ;;  %v498_v44 = vld [vmem:[%s1749_s7 + $0x148] sm:$0xff]  ;;  %945 = vmatprep.subr.bf16.mxu1 %v1398_v36  ;;  %v1389_v49 = vcombine.low %v506_v39, %v510_v40  ;;  %v516_v39 = vld [vmem:[%s1749_s7 + $0x1d8] sm:$0xff] }
  0x53   : > { %v509_v35 = vld [vmem:[%s1749_s7 + $0x1a0] sm:$0xff]  ;;  %v502_v45 = vld [vmem:[%s1749_s7 + $0x168] sm:$0xff]  ;;  %946 = vmatpush1.bf16.msra.mxu1 %v1397_v37  ;;  %v515_v37 = vld [vmem:[%s1749_s7 + $0x1d0] sm:$0xff] }
  0x54   : > { %v1388_v38 = vcombine.high %v505_v34, %v509_v35  ;;  %v497_v41 = vld [vmem:[%s1749_s7 + $0x140] sm:$0xff]  ;;  %902 = vmatprep.subr.bf16.mxu0 %v1396_v31  ;;  %v1387_v46 = vcombine.low %v505_v34, %v509_v35  ;;  %v1075_v47 = vld [vmem:[%s1959_s2 + $0x8] sm:$0xff]  ;;  %947 = vmatprep.subr.bf16.mxu1 %v1390_v42  ;;  %v1382_v51 = vcombine.high %v498_v44, %v502_v45  ;;  %v520_v40 = vld [vmem:[%s1749_s7 + $0x1f8] sm:$0xff] }
  0x55   : > { %v501_v43 = vld [vmem:[%s1749_s7 + $0x160] sm:$0xff]  ;;  %903 = vmatpush1.bf16.msra.mxu0 %v1395_v33  ;;  %v1103_v48 = vld [vmem:[%s1960_s3 + $0x8] sm:$0xff]  ;;  %1083 = vperm.xlu0 %1450, %v1075_v47   ;;  %v1381_v57 = vcombine.low %v498_v44, %v502_v45  ;;  %v1402_v44 = vcombine.high %v516_v39, %v520_v40  ;;  %v507_v45 = vld [vmem:[%s1749_s7 + $0x190] sm:$0xff] }
  0x56   : > { %904 = vmatprep.subr.bf16.mxu0 %v1388_v38  ;;  %v1380_v50 = vcombine.high %v497_v41, %v501_v43  ;;  %v489_v52 = vld [vmem:[%s1749_s7 + $0x100] sm:$0xff]  ;;  %v490_v54 = vld [vmem:[%s1749_s7 + $0x108] sm:$0xff]  ;;  %1111 = vperm.xlu1 %1451, %v1103_v48   ;;  %v1379_v56 = vcombine.low %v497_v41, %v501_v43  ;;  %v519_v38 = vld [vmem:[%s1749_s7 + $0x1f0] sm:$0xff] }
  0x57   : > { %v493_v53 = vld [vmem:[%s1749_s7 + $0x120] sm:$0xff]  ;;  %v494_v55 = vld [vmem:[%s1749_s7 + $0x128] sm:$0xff]  ;;  %948 = vmatpush1.bf16.msra.mxu1 %v1389_v49  ;;  %v1400_v43 = vcombine.high %v515_v37, %v519_v38  ;;  %v508_v48 = vld [vmem:[%s1749_s7 + $0x198] sm:$0xff] }
  0x58   : > { %v1372_v58 = vcombine.high %v489_v52, %v493_v53  ;;  %949 = vmatprep.subr.bf16.mxu1 %v1382_v51  ;;  %v1374_v59 = vcombine.high %v490_v54, %v494_v55  ;;  %v481_v60 = vld [vmem:[%s1749_s7 + $0xc0] sm:$0xff]  ;;  %v482_v62 = vld [vmem:[%s1749_s7 + $0xc8] sm:$0xff]  ;;  %v1371_v0 = vcombine.low %v489_v52, %v493_v53  ;;  %v1373_v1 = vcombine.low %v490_v54, %v494_v55  ;;  %v512_v49 = vld [vmem:[%s1749_s7 + $0x1b8] sm:$0xff] }
  0x59   : > { %905 = vmatpush1.bf16.msra.mxu0 %v1387_v46  ;;  %v485_v61 = vld [vmem:[%s1749_s7 + $0xe0] sm:$0xff]  ;;  %v486_v63 = vld [vmem:[%s1749_s7 + $0xe8] sm:$0xff]  ;;  %v511_v46 = vld [vmem:[%s1749_s7 + $0x1b0] sm:$0xff]  ;;  %v1401_v51 = vcombine.low %v516_v39, %v520_v40  ;;  %v1394_v53 = vcombine.high %v508_v48, %v512_v49 }
  0x5a   : > { %906 = vmatprep.subr.bf16.mxu0 %v1380_v50  ;;  %v1364_v2 = vcombine.high %v481_v60, %v485_v61  ;;  %v1366_v3 = vcombine.high %v482_v62, %v486_v63  ;;  %v473_v4 = vld [vmem:[%s1749_s7 + $0x80] sm:$0xff]  ;;  %v474_v6 = vld [vmem:[%s1749_s7 + $0x88] sm:$0xff]  ;;  %v1363_v8 = vcombine.low %v481_v60, %v485_v61  ;;  %v1365_v9 = vcombine.low %v482_v62, %v486_v63  ;;  %v499_v54 = vld [vmem:[%s1749_s7 + $0x150] sm:$0xff] }
  0x5b   : > { %950 = vmatpush1.bf16.msra.mxu1 %v1381_v57  ;;  %v477_v5 = vld [vmem:[%s1749_s7 + $0xa0] sm:$0xff]  ;;  %v478_v7 = vld [vmem:[%s1749_s7 + $0xa8] sm:$0xff]  ;;  %v1399_v50 = vcombine.low %v515_v37, %v519_v38  ;;  %v1392_v52 = vcombine.high %v507_v45, %v511_v46  ;;  %v503_v55 = vld [vmem:[%s1749_s7 + $0x170] sm:$0xff] }
  0x5c   : > { %951 = vmatprep.subr.bf16.mxu1 %v1374_v59  ;;  %v1356_v10 = vcombine.high %v473_v4, %v477_v5  ;;  %v1358_v11 = vcombine.high %v474_v6, %v478_v7  ;;  %v465_v12 = vld [vmem:[%s1749_s7 + $0x40] sm:$0xff]  ;;  %v466_v14 = vld [vmem:[%s1749_s7 + $0x48] sm:$0xff]  ;;  %v1355_v16 = vcombine.low %v473_v4, %v477_v5  ;;  %v1357_v17 = vcombine.low %v474_v6, %v478_v7  ;;  %v504_v57 = vld [vmem:[%s1749_s7 + $0x178] sm:$0xff] }
  0x5d   : > { %907 = vmatpush1.bf16.msra.mxu0 %v1379_v56  ;;  %v469_v13 = vld [vmem:[%s1749_s7 + $0x60] sm:$0xff]  ;;  %v470_v15 = vld [vmem:[%s1749_s7 + $0x68] sm:$0xff]  ;;  %v500_v56 = vld [vmem:[%s1749_s7 + $0x158] sm:$0xff]  ;;  %v1393_v59 = vcombine.low %v508_v48, %v512_v49  ;;  %v1384_v60 = vcombine.high %v499_v54, %v503_v55 }
  0x5e   : > { %908 = vmatprep.subr.bf16.mxu0 %v1372_v58  ;;  %v1348_v18 = vcombine.high %v465_v12, %v469_v13  ;;  %v1350_v19 = vcombine.high %v466_v14, %v470_v15  ;;  %v457_v20 = vld [vmem:[%s1749_s7] sm:$0xff]  ;;  %v458_v22 = vld [vmem:[%s1749_s7 + $0x8] sm:$0xff]  ;;  %v1347_v25 = vcombine.low %v465_v12, %v469_v13  ;;  %v1349_v26 = vcombine.low %v466_v14, %v470_v15  ;;  %v491_v62 = vld [vmem:[%s1749_s7 + $0x110] sm:$0xff] }
  0x5f   : > { %952 = vmatpush1.bf16.msra.mxu1 %v1373_v1  ;;  %v461_v21 = vld [vmem:[%s1749_s7 + $0x20] sm:$0xff]  ;;  %v462_v23 = vld [vmem:[%s1749_s7 + $0x28] sm:$0xff]  ;;  %v1391_v58 = vcombine.low %v507_v45, %v511_v46  ;;  %v1386_v61 = vcombine.high %v500_v56, %v504_v57  ;;  %v495_v63 = vld [vmem:[%s1749_s7 + $0x130] sm:$0xff] }
  0x60   : > { %953 = vmatprep.subr.bf16.mxu1 %v1366_v3  ;;  %v1340_v27 = vcombine.high %v457_v20, %v461_v21  ;;  %v1342_v28 = vcombine.high %v458_v22, %v462_v23  ;;  %v521_v29 = vld [vmem:[%s1749_s7 + $0x200] sm:$0xff]  ;;  %v522_v31 = vld [vmem:[%s1749_s7 + $0x208] sm:$0xff]  ;;  %v1339_v33 = vcombine.low %v457_v20, %v461_v21  ;;  %v1341_v34 = vcombine.low %v458_v22, %v462_v23  ;;  %v496_v1 = vld [vmem:[%s1749_s7 + $0x138] sm:$0xff] }
  0x61   : > { %909 = vmatpush1.bf16.msra.mxu0 %v1371_v0  ;;  %v525_v30 = vld [vmem:[%s1749_s7 + $0x220] sm:$0xff]  ;;  %v526_v32 = vld [vmem:[%s1749_s7 + $0x228] sm:$0xff]  ;;  %v492_v0 = vld [vmem:[%s1749_s7 + $0x118] sm:$0xff]  ;;  %v1385_v3 = vcombine.low %v500_v56, %v504_v57  ;;  %v1376_v4 = vcombine.high %v491_v62, %v495_v63 }
  0x62   : > { %910 = vmatprep.subr.bf16.mxu0 %v1364_v2  ;;  %v1404_v35 = vcombine.high %v521_v29, %v525_v30  ;;  %v1406_v36 = vcombine.high %v522_v31, %v526_v32  ;;  %v1403_v41 = vcombine.low %v521_v29, %v525_v30  ;;  %v1405_v42 = vcombine.low %v522_v31, %v526_v32  ;;  %v1802_v47 = vld [vmem:[%s1957_s0] ss:$8 sps:$4 sm:$0xff]   ;;  %v483_v6 = vld [vmem:[%s1749_s7 + $0xd0] sm:$0xff]  ;;  %v476_v15 = vld [vmem:[%s1749_s7 + $0x98] sm:$0xff] }
  0x63   : > { %954 = vmatpush1.bf16.msra.mxu1 %v1365_v9  ;;  %v1383_v2 = vcombine.low %v499_v54, %v503_v55  ;;  %v1378_v5 = vcombine.high %v492_v0, %v496_v1  ;;  %v487_v7 = vld [vmem:[%s1749_s7 + $0xf0] sm:$0xff]  ;;  %v488_v9 = vld [vmem:[%s1749_s7 + $0xf8] sm:$0xff] }
  0x64   : > { %955 = vmatprep.subr.bf16.mxu1 %v1358_v11  ;;  %v1368_v11 = vcombine.high %v483_v6, %v487_v7  ;;  %v475_v13 = vld [vmem:[%s1749_s7 + $0x90] sm:$0xff]  ;;  %v468_v23 = vld [vmem:[%s1749_s7 + $0x58] sm:$0xff] }
  0x65   : > { %911 = vmatpush1.bf16.msra.mxu0 %v1363_v8  ;;  %v484_v8 = vld [vmem:[%s1749_s7 + $0xd8] sm:$0xff]  ;;  %v479_v14 = vld [vmem:[%s1749_s7 + $0xb0] sm:$0xff] }
  0x66   : > { %912 = vmatprep.subr.bf16.mxu0 %v1356_v10  ;;  %v1375_v10 = vcombine.low %v491_v62, %v495_v63  ;;  %v1370_v12 = vcombine.high %v484_v8, %v488_v9  ;;  %v467_v21 = vld [vmem:[%s1749_s7 + $0x50] sm:$0xff]  ;;  %v460_v32 = vld [vmem:[%s1749_s7 + $0x18] sm:$0xff]  ;;  %v1131_v62 = vld [vmem:[%s1853_s15 + $0x8] sm:$0xff] }
  0x67   : > { %956 = vmatpush1.bf16.msra.mxu1 %v1357_v17  ;;  %v1367_v17 = vcombine.low %v483_v6, %v487_v7  ;;  %v471_v22 = vld [vmem:[%s1749_s7 + $0x70] sm:$0xff]  ;;  %v524_v40 = vld [vmem:[%s1749_s7 + $0x218] sm:$0xff] }
  0x68   : > { %957 = vmatprep.subr.bf16.mxu1 %v1350_v19  ;;  %v1360_v19 = vcombine.high %v475_v13, %v479_v14  ;;  %v459_v30 = vld [vmem:[%s1749_s7 + $0x10] sm:$0xff] }
  0x69   : > { %913 = vmatpush1.bf16.msra.mxu0 %v1355_v16  ;;  %v480_v16 = vld [vmem:[%s1749_s7 + $0xb8] sm:$0xff]  ;;  %v463_v31 = vld [vmem:[%s1749_s7 + $0x30] sm:$0xff] }
  0x6a   : > { %914 = vmatprep.subr.bf16.mxu0 %v1348_v18  ;;  %v1369_v18 = vcombine.low %v484_v8, %v488_v9  ;;  %v1362_v20 = vcombine.high %v476_v15, %v480_v16  ;;  %v523_v38 = vld [vmem:[%s1749_s7 + $0x210] sm:$0xff] }
  0x6b   : > { %958 = vmatpush1.bf16.msra.mxu1 %v1349_v26  ;;  %v1359_v26 = vcombine.low %v475_v13, %v479_v14  ;;  %v527_v39 = vld [vmem:[%s1749_s7 + $0x230] sm:$0xff] }
  0x6c   : > { %959 = vmatprep.subr.bf16.mxu1 %v1342_v28  ;;  %v1352_v28 = vcombine.high %v467_v21, %v471_v22  ;;  %v1407_v46 = vcombine.low %v523_v38, %v527_v39  ;;  %v1140_v14 = vld [vmem:[%s1853_s15 + $0x50] sm:$0xff] }
  0x6d   : > { %915 = vmatpush1.bf16.msra.mxu0 %v1347_v25  ;;  %v472_v25 = vld [vmem:[%s1749_s7 + $0x78] sm:$0xff] }
  0x6e   : > { %916 = vmatprep.subr.bf16.mxu0 %v1340_v27  ;;  %v1361_v27 = vcombine.low %v476_v15, %v480_v16  ;;  %v1354_v29 = vcombine.high %v468_v23, %v472_v25 }
  0x6f   : > { %960 = vmatpush1.bf16.msra.mxu1 %v1341_v34  ;;  %v1351_v34 = vcombine.low %v467_v21, %v471_v22 }
  0x70   : > { %975 = vmatprep.subr.bf16.mxu1 %v1406_v36  ;;  %v1344_v36 = vcombine.high %v459_v30, %v463_v31 }
  0x71   : > { %917 = vmatpush1.bf16.msra.mxu0 %v1339_v33  ;;  %v464_v33 = vld [vmem:[%s1749_s7 + $0x38] sm:$0xff] }
  0x72   : > { %932 = vmatprep.subr.bf16.mxu0 %v1404_v35  ;;  %v1353_v35 = vcombine.low %v468_v23, %v472_v25  ;;  %v1346_v37 = vcombine.high %v460_v32, %v464_v33 }
  0x73   : > { %976 = vmatpush2.bf16.msra.mxu1 %v1405_v42  ;;  %v1343_v42 = vcombine.low %v459_v30, %v463_v31 }
  0x74   : > { %1031 = vmatprep.subr.bf16.mxu1 %v1402_v44  ;;  %v1408_v44 = vcombine.high %v523_v38, %v527_v39  ;;  %v1134_v39 = vld [vmem:[%s1853_s15 + $0x20] sm:$0xff] }
  0x75   : > { %933 = vmatpush2.bf16.msra.mxu0 %v1403_v41  ;;  %v528_v41 = vld [vmem:[%s1749_s7 + $0x238] sm:$0xff] }
  0x76   : > { %988 = vmatprep.subr.bf16.mxu0 %v1400_v43  ;;  %978 = vmatmul.mubr.bf16.vlgmr.msra.gmra.mxu1 %v1802_v47  ;;  %v1345_v43 = vcombine.low %v460_v32, %v464_v33  ;;  %v1410_v45 = vcombine.high %v524_v40, %v528_v41  ;;  %v1409_v48 = vcombine.low %v524_v40, %v528_v41 }
  0x77   : > { %1032 = vmatpush1.bf16.msra.mxu1 %v1401_v51  ;;  %1414 = vmatprep.mubr.msk.bf16.mxu1 %vm898_vm0, %v1735_v24 }
  0x78   : > { %935 = vmatmul.mubr.bf16.vlgmr.msra.gmra.mxu0 %v1802_v47  ;;  %1033 = vmatprep.subr.bf16.mxu1 %v1394_v53 }
  0x79   : > { %989 = vmatpush1.bf16.msra.mxu0 %v1399_v50  ;;  %1413 = vmatprep.mubr.msk.bf16.mxu0 %vm898_vm0, %v1735_v24  ;;  %v1377_v24 = vcombine.low %v492_v0, %v496_v1 }
  0x7a   : > { %990 = vmatprep.subr.bf16.mxu0 %v1392_v52 }
  0x7b   : > { %1034 = vmatpush1.bf16.msra.mxu1 %v1393_v59 }
  0x7c   : > { %1035 = vmatprep.subr.bf16.mxu1 %v1386_v61 }
  0x7d   : > { %991 = vmatpush1.bf16.msra.mxu0 %v1391_v58  ;;  %v1132_v58 = vld [vmem:[%s1853_s15 + $0x10] sm:$0xff] }
  0x7e   : > { %992 = vmatprep.subr.bf16.mxu0 %v1384_v60 }
  0x7f   : > { %1036 = vmatpush1.bf16.msra.mxu1 %v1385_v3 }
  0x80   : > { %1037 = vmatprep.subr.bf16.mxu1 %v1378_v5 }
  0x81   : > { %993 = vmatpush1.bf16.msra.mxu0 %v1383_v2 }
  0x82   : > { %994 = vmatprep.subr.bf16.mxu0 %v1376_v4  ;;  %v1133_v4 = vld [vmem:[%s1853_s15 + $0x18] sm:$0xff] }
  0x83   : > { %1038 = vmatpush1.bf16.msra.mxu1 %v1377_v24 }
  0x84   : > { %1039 = vmatprep.subr.bf16.mxu1 %v1370_v12 }
  0x85   : > { %995 = vmatpush1.bf16.msra.mxu0 %v1375_v10  ;;  %v1138_v10 = vld [vmem:[%s1853_s15 + $0x40] sm:$0xff] }
  0x86   : > { %996 = vmatprep.subr.bf16.mxu0 %v1368_v11 }
  0x87   : > { %1040 = vmatpush1.bf16.msra.mxu1 %v1369_v18 }
  0x88   : > { %1041 = vmatprep.subr.bf16.mxu1 %v1362_v20  ;;  %v1139_v20 = vld [vmem:[%s1853_s15 + $0x48] sm:$0xff] }
  0x89   : > { %997 = vmatpush1.bf16.msra.mxu0 %v1367_v17 }
  0x8a   : > { %998 = vmatprep.subr.bf16.mxu0 %v1360_v19 }
  0x8b   : > { %1042 = vmatpush1.bf16.msra.mxu1 %v1361_v27 }
  0x8c   : > { %1043 = vmatprep.subr.bf16.mxu1 %v1354_v29 }
  0x8d   : > { %999 = vmatpush1.bf16.msra.mxu0 %v1359_v26  ;;  %v1141_v26 = vld [vmem:[%s1853_s15 + $0x58] sm:$0xff] }
  0x8e   : > { %1000 = vmatprep.subr.bf16.mxu0 %v1352_v28 }
  0x8f   : > { %1044 = vmatpush1.bf16.msra.mxu1 %v1353_v35 }
  0x90   : > { %1045 = vmatprep.subr.bf16.mxu1 %v1346_v37 }
  0x91   : > { %1001 = vmatpush1.bf16.msra.mxu0 %v1351_v34 }
  0x92   : > { %1002 = vmatprep.subr.bf16.mxu0 %v1344_v36 }
  0x93   : > { %1046 = vmatpush1.bf16.msra.mxu1 %v1345_v43  ;;  %v1136_v43 = vld [vmem:[%s1853_s15 + $0x30] sm:$0xff] }
  0x94   : > { %1061 = vmatprep.subr.bf16.mxu1 %v1410_v45 }
  0x95   : > { %1003 = vmatpush1.bf16.msra.mxu0 %v1343_v42 }
  0x96   : > { %1018 = vmatprep.subr.bf16.mxu0 %v1408_v44 }
  0x97   : > { %1062 = vmatpush2.bf16.msra.mxu1 %v1409_v48  ;;  %v1135_v48 = vld [vmem:[%s1853_s15 + $0x28] sm:$0xff] }
  0x99   : > { %1019 = vmatpush2.bf16.msra.mxu0 %v1407_v46 }
  0x9a   : > { %1064 = vmatmul.mubr.bf16.vlgmr.msra.gmra.mxu1 %v1802_v47 }
  0x9c   : > { %1021 = vmatmul.mubr.bf16.vlgmr.msra.gmra.mxu0 %v1802_v47  ;;  %v1130_v47 = vld [vmem:[%s1853_s15] sm:$0xff] }
  0xcb   : > { %v1842_v49 = vpop.permute.xlu0 %1078  ;;  %v1848_v50 = vpop.permute.xlu1 %1106 }
  0xd0   : > { %v1856_v56 = vpop.permute.xlu0 %1083 }
  0xd1   : > { %v1864_v1 = vpop.permute.xlu1 %1111 }
 0x136   : > { %v979_v53 = vpop.f32.mrf.mxu1 }
 0x137   : > { %v1088_v54 = vmul.f32 %v1842_v49, %v979_v53 }
 0x138   : > { %v936_v51 = vpop.f32.mrf.mxu0  ;;  %v981_v60 = vpop.f32.mrf.mxu1 }
 0x139   : > { %v1086_v52 = vmul.f32 %v1842_v49, %v936_v51  ;;  %v1116_v61 = vadd.f32 %v1848_v50, %v1088_v54  ;;  %v1089_v63 = vmul.f32 %v1842_v49, %v981_v60  ;;  %v1142_v60 = vld [vmem:[%s1853_s15 + $0x60] sm:$0xff] }
 0x13a   : > { %v938_v55 = vpop.f32.mrf.mxu0  ;;  %v983_v6 = vpop.f32.mrf.mxu1 }
 0x13b   : > { %v1114_v57 = vadd.f32 %v1848_v50, %v1086_v52  ;;  %v1087_v59 = vmul.f32 %v1842_v49, %v938_v55  ;;  %v1148_v7 = vadd.f32 %v1132_v58, %v1116_v61  ;;  %v1117_v8 = vadd.f32 %v1848_v50, %v1089_v63 }
 0x13c   : > { %v940_v0 = vpop.f32.mrf.mxu0  ;;  %v1096_v9 = vmul.f32 %v1856_v56, %v983_v6  ;;  %v985_v16 = vpop.f32.mrf.mxu1 }
 0x13d   : > { %v1146_v2 = vadd.f32 %v1130_v47, %v1114_v57  ;;  %v1115_v3 = vadd.f32 %v1848_v50, %v1087_v59  ;;  %v1094_v5 = vmul.f32 %v1856_v56, %v940_v0  ;;  %v1164_v17 = vmax.f32 %v1148_v7, 0.0  ;;  %v1137_v47 = vld [vmem:[%s1853_s15 + $0x38] sm:$0xff]  ;;  %v1143_v7 = vld [vmem:[%s1853_s15 + $0x68] sm:$0xff] }
 0x13e   : > { %v942_v24 = vpop.f32.mrf.mxu0  ;;  %v1149_v18 = vadd.f32 %v1133_v4, %v1117_v8  ;;  %v1124_v19 = vadd.f32 %v1864_v1, %v1096_v9  ;;  %v1097_v21 = vmul.f32 %v1856_v56, %v985_v16 }
 0x13f   : > { %v1162_v11 = vmax.f32 %v1146_v2, 0.0  ;;  %v1147_v12 = vadd.f32 %v1131_v62, %v1115_v3  ;;  %v1122_v13 = vadd.f32 %v1864_v1, %v1094_v5  ;;  %v1095_v15 = vmul.f32 %v1856_v56, %v942_v24  ;;  %1180 = vst [vmem:[%s1879_s18 + $0x10] sm:$0xff] %v1164_v17  ;;  %v1144_v2 = vld [vmem:[%s1853_s15 + $0x70] sm:$0xff] }
 0x140   : > { %v1165_v27 = vmax.f32 %v1149_v18, 0.0  ;;  %v1156_v28 = vadd.f32 %v1140_v14, %v1124_v19  ;;  %v1125_v29 = vadd.f32 %v1864_v1, %v1097_v21 }
 0x141   : > { %1178 = vst [vmem:[%s1879_s18] sm:$0xff] %v1162_v11  ;;  %v1163_v22 = vmax.f32 %v1147_v12, 0.0  ;;  %v1154_v23 = vadd.f32 %v1138_v10, %v1122_v13  ;;  %v1123_v25 = vadd.f32 %v1864_v1, %v1095_v15  ;;  %v1145_v11 = vld [vmem:[%s1853_s15 + $0x78] sm:$0xff] }
 0x142   : > { %1181 = vst [vmem:[%s1879_s18 + $0x18] sm:$0xff] %v1165_v27  ;;  %v1172_v32 = vmax.f32 %v1156_v28, 0.0  ;;  %v1157_v33 = vadd.f32 %v1141_v26, %v1125_v29 }
 0x143   : > { %1179 = vst [vmem:[%s1879_s18 + $0x8] sm:$0xff] %v1163_v22  ;;  %v1170_v30 = vmax.f32 %v1154_v23, 0.0  ;;  %v1155_v31 = vadd.f32 %v1139_v20, %v1123_v25 }
 0x144   : > { %1188 = vst [vmem:[%s1879_s18 + $0x50] sm:$0xff] %v1172_v32  ;;  %v1173_v35 = vmax.f32 %v1157_v33, 0.0 }
 0x145   : > { %1186 = vst [vmem:[%s1879_s18 + $0x40] sm:$0xff] %v1170_v30  ;;  %v1171_v34 = vmax.f32 %v1155_v31, 0.0 }
 0x146   : > { %1189 = vst [vmem:[%s1879_s18 + $0x58] sm:$0xff] %v1173_v35  ;;  %v1220_v21 = vld [vmem:[%s1879_s18 + $0x10] sm:$0xff] (%p1544_p5) }
 0x147   : > { %1187 = vst [vmem:[%s1879_s18 + $0x48] sm:$0xff] %v1171_v34  ;;  %1221 = vst [vmem:[%s1203_s27 + $0x10] sm:$0xff] (%p1544_p5), %v1220_v21 }
 0x149   : > { %v1222_v22 = vld [vmem:[%s1879_s18 + $0x18] sm:$0xff] (%p1544_p5) }
 0x14a   : > { %v1218_v20 = vld [vmem:[%s1879_s18 + $0x8] sm:$0xff] (%p1544_p5)  ;;  %1223 = vst [vmem:[%s1203_s27 + $0x18] sm:$0xff] (%p1544_p5), %v1222_v22 }
 0x14b   : > { %1219 = vst [vmem:[%s1203_s27 + $0x8] sm:$0xff] (%p1544_p5), %v1218_v20  ;;  %v1236_v30 = vld [vmem:[%s1879_s18 + $0x50] sm:$0xff] (%p1544_p5) }
 0x14c   : > { %v1232_v28 = vld [vmem:[%s1879_s18 + $0x40] sm:$0xff] (%p1544_p5)  ;;  %1237 = vst [vmem:[%s1203_s27 + $0x90] sm:$0xff] (%p1544_p5), %v1236_v30 }
 0x14d   : > { %1233 = vst [vmem:[%s1203_s27 + $0x80] sm:$0xff] (%p1544_p5), %v1232_v28  ;;  %v1238_v31 = vld [vmem:[%s1879_s18 + $0x58] sm:$0xff] (%p1544_p5) }
 0x14e   : > { %v1234_v29 = vld [vmem:[%s1879_s18 + $0x48] sm:$0xff] (%p1544_p5)  ;;  %1239 = vst [vmem:[%s1203_s27 + $0x98] sm:$0xff] (%p1544_p5), %v1238_v31 }
 0x14f   : > { %1235 = vst [vmem:[%s1203_s27 + $0x88] sm:$0xff] (%p1544_p5), %v1234_v29 }
 0x15a   : > { %v1065_v38 = vpop.f32.mrf.mxu1 }
 0x15b   : > { %v1092_v40 = vmul.f32 %v1842_v49, %v1065_v38 }
 0x15c   : > { %v1022_v36 = vpop.f32.mrf.mxu0  ;;  %v1067_v45 = vpop.f32.mrf.mxu1 }
 0x15d   : > { %v1090_v37 = vmul.f32 %v1842_v49, %v1022_v36  ;;  %v1120_v46 = vadd.f32 %v1848_v50, %v1092_v40  ;;  %v1093_v51 = vmul.f32 %v1842_v49, %v1067_v45 }
 0x15e   : > { %v1024_v41 = vpop.f32.mrf.mxu0  ;;  %v1069_v57 = vpop.f32.mrf.mxu1 }
 0x15f   : > { %v1118_v42 = vadd.f32 %v1848_v50, %v1090_v37  ;;  %v1091_v44 = vmul.f32 %v1842_v49, %v1024_v41  ;;  %v1152_v58 = vadd.f32 %v1136_v43, %v1120_v46  ;;  %v1121_v59 = vadd.f32 %v1848_v50, %v1093_v51 }
 0x160   : > { %v1026_v52 = vpop.f32.mrf.mxu0  ;;  %v1100_v61 = vmul.f32 %v1856_v56, %v1069_v57  ;;  %v1071_v4 = vpop.f32.mrf.mxu1 }
 0x161   : > { %v1150_v53 = vadd.f32 %v1134_v39, %v1118_v42  ;;  %v1119_v54 = vadd.f32 %v1848_v50, %v1091_v44  ;;  %v1098_v55 = vmul.f32 %v1856_v56, %v1026_v52  ;;  %v1168_v5 = vmax.f32 %v1152_v58, 0.0 }
 0x162   : > { %v1028_v62 = vpop.f32.mrf.mxu0  ;;  %v1153_v6 = vadd.f32 %v1137_v47, %v1121_v59  ;;  %v1128_v50 = vadd.f32 %v1864_v1, %v1100_v61  ;;  %v1101_v8 = vmul.f32 %v1856_v56, %v1071_v4 }
 0x163   : > { %v1166_v63 = vmax.f32 %v1150_v53, 0.0  ;;  %v1151_v49 = vadd.f32 %v1135_v48, %v1119_v54  ;;  %v1126_v0 = vadd.f32 %v1864_v1, %v1098_v55  ;;  %v1099_v3 = vmul.f32 %v1856_v56, %v1028_v62  ;;  %1184 = vst [vmem:[%s1879_s18 + $0x30] sm:$0xff] %v1168_v5 }
 0x164   : > { %v1169_v12 = vmax.f32 %v1153_v6, 0.0  ;;  %v1160_v13 = vadd.f32 %v1144_v2, %v1128_v50  ;;  %v1129_v14 = vadd.f32 %v1864_v1, %v1101_v8 }
 0x165   : > { %1182 = vst [vmem:[%s1879_s18 + $0x20] sm:$0xff] %v1166_v63  ;;  %v1167_v9 = vmax.f32 %v1151_v49, 0.0  ;;  %v1158_v10 = vadd.f32 %v1142_v60, %v1126_v0  ;;  %v1127_v24 = vadd.f32 %v1864_v1, %v1099_v3  ;;  %v1216_v1 = vld [vmem:[%s1879_s18] sm:$0xff] (%p1544_p5) }
 0x166   : > { %1185 = vst [vmem:[%s1879_s18 + $0x38] sm:$0xff] %v1169_v12  ;;  %v1176_v56 = vmax.f32 %v1160_v13, 0.0  ;;  %v1161_v17 = vadd.f32 %v1145_v11, %v1129_v14  ;;  %1217 = vst [vmem:[%s1203_s27] sm:$0xff] (%p1544_p5), %v1216_v1 }
 0x167   : > { %1183 = vst [vmem:[%s1879_s18 + $0x28] sm:$0xff] %v1167_v9  ;;  %v1174_v15 = vmax.f32 %v1158_v10, 0.0  ;;  %v1159_v16 = vadd.f32 %v1143_v7, %v1127_v24  ;;  %1200 = sbr.rel (!%p1544_p5) target bundleno = 372 (0x174), region = 90 }
 0x168   : > { %1192 = vst [vmem:[%s1879_s18 + $0x70] sm:$0xff] %v1176_v56  ;;  %v1177_v19 = vmax.f32 %v1161_v17, 0.0 }
 0x169   : > { %1190 = vst [vmem:[%s1879_s18 + $0x60] sm:$0xff] %v1174_v15  ;;  %v1175_v18 = vmax.f32 %v1159_v16, 0.0 }
 0x16a   : > { %1193 = vst [vmem:[%s1879_s18 + $0x78] sm:$0xff] %v1177_v19  ;;  %v1228_v26 = vld [vmem:[%s1879_s18 + $0x30] sm:$0xff] (%p1544_p5) }
 0x16b   : > { %1191 = vst [vmem:[%s1879_s18 + $0x68] sm:$0xff] %v1175_v18  ;;  %1229 = vst [vmem:[%s1203_s27 + $0x30] sm:$0xff] (%p1544_p5), %v1228_v26 }
 0x16c   : > { %v1224_v23 = vld [vmem:[%s1879_s18 + $0x20] sm:$0xff] }
 0x16d   : > { %1225 = vst [vmem:[%s1203_s27 + $0x20] sm:$0xff] %v1224_v23  ;;  %v1230_v27 = vld [vmem:[%s1879_s18 + $0x38] sm:$0xff] }
 0x16e   : > { %v1226_v25 = vld [vmem:[%s1879_s18 + $0x28] sm:$0xff]  ;;  %1231 = vst [vmem:[%s1203_s27 + $0x38] sm:$0xff] %v1230_v27 }
 0x16f   : > { %1227 = vst [vmem:[%s1203_s27 + $0x28] sm:$0xff] %v1226_v25  ;;  %v1244_v34 = vld [vmem:[%s1879_s18 + $0x70] sm:$0xff] }
 0x170   : > { %v1240_v32 = vld [vmem:[%s1879_s18 + $0x60] sm:$0xff]  ;;  %1245 = vst [vmem:[%s1203_s27 + $0xb0] sm:$0xff] %v1244_v34 }
 0x171   : > { %1241 = vst [vmem:[%s1203_s27 + $0xa0] sm:$0xff] %v1240_v32  ;;  %v1246_v35 = vld [vmem:[%s1879_s18 + $0x78] sm:$0xff] }
 0x172   : > { %v1242_v33 = vld [vmem:[%s1879_s18 + $0x68] sm:$0xff]  ;;  %1247 = vst [vmem:[%s1203_s27 + $0xb8] sm:$0xff] %v1246_v35 }
 0x173   : > { %1243 = vst [vmem:[%s1203_s27 + $0xa8] sm:$0xff] %v1242_v33 }
 0x174 PF: > { %p12_p10 = scmp.ge.s32.totalorder %s1527_s22, 4   ;;  %s1965_s18 = smov %s1473_s19 }
 0x175   : > { %s1966_s19 = smov %s1538_s25  ;;  %s1967_s20 = smov %s1527_s22 }
 0x176   :  { %14 = sbr.rel (!%p12_p10) target bundleno = 2 (0x2), region = 152 }

// kernel: resnet20_forward.23
= control target key start
LH: loop header
LB: loop body
LE: loop exit
PB: predicated region body
PF: predicated region fallthrough
CT: control target
= control target key end

     0   :  { %s1352_s15 = smov 0   ;;  %s1354_s16 = smov 0   ;;  %s1726_s0 = inlined_call_operand.vmem [shape: bf16[16,144], index: 0, kind: input, shape index: {}]   ;;  %s1727_s1 = inlined_call_operand.vmem [shape: bf16[144,2048], index: 1, kind: input, shape index: {}]   ;;  %s1728_s2 = inlined_call_operand.vmem [shape: f32[16,1], index: 2, kind: input, shape index: {}]   ;;  %s1729_s3 = inlined_call_operand.vmem [shape: f32[16,1], index: 3, kind: input, shape index: {}]   ;;  %s1730_s4 = inlined_call_operand.vmem [shape: f32[16,2048], index: 4, kind: output, shape index: {}]  }
   0x1   :  { %s1356_s17 = smov 0  }
   0x2 LB: > { %s1177_s18 = sadd.s32 4294967295, %s1324_s17   ;;  %s1369_s19 = sadd.s32 1, %s1324_s17   ;;  %s1324_s17 = sphi %s1356_s17, %s1734_s17   ;;  %s1320_s16 = sphi %s1354_s16, %s1733_s16   ;;  %s1316_s15 = sphi %s1352_s15, %s1732_s15  }
   0x3   : > { %s39_s20 = ssub.s32 %s1324_s17, %s1369_s19  ;;  %s42_s21 = sadd.s32 1, %s1320_s16 }
   0x4   : > { %p40_p0 = scmp.eq.s32.totalorder %s39_s20, 0  ;;  %p49_p1 = scmp.ne.s32.totalorder %s1320_s16, %s1316_s15 }
   0x5   : > { %p50_p2 = scmp.eq.s32.totalorder %s1324_s17, 0  ;;  %p121_p3 = scmp.eq.s32.totalorder %s1177_s18, 1 }
   0x6   : > { %s1380_s22 = scalar_select %p40_p0, %s1320_s16, %s42_s21  }
   0x7   : > { %p51_p4 = por %p50_p2, %p49_p1  ;;  %p1382_p5 = por %p121_p3, %p49_p1 }
   0x8   : > { %p1180_p6 = scmp.ge.s32.totalorder %s1324_s17, 2 }
   0xa   : > { %152 = sbr.rel (%p1180_p6) target bundleno = 56 (0x38), region = 28 }
   0xf   : > { %155 = sbr.rel (!%p51_p4) target bundleno = 56 (0x38), region = 32  ;;  %s157_s24 = sand.u32 (%p51_p4), 1, %s1320_s16  }
  0x10   : > { %s1268_s25 = sshll.u32 (%p51_p4), %s1324_s17, 5  ;;  %s1270_s26 = smul.u32 (%p51_p4), 576, %s157_s24 }
  0x11   : > { %s1392_s29 = scalar_lea.vmem (%p51_p4), %s1727_s1, %s1268_s25 }
  0x12   : > { %v175_v0 = vld [vmem:[%s1392_s29] sm:$0xff] (%p51_p4)  ;;  %v177_v1 = vld [vmem:[%s1392_s29 + $0x8] sm:$0xff] (%p51_p4)  ;;  %v179_v2 = vld [vmem:[%s1392_s29 + $0x10] sm:$0xff] (%p51_p4)  ;;  %s1400_s30 = scalar_lea.vmem (%p51_p4), [#allocation2], %s1270_s26 }
  0x13   : > { %v181_v3 = vld [vmem:[%s1392_s29 + $0x18] sm:$0xff] (%p51_p4)  ;;  %v183_v4 = vld [vmem:[%s1392_s29 + $0x40] sm:$0xff] (%p51_p4)  ;;  %v185_v5 = vld [vmem:[%s1392_s29 + $0x48] sm:$0xff] (%p51_p4)  ;;  %176 = vst [vmem:[%s1400_s30] sm:$0xff] (%p51_p4), %v175_v0 }
  0x14   : > { %178 = vst [vmem:[%s1400_s30 + $0x8] sm:$0xff] %v177_v1  ;;  %180 = vst [vmem:[%s1400_s30 + $0x10] sm:$0xff] %v179_v2  ;;  %v187_v6 = vld [vmem:[%s1392_s29 + $0x50] sm:$0xff]  ;;  %v189_v7 = vld [vmem:[%s1392_s29 + $0x58] sm:$0xff] }
  0x15   : > { %182 = vst [vmem:[%s1400_s30 + $0x18] sm:$0xff] %v181_v3  ;;  %184 = vst [vmem:[%s1400_s30 + $0x20] sm:$0xff] %v183_v4  ;;  %v191_v8 = vld [vmem:[%s1392_s29 + $0x80] sm:$0xff]  ;;  %v193_v9 = vld [vmem:[%s1392_s29 + $0x88] sm:$0xff] }
  0x16   : > { %186 = vst [vmem:[%s1400_s30 + $0x28] sm:$0xff] %v185_v5  ;;  %188 = vst [vmem:[%s1400_s30 + $0x30] sm:$0xff] %v187_v6  ;;  %v195_v10 = vld [vmem:[%s1392_s29 + $0x90] sm:$0xff]  ;;  %v197_v11 = vld [vmem:[%s1392_s29 + $0x98] sm:$0xff] }
  0x17   : > { %190 = vst [vmem:[%s1400_s30 + $0x38] sm:$0xff] %v189_v7  ;;  %192 = vst [vmem:[%s1400_s30 + $0x40] sm:$0xff] %v191_v8  ;;  %v199_v12 = vld [vmem:[%s1392_s29 + $0xc0] sm:$0xff]  ;;  %v201_v13 = vld [vmem:[%s1392_s29 + $0xc8] sm:$0xff] }
  0x18   : > { %194 = vst [vmem:[%s1400_s30 + $0x48] sm:$0xff] %v193_v9  ;;  %196 = vst [vmem:[%s1400_s30 + $0x50] sm:$0xff] %v195_v10  ;;  %v203_v14 = vld [vmem:[%s1392_s29 + $0xd0] sm:$0xff]  ;;  %v205_v15 = vld [vmem:[%s1392_s29 + $0xd8] sm:$0xff] }
  0x19   : > { %198 = vst [vmem:[%s1400_s30 + $0x58] sm:$0xff] %v197_v11  ;;  %200 = vst [vmem:[%s1400_s30 + $0x60] sm:$0xff] %v199_v12  ;;  %v207_v16 = vld [vmem:[%s1392_s29 + $0x100] sm:$0xff]  ;;  %v209_v17 = vld [vmem:[%s1392_s29 + $0x108] sm:$0xff] }
  0x1a   : > { %202 = vst [vmem:[%s1400_s30 + $0x68] sm:$0xff] %v201_v13  ;;  %204 = vst [vmem:[%s1400_s30 + $0x70] sm:$0xff] %v203_v14  ;;  %v211_v18 = vld [vmem:[%s1392_s29 + $0x110] sm:$0xff]  ;;  %v213_v19 = vld [vmem:[%s1392_s29 + $0x118] sm:$0xff] }
  0x1b   : > { %206 = vst [vmem:[%s1400_s30 + $0x78] sm:$0xff] %v205_v15  ;;  %208 = vst [vmem:[%s1400_s30 + $0x80] sm:$0xff] %v207_v16  ;;  %v215_v20 = vld [vmem:[%s1392_s29 + $0x140] sm:$0xff]  ;;  %v217_v21 = vld [vmem:[%s1392_s29 + $0x148] sm:$0xff] }
  0x1c   : > { %210 = vst [vmem:[%s1400_s30 + $0x88] sm:$0xff] %v209_v17  ;;  %212 = vst [vmem:[%s1400_s30 + $0x90] sm:$0xff] %v211_v18  ;;  %v219_v22 = vld [vmem:[%s1392_s29 + $0x150] sm:$0xff]  ;;  %v221_v23 = vld [vmem:[%s1392_s29 + $0x158] sm:$0xff] }
  0x1d   : > { %214 = vst [vmem:[%s1400_s30 + $0x98] sm:$0xff] %v213_v19  ;;  %216 = vst [vmem:[%s1400_s30 + $0xa0] sm:$0xff] %v215_v20  ;;  %v223_v24 = vld [vmem:[%s1392_s29 + $0x180] sm:$0xff]  ;;  %v225_v25 = vld [vmem:[%s1392_s29 + $0x188] sm:$0xff] }
  0x1e   : > { %218 = vst [vmem:[%s1400_s30 + $0xa8] sm:$0xff] %v217_v21  ;;  %220 = vst [vmem:[%s1400_s30 + $0xb0] sm:$0xff] %v219_v22  ;;  %v227_v26 = vld [vmem:[%s1392_s29 + $0x190] sm:$0xff]  ;;  %v229_v27 = vld [vmem:[%s1392_s29 + $0x198] sm:$0xff] }
  0x1f   : > { %222 = vst [vmem:[%s1400_s30 + $0xb8] sm:$0xff] %v221_v23  ;;  %224 = vst [vmem:[%s1400_s30 + $0xc0] sm:$0xff] %v223_v24  ;;  %v231_v28 = vld [vmem:[%s1392_s29 + $0x1c0] sm:$0xff]  ;;  %v233_v29 = vld [vmem:[%s1392_s29 + $0x1c8] sm:$0xff] }
  0x20   : > { %226 = vst [vmem:[%s1400_s30 + $0xc8] sm:$0xff] %v225_v25  ;;  %228 = vst [vmem:[%s1400_s30 + $0xd0] sm:$0xff] %v227_v26  ;;  %v235_v30 = vld [vmem:[%s1392_s29 + $0x1d0] sm:$0xff]  ;;  %v237_v31 = vld [vmem:[%s1392_s29 + $0x1d8] sm:$0xff] }
  0x21   : > { %230 = vst [vmem:[%s1400_s30 + $0xd8] sm:$0xff] %v229_v27  ;;  %232 = vst [vmem:[%s1400_s30 + $0xe0] sm:$0xff] %v231_v28  ;;  %v239_v32 = vld [vmem:[%s1392_s29 + $0x200] sm:$0xff]  ;;  %v241_v33 = vld [vmem:[%s1392_s29 + $0x208] sm:$0xff] }
  0x22   : > { %234 = vst [vmem:[%s1400_s30 + $0xe8] sm:$0xff] %v233_v29  ;;  %236 = vst [vmem:[%s1400_s30 + $0xf0] sm:$0xff] %v235_v30  ;;  %v243_v34 = vld [vmem:[%s1392_s29 + $0x210] sm:$0xff]  ;;  %v245_v35 = vld [vmem:[%s1392_s29 + $0x218] sm:$0xff] }
  0x23   : > { %238 = vst [vmem:[%s1400_s30 + $0xf8] sm:$0xff] %v237_v31  ;;  %240 = vst [vmem:[%s1400_s30 + $0x100] sm:$0xff] %v239_v32  ;;  %v247_v36 = vld [vmem:[%s1392_s29 + $0x240] sm:$0xff]  ;;  %v249_v37 = vld [vmem:[%s1392_s29 + $0x248] sm:$0xff] }
  0x24   : > { %242 = vst [vmem:[%s1400_s30 + $0x108] sm:$0xff] %v241_v33  ;;  %244 = vst [vmem:[%s1400_s30 + $0x110] sm:$0xff] %v243_v34  ;;  %v251_v38 = vld [vmem:[%s1392_s29 + $0x250] sm:$0xff]  ;;  %v253_v39 = vld [vmem:[%s1392_s29 + $0x258] sm:$0xff] }
  0x25   : > { %246 = vst [vmem:[%s1400_s30 + $0x118] sm:$0xff] %v245_v35  ;;  %248 = vst [vmem:[%s1400_s30 + $0x120] sm:$0xff] %v247_v36  ;;  %v255_v40 = vld [vmem:[%s1392_s29 + $0x280] sm:$0xff]  ;;  %v257_v41 = vld [vmem:[%s1392_s29 + $0x288] sm:$0xff] }
  0x26   : > { %250 = vst [vmem:[%s1400_s30 + $0x128] sm:$0xff] %v249_v37  ;;  %252 = vst [vmem:[%s1400_s30 + $0x130] sm:$0xff] %v251_v38  ;;  %v259_v42 = vld [vmem:[%s1392_s29 + $0x290] sm:$0xff]  ;;  %v261_v43 = vld [vmem:[%s1392_s29 + $0x298] sm:$0xff] }
  0x27   : > { %254 = vst [vmem:[%s1400_s30 + $0x138] sm:$0xff] %v253_v39  ;;  %256 = vst [vmem:[%s1400_s30 + $0x140] sm:$0xff] %v255_v40  ;;  %v263_v44 = vld [vmem:[%s1392_s29 + $0x2c0] sm:$0xff]  ;;  %v265_v45 = vld [vmem:[%s1392_s29 + $0x2c8] sm:$0xff] }
  0x28   : > { %258 = vst [vmem:[%s1400_s30 + $0x148] sm:$0xff] %v257_v41  ;;  %260 = vst [vmem:[%s1400_s30 + $0x150] sm:$0xff] %v259_v42  ;;  %v267_v46 = vld [vmem:[%s1392_s29 + $0x2d0] sm:$0xff]  ;;  %v269_v47 = vld [vmem:[%s1392_s29 + $0x2d8] sm:$0xff] }
  0x29   : > { %262 = vst [vmem:[%s1400_s30 + $0x158] sm:$0xff] %v261_v43  ;;  %264 = vst [vmem:[%s1400_s30 + $0x160] sm:$0xff] %v263_v44  ;;  %v271_v48 = vld [vmem:[%s1392_s29 + $0x300] sm:$0xff]  ;;  %v273_v49 = vld [vmem:[%s1392_s29 + $0x308] sm:$0xff] }
  0x2a   : > { %266 = vst [vmem:[%s1400_s30 + $0x168] sm:$0xff] %v265_v45  ;;  %268 = vst [vmem:[%s1400_s30 + $0x170] sm:$0xff] %v267_v46  ;;  %v275_v50 = vld [vmem:[%s1392_s29 + $0x310] sm:$0xff]  ;;  %v277_v51 = vld [vmem:[%s1392_s29 + $0x318] sm:$0xff] }
  0x2b   : > { %270 = vst [vmem:[%s1400_s30 + $0x178] sm:$0xff] %v269_v47  ;;  %272 = vst [vmem:[%s1400_s30 + $0x180] sm:$0xff] %v271_v48  ;;  %v279_v52 = vld [vmem:[%s1392_s29 + $0x340] sm:$0xff]  ;;  %v281_v53 = vld [vmem:[%s1392_s29 + $0x348] sm:$0xff] }
  0x2c   : > { %274 = vst [vmem:[%s1400_s30 + $0x188] sm:$0xff] %v273_v49  ;;  %276 = vst [vmem:[%s1400_s30 + $0x190] sm:$0xff] %v275_v50  ;;  %v283_v54 = vld [vmem:[%s1392_s29 + $0x350] sm:$0xff]  ;;  %v285_v55 = vld [vmem:[%s1392_s29 + $0x358] sm:$0xff] }
  0x2d   : > { %278 = vst [vmem:[%s1400_s30 + $0x198] sm:$0xff] %v277_v51  ;;  %280 = vst [vmem:[%s1400_s30 + $0x1a0] sm:$0xff] %v279_v52  ;;  %v287_v56 = vld [vmem:[%s1392_s29 + $0x380] sm:$0xff]  ;;  %v289_v57 = vld [vmem:[%s1392_s29 + $0x388] sm:$0xff] }
  0x2e   : > { %282 = vst [vmem:[%s1400_s30 + $0x1a8] sm:$0xff] %v281_v53  ;;  %284 = vst [vmem:[%s1400_s30 + $0x1b0] sm:$0xff] %v283_v54  ;;  %v291_v58 = vld [vmem:[%s1392_s29 + $0x390] sm:$0xff]  ;;  %v293_v59 = vld [vmem:[%s1392_s29 + $0x398] sm:$0xff] }
  0x2f   : > { %286 = vst [vmem:[%s1400_s30 + $0x1b8] sm:$0xff] %v285_v55  ;;  %288 = vst [vmem:[%s1400_s30 + $0x1c0] sm:$0xff] %v287_v56  ;;  %v295_v60 = vld [vmem:[%s1392_s29 + $0x3c0] sm:$0xff]  ;;  %v297_v61 = vld [vmem:[%s1392_s29 + $0x3c8] sm:$0xff] }
  0x30   : > { %290 = vst [vmem:[%s1400_s30 + $0x1c8] sm:$0xff] %v289_v57  ;;  %292 = vst [vmem:[%s1400_s30 + $0x1d0] sm:$0xff] %v291_v58  ;;  %v299_v62 = vld [vmem:[%s1392_s29 + $0x3d0] sm:$0xff]  ;;  %v301_v63 = vld [vmem:[%s1392_s29 + $0x3d8] sm:$0xff] }
  0x31   : > { %294 = vst [vmem:[%s1400_s30 + $0x1d8] sm:$0xff] %v293_v59  ;;  %296 = vst [vmem:[%s1400_s30 + $0x1e0] sm:$0xff] %v295_v60  ;;  %v303_v0 = vld [vmem:[%s1392_s29 + $0x400] sm:$0xff]  ;;  %v305_v1 = vld [vmem:[%s1392_s29 + $0x408] sm:$0xff] }
  0x32   : > { %298 = vst [vmem:[%s1400_s30 + $0x1e8] sm:$0xff] %v297_v61  ;;  %300 = vst [vmem:[%s1400_s30 + $0x1f0] sm:$0xff] %v299_v62  ;;  %v307_v2 = vld [vmem:[%s1392_s29 + $0x410] sm:$0xff]  ;;  %v309_v3 = vld [vmem:[%s1392_s29 + $0x418] sm:$0xff] }
  0x33   : > { %302 = vst [vmem:[%s1400_s30 + $0x1f8] sm:$0xff] %v301_v63  ;;  %304 = vst [vmem:[%s1400_s30 + $0x200] sm:$0xff] %v303_v0  ;;  %v311_v4 = vld [vmem:[%s1392_s29 + $0x440] sm:$0xff]  ;;  %v313_v5 = vld [vmem:[%s1392_s29 + $0x448] sm:$0xff] }
  0x34   : > { %306 = vst [vmem:[%s1400_s30 + $0x208] sm:$0xff] %v305_v1  ;;  %308 = vst [vmem:[%s1400_s30 + $0x210] sm:$0xff] %v307_v2  ;;  %v315_v6 = vld [vmem:[%s1392_s29 + $0x450] sm:$0xff]  ;;  %v317_v7 = vld [vmem:[%s1392_s29 + $0x458] sm:$0xff] }
  0x35   : > { %310 = vst [vmem:[%s1400_s30 + $0x218] sm:$0xff] %v309_v3  ;;  %312 = vst [vmem:[%s1400_s30 + $0x220] sm:$0xff] %v311_v4 }
  0x36   : > { %314 = vst [vmem:[%s1400_s30 + $0x228] sm:$0xff] %v313_v5  ;;  %316 = vst [vmem:[%s1400_s30 + $0x230] sm:$0xff] %v315_v6 }
  0x37   : > { %318 = vst [vmem:[%s1400_s30 + $0x238] sm:$0xff] %v317_v7 }
  0x38 PF: > { %p1183_p7 = scmp.ge.s32.totalorder %s1324_s17, 1  ;;  %p323_p8 = scmp.lt.s32.totalorder %s1324_s17, 3 }
  0x3a   : > { %p324_p9 = pnand %p1183_p7, %p323_p8 }
  0x3b   : > { %s330_s5 = sand.u32 (!%p324_p9), 1, %s1316_s15  }
  0x3c   : > { %327 = sbr.rel (%p324_p9) target bundleno = 358 (0x166), region = 55  ;;  %s1184_s27 = sshll.u32 (!%p324_p9), %s330_s5, 7 }
  0x3d   : > { %s1271_s8 = smul.u32 (!%p324_p9), 576, %s330_s5  ;;  %s1661_s15 = scalar_lea.vmem (!%p324_p9), [#allocation3], %s1184_s27 }
  0x3f   : > { %s1560_s13 = scalar_lea.vmem (!%p324_p9), [#allocation2], %s1271_s8 }
  0x41   : > { %v1546_v8 = vld [vmem:[%s1726_s0 + $0x4] ss:$8 sps:$4 sm:$0xff]   ;;  %vm800_vm0 = vcmask 130048   ;;  %v1326_v11 = vmov 0   ;;  %s1269_s28 = sshll.u32 (%p1382_p5), %s1177_s18, 6 }
  0x42   : > { %v976_v9 = vld [vmem:[%s1728_s2] sm:$0xff]  ;;  %1259 = vmatprep.mubr.msk.bf16.mxu0 %vm800_vm0, %v1546_v8  ;;  %1260 = vmatprep.mubr.msk.bf16.mxu1 %vm800_vm0, %v1546_v8  ;;  %v416_v14 = vld [vmem:[%s1560_s13 + $0x1c8] sm:$0xff]  ;;  %s1073_s23 = scalar_lea.vmem (%p1382_p5), %s1730_s4, %s1269_s28 }
  0x43   : > { %v1004_v10 = vld [vmem:[%s1729_s3] sm:$0xff]  ;;  %1297 = vset.pattern.permute.xlu0 %v1326_v11  ;;  %1298 = vset.pattern.permute.xlu1 %v1326_v11  ;;  %v420_v16 = vld [vmem:[%s1560_s13 + $0x1e8] sm:$0xff] }
  0x44   : > { %v415_v12 = vld [vmem:[%s1560_s13 + $0x1c0] sm:$0xff]  ;;  %980 = vperm.xlu0 %1297, %v976_v9   ;;  %1008 = vperm.xlu1 %1298, %v1004_v10   ;;  %v1246_v20 = vcombine.high %v416_v14, %v420_v16  ;;  %v1245_v21 = vcombine.low %v416_v14, %v420_v16  ;;  %v408_v23 = vld [vmem:[%s1560_s13 + $0x188] sm:$0xff] }
  0x45   : > { %v419_v13 = vld [vmem:[%s1560_s13 + $0x1e0] sm:$0xff]  ;;  %v412_v24 = vld [vmem:[%s1560_s13 + $0x1a8] sm:$0xff] }
  0x46   : > { %v1244_v15 = vcombine.high %v415_v12, %v419_v13  ;;  %v1243_v17 = vcombine.low %v415_v12, %v419_v13  ;;  %v407_v18 = vld [vmem:[%s1560_s13 + $0x180] sm:$0xff]  ;;  %v1238_v26 = vcombine.high %v408_v23, %v412_v24  ;;  %v400_v28 = vld [vmem:[%s1560_s13 + $0x148] sm:$0xff]  ;;  %847 = vmatprep.subr.bf16.mxu1 %v1246_v20  ;;  %v1237_v33 = vcombine.low %v408_v23, %v412_v24  ;;  %v418_v23 = vld [vmem:[%s1560_s13 + $0x1d8] sm:$0xff] }
  0x47   : > { %v411_v19 = vld [vmem:[%s1560_s13 + $0x1a0] sm:$0xff]  ;;  %v404_v29 = vld [vmem:[%s1560_s13 + $0x168] sm:$0xff]  ;;  %848 = vmatpush1.bf16.msra.mxu1 %v1245_v21  ;;  %v417_v21 = vld [vmem:[%s1560_s13 + $0x1d0] sm:$0xff] }
  0x48   : > { %v1236_v22 = vcombine.high %v407_v18, %v411_v19  ;;  %v399_v25 = vld [vmem:[%s1560_s13 + $0x140] sm:$0xff]  ;;  %804 = vmatprep.subr.bf16.mxu0 %v1244_v15  ;;  %v1235_v30 = vcombine.low %v407_v18, %v411_v19  ;;  %v977_v31 = vld [vmem:[%s1728_s2 + $0x8] sm:$0xff]  ;;  %849 = vmatprep.subr.bf16.mxu1 %v1238_v26  ;;  %v1230_v35 = vcombine.high %v400_v28, %v404_v29  ;;  %v422_v24 = vld [vmem:[%s1560_s13 + $0x1f8] sm:$0xff] }
  0x49   : > { %v403_v27 = vld [vmem:[%s1560_s13 + $0x160] sm:$0xff]  ;;  %805 = vmatpush1.bf16.msra.mxu0 %v1243_v17  ;;  %v1005_v32 = vld [vmem:[%s1729_s3 + $0x8] sm:$0xff]  ;;  %985 = vperm.xlu0 %1297, %v977_v31   ;;  %v1229_v41 = vcombine.low %v400_v28, %v404_v29  ;;  %v1250_v28 = vcombine.high %v418_v23, %v422_v24  ;;  %v409_v29 = vld [vmem:[%s1560_s13 + $0x190] sm:$0xff] }
  0x4a   : > { %806 = vmatprep.subr.bf16.mxu0 %v1236_v22  ;;  %v1228_v34 = vcombine.high %v399_v25, %v403_v27  ;;  %v391_v36 = vld [vmem:[%s1560_s13 + $0x100] sm:$0xff]  ;;  %v392_v38 = vld [vmem:[%s1560_s13 + $0x108] sm:$0xff]  ;;  %1013 = vperm.xlu1 %1298, %v1005_v32   ;;  %v1227_v40 = vcombine.low %v399_v25, %v403_v27  ;;  %v421_v22 = vld [vmem:[%s1560_s13 + $0x1f0] sm:$0xff] }
  0x4b   : > { %v395_v37 = vld [vmem:[%s1560_s13 + $0x120] sm:$0xff]  ;;  %v396_v39 = vld [vmem:[%s1560_s13 + $0x128] sm:$0xff]  ;;  %850 = vmatpush1.bf16.msra.mxu1 %v1237_v33  ;;  %v1248_v27 = vcombine.high %v417_v21, %v421_v22  ;;  %v410_v32 = vld [vmem:[%s1560_s13 + $0x198] sm:$0xff] }
  0x4c   : > { %v1220_v42 = vcombine.high %v391_v36, %v395_v37  ;;  %851 = vmatprep.subr.bf16.mxu1 %v1230_v35  ;;  %v1222_v43 = vcombine.high %v392_v38, %v396_v39  ;;  %v383_v44 = vld [vmem:[%s1560_s13 + $0xc0] sm:$0xff]  ;;  %v384_v46 = vld [vmem:[%s1560_s13 + $0xc8] sm:$0xff]  ;;  %v1219_v48 = vcombine.low %v391_v36, %v395_v37  ;;  %v1221_v49 = vcombine.low %v392_v38, %v396_v39  ;;  %v414_v33 = vld [vmem:[%s1560_s13 + $0x1b8] sm:$0xff] }
  0x4d   : > { %807 = vmatpush1.bf16.msra.mxu0 %v1235_v30  ;;  %v387_v45 = vld [vmem:[%s1560_s13 + $0xe0] sm:$0xff]  ;;  %v388_v47 = vld [vmem:[%s1560_s13 + $0xe8] sm:$0xff]  ;;  %v413_v30 = vld [vmem:[%s1560_s13 + $0x1b0] sm:$0xff]  ;;  %v1249_v35 = vcombine.low %v418_v23, %v422_v24  ;;  %v1242_v37 = vcombine.high %v410_v32, %v414_v33 }
  0x4e   : > { %808 = vmatprep.subr.bf16.mxu0 %v1228_v34  ;;  %v1212_v50 = vcombine.high %v383_v44, %v387_v45  ;;  %v1214_v51 = vcombine.high %v384_v46, %v388_v47  ;;  %v375_v52 = vld [vmem:[%s1560_s13 + $0x80] sm:$0xff]  ;;  %v376_v54 = vld [vmem:[%s1560_s13 + $0x88] sm:$0xff]  ;;  %v1211_v56 = vcombine.low %v383_v44, %v387_v45  ;;  %v1213_v57 = vcombine.low %v384_v46, %v388_v47  ;;  %v401_v38 = vld [vmem:[%s1560_s13 + $0x150] sm:$0xff] }
  0x4f   : > { %852 = vmatpush1.bf16.msra.mxu1 %v1229_v41  ;;  %v379_v53 = vld [vmem:[%s1560_s13 + $0xa0] sm:$0xff]  ;;  %v380_v55 = vld [vmem:[%s1560_s13 + $0xa8] sm:$0xff]  ;;  %v1247_v34 = vcombine.low %v417_v21, %v421_v22  ;;  %v1240_v36 = vcombine.high %v409_v29, %v413_v30  ;;  %v405_v39 = vld [vmem:[%s1560_s13 + $0x170] sm:$0xff] }
  0x50   : > { %853 = vmatprep.subr.bf16.mxu1 %v1222_v43  ;;  %v1204_v58 = vcombine.high %v375_v52, %v379_v53  ;;  %v1206_v59 = vcombine.high %v376_v54, %v380_v55  ;;  %v367_v60 = vld [vmem:[%s1560_s13 + $0x40] sm:$0xff]  ;;  %v368_v62 = vld [vmem:[%s1560_s13 + $0x48] sm:$0xff]  ;;  %v1203_v0 = vcombine.low %v375_v52, %v379_v53  ;;  %v1205_v1 = vcombine.low %v376_v54, %v380_v55  ;;  %v406_v41 = vld [vmem:[%s1560_s13 + $0x178] sm:$0xff] }
  0x51   : > { %809 = vmatpush1.bf16.msra.mxu0 %v1227_v40  ;;  %v371_v61 = vld [vmem:[%s1560_s13 + $0x60] sm:$0xff]  ;;  %v372_v63 = vld [vmem:[%s1560_s13 + $0x68] sm:$0xff]  ;;  %v402_v40 = vld [vmem:[%s1560_s13 + $0x158] sm:$0xff]  ;;  %v1241_v43 = vcombine.low %v410_v32, %v414_v33  ;;  %v1232_v44 = vcombine.high %v401_v38, %v405_v39 }
  0x52   : > { %810 = vmatprep.subr.bf16.mxu0 %v1220_v42  ;;  %v1196_v2 = vcombine.high %v367_v60, %v371_v61  ;;  %v1198_v3 = vcombine.high %v368_v62, %v372_v63  ;;  %v359_v4 = vld [vmem:[%s1560_s13] sm:$0xff]  ;;  %v360_v6 = vld [vmem:[%s1560_s13 + $0x8] sm:$0xff]  ;;  %v1195_v9 = vcombine.low %v367_v60, %v371_v61  ;;  %v1197_v10 = vcombine.low %v368_v62, %v372_v63  ;;  %v393_v46 = vld [vmem:[%s1560_s13 + $0x110] sm:$0xff] }
  0x53   : > { %854 = vmatpush1.bf16.msra.mxu1 %v1221_v49  ;;  %v363_v5 = vld [vmem:[%s1560_s13 + $0x20] sm:$0xff]  ;;  %v364_v7 = vld [vmem:[%s1560_s13 + $0x28] sm:$0xff]  ;;  %v1239_v42 = vcombine.low %v409_v29, %v413_v30  ;;  %v1234_v45 = vcombine.high %v402_v40, %v406_v41  ;;  %v397_v47 = vld [vmem:[%s1560_s13 + $0x130] sm:$0xff] }
  0x54   : > { %855 = vmatprep.subr.bf16.mxu1 %v1214_v51  ;;  %v1188_v11 = vcombine.high %v359_v4, %v363_v5  ;;  %v1190_v12 = vcombine.high %v360_v6, %v364_v7  ;;  %v423_v13 = vld [vmem:[%s1560_s13 + $0x200] sm:$0xff]  ;;  %v424_v15 = vld [vmem:[%s1560_s13 + $0x208] sm:$0xff]  ;;  %v1187_v17 = vcombine.low %v359_v4, %v363_v5  ;;  %v1189_v18 = vcombine.low %v360_v6, %v364_v7  ;;  %v398_v49 = vld [vmem:[%s1560_s13 + $0x138] sm:$0xff] }
  0x55   : > { %811 = vmatpush1.bf16.msra.mxu0 %v1219_v48  ;;  %v427_v14 = vld [vmem:[%s1560_s13 + $0x220] sm:$0xff]  ;;  %v428_v16 = vld [vmem:[%s1560_s13 + $0x228] sm:$0xff]  ;;  %v394_v48 = vld [vmem:[%s1560_s13 + $0x118] sm:$0xff]  ;;  %v1233_v51 = vcombine.low %v402_v40, %v406_v41  ;;  %v1224_v52 = vcombine.high %v393_v46, %v397_v47 }
  0x56   : > { %812 = vmatprep.subr.bf16.mxu0 %v1212_v50  ;;  %v1252_v19 = vcombine.high %v423_v13, %v427_v14  ;;  %v1254_v20 = vcombine.high %v424_v15, %v428_v16  ;;  %v1251_v25 = vcombine.low %v423_v13, %v427_v14  ;;  %v1253_v26 = vcombine.low %v424_v15, %v428_v16  ;;  %v1613_v31 = vld [vmem:[%s1726_s0] ss:$8 sps:$4 sm:$0xff]   ;;  %v385_v54 = vld [vmem:[%s1560_s13 + $0xd0] sm:$0xff]  ;;  %v378_v63 = vld [vmem:[%s1560_s13 + $0x98] sm:$0xff] }
  0x57   : > { %856 = vmatpush1.bf16.msra.mxu1 %v1213_v57  ;;  %v1231_v50 = vcombine.low %v401_v38, %v405_v39  ;;  %v1226_v53 = vcombine.high %v394_v48, %v398_v49  ;;  %v389_v55 = vld [vmem:[%s1560_s13 + $0xf0] sm:$0xff]  ;;  %v390_v57 = vld [vmem:[%s1560_s13 + $0xf8] sm:$0xff] }
  0x58   : > { %857 = vmatprep.subr.bf16.mxu1 %v1206_v59  ;;  %v1216_v59 = vcombine.high %v385_v54, %v389_v55  ;;  %v377_v61 = vld [vmem:[%s1560_s13 + $0x90] sm:$0xff]  ;;  %v370_v7 = vld [vmem:[%s1560_s13 + $0x58] sm:$0xff] }
  0x59   : > { %813 = vmatpush1.bf16.msra.mxu0 %v1211_v56  ;;  %v386_v56 = vld [vmem:[%s1560_s13 + $0xd8] sm:$0xff]  ;;  %v381_v62 = vld [vmem:[%s1560_s13 + $0xb0] sm:$0xff] }
  0x5a   : > { %814 = vmatprep.subr.bf16.mxu0 %v1204_v58  ;;  %v1223_v58 = vcombine.low %v393_v46, %v397_v47  ;;  %v1218_v60 = vcombine.high %v386_v56, %v390_v57  ;;  %v369_v5 = vld [vmem:[%s1560_s13 + $0x50] sm:$0xff]  ;;  %v362_v16 = vld [vmem:[%s1560_s13 + $0x18] sm:$0xff] }
  0x5b   : > { %858 = vmatpush1.bf16.msra.mxu1 %v1205_v1  ;;  %v1215_v1 = vcombine.low %v385_v54, %v389_v55  ;;  %v373_v6 = vld [vmem:[%s1560_s13 + $0x70] sm:$0xff]  ;;  %v426_v24 = vld [vmem:[%s1560_s13 + $0x218] sm:$0xff] }
  0x5c   : > { %859 = vmatprep.subr.bf16.mxu1 %v1198_v3  ;;  %v1208_v3 = vcombine.high %v377_v61, %v381_v62  ;;  %v361_v14 = vld [vmem:[%s1560_s13 + $0x10] sm:$0xff] }
  0x5d   : > { %815 = vmatpush1.bf16.msra.mxu0 %v1203_v0  ;;  %v382_v0 = vld [vmem:[%s1560_s13 + $0xb8] sm:$0xff]  ;;  %v365_v15 = vld [vmem:[%s1560_s13 + $0x30] sm:$0xff] }
  0x5e   : > { %816 = vmatprep.subr.bf16.mxu0 %v1196_v2  ;;  %v1217_v2 = vcombine.low %v386_v56, %v390_v57  ;;  %v1210_v4 = vcombine.high %v378_v63, %v382_v0  ;;  %v425_v22 = vld [vmem:[%s1560_s13 + $0x210] sm:$0xff] }
  0x5f   : > { %860 = vmatpush1.bf16.msra.mxu1 %v1197_v10  ;;  %v1207_v10 = vcombine.low %v377_v61, %v381_v62  ;;  %v429_v23 = vld [vmem:[%s1560_s13 + $0x230] sm:$0xff] }
  0x60   : > { %861 = vmatprep.subr.bf16.mxu1 %v1190_v12  ;;  %v1200_v12 = vcombine.high %v369_v5, %v373_v6  ;;  %v1255_v30 = vcombine.low %v425_v22, %v429_v23 }
  0x61   : > { %817 = vmatpush1.bf16.msra.mxu0 %v1195_v9  ;;  %v374_v9 = vld [vmem:[%s1560_s13 + $0x78] sm:$0xff] }
  0x62   : > { %818 = vmatprep.subr.bf16.mxu0 %v1188_v11  ;;  %v1209_v11 = vcombine.low %v378_v63, %v382_v0  ;;  %v1202_v13 = vcombine.high %v370_v7, %v374_v9 }
  0x63   : > { %862 = vmatpush1.bf16.msra.mxu1 %v1189_v18  ;;  %v1199_v18 = vcombine.low %v369_v5, %v373_v6 }
  0x64   : > { %877 = vmatprep.subr.bf16.mxu1 %v1254_v20  ;;  %v1192_v20 = vcombine.high %v361_v14, %v365_v15 }
  0x65   : > { %819 = vmatpush1.bf16.msra.mxu0 %v1187_v17  ;;  %v366_v17 = vld [vmem:[%s1560_s13 + $0x38] sm:$0xff] }
  0x66   : > { %834 = vmatprep.subr.bf16.mxu0 %v1252_v19  ;;  %v1201_v19 = vcombine.low %v370_v7, %v374_v9  ;;  %v1194_v21 = vcombine.high %v362_v16, %v366_v17 }
  0x67   : > { %878 = vmatpush2.bf16.msra.mxu1 %v1253_v26  ;;  %v1191_v26 = vcombine.low %v361_v14, %v365_v15 }
  0x68   : > { %933 = vmatprep.subr.bf16.mxu1 %v1250_v28  ;;  %v1256_v28 = vcombine.high %v425_v22, %v429_v23 }
  0x69   : > { %835 = vmatpush2.bf16.msra.mxu0 %v1251_v25  ;;  %v430_v25 = vld [vmem:[%s1560_s13 + $0x238] sm:$0xff] }
  0x6a   : > { %890 = vmatprep.subr.bf16.mxu0 %v1248_v27  ;;  %880 = vmatmul.mubr.bf16.vlgmr.msra.gmra.mxu1 %v1613_v31  ;;  %v1193_v27 = vcombine.low %v362_v16, %v366_v17  ;;  %v1258_v29 = vcombine.high %v426_v24, %v430_v25  ;;  %v1257_v32 = vcombine.low %v426_v24, %v430_v25 }
  0x6b   : > { %934 = vmatpush1.bf16.msra.mxu1 %v1249_v35  ;;  %1262 = vmatprep.mubr.msk.bf16.mxu1 %vm800_vm0, %v1546_v8 }
  0x6c   : > { %837 = vmatmul.mubr.bf16.vlgmr.msra.gmra.mxu0 %v1613_v31  ;;  %935 = vmatprep.subr.bf16.mxu1 %v1242_v37 }
  0x6d   : > { %891 = vmatpush1.bf16.msra.mxu0 %v1247_v34  ;;  %1261 = vmatprep.mubr.msk.bf16.mxu0 %vm800_vm0, %v1546_v8  ;;  %v1225_v8 = vcombine.low %v394_v48, %v398_v49 }
  0x6e   : > { %892 = vmatprep.subr.bf16.mxu0 %v1240_v36 }
  0x6f   : > { %936 = vmatpush1.bf16.msra.mxu1 %v1241_v43 }
  0x70   : > { %937 = vmatprep.subr.bf16.mxu1 %v1234_v45 }
  0x71   : > { %893 = vmatpush1.bf16.msra.mxu0 %v1239_v42 }
  0x72   : > { %894 = vmatprep.subr.bf16.mxu0 %v1232_v44 }
  0x73   : > { %938 = vmatpush1.bf16.msra.mxu1 %v1233_v51 }
  0x74   : > { %939 = vmatprep.subr.bf16.mxu1 %v1226_v53 }
  0x75   : > { %895 = vmatpush1.bf16.msra.mxu0 %v1231_v50 }
  0x76   : > { %896 = vmatprep.subr.bf16.mxu0 %v1224_v52 }
  0x77   : > { %940 = vmatpush1.bf16.msra.mxu1 %v1225_v8 }
  0x78   : > { %941 = vmatprep.subr.bf16.mxu1 %v1218_v60 }
  0x79   : > { %897 = vmatpush1.bf16.msra.mxu0 %v1223_v58 }
  0x7a   : > { %898 = vmatprep.subr.bf16.mxu0 %v1216_v59 }
  0x7b   : > { %942 = vmatpush1.bf16.msra.mxu1 %v1217_v2 }
  0x7c   : > { %943 = vmatprep.subr.bf16.mxu1 %v1210_v4 }
  0x7d   : > { %899 = vmatpush1.bf16.msra.mxu0 %v1215_v1 }
  0x7e   : > { %900 = vmatprep.subr.bf16.mxu0 %v1208_v3 }
  0x7f   : > { %944 = vmatpush1.bf16.msra.mxu1 %v1209_v11 }
  0x80   : > { %945 = vmatprep.subr.bf16.mxu1 %v1202_v13 }
  0x81   : > { %901 = vmatpush1.bf16.msra.mxu0 %v1207_v10 }
  0x82   : > { %902 = vmatprep.subr.bf16.mxu0 %v1200_v12 }
  0x83   : > { %946 = vmatpush1.bf16.msra.mxu1 %v1201_v19 }
  0x84   : > { %947 = vmatprep.subr.bf16.mxu1 %v1194_v21 }
  0x85   : > { %903 = vmatpush1.bf16.msra.mxu0 %v1199_v18 }
  0x86   : > { %904 = vmatprep.subr.bf16.mxu0 %v1192_v20 }
  0x87   : > { %948 = vmatpush1.bf16.msra.mxu1 %v1193_v27 }
  0x88   : > { %963 = vmatprep.subr.bf16.mxu1 %v1258_v29 }
  0x89   : > { %905 = vmatpush1.bf16.msra.mxu0 %v1191_v26 }
  0x8a   : > { %920 = vmatprep.subr.bf16.mxu0 %v1256_v28 }
  0x8b   : > { %964 = vmatpush2.bf16.msra.mxu1 %v1257_v32 }
  0x8d   : > { %921 = vmatpush2.bf16.msra.mxu0 %v1255_v30 }
  0x8e   : > { %966 = vmatmul.mubr.bf16.vlgmr.msra.gmra.mxu1 %v1613_v31 }
  0x90   : > { %923 = vmatmul.mubr.bf16.vlgmr.msra.gmra.mxu0 %v1613_v31 }
  0xbf   : > { %v981_v33 = vpop.permute.xlu0 %980  ;;  %v1009_v34 = vpop.permute.xlu1 %1008 }
  0xc4   : > { %v1655_v40 = vpop.permute.xlu0 %985 }
  0xc5   : > { %v1657_v47 = vpop.permute.xlu1 %1013 }
 0x12a   : > { %v881_v37 = vpop.f32.mrf.mxu1 }
 0x12b   : > { %v990_v38 = vmul.f32 %v981_v33, %v881_v37 }
 0x12c   : > { %v838_v35 = vpop.f32.mrf.mxu0  ;;  %v883_v43 = vpop.f32.mrf.mxu1 }
 0x12d   : > { %v988_v36 = vmul.f32 %v981_v33, %v838_v35  ;;  %v1018_v44 = vadd.f32 %v1009_v34, %v990_v38  ;;  %v991_v45 = vmul.f32 %v981_v33, %v883_v43 }
 0x12e   : > { %v840_v39 = vpop.f32.mrf.mxu0  ;;  %v885_v50 = vpop.f32.mrf.mxu1 }
 0x12f   : > { %v1016_v41 = vadd.f32 %v1009_v34, %v988_v36  ;;  %v989_v42 = vmul.f32 %v981_v33, %v840_v39  ;;  %v1034_v51 = vmax.f32 %v1018_v44, 0.0  ;;  %v1019_v52 = vadd.f32 %v1009_v34, %v991_v45 }
 0x130   : > { %v842_v46 = vpop.f32.mrf.mxu0  ;;  %v998_v53 = vmul.f32 %v1655_v40, %v885_v50  ;;  %v887_v58 = vpop.f32.mrf.mxu1 }
 0x131   : > { %v1032_v31 = vmax.f32 %v1016_v41, 0.0  ;;  %v1017_v48 = vadd.f32 %v1009_v34, %v989_v42  ;;  %v996_v49 = vmul.f32 %v1655_v40, %v842_v46  ;;  %1050 = vst [vmem:[%s1661_s15 + $0x10] sm:$0xff] %v1034_v51  ;;  %v1035_v8 = vmax.f32 %v1019_v52, 0.0 }
 0x132   : > { %v844_v54 = vpop.f32.mrf.mxu0  ;;  %v1026_v59 = vadd.f32 %v1657_v47, %v998_v53  ;;  %v999_v60 = vmul.f32 %v1655_v40, %v887_v58 }
 0x133   : > { %1048 = vst [vmem:[%s1661_s15] sm:$0xff] %v1032_v31  ;;  %v1033_v55 = vmax.f32 %v1017_v48, 0.0  ;;  %v1024_v56 = vadd.f32 %v1657_v47, %v996_v49  ;;  %v997_v57 = vmul.f32 %v1655_v40, %v844_v54  ;;  %1051 = vst [vmem:[%s1661_s15 + $0x18] sm:$0xff] %v1035_v8 }
 0x134   : > { %v1042_v63 = vmax.f32 %v1026_v59, 0.0  ;;  %v1027_v0 = vadd.f32 %v1657_v47, %v999_v60 }
 0x135   : > { %1049 = vst [vmem:[%s1661_s15 + $0x8] sm:$0xff] %v1033_v55  ;;  %v1040_v61 = vmax.f32 %v1024_v56, 0.0  ;;  %v1025_v62 = vadd.f32 %v1657_v47, %v997_v57 }
 0x136   : > { %1058 = vst [vmem:[%s1661_s15 + $0x50] sm:$0xff] %v1042_v63  ;;  %v1043_v2 = vmax.f32 %v1027_v0, 0.0 }
 0x137   : > { %1056 = vst [vmem:[%s1661_s15 + $0x40] sm:$0xff] %v1040_v61  ;;  %v1041_v1 = vmax.f32 %v1025_v62, 0.0 }
 0x138   : > { %1059 = vst [vmem:[%s1661_s15 + $0x58] sm:$0xff] %v1043_v2  ;;  %v1090_v39 = vld [vmem:[%s1661_s15 + $0x10] sm:$0xff] (%p1382_p5) }
 0x139   : > { %1057 = vst [vmem:[%s1661_s15 + $0x48] sm:$0xff] %v1041_v1  ;;  %1091 = vst [vmem:[%s1073_s23 + $0x10] sm:$0xff] (%p1382_p5), %v1090_v39 }
 0x13a   : > { %v1086_v37 = vld [vmem:[%s1661_s15] sm:$0xff] (%p1382_p5) }
 0x13b   : > { %1087 = vst [vmem:[%s1073_s23] sm:$0xff] (%p1382_p5), %v1086_v37 }
 0x13c   : > { %v1088_v38 = vld [vmem:[%s1661_s15 + $0x8] sm:$0xff] (%p1382_p5) }
 0x13d   : > { %1089 = vst [vmem:[%s1073_s23 + $0x8] sm:$0xff] (%p1382_p5), %v1088_v38 }
 0x13e   : > { %v1102_v45 = vld [vmem:[%s1661_s15 + $0x40] sm:$0xff] (%p1382_p5) }
 0x13f   : > { %1103 = vst [vmem:[%s1073_s23 + $0x80] sm:$0xff] (%p1382_p5), %v1102_v45  ;;  %v1108_v31 = vld [vmem:[%s1661_s15 + $0x58] sm:$0xff] (%p1382_p5) }
 0x140   : > { %v1104_v46 = vld [vmem:[%s1661_s15 + $0x48] sm:$0xff] (%p1382_p5)  ;;  %1109 = vst [vmem:[%s1073_s23 + $0x98] sm:$0xff] (%p1382_p5), %v1108_v31 }
 0x141   : > { %1105 = vst [vmem:[%s1073_s23 + $0x88] sm:$0xff] (%p1382_p5), %v1104_v46 }
 0x14e   : > { %v967_v5 = vpop.f32.mrf.mxu1 }
 0x14f   : > { %v994_v6 = vmul.f32 %v981_v33, %v967_v5 }
 0x150   : > { %v924_v3 = vpop.f32.mrf.mxu0  ;;  %v969_v11 = vpop.f32.mrf.mxu1 }
 0x151   : > { %v992_v4 = vmul.f32 %v981_v33, %v924_v3  ;;  %v1022_v12 = vadd.f32 %v1009_v34, %v994_v6  ;;  %v995_v13 = vmul.f32 %v981_v33, %v969_v11 }
 0x152   : > { %v926_v7 = vpop.f32.mrf.mxu0  ;;  %v971_v18 = vpop.f32.mrf.mxu1 }
 0x153   : > { %v1020_v9 = vadd.f32 %v1009_v34, %v992_v4  ;;  %v993_v10 = vmul.f32 %v981_v33, %v926_v7  ;;  %v1038_v19 = vmax.f32 %v1022_v12, 0.0  ;;  %v1023_v20 = vadd.f32 %v1009_v34, %v995_v13 }
 0x154   : > { %v928_v14 = vpop.f32.mrf.mxu0  ;;  %v1002_v21 = vmul.f32 %v1655_v40, %v971_v18  ;;  %v973_v26 = vpop.f32.mrf.mxu1 }
 0x155   : > { %v1036_v15 = vmax.f32 %v1020_v9, 0.0  ;;  %v1021_v16 = vadd.f32 %v1009_v34, %v993_v10  ;;  %v1000_v17 = vmul.f32 %v1655_v40, %v928_v14  ;;  %1054 = vst [vmem:[%s1661_s15 + $0x30] sm:$0xff] %v1038_v19  ;;  %v1039_v27 = vmax.f32 %v1023_v20, 0.0 }
 0x156   : > { %v930_v22 = vpop.f32.mrf.mxu0  ;;  %v1030_v28 = vadd.f32 %v1657_v47, %v1002_v21  ;;  %v1003_v29 = vmul.f32 %v1655_v40, %v973_v26 }
 0x157   : > { %1052 = vst [vmem:[%s1661_s15 + $0x20] sm:$0xff] %v1036_v15  ;;  %v1037_v23 = vmax.f32 %v1021_v16, 0.0  ;;  %v1028_v24 = vadd.f32 %v1657_v47, %v1000_v17  ;;  %v1001_v25 = vmul.f32 %v1655_v40, %v930_v22  ;;  %1055 = vst [vmem:[%s1661_s15 + $0x38] sm:$0xff] %v1039_v27  ;;  %v1092_v40 = vld [vmem:[%s1661_s15 + $0x18] sm:$0xff] (%p1382_p5) }
 0x158   : > { %v1046_v33 = vmax.f32 %v1030_v28, 0.0  ;;  %v1031_v34 = vadd.f32 %v1657_v47, %v1003_v29  ;;  %1093 = vst [vmem:[%s1073_s23 + $0x18] sm:$0xff] (%p1382_p5), %v1092_v40 }
 0x159   : > { %1053 = vst [vmem:[%s1661_s15 + $0x28] sm:$0xff] %v1037_v23  ;;  %v1044_v30 = vmax.f32 %v1028_v24, 0.0  ;;  %v1029_v32 = vadd.f32 %v1657_v47, %v1001_v25  ;;  %1070 = sbr.rel (!%p1382_p5) target bundleno = 358 (0x166), region = 63  ;;  %v1106_v47 = vld [vmem:[%s1661_s15 + $0x50] sm:$0xff] (%p1382_p5) }
 0x15a   : > { %1062 = vst [vmem:[%s1661_s15 + $0x70] sm:$0xff] %v1046_v33  ;;  %v1047_v36 = vmax.f32 %v1031_v34, 0.0  ;;  %1107 = vst [vmem:[%s1073_s23 + $0x90] sm:$0xff] (%p1382_p5), %v1106_v47 }
 0x15b   : > { %1060 = vst [vmem:[%s1661_s15 + $0x60] sm:$0xff] %v1044_v30  ;;  %v1045_v35 = vmax.f32 %v1029_v32, 0.0 }
 0x15c   : > { %1063 = vst [vmem:[%s1661_s15 + $0x78] sm:$0xff] %v1047_v36  ;;  %v1098_v43 = vld [vmem:[%s1661_s15 + $0x30] sm:$0xff] (%p1382_p5) }
 0x15d   : > { %1061 = vst [vmem:[%s1661_s15 + $0x68] sm:$0xff] %v1045_v35  ;;  %1099 = vst [vmem:[%s1073_s23 + $0x30] sm:$0xff] (%p1382_p5), %v1098_v43 }
 0x15e   : > { %v1094_v41 = vld [vmem:[%s1661_s15 + $0x20] sm:$0xff]  ;;  %v1100_v44 = vld [vmem:[%s1661_s15 + $0x38] sm:$0xff] }
 0x15f   : > { %1095 = vst [vmem:[%s1073_s23 + $0x20] sm:$0xff] %v1094_v41  ;;  %1101 = vst [vmem:[%s1073_s23 + $0x38] sm:$0xff] %v1100_v44 }
 0x160   : > { %v1096_v42 = vld [vmem:[%s1661_s15 + $0x28] sm:$0xff] }
 0x161   : > { %1097 = vst [vmem:[%s1073_s23 + $0x28] sm:$0xff] %v1096_v42  ;;  %v1114_v50 = vld [vmem:[%s1661_s15 + $0x70] sm:$0xff] }
 0x162   : > { %v1110_v48 = vld [vmem:[%s1661_s15 + $0x60] sm:$0xff]  ;;  %1115 = vst [vmem:[%s1073_s23 + $0xb0] sm:$0xff] %v1114_v50 }
 0x163   : > { %1111 = vst [vmem:[%s1073_s23 + $0xa0] sm:$0xff] %v1110_v48  ;;  %v1116_v51 = vld [vmem:[%s1661_s15 + $0x78] sm:$0xff] }
 0x164   : > { %v1112_v49 = vld [vmem:[%s1661_s15 + $0x68] sm:$0xff]  ;;  %1117 = vst [vmem:[%s1073_s23 + $0xb8] sm:$0xff] %v1116_v51 }
 0x165   : > { %1113 = vst [vmem:[%s1073_s23 + $0xa8] sm:$0xff] %v1112_v49 }
 0x166 PF: > { %p11_p10 = scmp.ge.s32.totalorder %s1369_s19, 4   ;;  %s1732_s15 = smov %s1320_s16 }
 0x167   : > { %s1733_s16 = smov %s1380_s22  ;;  %s1734_s17 = smov %s1369_s19 }
 0x168   :  { %13 = sbr.rel (!%p11_p10) target bundleno = 2 (0x2), region = 117 }

// kernel: resnet20_forward.29
= control target key start
LH: loop header
LB: loop body
LE: loop exit
PB: predicated region body
PF: predicated region fallthrough
CT: control target
= control target key end

     0   :  { %s835_s15 = smov 0   ;;  %s837_s16 = smov 0   ;;  %s993_s0 = inlined_call_operand.vmem [shape: bf16[32,144], index: 0, kind: input, shape index: {}]   ;;  %s994_s1 = inlined_call_operand.vmem [shape: bf16[144,512], index: 1, kind: input, shape index: {}]   ;;  %s995_s2 = inlined_call_operand.vmem [shape: f32[32,1], index: 2, kind: input, shape index: {}]   ;;  %s996_s3 = inlined_call_operand.vmem [shape: f32[32,1], index: 3, kind: input, shape index: {}]   ;;  %s997_s4 = inlined_call_operand.vmem [shape: f32[32,512], index: 4, kind: output, shape index: {}]  }
   0x1   :  { %s839_s17 = smov 0  }
   0x2 LB: > { %s666_s18 = sadd.s32 4294967295, %s807_s17   ;;  %s852_s19 = sadd.s32 1, %s807_s17   ;;  %s807_s17 = sphi %s839_s17, %s1001_s17   ;;  %s803_s16 = sphi %s837_s16, %s1000_s16   ;;  %s799_s15 = sphi %s835_s15, %s999_s15  }
   0x3   : > { %s39_s20 = ssub.s32 %s807_s17, %s852_s19  ;;  %s42_s21 = sadd.s32 1, %s803_s16 }
   0x4   : > { %p40_p0 = scmp.eq.s32.totalorder %s39_s20, 0  ;;  %p49_p1 = scmp.ne.s32.totalorder %s803_s16, %s799_s15 }
   0x5   : > { %p50_p2 = scmp.eq.s32.totalorder %s807_s17, 0  ;;  %p121_p3 = scmp.eq.s32.totalorder %s666_s18, 1 }
   0x6   : > { %s863_s22 = scalar_select %p40_p0, %s803_s16, %s42_s21  }
   0x7   : > { %p51_p4 = por %p50_p2, %p49_p1  ;;  %p865_p5 = por %p121_p3, %p49_p1 }
   0x8   : > { %p669_p6 = scmp.ge.s32.totalorder %s807_s17, 2 }
   0xa   : > { %152 = sbr.rel (%p669_p6) target bundleno = 28 (0x1c), region = 28 }
   0xf   : > { %155 = sbr.rel (!%p51_p4) target bundleno = 28 (0x1c), region = 32  ;;  %s157_s24 = sand.u32 (%p51_p4), 1, %s803_s16  }
  0x10   : > { %s703_s25 = sshll.u32 (%p51_p4), %s807_s17, 3  ;;  %s723_s26 = smul.u32 (%p51_p4), 144, %s157_s24 }
  0x11   : > { %s875_s29 = scalar_lea.vmem (%p51_p4), %s994_s1, %s703_s25 }
  0x12   : > { %v225_v0 = vld [vmem:[%s875_s29] sm:$0xff] (%p51_p4)  ;;  %v227_v1 = vld [vmem:[%s875_s29 + $0x10] sm:$0xff] (%p51_p4)  ;;  %s159_s30 = scalar_lea.vmem (%p51_p4), [#allocation2], %s723_s26 }
  0x13   : > { %v229_v2 = vld [vmem:[%s875_s29 + $0x20] sm:$0xff] (%p51_p4)  ;;  %v231_v3 = vld [vmem:[%s875_s29 + $0x30] sm:$0xff] (%p51_p4)  ;;  %226 = vst [vmem:[%s159_s30] sm:$0xff] (%p51_p4), %v225_v0  ;;  %228 = vst [vmem:[%s159_s30 + $0x8] sm:$0xff] (%p51_p4), %v227_v1 }
  0x14   : > { %v233_v4 = vld [vmem:[%s875_s29 + $0x40] sm:$0xff]  ;;  %v235_v5 = vld [vmem:[%s875_s29 + $0x50] sm:$0xff]  ;;  %230 = vst [vmem:[%s159_s30 + $0x10] sm:$0xff] %v229_v2  ;;  %232 = vst [vmem:[%s159_s30 + $0x18] sm:$0xff] %v231_v3 }
  0x15   : > { %234 = vst [vmem:[%s159_s30 + $0x20] sm:$0xff] %v233_v4  ;;  %236 = vst [vmem:[%s159_s30 + $0x28] sm:$0xff] %v235_v5  ;;  %v237_v6 = vld [vmem:[%s875_s29 + $0x60] sm:$0xff]  ;;  %v239_v7 = vld [vmem:[%s875_s29 + $0x70] sm:$0xff] }
  0x16   : > { %v241_v8 = vld [vmem:[%s875_s29 + $0x80] sm:$0xff]  ;;  %238 = vst [vmem:[%s159_s30 + $0x30] sm:$0xff] %v237_v6  ;;  %240 = vst [vmem:[%s159_s30 + $0x38] sm:$0xff] %v239_v7  ;;  %v243_v9 = vld [vmem:[%s875_s29 + $0x90] sm:$0xff] }
  0x17   : > { %242 = vst [vmem:[%s159_s30 + $0x40] sm:$0xff] %v241_v8  ;;  %v245_v10 = vld [vmem:[%s875_s29 + $0xa0] sm:$0xff]  ;;  %v247_v11 = vld [vmem:[%s875_s29 + $0xb0] sm:$0xff]  ;;  %244 = vst [vmem:[%s159_s30 + $0x48] sm:$0xff] %v243_v9 }
  0x18   : > { %246 = vst [vmem:[%s159_s30 + $0x50] sm:$0xff] %v245_v10  ;;  %248 = vst [vmem:[%s159_s30 + $0x58] sm:$0xff] %v247_v11  ;;  %v249_v12 = vld [vmem:[%s875_s29 + $0xc0] sm:$0xff]  ;;  %v251_v13 = vld [vmem:[%s875_s29 + $0xd0] sm:$0xff] }
  0x19   : > { %v253_v14 = vld [vmem:[%s875_s29 + $0xe0] sm:$0xff]  ;;  %250 = vst [vmem:[%s159_s30 + $0x60] sm:$0xff] %v249_v12  ;;  %252 = vst [vmem:[%s159_s30 + $0x68] sm:$0xff] %v251_v13  ;;  %v255_v15 = vld [vmem:[%s875_s29 + $0xf0] sm:$0xff] }
  0x1a   : > { %254 = vst [vmem:[%s159_s30 + $0x70] sm:$0xff] %v253_v14  ;;  %v257_v16 = vld [vmem:[%s875_s29 + $0x100] sm:$0xff]  ;;  %v259_v17 = vld [vmem:[%s875_s29 + $0x110] sm:$0xff]  ;;  %256 = vst [vmem:[%s159_s30 + $0x78] sm:$0xff] %v255_v15 }
  0x1b   : > { %258 = vst [vmem:[%s159_s30 + $0x80] sm:$0xff] %v257_v16  ;;  %260 = vst [vmem:[%s159_s30 + $0x88] sm:$0xff] %v259_v17 }
  0x1c PF: > { %p672_p7 = scmp.ge.s32.totalorder %s807_s17, 1  ;;  %p265_p8 = scmp.lt.s32.totalorder %s807_s17, 3 }
  0x1e   : > { %p266_p9 = pnand %p672_p7, %p265_p8 }
  0x1f   : > { %s272_s5 = sand.u32 (!%p266_p9), 1, %s799_s15  }
  0x20   : > { %269 = sbr.rel (%p266_p9) target bundleno = 292 (0x124), region = 70  ;;  %s673_s14 = sshll.u32 (!%p266_p9), %s272_s5, 6 }
  0x21   : > { %s724_s6 = smul.u32 (!%p266_p9), 144, %s272_s5  ;;  %s958_s15 = scalar_lea.vmem (!%p266_p9), [#allocation3], %s673_s14 }
  0x23   : > { %s912_s20 = scalar_lea.vmem (!%p266_p9), [#allocation2], %s724_s6 }
  0x25   : > { %vm429_vm0 = vcmask 130048   ;;  %v781_v18 = vld [vmem:[%s993_s0 + $0x4] ss:$8 sps:$4 sm:$0xff]   ;;  %v784_v19 = vld [vmem:[%s993_s0 + $0x14] ss:$8 sps:$4 sm:$0xff]   ;;  %v809_v20 = vmov 0  }
  0x26   : > { %751 = vset.pattern.permute.xlu1 %v809_v20  ;;  %750 = vset.pattern.permute.xlu0 %v809_v20  ;;  %v491_v21 = vld [vmem:[%s995_s2 + $0x10] sm:$0xff]  ;;  %v489_v22 = vld [vmem:[%s995_s2] sm:$0xff]  ;;  %v492_v24 = vld [vmem:[%s995_s2 + $0x18] sm:$0xff]  ;;  %s704_s5 = sshll.u32 (%p865_p5), %s666_s18, 4 }
  0x27   : > { %696 = vmatprep.mubr.msk.bf16.mxu0 %vm429_vm0, %v781_v18  ;;  %505 = vperm.xlu1 %751, %v491_v21   ;;  %v752_v23 = vld [vmem:[%s912_s20 + $0x74] ss:$8 sps:$4 sm:$0xff]   ;;  %v754_v25 = vld [vmem:[%s912_s20 + $0x70] ss:$8 sps:$4 sm:$0xff]   ;;  %v755_v26 = vld [vmem:[%s912_s20 + $0x64] ss:$8 sps:$4 sm:$0xff]   ;;  %s578_s24 = scalar_lea.vmem (%p865_p5), %s997_s4, %s704_s5 }
  0x28   : > { %697 = vmatprep.mubr.msk.bf16.mxu1 %vm429_vm0, %v784_v19  ;;  %495 = vperm.xlu0 %750, %v489_v22   ;;  %v490_v27 = vld [vmem:[%s995_s2 + $0x8] sm:$0xff]  ;;  %v521_v35 = vld [vmem:[%s996_s3] sm:$0xff]  ;;  %v524_v36 = vld [vmem:[%s996_s3 + $0x18] sm:$0xff] }
  0x29   : > { %436 = vmatprep.subr.bf16.mxu0 %v752_v23  ;;  %705 = vmatprep.subr.bf16.mxu1 %v752_v23  ;;  %v757_v28 = vld [vmem:[%s912_s20 + $0x60] ss:$8 sps:$4 sm:$0xff]   ;;  %v758_v29 = vld [vmem:[%s912_s20 + $0x54] ss:$8 sps:$4 sm:$0xff]   ;;  %v760_v30 = vld [vmem:[%s912_s20 + $0x50] ss:$8 sps:$4 sm:$0xff]  }
  0x2a   : > { %437 = vmatpush1.bf16.msra.mxu0 %v754_v25  ;;  %714 = vmatpush1.bf16.msra.mxu1 %v754_v25  ;;  %v761_v31 = vld [vmem:[%s912_s20 + $0x44] ss:$8 sps:$4 sm:$0xff]   ;;  %v763_v32 = vld [vmem:[%s912_s20 + $0x40] ss:$8 sps:$4 sm:$0xff]   ;;  %v764_v33 = vld [vmem:[%s912_s20 + $0x34] ss:$8 sps:$4 sm:$0xff]  }
  0x2b   : > { %438 = vmatprep.subr.bf16.mxu0 %v755_v26  ;;  %706 = vmatprep.subr.bf16.mxu1 %v755_v26  ;;  %v522_v34 = vld [vmem:[%s996_s3 + $0x8] sm:$0xff]  ;;  %v523_v37 = vld [vmem:[%s996_s3 + $0x10] sm:$0xff] }
  0x2c   : > { %510 = vperm.xlu1 %751, %v492_v24   ;;  %500 = vperm.xlu0 %750, %v490_v27   ;;  %v766_v38 = vld [vmem:[%s912_s20 + $0x30] ss:$8 sps:$4 sm:$0xff]   ;;  %v767_v39 = vld [vmem:[%s912_s20 + $0x24] ss:$8 sps:$4 sm:$0xff]   ;;  %v769_v40 = vld [vmem:[%s912_s20 + $0x20] ss:$8 sps:$4 sm:$0xff]  }
  0x2d   : > { %v770_v41 = vld [vmem:[%s912_s20 + $0x14] ss:$8 sps:$4 sm:$0xff]   ;;  %v772_v42 = vld [vmem:[%s912_s20 + $0x10] ss:$8 sps:$4 sm:$0xff]   ;;  %v773_v43 = vld [vmem:[%s912_s20 + $0x4] ss:$8 sps:$4 sm:$0xff]  }
  0x2e   : > { %439 = vmatpush1.bf16.msra.mxu0 %v757_v28  ;;  %715 = vmatpush1.bf16.msra.mxu1 %v757_v28  ;;  %v775_v44 = vld [vmem:[%s912_s20] ss:$8 sps:$4 sm:$0xff]   ;;  %v776_v45 = vld [vmem:[%s912_s20 + $0x84] ss:$8 sps:$4 sm:$0xff]  }
  0x2f   : > { %440 = vmatprep.subr.bf16.mxu0 %v758_v29  ;;  %707 = vmatprep.subr.bf16.mxu1 %v758_v29  ;;  %v778_v46 = vld [vmem:[%s912_s20 + $0x80] ss:$8 sps:$4 sm:$0xff]  }
  0x30   : > { %532 = vperm.xlu1 %751, %v522_v34   ;;  %527 = vperm.xlu0 %750, %v521_v35   ;;  %v779_v47 = vld [vmem:[%s993_s0] ss:$8 sps:$4 sm:$0xff]   ;;  %v782_v48 = vld [vmem:[%s993_s0 + $0x10] ss:$8 sps:$4 sm:$0xff]  }
  0x32   : > { %441 = vmatpush1.bf16.msra.mxu0 %v760_v30  ;;  %716 = vmatpush1.bf16.msra.mxu1 %v760_v30 }
  0x33   : > { %442 = vmatprep.subr.bf16.mxu0 %v761_v31  ;;  %708 = vmatprep.subr.bf16.mxu1 %v761_v31 }
  0x34   : > { %542 = vperm.xlu1 %751, %v524_v36   ;;  %537 = vperm.xlu0 %750, %v523_v37  }
  0x36   : > { %443 = vmatpush1.bf16.msra.mxu0 %v763_v32  ;;  %717 = vmatpush1.bf16.msra.mxu1 %v763_v32 }
  0x37   : > { %444 = vmatprep.subr.bf16.mxu0 %v764_v33  ;;  %709 = vmatprep.subr.bf16.mxu1 %v764_v33 }
  0x3a   : > { %445 = vmatpush1.bf16.msra.mxu0 %v766_v38  ;;  %718 = vmatpush1.bf16.msra.mxu1 %v766_v38 }
  0x3b   : > { %446 = vmatprep.subr.bf16.mxu0 %v767_v39  ;;  %710 = vmatprep.subr.bf16.mxu1 %v767_v39 }
  0x3e   : > { %447 = vmatpush1.bf16.msra.mxu0 %v769_v40  ;;  %719 = vmatpush1.bf16.msra.mxu1 %v769_v40 }
  0x3f   : > { %448 = vmatprep.subr.bf16.mxu0 %v770_v41  ;;  %711 = vmatprep.subr.bf16.mxu1 %v770_v41 }
  0x42   : > { %449 = vmatpush1.bf16.msra.mxu0 %v772_v42  ;;  %720 = vmatpush1.bf16.msra.mxu1 %v772_v42 }
  0x43   : > { %450 = vmatprep.subr.bf16.mxu0 %v773_v43  ;;  %712 = vmatprep.subr.bf16.mxu1 %v773_v43 }
  0x46   : > { %451 = vmatpush1.bf16.msra.mxu0 %v775_v44  ;;  %721 = vmatpush1.bf16.msra.mxu1 %v775_v44 }
  0x47   : > { %466 = vmatprep.subr.bf16.mxu0 %v776_v45  ;;  %713 = vmatprep.subr.bf16.mxu1 %v776_v45 }
  0x4a   : > { %467 = vmatpush2.bf16.msra.mxu0 %v778_v46  ;;  %722 = vmatpush2.bf16.msra.mxu1 %v778_v46 }
  0x4d   : > { %469 = vmatmul.mubr.bf16.vlgmr.msra.gmra.mxu0 %v779_v47  ;;  %479 = vmatmul.mubr.bf16.vlgmr.msra.gmra.mxu1 %v782_v48 }
  0xa2   : > { %v506_v50 = vpop.permute.xlu1 %505 }
  0xa3   : > { %v496_v49 = vpop.permute.xlu0 %495 }
  0xa7   : > { %v501_v51 = vpop.permute.xlu0 %500  ;;  %v511_v52 = vpop.permute.xlu1 %510 }
  0xab   : > { %v528_v53 = vpop.permute.xlu0 %527  ;;  %v533_v56 = vpop.permute.xlu1 %532 }
  0xaf   : > { %v538_v57 = vpop.permute.xlu0 %537  ;;  %v543_v12 = vpop.permute.xlu1 %542 }
 0x10d   : > { %v470_v54 = vpop.f32.mrf.mxu0  ;;  %v480_v55 = vpop.f32.mrf.mxu1 }
 0x10e   : > { %v513_v58 = vmul.f32 %v496_v49, %v470_v54  ;;  %v517_v59 = vmul.f32 %v506_v50, %v480_v55 }
 0x10f   : > { %v472_v60 = vpop.f32.mrf.mxu0  ;;  %v482_v61 = vpop.f32.mrf.mxu1 }
 0x110   : > { %v545_v62 = vadd.f32 %v528_v53, %v513_v58  ;;  %v549_v63 = vadd.f32 %v538_v57, %v517_v59  ;;  %v514_v0 = vmul.f32 %v496_v49, %v472_v60  ;;  %v518_v1 = vmul.f32 %v506_v50, %v482_v61 }
 0x111   : > { %v474_v2 = vpop.f32.mrf.mxu0  ;;  %v484_v3 = vpop.f32.mrf.mxu1 }
 0x112   : > { %v553_v4 = vmax.f32 %v545_v62, 0.0  ;;  %v557_v5 = vmax.f32 %v549_v63, 0.0  ;;  %v546_v6 = vadd.f32 %v528_v53, %v514_v0  ;;  %v550_v7 = vadd.f32 %v538_v57, %v518_v1 }
 0x113   : > { %v515_v8 = vmul.f32 %v501_v51, %v474_v2  ;;  %v519_v9 = vmul.f32 %v511_v52, %v484_v3  ;;  %v476_v10 = vpop.f32.mrf.mxu0  ;;  %v486_v11 = vpop.f32.mrf.mxu1 }
 0x114   : > { %561 = vst [vmem:[%s958_s15] sm:$0xff] %v553_v4  ;;  %565 = vst [vmem:[%s958_s15 + $0x20] sm:$0xff] %v557_v5  ;;  %v554_v13 = vmax.f32 %v546_v6, 0.0  ;;  %v558_v14 = vmax.f32 %v550_v7, 0.0  ;;  %v516_v15 = vmul.f32 %v501_v51, %v476_v10  ;;  %v520_v16 = vmul.f32 %v511_v52, %v486_v11 }
 0x115   : > { %v547_v17 = vadd.f32 %v533_v56, %v515_v8  ;;  %v551_v18 = vadd.f32 %v543_v12, %v519_v9 }
 0x116   : > { %562 = vst [vmem:[%s958_s15 + $0x8] sm:$0xff] %v554_v13  ;;  %566 = vst [vmem:[%s958_s15 + $0x28] sm:$0xff] %v558_v14  ;;  %v548_v19 = vadd.f32 %v533_v56, %v516_v15  ;;  %v552_v20 = vadd.f32 %v543_v12, %v520_v16  ;;  %575 = sbr.rel (!%p865_p5) target bundleno = 292 (0x124), region = 78 }
 0x117   : > { %v555_v21 = vmax.f32 %v547_v17, 0.0  ;;  %v559_v22 = vmax.f32 %v551_v18, 0.0 }
 0x118   : > { %v556_v23 = vmax.f32 %v548_v19, 0.0  ;;  %v560_v24 = vmax.f32 %v552_v20, 0.0 }
 0x119   : > { %563 = vst [vmem:[%s958_s15 + $0x10] sm:$0xff] %v555_v21  ;;  %567 = vst [vmem:[%s958_s15 + $0x30] sm:$0xff] %v559_v22 }
 0x11a   : > { %564 = vst [vmem:[%s958_s15 + $0x18] sm:$0xff] %v556_v23  ;;  %568 = vst [vmem:[%s958_s15 + $0x38] sm:$0xff] %v560_v24 }
 0x11b   : > { %v591_v25 = vld [vmem:[%s958_s15] sm:$0xff] }
 0x11c   : > { %v599_v29 = vld [vmem:[%s958_s15 + $0x20] sm:$0xff]  ;;  %592 = vst [vmem:[%s578_s24] sm:$0xff] %v591_v25 }
 0x11d   : > { %v593_v26 = vld [vmem:[%s958_s15 + $0x8] sm:$0xff]  ;;  %600 = vst [vmem:[%s578_s24 + $0x40] sm:$0xff] %v599_v29 }
 0x11e   : > { %v601_v30 = vld [vmem:[%s958_s15 + $0x28] sm:$0xff]  ;;  %594 = vst [vmem:[%s578_s24 + $0x8] sm:$0xff] %v593_v26 }
 0x11f   : > { %602 = vst [vmem:[%s578_s24 + $0x48] sm:$0xff] %v601_v30 }
 0x120   : > { %v595_v27 = vld [vmem:[%s958_s15 + $0x10] sm:$0xff] }
 0x121   : > { %v597_v28 = vld [vmem:[%s958_s15 + $0x18] sm:$0xff]  ;;  %596 = vst [vmem:[%s578_s24 + $0x20] sm:$0xff] %v595_v27  ;;  %v603_v31 = vld [vmem:[%s958_s15 + $0x30] sm:$0xff] }
 0x122   : > { %598 = vst [vmem:[%s578_s24 + $0x28] sm:$0xff] %v597_v28  ;;  %v605_v32 = vld [vmem:[%s958_s15 + $0x38] sm:$0xff]  ;;  %604 = vst [vmem:[%s578_s24 + $0x60] sm:$0xff] %v603_v31 }
 0x123   : > { %606 = vst [vmem:[%s578_s24 + $0x68] sm:$0xff] %v605_v32 }
 0x124 PF: > { %p11_p10 = scmp.ge.s32.totalorder %s852_s19, 4   ;;  %s999_s15 = smov %s803_s16 }
 0x125   : > { %s1000_s16 = smov %s863_s22  ;;  %s1001_s17 = smov %s852_s19 }
 0x126   :  { %13 = sbr.rel (!%p11_p10) target bundleno = 2 (0x2), region = 132 }

// kernel: resnet20_forward.30
= control target key start
LH: loop header
LB: loop body
LE: loop exit
PB: predicated region body
PF: predicated region fallthrough
CT: control target
= control target key end

     0   :  { %s597_s15 = smov 0   ;;  %s599_s16 = smov 0   ;;  %s709_s0 = inlined_call_operand.vmem [shape: bf16[32,16], index: 0, kind: input, shape index: {}]   ;;  %s710_s1 = inlined_call_operand.vmem [shape: bf16[16,512], index: 1, kind: input, shape index: {}]   ;;  %s711_s2 = inlined_call_operand.vmem [shape: f32[32,1], index: 2, kind: input, shape index: {}]   ;;  %s712_s3 = inlined_call_operand.vmem [shape: f32[32,1], index: 3, kind: input, shape index: {}]   ;;  %s713_s4 = inlined_call_operand.vmem [shape: f32[32,512], index: 4, kind: output, shape index: {}]  }
   0x1   :  { %s601_s17 = smov 0  }
   0x2 LB: > { %s490_s18 = sadd.s32 4294967295, %s569_s17   ;;  %s614_s19 = sadd.s32 1, %s569_s17   ;;  %s569_s17 = sphi %s601_s17, %s717_s17   ;;  %s565_s16 = sphi %s599_s16, %s716_s16   ;;  %s561_s15 = sphi %s597_s15, %s715_s15  }
   0x3   : > { %s39_s20 = ssub.s32 %s569_s17, %s614_s19  ;;  %s42_s21 = sadd.s32 1, %s565_s16 }
   0x4   : > { %p40_p0 = scmp.eq.s32.totalorder %s39_s20, 0  ;;  %p49_p1 = scmp.ne.s32.totalorder %s565_s16, %s561_s15 }
   0x5   : > { %p50_p2 = scmp.eq.s32.totalorder %s569_s17, 0  ;;  %p121_p3 = scmp.eq.s32.totalorder %s490_s18, 1 }
   0x6   : > { %s625_s22 = scalar_select %p40_p0, %s565_s16, %s42_s21  }
   0x7   : > { %p51_p4 = por %p50_p2, %p49_p1  ;;  %p627_p5 = por %p121_p3, %p49_p1 }
   0x8   : > { %p493_p6 = scmp.ge.s32.totalorder %s569_s17, 2 }
   0xa   : > { %152 = sbr.rel (%p493_p6) target bundleno = 20 (0x14), region = 28 }
   0xf   : > { %155 = sbr.rel (!%p51_p4) target bundleno = 20 (0x14), region = 32  ;;  %s157_s24 = sand.u32 (%p51_p4), 1, %s565_s16  }
  0x10   : > { %s511_s25 = sshll.u32 (%p51_p4), %s569_s17, 3  ;;  %s494_s26 = sshll.u32 (%p51_p4), %s157_s24, 4 }
  0x11   : > { %s162_s29 = scalar_lea.vmem (%p51_p4), %s710_s1, %s511_s25  ;;  %s159_s30 = scalar_lea.vmem (%p51_p4), [#allocation2], %s494_s26 }
  0x12   : > { %v193_v0 = vld [vmem:[%s162_s29] sm:$0xff] (%p51_p4)  ;;  %v195_v1 = vld [vmem:[%s162_s29 + $0x10] sm:$0xff] (%p51_p4) }
  0x13   : > { %194 = vst [vmem:[%s159_s30] sm:$0xff] (%p51_p4), %v193_v0  ;;  %196 = vst [vmem:[%s159_s30 + $0x8] sm:$0xff] (%p51_p4), %v195_v1 }
  0x14 PF: > { %p497_p7 = scmp.ge.s32.totalorder %s569_s17, 1  ;;  %p201_p8 = scmp.lt.s32.totalorder %s569_s17, 3 }
  0x16   : > { %p202_p9 = pnand %p497_p7, %p201_p8 }
  0x17   : > { %s208_s5 = sand.u32 (!%p202_p9), 1, %s561_s15  }
  0x18   : > { %205 = sbr.rel (%p202_p9) target bundleno = 249 (0xf9), region = 70  ;;  %s498_s6 = sshll.u32 (!%p202_p9), %s208_s5, 4 }
  0x19   : > { %s210_s9 = scalar_lea.vmem (!%p202_p9), [#allocation2], %s498_s6  ;;  %s499_s10 = sshll.u32 (!%p202_p9), %s208_s5, 6 }
  0x1a   : > { %s674_s11 = scalar_lea.vmem (!%p202_p9), [#allocation3], %s499_s10 }
  0x1d   : > { %v571_v2 = vmov 0   ;;  %v323_v3 = vld [vmem:[%s711_s2 + $0x10] sm:$0xff]  ;;  %v321_v6 = vld [vmem:[%s711_s2] sm:$0xff]  ;;  %v324_v7 = vld [vmem:[%s711_s2 + $0x18] sm:$0xff]  ;;  %vm261_vm0 = vcmask 130048   ;;  %s512_s15 = sshll.u32 (%p627_p5), %s490_s18, 4 }
  0x1e   : > { %300 = vmatprep.mubr.bf16.mxu0 %v571_v2  ;;  %310 = vmatprep.mubr.bf16.mxu1 %v571_v2  ;;  %v542_v4 = vld [vmem:[%s210_s9 + $0x4] ss:$8 sps:$4 sm:$0xff]   ;;  %v544_v5 = vld [vmem:[%s210_s9] ss:$8 sps:$4 sm:$0xff]   ;;  %s402_s13 = scalar_lea.vmem (%p627_p5), %s713_s4, %s512_s15 }
  0x1f   : > { %541 = vset.pattern.permute.xlu1 %v571_v2  ;;  %540 = vset.pattern.permute.xlu0 %v571_v2  ;;  %v545_v8 = vld [vmem:[%s709_s0] sm:$0xff]   ;;  %v546_v9 = vld [vmem:[%s709_s0 + $0x8] sm:$0xff]   ;;  %v356_v13 = vld [vmem:[%s712_s3 + $0x18] sm:$0xff] }
  0x20   : > { %337 = vperm.xlu1 %541, %v323_v3   ;;  %282 = vmatprep.subr.bf16.mxu0 %v542_v4  ;;  %v322_v10 = vld [vmem:[%s711_s2 + $0x8] sm:$0xff]  ;;  %v353_v12 = vld [vmem:[%s712_s3] sm:$0xff]  ;;  %v355_v14 = vld [vmem:[%s712_s3 + $0x10] sm:$0xff] }
  0x21   : > { %513 = vmatprep.subr.bf16.mxu1 %v542_v4  ;;  %283 = vmatpush1.bf16.msra.mxu0 %v544_v5  ;;  %v354_v11 = vld [vmem:[%s712_s3 + $0x8] sm:$0xff] }
  0x22   : > { %514 = vmatpush1.bf16.msra.mxu1 %v544_v5  ;;  %327 = vperm.xlu0 %540, %v321_v6  }
  0x24   : > { %342 = vperm.xlu1 %541, %v324_v7   ;;  %504 = vmatmul.mubr.msk.bf16.vlgmr.msra.gmra.mxu0 %vm261_vm0, %v545_v8 }
  0x25   : > { %505 = vmatmul.mubr.msk.bf16.vlgmr.msra.gmra.mxu1 %vm261_vm0, %v546_v9 }
  0x26   : > { %332 = vperm.xlu0 %540, %v322_v10  }
  0x28   : > { %364 = vperm.xlu1 %541, %v354_v11  }
  0x2a   : > { %359 = vperm.xlu0 %540, %v353_v12  }
  0x2c   : > { %374 = vperm.xlu1 %541, %v356_v13  }
  0x2e   : > { %369 = vperm.xlu0 %540, %v355_v14  }
  0x9b   : > { %v338_v16 = vpop.permute.xlu1 %337 }
  0x9d   : > { %v328_v15 = vpop.permute.xlu0 %327 }
  0x9f   : > { %v343_v18 = vpop.permute.xlu1 %342 }
  0xa1   : > { %v333_v17 = vpop.permute.xlu0 %332 }
  0xa3   : > { %v365_v20 = vpop.permute.xlu1 %364 }
  0xa5   : > { %v360_v19 = vpop.permute.xlu0 %359 }
  0xa7   : > { %v375_v34 = vpop.permute.xlu1 %374 }
  0xa9   : > { %v370_v23 = vpop.permute.xlu0 %369 }
  0xe4   : > { %v302_v21 = vpop.f32.mrf.mxu0 }
  0xe5   : > { %v312_v22 = vpop.f32.mrf.mxu1  ;;  %v345_v24 = vmul.f32 %v328_v15, %v302_v21 }
  0xe6   : > { %v349_v25 = vmul.f32 %v338_v16, %v312_v22  ;;  %v304_v26 = vpop.f32.mrf.mxu0 }
  0xe7   : > { %v314_v27 = vpop.f32.mrf.mxu1  ;;  %v377_v28 = vadd.f32 %v360_v19, %v345_v24  ;;  %v346_v30 = vmul.f32 %v328_v15, %v304_v26 }
  0xe8   : > { %v381_v29 = vadd.f32 %v370_v23, %v349_v25  ;;  %v350_v31 = vmul.f32 %v338_v16, %v314_v27  ;;  %v306_v32 = vpop.f32.mrf.mxu0 }
  0xe9   : > { %v316_v33 = vpop.f32.mrf.mxu1  ;;  %385 = vst [vmem:[%s674_s11] sm:$0xff] %v377_v28  ;;  %v378_v35 = vadd.f32 %v360_v19, %v346_v30  ;;  %v347_v37 = vmul.f32 %v333_v17, %v306_v32 }
  0xea   : > { %389 = vst [vmem:[%s674_s11 + $0x20] sm:$0xff] %v381_v29  ;;  %v382_v36 = vadd.f32 %v370_v23, %v350_v31  ;;  %v351_v38 = vmul.f32 %v343_v18, %v316_v33  ;;  %v308_v39 = vpop.f32.mrf.mxu0 }
  0xeb   : > { %v318_v40 = vpop.f32.mrf.mxu1  ;;  %386 = vst [vmem:[%s674_s11 + $0x8] sm:$0xff] %v378_v35  ;;  %v379_v41 = vadd.f32 %v365_v20, %v347_v37  ;;  %v348_v43 = vmul.f32 %v333_v17, %v308_v39 }
  0xec   : > { %390 = vst [vmem:[%s674_s11 + $0x28] sm:$0xff] %v382_v36  ;;  %v383_v42 = vadd.f32 %v375_v34, %v351_v38  ;;  %v352_v44 = vmul.f32 %v343_v18, %v318_v40  ;;  %399 = sbr.rel (!%p627_p5) target bundleno = 249 (0xf9), region = 78 }
  0xed   : > { %387 = vst [vmem:[%s674_s11 + $0x10] sm:$0xff] %v379_v41  ;;  %v380_v45 = vadd.f32 %v365_v20, %v348_v43 }
  0xee   : > { %391 = vst [vmem:[%s674_s11 + $0x30] sm:$0xff] %v383_v42  ;;  %v384_v46 = vadd.f32 %v375_v34, %v352_v44 }
  0xef   : > { %388 = vst [vmem:[%s674_s11 + $0x18] sm:$0xff] %v380_v45 }
  0xf0   : > { %392 = vst [vmem:[%s674_s11 + $0x38] sm:$0xff] %v384_v46  ;;  %v415_v47 = vld [vmem:[%s674_s11] sm:$0xff] (%p627_p5) }
  0xf1   : > { %v423_v51 = vld [vmem:[%s674_s11 + $0x20] sm:$0xff]  ;;  %416 = vst [vmem:[%s402_s13] sm:$0xff] %v415_v47 }
  0xf2   : > { %v417_v48 = vld [vmem:[%s674_s11 + $0x8] sm:$0xff]  ;;  %424 = vst [vmem:[%s402_s13 + $0x40] sm:$0xff] %v423_v51 }
  0xf3   : > { %v425_v52 = vld [vmem:[%s674_s11 + $0x28] sm:$0xff]  ;;  %418 = vst [vmem:[%s402_s13 + $0x8] sm:$0xff] %v417_v48 }
  0xf4   : > { %v419_v49 = vld [vmem:[%s674_s11 + $0x10] sm:$0xff]  ;;  %426 = vst [vmem:[%s402_s13 + $0x48] sm:$0xff] %v425_v52 }
  0xf5   : > { %420 = vst [vmem:[%s402_s13 + $0x20] sm:$0xff] %v419_v49  ;;  %v427_v53 = vld [vmem:[%s674_s11 + $0x30] sm:$0xff] }
  0xf6   : > { %v421_v50 = vld [vmem:[%s674_s11 + $0x18] sm:$0xff]  ;;  %428 = vst [vmem:[%s402_s13 + $0x60] sm:$0xff] %v427_v53 }
  0xf7   : > { %422 = vst [vmem:[%s402_s13 + $0x28] sm:$0xff] %v421_v50  ;;  %v429_v54 = vld [vmem:[%s674_s11 + $0x38] sm:$0xff] }
  0xf8   : > { %430 = vst [vmem:[%s402_s13 + $0x68] sm:$0xff] %v429_v54 }
  0xf9 PF: > { %p11_p10 = scmp.ge.s32.totalorder %s614_s19, 4   ;;  %s715_s15 = smov %s565_s16 }
  0xfa   : > { %s716_s16 = smov %s625_s22  ;;  %s717_s17 = smov %s614_s19 }
  0xfb   :  { %13 = sbr.rel (!%p11_p10) target bundleno = 2 (0x2), region = 132 }

// kernel: resnet20_forward.31
= control target key start
LH: loop header
LB: loop body
LE: loop exit
PB: predicated region body
PF: predicated region fallthrough
CT: control target
= control target key end

     0   :  { %s1241_s18 = smov 0   ;;  %s1243_s19 = smov 0   ;;  %s1508_s0 = inlined_call_operand.vmem [shape: bf16[32,288], index: 0, kind: input, shape index: {}]   ;;  %s1509_s1 = inlined_call_operand.vmem [shape: bf16[288,512], index: 1, kind: input, shape index: {}]   ;;  %s1510_s2 = inlined_call_operand.vmem [shape: f32[32,1], index: 2, kind: input, shape index: {}]   ;;  %s1511_s3 = inlined_call_operand.vmem [shape: f32[32,1], index: 3, kind: input, shape index: {}]   ;;  %s1512_s4 = inlined_call_operand.vmem [shape: f32[32,512], index: 4, kind: input, shape index: {}]   ;;  %s1513_s5 = inlined_call_operand.vmem [shape: f32[32,512], index: 5, kind: output, shape index: {}]  }
   0x1   :  { %s1245_s20 = smov 0  }
   0x2 LB: > { %s1031_s21 = sadd.s32 4294967295, %s1208_s20   ;;  %s1258_s22 = sadd.s32 1, %s1208_s20   ;;  %s1208_s20 = sphi %s1245_s20, %s1518_s20   ;;  %s1204_s19 = sphi %s1243_s19, %s1517_s19   ;;  %s1200_s18 = sphi %s1241_s18, %s1516_s18  }
   0x3   : > { %s40_s23 = ssub.s32 %s1208_s20, %s1258_s22  ;;  %s43_s24 = sadd.s32 1, %s1204_s19 }
   0x4   : > { %p41_p0 = scmp.eq.s32.totalorder %s40_s23, 0  ;;  %p50_p1 = scmp.ne.s32.totalorder %s1204_s19, %s1200_s18 }
   0x5   : > { %p51_p2 = scmp.eq.s32.totalorder %s1208_s20, 0  ;;  %p148_p3 = scmp.eq.s32.totalorder %s1031_s21, 1 }
   0x6   : > { %s1269_s25 = scalar_select %p41_p0, %s1204_s19, %s43_s24  }
   0x7   : > { %p1271_p4 = por %p51_p2, %p50_p1  ;;  %p1275_p5 = por %p148_p3, %p50_p1 }
   0x8   : > { %p1034_p6 = scmp.ge.s32.totalorder %s1208_s20, 2 }
   0xa   : > { %179 = sbr.rel (%p1034_p6) target bundleno = 45 (0x2d), region = 28 }
   0xf   : > { %182 = sbr.rel (!%p1271_p4) target bundleno = 37 (0x25), region = 32  ;;  %s184_s28 = sand.u32 (%p1271_p4), 1, %s1204_s19  }
  0x10   : > { %s1092_s29 = sshll.u32 (%p1271_p4), %s1208_s20, 3  ;;  %s1095_s30 = smul.u32 (%p1271_p4), 288, %s184_s28 }
  0x11   : > { %s1287_s8 = scalar_lea.vmem (%p1271_p4), %s1509_s1, %s1092_s29 }
  0x12   : > { %v288_v0 = vld [vmem:[%s1287_s8] sm:$0xff] (%p1271_p4)  ;;  %v290_v1 = vld [vmem:[%s1287_s8 + $0x10] sm:$0xff] (%p1271_p4)  ;;  %s1295_s9 = scalar_lea.vmem (%p1271_p4), [#allocation2], %s1095_s30 }
  0x13   : > { %v292_v2 = vld [vmem:[%s1287_s8 + $0x20] sm:$0xff] (%p1271_p4)  ;;  %v294_v3 = vld [vmem:[%s1287_s8 + $0x30] sm:$0xff] (%p1271_p4)  ;;  %289 = vst [vmem:[%s1295_s9] sm:$0xff] (%p1271_p4), %v288_v0  ;;  %291 = vst [vmem:[%s1295_s9 + $0x8] sm:$0xff] (%p1271_p4), %v290_v1 }
  0x14   : > { %v296_v4 = vld [vmem:[%s1287_s8 + $0x40] sm:$0xff]  ;;  %v298_v5 = vld [vmem:[%s1287_s8 + $0x50] sm:$0xff]  ;;  %293 = vst [vmem:[%s1295_s9 + $0x10] sm:$0xff] %v292_v2  ;;  %295 = vst [vmem:[%s1295_s9 + $0x18] sm:$0xff] %v294_v3 }
  0x15   : > { %297 = vst [vmem:[%s1295_s9 + $0x20] sm:$0xff] %v296_v4  ;;  %299 = vst [vmem:[%s1295_s9 + $0x28] sm:$0xff] %v298_v5  ;;  %v300_v6 = vld [vmem:[%s1287_s8 + $0x60] sm:$0xff]  ;;  %v302_v7 = vld [vmem:[%s1287_s8 + $0x70] sm:$0xff] }
  0x16   : > { %v304_v8 = vld [vmem:[%s1287_s8 + $0x80] sm:$0xff]  ;;  %301 = vst [vmem:[%s1295_s9 + $0x30] sm:$0xff] %v300_v6  ;;  %303 = vst [vmem:[%s1295_s9 + $0x38] sm:$0xff] %v302_v7  ;;  %v306_v9 = vld [vmem:[%s1287_s8 + $0x90] sm:$0xff] }
  0x17   : > { %305 = vst [vmem:[%s1295_s9 + $0x40] sm:$0xff] %v304_v8  ;;  %v308_v10 = vld [vmem:[%s1287_s8 + $0xa0] sm:$0xff]  ;;  %v310_v11 = vld [vmem:[%s1287_s8 + $0xb0] sm:$0xff]  ;;  %307 = vst [vmem:[%s1295_s9 + $0x48] sm:$0xff] %v306_v9 }
  0x18   : > { %309 = vst [vmem:[%s1295_s9 + $0x50] sm:$0xff] %v308_v10  ;;  %311 = vst [vmem:[%s1295_s9 + $0x58] sm:$0xff] %v310_v11  ;;  %v312_v12 = vld [vmem:[%s1287_s8 + $0xc0] sm:$0xff]  ;;  %v314_v13 = vld [vmem:[%s1287_s8 + $0xd0] sm:$0xff] }
  0x19   : > { %v316_v14 = vld [vmem:[%s1287_s8 + $0xe0] sm:$0xff]  ;;  %313 = vst [vmem:[%s1295_s9 + $0x60] sm:$0xff] %v312_v12  ;;  %315 = vst [vmem:[%s1295_s9 + $0x68] sm:$0xff] %v314_v13  ;;  %v318_v15 = vld [vmem:[%s1287_s8 + $0xf0] sm:$0xff] }
  0x1a   : > { %317 = vst [vmem:[%s1295_s9 + $0x70] sm:$0xff] %v316_v14  ;;  %v320_v16 = vld [vmem:[%s1287_s8 + $0x100] sm:$0xff]  ;;  %v322_v17 = vld [vmem:[%s1287_s8 + $0x110] sm:$0xff]  ;;  %319 = vst [vmem:[%s1295_s9 + $0x78] sm:$0xff] %v318_v15 }
  0x1b   : > { %321 = vst [vmem:[%s1295_s9 + $0x80] sm:$0xff] %v320_v16  ;;  %323 = vst [vmem:[%s1295_s9 + $0x88] sm:$0xff] %v322_v17  ;;  %v324_v18 = vld [vmem:[%s1287_s8 + $0x120] sm:$0xff]  ;;  %v326_v19 = vld [vmem:[%s1287_s8 + $0x130] sm:$0xff] }
  0x1c   : > { %v328_v20 = vld [vmem:[%s1287_s8 + $0x140] sm:$0xff]  ;;  %325 = vst [vmem:[%s1295_s9 + $0x90] sm:$0xff] %v324_v18  ;;  %327 = vst [vmem:[%s1295_s9 + $0x98] sm:$0xff] %v326_v19  ;;  %v330_v21 = vld [vmem:[%s1287_s8 + $0x150] sm:$0xff] }
  0x1d   : > { %329 = vst [vmem:[%s1295_s9 + $0xa0] sm:$0xff] %v328_v20  ;;  %v332_v22 = vld [vmem:[%s1287_s8 + $0x160] sm:$0xff]  ;;  %v334_v23 = vld [vmem:[%s1287_s8 + $0x170] sm:$0xff]  ;;  %331 = vst [vmem:[%s1295_s9 + $0xa8] sm:$0xff] %v330_v21 }
  0x1e   : > { %333 = vst [vmem:[%s1295_s9 + $0xb0] sm:$0xff] %v332_v22  ;;  %335 = vst [vmem:[%s1295_s9 + $0xb8] sm:$0xff] %v334_v23  ;;  %v336_v24 = vld [vmem:[%s1287_s8 + $0x180] sm:$0xff]  ;;  %v338_v25 = vld [vmem:[%s1287_s8 + $0x190] sm:$0xff] }
  0x1f   : > { %v340_v26 = vld [vmem:[%s1287_s8 + $0x1a0] sm:$0xff]  ;;  %337 = vst [vmem:[%s1295_s9 + $0xc0] sm:$0xff] %v336_v24  ;;  %339 = vst [vmem:[%s1295_s9 + $0xc8] sm:$0xff] %v338_v25  ;;  %v342_v27 = vld [vmem:[%s1287_s8 + $0x1b0] sm:$0xff] }
  0x20   : > { %341 = vst [vmem:[%s1295_s9 + $0xd0] sm:$0xff] %v340_v26  ;;  %v344_v28 = vld [vmem:[%s1287_s8 + $0x1c0] sm:$0xff]  ;;  %v346_v29 = vld [vmem:[%s1287_s8 + $0x1d0] sm:$0xff]  ;;  %343 = vst [vmem:[%s1295_s9 + $0xd8] sm:$0xff] %v342_v27 }
  0x21   : > { %345 = vst [vmem:[%s1295_s9 + $0xe0] sm:$0xff] %v344_v28  ;;  %347 = vst [vmem:[%s1295_s9 + $0xe8] sm:$0xff] %v346_v29  ;;  %v348_v30 = vld [vmem:[%s1287_s8 + $0x1e0] sm:$0xff]  ;;  %v350_v31 = vld [vmem:[%s1287_s8 + $0x1f0] sm:$0xff] }
  0x22   : > { %v352_v32 = vld [vmem:[%s1287_s8 + $0x200] sm:$0xff]  ;;  %349 = vst [vmem:[%s1295_s9 + $0xf0] sm:$0xff] %v348_v30  ;;  %351 = vst [vmem:[%s1295_s9 + $0xf8] sm:$0xff] %v350_v31  ;;  %v354_v33 = vld [vmem:[%s1287_s8 + $0x210] sm:$0xff] }
  0x23   : > { %353 = vst [vmem:[%s1295_s9 + $0x100] sm:$0xff] %v352_v32  ;;  %v356_v34 = vld [vmem:[%s1287_s8 + $0x220] sm:$0xff]  ;;  %v358_v35 = vld [vmem:[%s1287_s8 + $0x230] sm:$0xff]  ;;  %355 = vst [vmem:[%s1295_s9 + $0x108] sm:$0xff] %v354_v33 }
  0x24   : > { %357 = vst [vmem:[%s1295_s9 + $0x110] sm:$0xff] %v356_v34  ;;  %359 = vst [vmem:[%s1295_s9 + $0x118] sm:$0xff] %v358_v35 }
  0x25 PF: > { %365 = sbr.rel (!%p1271_p4) target bundleno = 45 (0x2d), region = 70  ;;  %s367_s10 = sand.u32 (%p1271_p4), 1, %s1204_s19  }
  0x26   : > { %s1093_s11 = sshll.u32 (%p1271_p4), %s1208_s20, 4  ;;  %s1037_s12 = sshll.u32 (%p1271_p4), %s367_s10, 6 }
  0x27   : > { %s372_s15 = scalar_lea.vmem (%p1271_p4), %s1512_s4, %s1093_s11  ;;  %s369_s16 = scalar_lea.vmem (%p1271_p4), [#allocation3], %s1037_s12 }
  0x28   : > { %v385_v36 = vld [vmem:[%s372_s15] sm:$0xff] (%p1271_p4)  ;;  %v387_v37 = vld [vmem:[%s372_s15 + $0x8] sm:$0xff] (%p1271_p4) }
  0x29   : > { %v389_v38 = vld [vmem:[%s372_s15 + $0x20] sm:$0xff] (%p1271_p4)  ;;  %386 = vst [vmem:[%s369_s16] sm:$0xff] (%p1271_p4), %v385_v36  ;;  %388 = vst [vmem:[%s369_s16 + $0x8] sm:$0xff] (%p1271_p4), %v387_v37  ;;  %v391_v39 = vld [vmem:[%s372_s15 + $0x28] sm:$0xff] (%p1271_p4) }
  0x2a   : > { %390 = vst [vmem:[%s369_s16 + $0x10] sm:$0xff] %v389_v38  ;;  %v393_v40 = vld [vmem:[%s372_s15 + $0x40] sm:$0xff]  ;;  %v395_v41 = vld [vmem:[%s372_s15 + $0x48] sm:$0xff]  ;;  %392 = vst [vmem:[%s369_s16 + $0x18] sm:$0xff] %v391_v39 }
  0x2b   : > { %394 = vst [vmem:[%s369_s16 + $0x20] sm:$0xff] %v393_v40  ;;  %396 = vst [vmem:[%s369_s16 + $0x28] sm:$0xff] %v395_v41  ;;  %v397_v42 = vld [vmem:[%s372_s15 + $0x60] sm:$0xff]  ;;  %v399_v43 = vld [vmem:[%s372_s15 + $0x68] sm:$0xff] }
  0x2c   : > { %398 = vst [vmem:[%s369_s16 + $0x30] sm:$0xff] %v397_v42  ;;  %400 = vst [vmem:[%s369_s16 + $0x38] sm:$0xff] %v399_v43 }
  0x2d PF: > { %p1040_p7 = scmp.ge.s32.totalorder %s1208_s20, 1  ;;  %p405_p8 = scmp.lt.s32.totalorder %s1208_s20, 3 }
  0x2f   : > { %p406_p9 = pnand %p1040_p7, %p405_p8 }
  0x30   : > { %s412_s17 = sand.u32 (!%p406_p9), 1, %s1200_s18  }
  0x31   : > { %409 = sbr.rel (%p406_p9) target bundleno = 347 (0x15b), region = 93 }
  0x32   : > { %s1096_s23 = smul.u32 (!%p406_p9), 288, %s412_s17 }
  0x34   : > { %s1378_s28 = scalar_lea.vmem (!%p406_p9), [#allocation2], %s1096_s23 }
  0x36   : > { %v1210_v44 = vmov 0   ;;  %v1181_v45 = vld [vmem:[%s1508_s0 + $0x4] ss:$12 sps:$4 sm:$0xff]   ;;  %v1124_v46 = vld [vmem:[%s1378_s28 + $0x74] ss:$8 sps:$4 sm:$0xff]   ;;  %vm707_vm0 = vcmask 261120  }
  0x37   : > { %799 = vmatprep.mubr.bf16.mxu1 %v1210_v44  ;;  %1123 = vset.pattern.permute.xlu1 %v1210_v44  ;;  %v1126_v47 = vld [vmem:[%s1378_s28 + $0x70] ss:$8 sps:$4 sm:$0xff]   ;;  %v1127_v48 = vld [vmem:[%s1378_s28 + $0x64] ss:$8 sps:$4 sm:$0xff]   ;;  %v1129_v49 = vld [vmem:[%s1378_s28 + $0x60] ss:$8 sps:$4 sm:$0xff]  }
  0x38   : > { %1122 = vset.pattern.permute.xlu0 %v1210_v44  ;;  %746 = vmatprep.mubr.bf16.mxu0 %v1181_v45  ;;  %v1130_v50 = vld [vmem:[%s1378_s28 + $0x54] ss:$8 sps:$4 sm:$0xff]   ;;  %v1132_v51 = vld [vmem:[%s1378_s28 + $0x50] ss:$8 sps:$4 sm:$0xff]   ;;  %v1133_v52 = vld [vmem:[%s1378_s28 + $0x44] ss:$8 sps:$4 sm:$0xff]  }
  0x39   : > { %714 = vmatprep.subr.bf16.mxu0 %v1124_v46  ;;  %v1135_v53 = vld [vmem:[%s1378_s28 + $0x40] ss:$8 sps:$4 sm:$0xff]   ;;  %v1136_v54 = vld [vmem:[%s1378_s28 + $0x34] ss:$8 sps:$4 sm:$0xff]   ;;  %v1138_v55 = vld [vmem:[%s1378_s28 + $0x30] ss:$8 sps:$4 sm:$0xff]  }
  0x3a   : > { %715 = vmatpush1.bf16.msra.mxu0 %v1126_v47  ;;  %v1139_v56 = vld [vmem:[%s1378_s28 + $0x24] ss:$8 sps:$4 sm:$0xff]   ;;  %v1163_v57 = vld [vmem:[%s1378_s28 + $0x114] ss:$8 sps:$4 sm:$0xff]   ;;  %v1165_v58 = vld [vmem:[%s1378_s28 + $0x110] ss:$8 sps:$4 sm:$0xff]  }
  0x3b   : > { %716 = vmatprep.subr.bf16.mxu0 %v1127_v48  ;;  %v1141_v59 = vld [vmem:[%s1378_s28 + $0x20] ss:$8 sps:$4 sm:$0xff]   ;;  %v1142_v60 = vld [vmem:[%s1378_s28 + $0x14] ss:$8 sps:$4 sm:$0xff]   ;;  %779 = vmatprep.subr.bf16.mxu1 %v1163_v57  ;;  %v1169_v61 = vld [vmem:[%s1378_s28 + $0x104] ss:$8 sps:$4 sm:$0xff]  }
  0x3c   : > { %780 = vmatpush1.bf16.msra.mxu1 %v1165_v58  ;;  %v1171_v62 = vld [vmem:[%s1378_s28 + $0x100] ss:$8 sps:$4 sm:$0xff]   ;;  %v1144_v63 = vld [vmem:[%s1378_s28 + $0x10] ss:$8 sps:$4 sm:$0xff]   ;;  %v1145_v0 = vld [vmem:[%s1378_s28 + $0x4] ss:$8 sps:$4 sm:$0xff]  }
  0x3d   : > { %781 = vmatprep.subr.bf16.mxu1 %v1169_v61  ;;  %v1175_v1 = vld [vmem:[%s1508_s0 + $0x8] ss:$12 sps:$4 sm:$0xff]   ;;  %v820_v3 = vld [vmem:[%s1510_s2] sm:$0xff]  ;;  %v823_v5 = vld [vmem:[%s1510_s2 + $0x18] sm:$0xff] }
  0x3e   : > { %717 = vmatpush1.bf16.msra.mxu0 %v1129_v49  ;;  %v822_v2 = vld [vmem:[%s1510_s2 + $0x10] sm:$0xff]  ;;  %826 = vperm.xlu0 %1122, %v820_v3   ;;  %v1147_v4 = vld [vmem:[%s1378_s28] ss:$8 sps:$4 sm:$0xff]   ;;  %v1151_v11 = vld [vmem:[%s1378_s28 + $0xe4] ss:$8 sps:$4 sm:$0xff]  }
  0x3f   : > { %718 = vmatprep.subr.bf16.mxu0 %v1130_v50  ;;  %836 = vperm.xlu1 %1123, %v822_v2   ;;  %v821_v6 = vld [vmem:[%s1510_s2 + $0x8] sm:$0xff]  ;;  %v1148_v7 = vld [vmem:[%s1378_s28 + $0xf4] ss:$8 sps:$4 sm:$0xff]   ;;  %v1150_v8 = vld [vmem:[%s1378_s28 + $0xf0] ss:$8 sps:$4 sm:$0xff]  }
  0x40   : > { %782 = vmatpush1.bf16.msra.mxu1 %v1171_v62  ;;  %v853_v9 = vld [vmem:[%s1511_s3 + $0x8] sm:$0xff]  ;;  %v852_v10 = vld [vmem:[%s1511_s3] sm:$0xff]  ;;  %v855_v14 = vld [vmem:[%s1511_s3 + $0x18] sm:$0xff] }
  0x41   : > { %v1182_v12 = vld [vmem:[%s1508_s0 + $0x20] ss:$12 sps:$4 sm:$0xff]   ;;  %v854_v15 = vld [vmem:[%s1511_s3 + $0x10] sm:$0xff]  ;;  %v1183_v29 = vld [vmem:[%s1508_s0 + $0x1c] ss:$12 sps:$4 sm:$0xff]  }
  0x42   : > { %719 = vmatpush1.bf16.msra.mxu0 %v1132_v51  ;;  %831 = vperm.xlu0 %1122, %v821_v6   ;;  %v1153_v13 = vld [vmem:[%s1378_s28 + $0xe0] ss:$8 sps:$4 sm:$0xff]   ;;  %v1154_v16 = vld [vmem:[%s1378_s28 + $0xd4] ss:$8 sps:$4 sm:$0xff]   ;;  %v1156_v17 = vld [vmem:[%s1378_s28 + $0xd0] ss:$8 sps:$4 sm:$0xff]  }
  0x43   : > { %720 = vmatprep.subr.bf16.mxu0 %v1133_v52  ;;  %1085 = vmatmul.mubr.msk.bf16.vlgmr.msra.gmra.mxu1 %vm707_vm0, %v1175_v1  ;;  %v1157_v18 = vld [vmem:[%s1378_s28 + $0xc4] ss:$8 sps:$4 sm:$0xff]   ;;  %v1159_v19 = vld [vmem:[%s1378_s28 + $0xc0] ss:$8 sps:$4 sm:$0xff]   ;;  %v1160_v20 = vld [vmem:[%s1378_s28 + $0xb4] ss:$8 sps:$4 sm:$0xff]  }
  0x44   : > { %809 = vmatprep.mubr.bf16.mxu1 %v1210_v44  ;;  %841 = vperm.xlu1 %1123, %v823_v5   ;;  %v1162_v21 = vld [vmem:[%s1378_s28 + $0xb0] ss:$8 sps:$4 sm:$0xff]   ;;  %v1166_v22 = vld [vmem:[%s1378_s28 + $0xa4] ss:$8 sps:$4 sm:$0xff]   ;;  %v1168_v23 = vld [vmem:[%s1378_s28 + $0xa0] ss:$8 sps:$4 sm:$0xff]  }
  0x45   : > { %v1172_v24 = vld [vmem:[%s1378_s28 + $0x94] ss:$8 sps:$4 sm:$0xff]   ;;  %v1174_v25 = vld [vmem:[%s1378_s28 + $0x90] ss:$8 sps:$4 sm:$0xff]   ;;  %v1176_v26 = vld [vmem:[%s1378_s28 + $0x84] ss:$8 sps:$4 sm:$0xff]  }
  0x46   : > { %721 = vmatpush1.bf16.msra.mxu0 %v1135_v53  ;;  %858 = vperm.xlu0 %1122, %v852_v10   ;;  %v1178_v27 = vld [vmem:[%s1378_s28 + $0x80] ss:$8 sps:$4 sm:$0xff]   ;;  %v1185_v30 = vld [vmem:[%s1508_s0 + $0x18] ss:$12 sps:$4 sm:$0xff]   ;;  %s1459_s28 = sshll.u32 %s412_s17, 6  ;;  %s1094_s17 = sshll.u32 (%p1275_p5), %s1031_s21, 4 }
  0x47   : > { %722 = vmatprep.subr.bf16.mxu0 %v1136_v54  ;;  %v1179_v28 = vld [vmem:[%s1508_s0] ss:$12 sps:$4 sm:$0xff]   ;;  %s1462_s14 = scalar_lea.vmem [#allocation3], %s1459_s28  ;;  %s1469_s18 = scalar_lea.vmem [#allocation4], %s1459_s28 }
  0x48   : > { %863 = vperm.xlu1 %1123, %v853_v9   ;;  %v884_v46 = vld [vmem:[%s1462_s14] sm:$0xff]  ;;  %v885_v51 = vld [vmem:[%s1462_s14 + $0x8] sm:$0xff]  ;;  %v887_v1 = vld [vmem:[%s1462_s14 + $0x18] sm:$0xff]  ;;  %s925_s23 = scalar_lea.vmem (%p1275_p5), %s1513_s5, %s1094_s17 }
  0x4a   : > { %723 = vmatpush1.bf16.msra.mxu0 %v1138_v55  ;;  %868 = vperm.xlu0 %1122, %v854_v15  }
  0x4b   : > { %724 = vmatprep.subr.bf16.mxu0 %v1139_v56  ;;  %1086 = vmatmul.mubr.msk.bf16.gmra.mxu1 %vm707_vm0, %v1182_v12 }
  0x4c   : > { %873 = vperm.xlu1 %1123, %v855_v14   ;;  %v888_v14 = vld [vmem:[%s1462_s14 + $0x20] sm:$0xff] }
  0x4e   : > { %725 = vmatpush1.bf16.msra.mxu0 %v1141_v59  ;;  %v886_v59 = vld [vmem:[%s1462_s14 + $0x10] sm:$0xff] }
  0x4f   : > { %726 = vmatprep.subr.bf16.mxu0 %v1142_v60 }
  0x52   : > { %727 = vmatpush1.bf16.msra.mxu0 %v1144_v63 }
  0x53   : > { %728 = vmatprep.subr.bf16.mxu0 %v1145_v0 }
  0x56   : > { %729 = vmatpush1.bf16.msra.mxu0 %v1147_v4 }
  0x57   : > { %730 = vmatprep.subr.bf16.mxu0 %v1148_v7 }
  0x5a   : > { %731 = vmatpush2.bf16.msra.mxu0 %v1150_v8 }
  0x5b   : > { %732 = vmatprep.subr.bf16.mxu0 %v1151_v11 }
  0x5e   : > { %733 = vmatpush2.bf16.msra.mxu0 %v1153_v13 }
  0x5f   : > { %734 = vmatprep.subr.bf16.mxu0 %v1154_v16 }
  0x62   : > { %735 = vmatpush2.bf16.msra.mxu0 %v1156_v17 }
  0x63   : > { %736 = vmatprep.subr.bf16.mxu0 %v1157_v18 }
  0x66   : > { %737 = vmatpush2.bf16.msra.mxu0 %v1159_v19  ;;  %v889_v19 = vld [vmem:[%s1462_s14 + $0x28] sm:$0xff] }
  0x67   : > { %738 = vmatprep.subr.bf16.mxu0 %v1160_v20 }
  0x6a   : > { %739 = vmatpush2.bf16.msra.mxu0 %v1162_v21 }
  0x6b   : > { %740 = vmatprep.subr.bf16.mxu0 %v1166_v22 }
  0x6e   : > { %741 = vmatpush2.bf16.msra.mxu0 %v1168_v23 }
  0x6f   : > { %742 = vmatprep.subr.bf16.mxu0 %v1172_v24 }
  0x72   : > { %743 = vmatpush2.bf16.msra.mxu0 %v1174_v25 }
  0x73   : > { %744 = vmatprep.subr.bf16.mxu0 %v1176_v26 }
  0x76   : > { %745 = vmatpush2.bf16.msra.mxu0 %v1178_v27  ;;  %v890_v27 = vld [vmem:[%s1462_s14 + $0x30] sm:$0xff] }
  0x79   : > { %747 = vmatmul.mubr.bf16.vlgmr.msra.gmra.mxu0 %v1179_v28 }
  0x7a   : > { %756 = vmatprep.mubr.bf16.mxu0 %v1183_v29 }
  0x81   : > { %757 = vmatmul.mubr.bf16.gmra.mxu0 %v1185_v30 }
  0xb9   : > { %v827_v33 = vpop.permute.xlu0 %826 }
  0xba   : > { %v837_v35 = vpop.permute.xlu1 %836 }
  0xbd   : > { %v832_v36 = vpop.permute.xlu0 %831 }
  0xbf   : > { %v842_v39 = vpop.permute.xlu1 %841 }
  0xc1   : > { %v859_v45 = vpop.permute.xlu0 %858 }
  0xc3   : > { %v864_v58 = vpop.permute.xlu1 %863 }
  0xc5   : > { %v869_v12 = vpop.permute.xlu0 %868 }
  0xc7   : > { %v874_v25 = vpop.permute.xlu1 %873 }
 0x103   : > { %v801_v31 = vpop.f32.mrf.mxu1 }
 0x105   : > { %v803_v32 = vpop.f32.mrf.mxu1 }
 0x107   : > { %v805_v34 = vpop.f32.mrf.mxu1 }
 0x109   : > { %v807_v37 = vpop.f32.mrf.mxu1 }
 0x10b   : > { %v811_v42 = vpop.f32.mrf.mxu1 }
 0x10d   : > { %v813_v52 = vpop.f32.mrf.mxu1 }
 0x10f   : > { %v815_v2 = vpop.f32.mrf.mxu1 }
 0x111   : > { %v817_v18 = vpop.f32.mrf.mxu1 }
 0x139   : > { %v748_v38 = vpop.f32.mrf.mxu0 }
 0x13a   : > { %v802_v40 = vadd.f32 %v801_v31, %v748_v38 }
 0x13b   : > { %v750_v41 = vpop.f32.mrf.mxu0 }
 0x13c   : > { %v844_v43 = vmul.f32 %v827_v33, %v802_v40  ;;  %v804_v44 = vadd.f32 %v803_v32, %v750_v41  ;;  %v891_v32 = vld [vmem:[%s1462_s14 + $0x38] sm:$0xff] }
 0x13d   : > { %v752_v47 = vpop.f32.mrf.mxu0 }
 0x13e   : > { %v876_v48 = vadd.f32 %v859_v45, %v844_v43  ;;  %v845_v49 = vmul.f32 %v827_v33, %v804_v44  ;;  %v806_v50 = vadd.f32 %v805_v34, %v752_v47 }
 0x13f   : > { %v754_v53 = vpop.f32.mrf.mxu0 }
 0x140   : > { %v892_v54 = vadd.f32 %v884_v46, %v876_v48  ;;  %v877_v55 = vadd.f32 %v859_v45, %v845_v49  ;;  %v846_v56 = vmul.f32 %v832_v36, %v806_v50  ;;  %v808_v57 = vadd.f32 %v807_v37, %v754_v53 }
 0x141   : > { %v758_v60 = vpop.f32.mrf.mxu0 }
 0x142   : > { %v900_v61 = vmax.f32 %v892_v54, 0.0  ;;  %v893_v62 = vadd.f32 %v885_v51, %v877_v55  ;;  %v878_v63 = vadd.f32 %v864_v58, %v846_v56  ;;  %v847_v0 = vmul.f32 %v832_v36, %v808_v57 }
 0x143   : > { %v812_v3 = vadd.f32 %v811_v42, %v758_v60  ;;  %v760_v4 = vpop.f32.mrf.mxu0 }
 0x144   : > { %908 = vst [vmem:[%s1469_s18] sm:$0xff] %v900_v61  ;;  %v901_v5 = vmax.f32 %v893_v62, 0.0  ;;  %v894_v6 = vadd.f32 %v886_v59, %v878_v63  ;;  %v879_v7 = vadd.f32 %v864_v58, %v847_v0  ;;  %v814_v8 = vadd.f32 %v813_v52, %v760_v4 }
 0x145   : > { %v848_v9 = vmul.f32 %v837_v35, %v812_v3  ;;  %v762_v10 = vpop.f32.mrf.mxu0 }
 0x146   : > { %909 = vst [vmem:[%s1469_s18 + $0x8] sm:$0xff] %v901_v5  ;;  %v902_v11 = vmax.f32 %v894_v6, 0.0  ;;  %v895_v13 = vadd.f32 %v887_v1, %v879_v7  ;;  %v849_v15 = vmul.f32 %v837_v35, %v814_v8  ;;  %v816_v16 = vadd.f32 %v815_v2, %v762_v10 }
 0x147   : > { %v880_v17 = vadd.f32 %v869_v12, %v848_v9  ;;  %v764_v20 = vpop.f32.mrf.mxu0 }
 0x148   : > { %910 = vst [vmem:[%s1469_s18 + $0x10] sm:$0xff] %v902_v11  ;;  %v903_v21 = vmax.f32 %v895_v13, 0.0  ;;  %v881_v22 = vadd.f32 %v869_v12, %v849_v15  ;;  %v850_v23 = vmul.f32 %v842_v39, %v816_v16  ;;  %v818_v24 = vadd.f32 %v817_v18, %v764_v20 }
 0x149   : > { %v896_v26 = vadd.f32 %v888_v14, %v880_v17 }
 0x14a   : > { %911 = vst [vmem:[%s1469_s18 + $0x18] sm:$0xff] %v903_v21  ;;  %v897_v28 = vadd.f32 %v889_v19, %v881_v22  ;;  %v882_v29 = vadd.f32 %v874_v25, %v850_v23  ;;  %v851_v30 = vmul.f32 %v842_v39, %v818_v24 }
 0x14b   : > { %v904_v31 = vmax.f32 %v896_v26, 0.0  ;;  %v938_v39 = vld [vmem:[%s1469_s18] sm:$0xff] (%p1275_p5) }
 0x14c   : > { %v905_v33 = vmax.f32 %v897_v28, 0.0  ;;  %v898_v34 = vadd.f32 %v890_v27, %v882_v29  ;;  %v883_v35 = vadd.f32 %v874_v25, %v851_v30  ;;  %939 = vst [vmem:[%s925_s23] sm:$0xff] (%p1275_p5), %v938_v39 }
 0x14d   : > { %912 = vst [vmem:[%s1469_s18 + $0x20] sm:$0xff] %v904_v31  ;;  %v940_v40 = vld [vmem:[%s1469_s18 + $0x8] sm:$0xff] (%p1275_p5) }
 0x14e   : > { %913 = vst [vmem:[%s1469_s18 + $0x28] sm:$0xff] %v905_v33  ;;  %v906_v36 = vmax.f32 %v898_v34, 0.0  ;;  %v899_v37 = vadd.f32 %v891_v32, %v883_v35  ;;  %922 = sbr.rel (!%p1275_p5) target bundleno = 347 (0x15b), region = 105  ;;  %941 = vst [vmem:[%s925_s23 + $0x8] sm:$0xff] (%p1275_p5), %v940_v40 }
 0x14f   : > { %v942_v41 = vld [vmem:[%s1469_s18 + $0x10] sm:$0xff] (%p1275_p5) }
 0x150   : > { %914 = vst [vmem:[%s1469_s18 + $0x30] sm:$0xff] %v906_v36  ;;  %v907_v38 = vmax.f32 %v899_v37, 0.0  ;;  %943 = vst [vmem:[%s925_s23 + $0x20] sm:$0xff] (%p1275_p5), %v942_v41 }
 0x151   : > { %v944_v42 = vld [vmem:[%s1469_s18 + $0x18] sm:$0xff] (%p1275_p5) }
 0x152   : > { %915 = vst [vmem:[%s1469_s18 + $0x38] sm:$0xff] %v907_v38  ;;  %945 = vst [vmem:[%s925_s23 + $0x28] sm:$0xff] (%p1275_p5), %v944_v42 }
 0x154   : > { %v946_v43 = vld [vmem:[%s1469_s18 + $0x20] sm:$0xff] }
 0x155   : > { %v948_v44 = vld [vmem:[%s1469_s18 + $0x28] sm:$0xff]  ;;  %947 = vst [vmem:[%s925_s23 + $0x40] sm:$0xff] %v946_v43 }
 0x156   : > { %949 = vst [vmem:[%s925_s23 + $0x48] sm:$0xff] %v948_v44 }
 0x157   : > { %v950_v45 = vld [vmem:[%s1469_s18 + $0x30] sm:$0xff] }
 0x158   : > { %951 = vst [vmem:[%s925_s23 + $0x60] sm:$0xff] %v950_v45 }
 0x159   : > { %v952_v46 = vld [vmem:[%s1469_s18 + $0x38] sm:$0xff] }
 0x15a   : > { %953 = vst [vmem:[%s925_s23 + $0x68] sm:$0xff] %v952_v46 }
 0x15b PF: > { %p12_p10 = scmp.ge.s32.totalorder %s1258_s22, 4   ;;  %s1516_s18 = smov %s1204_s19 }
 0x15c   : > { %s1517_s19 = smov %s1269_s25  ;;  %s1518_s20 = smov %s1258_s22 }
 0x15d   :  { %14 = sbr.rel (!%p12_p10) target bundleno = 2 (0x2), region = 167 }

// kernel: resnet20_forward.32
= control target key start
LH: loop header
LB: loop body
LE: loop exit
PB: predicated region body
PF: predicated region fallthrough
CT: control target
= control target key end

     0   :  { %s1115_s15 = smov 0   ;;  %s1117_s16 = smov 0   ;;  %s1355_s0 = inlined_call_operand.vmem [shape: bf16[32,288], index: 0, kind: input, shape index: {}]   ;;  %s1356_s1 = inlined_call_operand.vmem [shape: bf16[288,512], index: 1, kind: input, shape index: {}]   ;;  %s1357_s2 = inlined_call_operand.vmem [shape: f32[32,1], index: 2, kind: input, shape index: {}]   ;;  %s1358_s3 = inlined_call_operand.vmem [shape: f32[32,1], index: 3, kind: input, shape index: {}]   ;;  %s1359_s4 = inlined_call_operand.vmem [shape: f32[32,512], index: 4, kind: output, shape index: {}]  }
   0x1   :  { %s1119_s17 = smov 0  }
   0x2 LB: > { %s915_s18 = sadd.s32 4294967295, %s1087_s17   ;;  %s1132_s19 = sadd.s32 1, %s1087_s17   ;;  %s1087_s17 = sphi %s1119_s17, %s1363_s17   ;;  %s1083_s16 = sphi %s1117_s16, %s1362_s16   ;;  %s1079_s15 = sphi %s1115_s15, %s1361_s15  }
   0x3   : > { %s39_s20 = ssub.s32 %s1087_s17, %s1132_s19  ;;  %s42_s21 = sadd.s32 1, %s1083_s16 }
   0x4   : > { %p40_p0 = scmp.eq.s32.totalorder %s39_s20, 0  ;;  %p49_p1 = scmp.ne.s32.totalorder %s1083_s16, %s1079_s15 }
   0x5   : > { %p50_p2 = scmp.eq.s32.totalorder %s1087_s17, 0  ;;  %p121_p3 = scmp.eq.s32.totalorder %s915_s18, 1 }
   0x6   : > { %s1143_s22 = scalar_select %p40_p0, %s1083_s16, %s42_s21  }
   0x7   : > { %p51_p4 = por %p50_p2, %p49_p1  ;;  %p1145_p5 = por %p121_p3, %p49_p1 }
   0x8   : > { %p918_p6 = scmp.ge.s32.totalorder %s1087_s17, 2 }
   0xa   : > { %152 = sbr.rel (%p918_p6) target bundleno = 37 (0x25), region = 28 }
   0xf   : > { %155 = sbr.rel (!%p51_p4) target bundleno = 37 (0x25), region = 32  ;;  %s157_s24 = sand.u32 (%p51_p4), 1, %s1083_s16  }
  0x10   : > { %s972_s25 = sshll.u32 (%p51_p4), %s1087_s17, 3  ;;  %s974_s26 = smul.u32 (%p51_p4), 288, %s157_s24 }
  0x11   : > { %s1155_s29 = scalar_lea.vmem (%p51_p4), %s1356_s1, %s972_s25 }
  0x12   : > { %v261_v0 = vld [vmem:[%s1155_s29] sm:$0xff] (%p51_p4)  ;;  %v263_v1 = vld [vmem:[%s1155_s29 + $0x10] sm:$0xff] (%p51_p4)  ;;  %s1163_s30 = scalar_lea.vmem (%p51_p4), [#allocation2], %s974_s26 }
  0x13   : > { %v265_v2 = vld [vmem:[%s1155_s29 + $0x20] sm:$0xff] (%p51_p4)  ;;  %v267_v3 = vld [vmem:[%s1155_s29 + $0x30] sm:$0xff] (%p51_p4)  ;;  %262 = vst [vmem:[%s1163_s30] sm:$0xff] (%p51_p4), %v261_v0  ;;  %264 = vst [vmem:[%s1163_s30 + $0x8] sm:$0xff] (%p51_p4), %v263_v1 }
  0x14   : > { %v269_v4 = vld [vmem:[%s1155_s29 + $0x40] sm:$0xff]  ;;  %v271_v5 = vld [vmem:[%s1155_s29 + $0x50] sm:$0xff]  ;;  %266 = vst [vmem:[%s1163_s30 + $0x10] sm:$0xff] %v265_v2  ;;  %268 = vst [vmem:[%s1163_s30 + $0x18] sm:$0xff] %v267_v3 }
  0x15   : > { %270 = vst [vmem:[%s1163_s30 + $0x20] sm:$0xff] %v269_v4  ;;  %272 = vst [vmem:[%s1163_s30 + $0x28] sm:$0xff] %v271_v5  ;;  %v273_v6 = vld [vmem:[%s1155_s29 + $0x60] sm:$0xff]  ;;  %v275_v7 = vld [vmem:[%s1155_s29 + $0x70] sm:$0xff] }
  0x16   : > { %v277_v8 = vld [vmem:[%s1155_s29 + $0x80] sm:$0xff]  ;;  %274 = vst [vmem:[%s1163_s30 + $0x30] sm:$0xff] %v273_v6  ;;  %276 = vst [vmem:[%s1163_s30 + $0x38] sm:$0xff] %v275_v7  ;;  %v279_v9 = vld [vmem:[%s1155_s29 + $0x90] sm:$0xff] }
  0x17   : > { %278 = vst [vmem:[%s1163_s30 + $0x40] sm:$0xff] %v277_v8  ;;  %v281_v10 = vld [vmem:[%s1155_s29 + $0xa0] sm:$0xff]  ;;  %v283_v11 = vld [vmem:[%s1155_s29 + $0xb0] sm:$0xff]  ;;  %280 = vst [vmem:[%s1163_s30 + $0x48] sm:$0xff] %v279_v9 }
  0x18   : > { %282 = vst [vmem:[%s1163_s30 + $0x50] sm:$0xff] %v281_v10  ;;  %284 = vst [vmem:[%s1163_s30 + $0x58] sm:$0xff] %v283_v11  ;;  %v285_v12 = vld [vmem:[%s1155_s29 + $0xc0] sm:$0xff]  ;;  %v287_v13 = vld [vmem:[%s1155_s29 + $0xd0] sm:$0xff] }
  0x19   : > { %v289_v14 = vld [vmem:[%s1155_s29 + $0xe0] sm:$0xff]  ;;  %286 = vst [vmem:[%s1163_s30 + $0x60] sm:$0xff] %v285_v12  ;;  %288 = vst [vmem:[%s1163_s30 + $0x68] sm:$0xff] %v287_v13  ;;  %v291_v15 = vld [vmem:[%s1155_s29 + $0xf0] sm:$0xff] }
  0x1a   : > { %290 = vst [vmem:[%s1163_s30 + $0x70] sm:$0xff] %v289_v14  ;;  %v293_v16 = vld [vmem:[%s1155_s29 + $0x100] sm:$0xff]  ;;  %v295_v17 = vld [vmem:[%s1155_s29 + $0x110] sm:$0xff]  ;;  %292 = vst [vmem:[%s1163_s30 + $0x78] sm:$0xff] %v291_v15 }
  0x1b   : > { %294 = vst [vmem:[%s1163_s30 + $0x80] sm:$0xff] %v293_v16  ;;  %296 = vst [vmem:[%s1163_s30 + $0x88] sm:$0xff] %v295_v17  ;;  %v297_v18 = vld [vmem:[%s1155_s29 + $0x120] sm:$0xff]  ;;  %v299_v19 = vld [vmem:[%s1155_s29 + $0x130] sm:$0xff] }
  0x1c   : > { %v301_v20 = vld [vmem:[%s1155_s29 + $0x140] sm:$0xff]  ;;  %298 = vst [vmem:[%s1163_s30 + $0x90] sm:$0xff] %v297_v18  ;;  %300 = vst [vmem:[%s1163_s30 + $0x98] sm:$0xff] %v299_v19  ;;  %v303_v21 = vld [vmem:[%s1155_s29 + $0x150] sm:$0xff] }
  0x1d   : > { %302 = vst [vmem:[%s1163_s30 + $0xa0] sm:$0xff] %v301_v20  ;;  %v305_v22 = vld [vmem:[%s1155_s29 + $0x160] sm:$0xff]  ;;  %v307_v23 = vld [vmem:[%s1155_s29 + $0x170] sm:$0xff]  ;;  %304 = vst [vmem:[%s1163_s30 + $0xa8] sm:$0xff] %v303_v21 }
  0x1e   : > { %306 = vst [vmem:[%s1163_s30 + $0xb0] sm:$0xff] %v305_v22  ;;  %308 = vst [vmem:[%s1163_s30 + $0xb8] sm:$0xff] %v307_v23  ;;  %v309_v24 = vld [vmem:[%s1155_s29 + $0x180] sm:$0xff]  ;;  %v311_v25 = vld [vmem:[%s1155_s29 + $0x190] sm:$0xff] }
  0x1f   : > { %v313_v26 = vld [vmem:[%s1155_s29 + $0x1a0] sm:$0xff]  ;;  %310 = vst [vmem:[%s1163_s30 + $0xc0] sm:$0xff] %v309_v24  ;;  %312 = vst [vmem:[%s1163_s30 + $0xc8] sm:$0xff] %v311_v25  ;;  %v315_v27 = vld [vmem:[%s1155_s29 + $0x1b0] sm:$0xff] }
  0x20   : > { %314 = vst [vmem:[%s1163_s30 + $0xd0] sm:$0xff] %v313_v26  ;;  %v317_v28 = vld [vmem:[%s1155_s29 + $0x1c0] sm:$0xff]  ;;  %v319_v29 = vld [vmem:[%s1155_s29 + $0x1d0] sm:$0xff]  ;;  %316 = vst [vmem:[%s1163_s30 + $0xd8] sm:$0xff] %v315_v27 }
  0x21   : > { %318 = vst [vmem:[%s1163_s30 + $0xe0] sm:$0xff] %v317_v28  ;;  %320 = vst [vmem:[%s1163_s30 + $0xe8] sm:$0xff] %v319_v29  ;;  %v321_v30 = vld [vmem:[%s1155_s29 + $0x1e0] sm:$0xff]  ;;  %v323_v31 = vld [vmem:[%s1155_s29 + $0x1f0] sm:$0xff] }
  0x22   : > { %v325_v32 = vld [vmem:[%s1155_s29 + $0x200] sm:$0xff]  ;;  %322 = vst [vmem:[%s1163_s30 + $0xf0] sm:$0xff] %v321_v30  ;;  %324 = vst [vmem:[%s1163_s30 + $0xf8] sm:$0xff] %v323_v31  ;;  %v327_v33 = vld [vmem:[%s1155_s29 + $0x210] sm:$0xff] }
  0x23   : > { %326 = vst [vmem:[%s1163_s30 + $0x100] sm:$0xff] %v325_v32  ;;  %v329_v34 = vld [vmem:[%s1155_s29 + $0x220] sm:$0xff]  ;;  %v331_v35 = vld [vmem:[%s1155_s29 + $0x230] sm:$0xff]  ;;  %328 = vst [vmem:[%s1163_s30 + $0x108] sm:$0xff] %v327_v33 }
  0x24   : > { %330 = vst [vmem:[%s1163_s30 + $0x110] sm:$0xff] %v329_v34  ;;  %332 = vst [vmem:[%s1163_s30 + $0x118] sm:$0xff] %v331_v35 }
  0x25 PF: > { %p921_p7 = scmp.ge.s32.totalorder %s1087_s17, 1  ;;  %p337_p8 = scmp.lt.s32.totalorder %s1087_s17, 3 }
  0x27   : > { %p338_p9 = pnand %p921_p7, %p337_p8 }
  0x28   : > { %s344_s5 = sand.u32 (!%p338_p9), 1, %s1079_s15  }
  0x29   : > { %341 = sbr.rel (%p338_p9) target bundleno = 337 (0x151), region = 70 }
  0x2a   : > { %s975_s6 = smul.u32 (!%p338_p9), 288, %s344_s5 }
  0x2c   : > { %s1239_s9 = scalar_lea.vmem (!%p338_p9), [#allocation2], %s975_s6 }
  0x2e   : > { %v1089_v36 = vmov 0   ;;  %v1060_v37 = vld [vmem:[%s1355_s0 + $0x4] ss:$12 sps:$4 sm:$0xff]   ;;  %v1003_v38 = vld [vmem:[%s1239_s9 + $0x74] ss:$8 sps:$4 sm:$0xff]   ;;  %vm625_vm0 = vcmask 261120  }
  0x2f   : > { %717 = vmatprep.mubr.bf16.mxu1 %v1089_v36  ;;  %1002 = vset.pattern.permute.xlu1 %v1089_v36  ;;  %v1005_v39 = vld [vmem:[%s1239_s9 + $0x70] ss:$8 sps:$4 sm:$0xff]   ;;  %v1006_v40 = vld [vmem:[%s1239_s9 + $0x64] ss:$8 sps:$4 sm:$0xff]   ;;  %v1008_v41 = vld [vmem:[%s1239_s9 + $0x60] ss:$8 sps:$4 sm:$0xff]  }
  0x30   : > { %1001 = vset.pattern.permute.xlu0 %v1089_v36  ;;  %664 = vmatprep.mubr.bf16.mxu0 %v1060_v37  ;;  %v1009_v42 = vld [vmem:[%s1239_s9 + $0x54] ss:$8 sps:$4 sm:$0xff]   ;;  %v1011_v43 = vld [vmem:[%s1239_s9 + $0x50] ss:$8 sps:$4 sm:$0xff]   ;;  %v1012_v44 = vld [vmem:[%s1239_s9 + $0x44] ss:$8 sps:$4 sm:$0xff]  }
  0x31   : > { %632 = vmatprep.subr.bf16.mxu0 %v1003_v38  ;;  %v1014_v45 = vld [vmem:[%s1239_s9 + $0x40] ss:$8 sps:$4 sm:$0xff]   ;;  %v1015_v46 = vld [vmem:[%s1239_s9 + $0x34] ss:$8 sps:$4 sm:$0xff]   ;;  %v1017_v47 = vld [vmem:[%s1239_s9 + $0x30] ss:$8 sps:$4 sm:$0xff]  }
  0x32   : > { %633 = vmatpush1.bf16.msra.mxu0 %v1005_v39  ;;  %v1018_v48 = vld [vmem:[%s1239_s9 + $0x24] ss:$8 sps:$4 sm:$0xff]   ;;  %v1042_v49 = vld [vmem:[%s1239_s9 + $0x114] ss:$8 sps:$4 sm:$0xff]   ;;  %v1044_v50 = vld [vmem:[%s1239_s9 + $0x110] ss:$8 sps:$4 sm:$0xff]  }
  0x33   : > { %634 = vmatprep.subr.bf16.mxu0 %v1006_v40  ;;  %v1020_v51 = vld [vmem:[%s1239_s9 + $0x20] ss:$8 sps:$4 sm:$0xff]   ;;  %v1021_v52 = vld [vmem:[%s1239_s9 + $0x14] ss:$8 sps:$4 sm:$0xff]   ;;  %697 = vmatprep.subr.bf16.mxu1 %v1042_v49  ;;  %v1048_v53 = vld [vmem:[%s1239_s9 + $0x104] ss:$8 sps:$4 sm:$0xff]  }
  0x34   : > { %698 = vmatpush1.bf16.msra.mxu1 %v1044_v50  ;;  %v1050_v54 = vld [vmem:[%s1239_s9 + $0x100] ss:$8 sps:$4 sm:$0xff]   ;;  %v1023_v55 = vld [vmem:[%s1239_s9 + $0x10] ss:$8 sps:$4 sm:$0xff]   ;;  %v1024_v56 = vld [vmem:[%s1239_s9 + $0x4] ss:$8 sps:$4 sm:$0xff]  }
  0x35   : > { %699 = vmatprep.subr.bf16.mxu1 %v1048_v53  ;;  %v1054_v57 = vld [vmem:[%s1355_s0 + $0x8] ss:$12 sps:$4 sm:$0xff]   ;;  %v738_v59 = vld [vmem:[%s1357_s2] sm:$0xff]  ;;  %v741_v61 = vld [vmem:[%s1357_s2 + $0x18] sm:$0xff]  ;;  %s973_s15 = sshll.u32 (%p1145_p5), %s915_s18, 4 }
  0x36   : > { %635 = vmatpush1.bf16.msra.mxu0 %v1008_v41  ;;  %v740_v58 = vld [vmem:[%s1357_s2 + $0x10] sm:$0xff]  ;;  %744 = vperm.xlu0 %1001, %v738_v59   ;;  %v1026_v60 = vld [vmem:[%s1239_s9] ss:$8 sps:$4 sm:$0xff]   ;;  %v1030_v3 = vld [vmem:[%s1239_s9 + $0xe4] ss:$8 sps:$4 sm:$0xff]   ;;  %s827_s28 = scalar_lea.vmem (%p1145_p5), %s1359_s4, %s973_s15 }
  0x37   : > { %636 = vmatprep.subr.bf16.mxu0 %v1009_v42  ;;  %754 = vperm.xlu1 %1002, %v740_v58   ;;  %v739_v62 = vld [vmem:[%s1357_s2 + $0x8] sm:$0xff]  ;;  %v1027_v63 = vld [vmem:[%s1239_s9 + $0xf4] ss:$8 sps:$4 sm:$0xff]   ;;  %v1029_v0 = vld [vmem:[%s1239_s9 + $0xf0] ss:$8 sps:$4 sm:$0xff]  }
  0x38   : > { %700 = vmatpush1.bf16.msra.mxu1 %v1050_v54  ;;  %v771_v1 = vld [vmem:[%s1358_s3 + $0x8] sm:$0xff]  ;;  %v770_v2 = vld [vmem:[%s1358_s3] sm:$0xff]  ;;  %v773_v6 = vld [vmem:[%s1358_s3 + $0x18] sm:$0xff] }
  0x39   : > { %v1061_v4 = vld [vmem:[%s1355_s0 + $0x20] ss:$12 sps:$4 sm:$0xff]   ;;  %v772_v7 = vld [vmem:[%s1358_s3 + $0x10] sm:$0xff]  ;;  %v1062_v21 = vld [vmem:[%s1355_s0 + $0x1c] ss:$12 sps:$4 sm:$0xff]  }
  0x3a   : > { %637 = vmatpush1.bf16.msra.mxu0 %v1011_v43  ;;  %749 = vperm.xlu0 %1001, %v739_v62   ;;  %v1032_v5 = vld [vmem:[%s1239_s9 + $0xe0] ss:$8 sps:$4 sm:$0xff]   ;;  %v1033_v8 = vld [vmem:[%s1239_s9 + $0xd4] ss:$8 sps:$4 sm:$0xff]   ;;  %v1035_v9 = vld [vmem:[%s1239_s9 + $0xd0] ss:$8 sps:$4 sm:$0xff]  }
  0x3b   : > { %638 = vmatprep.subr.bf16.mxu0 %v1012_v44  ;;  %965 = vmatmul.mubr.msk.bf16.vlgmr.msra.gmra.mxu1 %vm625_vm0, %v1054_v57  ;;  %v1036_v10 = vld [vmem:[%s1239_s9 + $0xc4] ss:$8 sps:$4 sm:$0xff]   ;;  %v1038_v11 = vld [vmem:[%s1239_s9 + $0xc0] ss:$8 sps:$4 sm:$0xff]   ;;  %v1039_v12 = vld [vmem:[%s1239_s9 + $0xb4] ss:$8 sps:$4 sm:$0xff]  }
  0x3c   : > { %727 = vmatprep.mubr.bf16.mxu1 %v1089_v36  ;;  %759 = vperm.xlu1 %1002, %v741_v61   ;;  %v1041_v13 = vld [vmem:[%s1239_s9 + $0xb0] ss:$8 sps:$4 sm:$0xff]   ;;  %v1045_v14 = vld [vmem:[%s1239_s9 + $0xa4] ss:$8 sps:$4 sm:$0xff]   ;;  %v1047_v15 = vld [vmem:[%s1239_s9 + $0xa0] ss:$8 sps:$4 sm:$0xff]  }
  0x3d   : > { %v1051_v16 = vld [vmem:[%s1239_s9 + $0x94] ss:$8 sps:$4 sm:$0xff]   ;;  %v1053_v17 = vld [vmem:[%s1239_s9 + $0x90] ss:$8 sps:$4 sm:$0xff]   ;;  %v1055_v18 = vld [vmem:[%s1239_s9 + $0x84] ss:$8 sps:$4 sm:$0xff]  }
  0x3e   : > { %639 = vmatpush1.bf16.msra.mxu0 %v1014_v45  ;;  %776 = vperm.xlu0 %1001, %v770_v2   ;;  %v1057_v19 = vld [vmem:[%s1239_s9 + $0x80] ss:$8 sps:$4 sm:$0xff]   ;;  %v1064_v22 = vld [vmem:[%s1355_s0 + $0x18] ss:$12 sps:$4 sm:$0xff]   ;;  %s922_s9 = sshll.u32 %s344_s5, 6 }
  0x3f   : > { %640 = vmatprep.subr.bf16.mxu0 %v1015_v46  ;;  %v1058_v20 = vld [vmem:[%s1355_s0] ss:$12 sps:$4 sm:$0xff]   ;;  %s1320_s26 = scalar_lea.vmem [#allocation3], %s922_s9 }
  0x40   : > { %781 = vperm.xlu1 %1002, %v771_v1  }
  0x42   : > { %641 = vmatpush1.bf16.msra.mxu0 %v1017_v47  ;;  %786 = vperm.xlu0 %1001, %v772_v7  }
  0x43   : > { %642 = vmatprep.subr.bf16.mxu0 %v1018_v48  ;;  %966 = vmatmul.mubr.msk.bf16.gmra.mxu1 %vm625_vm0, %v1061_v4 }
  0x44   : > { %791 = vperm.xlu1 %1002, %v773_v6  }
  0x46   : > { %643 = vmatpush1.bf16.msra.mxu0 %v1020_v51 }
  0x47   : > { %644 = vmatprep.subr.bf16.mxu0 %v1021_v52 }
  0x4a   : > { %645 = vmatpush1.bf16.msra.mxu0 %v1023_v55 }
  0x4b   : > { %646 = vmatprep.subr.bf16.mxu0 %v1024_v56 }
  0x4e   : > { %647 = vmatpush1.bf16.msra.mxu0 %v1026_v60 }
  0x4f   : > { %648 = vmatprep.subr.bf16.mxu0 %v1027_v63 }
  0x52   : > { %649 = vmatpush2.bf16.msra.mxu0 %v1029_v0 }
  0x53   : > { %650 = vmatprep.subr.bf16.mxu0 %v1030_v3 }
  0x56   : > { %651 = vmatpush2.bf16.msra.mxu0 %v1032_v5 }
  0x57   : > { %652 = vmatprep.subr.bf16.mxu0 %v1033_v8 }
  0x5a   : > { %653 = vmatpush2.bf16.msra.mxu0 %v1035_v9 }
  0x5b   : > { %654 = vmatprep.subr.bf16.mxu0 %v1036_v10 }
  0x5e   : > { %655 = vmatpush2.bf16.msra.mxu0 %v1038_v11 }
  0x5f   : > { %656 = vmatprep.subr.bf16.mxu0 %v1039_v12 }
  0x62   : > { %657 = vmatpush2.bf16.msra.mxu0 %v1041_v13 }
  0x63   : > { %658 = vmatprep.subr.bf16.mxu0 %v1045_v14 }
  0x66   : > { %659 = vmatpush2.bf16.msra.mxu0 %v1047_v15 }
  0x67   : > { %660 = vmatprep.subr.bf16.mxu0 %v1051_v16 }
  0x6a   : > { %661 = vmatpush2.bf16.msra.mxu0 %v1053_v17 }
  0x6b   : > { %662 = vmatprep.subr.bf16.mxu0 %v1055_v18 }
  0x6e   : > { %663 = vmatpush2.bf16.msra.mxu0 %v1057_v19 }
  0x71   : > { %665 = vmatmul.mubr.bf16.vlgmr.msra.gmra.mxu0 %v1058_v20 }
  0x72   : > { %674 = vmatprep.mubr.bf16.mxu0 %v1062_v21 }
  0x79   : > { %675 = vmatmul.mubr.bf16.gmra.mxu0 %v1064_v22 }
  0xb1   : > { %v745_v25 = vpop.permute.xlu0 %744 }
  0xb2   : > { %v755_v27 = vpop.permute.xlu1 %754 }
  0xb5   : > { %v750_v28 = vpop.permute.xlu0 %749 }
  0xb7   : > { %v760_v31 = vpop.permute.xlu1 %759 }
  0xb9   : > { %v777_v37 = vpop.permute.xlu0 %776 }
  0xbb   : > { %v782_v48 = vpop.permute.xlu1 %781 }
  0xbd   : > { %v787_v60 = vpop.permute.xlu0 %786 }
  0xbf   : > { %v792_v8 = vpop.permute.xlu1 %791 }
  0xfb   : > { %v719_v23 = vpop.f32.mrf.mxu1 }
  0xfd   : > { %v721_v24 = vpop.f32.mrf.mxu1 }
  0xff   : > { %v723_v26 = vpop.f32.mrf.mxu1 }
 0x101   : > { %v725_v29 = vpop.f32.mrf.mxu1 }
 0x103   : > { %v729_v34 = vpop.f32.mrf.mxu1 }
 0x105   : > { %v731_v42 = vpop.f32.mrf.mxu1 }
 0x107   : > { %v733_v54 = vpop.f32.mrf.mxu1 }
 0x109   : > { %v735_v2 = vpop.f32.mrf.mxu1 }
 0x131   : > { %v666_v30 = vpop.f32.mrf.mxu0 }
 0x132   : > { %v720_v32 = vadd.f32 %v719_v23, %v666_v30 }
 0x133   : > { %v668_v33 = vpop.f32.mrf.mxu0 }
 0x134   : > { %v762_v35 = vmul.f32 %v745_v25, %v720_v32  ;;  %v722_v36 = vadd.f32 %v721_v24, %v668_v33 }
 0x135   : > { %v670_v38 = vpop.f32.mrf.mxu0 }
 0x136   : > { %v794_v39 = vadd.f32 %v777_v37, %v762_v35  ;;  %v763_v40 = vmul.f32 %v745_v25, %v722_v36  ;;  %v724_v41 = vadd.f32 %v723_v26, %v670_v38 }
 0x137   : > { %v672_v43 = vpop.f32.mrf.mxu0 }
 0x138   : > { %v802_v44 = vmax.f32 %v794_v39, 0.0  ;;  %v795_v45 = vadd.f32 %v777_v37, %v763_v40  ;;  %v764_v46 = vmul.f32 %v750_v28, %v724_v41  ;;  %v726_v47 = vadd.f32 %v725_v29, %v672_v43 }
 0x139   : > { %v676_v49 = vpop.f32.mrf.mxu0 }
 0x13a   : > { %810 = vst [vmem:[%s1320_s26] sm:$0xff] %v802_v44  ;;  %v803_v50 = vmax.f32 %v795_v45, 0.0  ;;  %v796_v51 = vadd.f32 %v782_v48, %v764_v46  ;;  %v765_v52 = vmul.f32 %v750_v28, %v726_v47  ;;  %v730_v53 = vadd.f32 %v729_v34, %v676_v49 }
 0x13b   : > { %v678_v55 = vpop.f32.mrf.mxu0 }
 0x13c   : > { %811 = vst [vmem:[%s1320_s26 + $0x8] sm:$0xff] %v803_v50  ;;  %v804_v56 = vmax.f32 %v796_v51, 0.0  ;;  %v797_v57 = vadd.f32 %v782_v48, %v765_v52  ;;  %v766_v58 = vmul.f32 %v755_v27, %v730_v53  ;;  %v732_v59 = vadd.f32 %v731_v42, %v678_v55 }
 0x13d   : > { %v680_v61 = vpop.f32.mrf.mxu0 }
 0x13e   : > { %812 = vst [vmem:[%s1320_s26 + $0x10] sm:$0xff] %v804_v56  ;;  %v805_v62 = vmax.f32 %v797_v57, 0.0  ;;  %v798_v63 = vadd.f32 %v787_v60, %v766_v58  ;;  %v767_v0 = vmul.f32 %v755_v27, %v732_v59  ;;  %v734_v1 = vadd.f32 %v733_v54, %v680_v61 }
 0x13f   : > { %v682_v3 = vpop.f32.mrf.mxu0 }
 0x140   : > { %813 = vst [vmem:[%s1320_s26 + $0x18] sm:$0xff] %v805_v62  ;;  %v806_v4 = vmax.f32 %v798_v63, 0.0  ;;  %v799_v5 = vadd.f32 %v787_v60, %v767_v0  ;;  %v768_v6 = vmul.f32 %v760_v31, %v734_v1  ;;  %v736_v7 = vadd.f32 %v735_v2, %v682_v3 }
 0x141   : > { %v840_v15 = vld [vmem:[%s1320_s26] sm:$0xff] (%p1145_p5) }
 0x142   : > { %814 = vst [vmem:[%s1320_s26 + $0x20] sm:$0xff] %v806_v4  ;;  %v807_v9 = vmax.f32 %v799_v5, 0.0  ;;  %v800_v10 = vadd.f32 %v792_v8, %v768_v6  ;;  %v769_v11 = vmul.f32 %v760_v31, %v736_v7  ;;  %841 = vst [vmem:[%s827_s28] sm:$0xff] (%p1145_p5), %v840_v15 }
 0x143   : > { %v842_v16 = vld [vmem:[%s1320_s26 + $0x8] sm:$0xff] (%p1145_p5) }
 0x144   : > { %815 = vst [vmem:[%s1320_s26 + $0x28] sm:$0xff] %v807_v9  ;;  %v808_v12 = vmax.f32 %v800_v10, 0.0  ;;  %v801_v13 = vadd.f32 %v792_v8, %v769_v11  ;;  %824 = sbr.rel (!%p1145_p5) target bundleno = 337 (0x151), region = 78  ;;  %843 = vst [vmem:[%s827_s28 + $0x8] sm:$0xff] (%p1145_p5), %v842_v16 }
 0x145   : > { %v844_v17 = vld [vmem:[%s1320_s26 + $0x10] sm:$0xff] (%p1145_p5) }
 0x146   : > { %816 = vst [vmem:[%s1320_s26 + $0x30] sm:$0xff] %v808_v12  ;;  %v809_v14 = vmax.f32 %v801_v13, 0.0  ;;  %845 = vst [vmem:[%s827_s28 + $0x20] sm:$0xff] (%p1145_p5), %v844_v17 }
 0x147   : > { %v846_v18 = vld [vmem:[%s1320_s26 + $0x18] sm:$0xff] (%p1145_p5) }
 0x148   : > { %817 = vst [vmem:[%s1320_s26 + $0x38] sm:$0xff] %v809_v14  ;;  %847 = vst [vmem:[%s827_s28 + $0x28] sm:$0xff] (%p1145_p5), %v846_v18 }
 0x149   : > { %v848_v19 = vld [vmem:[%s1320_s26 + $0x20] sm:$0xff] }
 0x14a   : > { %849 = vst [vmem:[%s827_s28 + $0x40] sm:$0xff] %v848_v19 }
 0x14b   : > { %v850_v20 = vld [vmem:[%s1320_s26 + $0x28] sm:$0xff] }
 0x14c   : > { %851 = vst [vmem:[%s827_s28 + $0x48] sm:$0xff] %v850_v20 }
 0x14d   : > { %v852_v21 = vld [vmem:[%s1320_s26 + $0x30] sm:$0xff] }
 0x14e   : > { %853 = vst [vmem:[%s827_s28 + $0x60] sm:$0xff] %v852_v21 }
 0x14f   : > { %v854_v22 = vld [vmem:[%s1320_s26 + $0x38] sm:$0xff] }
 0x150   : > { %855 = vst [vmem:[%s827_s28 + $0x68] sm:$0xff] %v854_v22 }
 0x151 PF: > { %p11_p10 = scmp.ge.s32.totalorder %s1132_s19, 4   ;;  %s1361_s15 = smov %s1083_s16 }
 0x152   : > { %s1362_s16 = smov %s1143_s22  ;;  %s1363_s17 = smov %s1132_s19 }
 0x153   :  { %13 = sbr.rel (!%p11_p10) target bundleno = 2 (0x2), region = 132 }

// kernel: resnet20_forward.36
= control target key start
LH: loop header
LB: loop body
LE: loop exit
PB: predicated region body
PF: predicated region fallthrough
CT: control target
= control target key end

     0   :  { %v658_v1 = vmov 0   ;;  %vm238_vm0 = vcmask 261120   ;;  %s859_s1 = inlined_call_operand.vmem [shape: bf16[288,128], index: 1, kind: input, shape index: {}]   ;;  %s860_s0 = inlined_call_operand.vmem [shape: bf16[64,288], index: 0, kind: input, shape index: {}]   ;;  %s861_s2 = inlined_call_operand.vmem [shape: f32[64,1], index: 2, kind: input, shape index: {}]   ;;  %s862_s3 = inlined_call_operand.vmem [shape: f32[64,1], index: 3, kind: input, shape index: {}]   ;;  %s863_s4 = inlined_call_operand.vmem [shape: f32[64,128], index: 4, kind: output, shape index: {}]  }
   0x1   :  { %v624_v0 = vld [vmem:[%s859_s1 + $0x78] sm:$0xff]   ;;  %623 = vset.pattern.permute.xlu1 %v658_v1  ;;  %622 = vset.pattern.permute.xlu0 %v658_v1  ;;  %v626_v3 = vld [vmem:[%s859_s1 + $0x70] sm:$0xff]   ;;  %v628_v5 = vld [vmem:[%s859_s1 + $0x68] sm:$0xff]  }
   0x2   :  { %v625_v2 = vld [vmem:[%s859_s1 + $0x38] sm:$0xff]   ;;  %547 = vmatprep.subr.bf16.mxu0 %v624_v0  ;;  %605 = vmatprep.subr.bf16.mxu1 %v624_v0  ;;  %v627_v4 = vld [vmem:[%s859_s1 + $0x30] sm:$0xff]   ;;  %v629_v6 = vld [vmem:[%s859_s1 + $0x28] sm:$0xff]  }
   0x3   :  { %548 = vmatpush3.bf16.msra.mxu0 %v625_v2  ;;  %613 = vmatpush3.bf16.msra.mxu1 %v625_v2  ;;  %v630_v7 = vld [vmem:[%s859_s1 + $0x60] sm:$0xff]   ;;  %v632_v9 = vld [vmem:[%s859_s1 + $0x58] sm:$0xff]   ;;  %v634_v11 = vld [vmem:[%s859_s1 + $0x50] sm:$0xff]  }
   0x4   :  { %549 = vmatprep.subr.bf16.mxu0 %v626_v3  ;;  %606 = vmatprep.subr.bf16.mxu1 %v626_v3  ;;  %v631_v8 = vld [vmem:[%s859_s1 + $0x20] sm:$0xff]   ;;  %v633_v10 = vld [vmem:[%s859_s1 + $0x18] sm:$0xff]   ;;  %v635_v14 = vld [vmem:[%s859_s1 + $0x10] sm:$0xff]  }
   0x5   :  { %v642_v12 = vld [vmem:[%s860_s0 + $0x4] ss:$12 sps:$4 sm:$0xff]   ;;  %v645_v13 = vld [vmem:[%s860_s0 + $0x4c] ss:$12 sps:$4 sm:$0xff]   ;;  %v643_v23 = vld [vmem:[%s860_s0 + $0x48] ss:$12 sps:$4 sm:$0xff]  }
   0x6   :  { %v636_v15 = vld [vmem:[%s859_s1 + $0x48] sm:$0xff]   ;;  %283 = vmatprep.mubr.bf16.mxu0 %v642_v12  ;;  %307 = vmatprep.mubr.bf16.mxu1 %v645_v13  ;;  %v638_v17 = vld [vmem:[%s859_s1 + $0x40] sm:$0xff]   ;;  %v383_v19 = vld [vmem:[%s861_s2 + $0x10] sm:$0xff] }
   0x7   :  { %550 = vmatpush3.bf16.msra.mxu0 %v627_v4  ;;  %614 = vmatpush3.bf16.msra.mxu1 %v627_v4  ;;  %v637_v16 = vld [vmem:[%s859_s1 + $0x8] sm:$0xff]   ;;  %v639_v18 = vld [vmem:[%s859_s1] sm:$0xff]   ;;  %v384_v24 = vld [vmem:[%s861_s2 + $0x18] sm:$0xff] }
   0x8   :  { %551 = vmatprep.subr.bf16.mxu0 %v628_v5  ;;  %607 = vmatprep.subr.bf16.mxu1 %v628_v5  ;;  %v381_v20 = vld [vmem:[%s861_s2] sm:$0xff]  ;;  %v646_v21 = vld [vmem:[%s859_s1 + $0x88] sm:$0xff]   ;;  %v388_v33 = vld [vmem:[%s861_s2 + $0x38] sm:$0xff] }
   0x9   :  { %v640_v22 = vld [vmem:[%s860_s0] ss:$12 sps:$4 sm:$0xff]   ;;  %401 = vperm.xlu1 %623, %v383_v19   ;;  %391 = vperm.xlu0 %622, %v381_v20   ;;  %v648_v26 = vld [vmem:[%s860_s0 + $0x1c] ss:$12 sps:$4 sm:$0xff]   ;;  %v651_v31 = vld [vmem:[%s860_s0 + $0x18] ss:$12 sps:$4 sm:$0xff]  }
   0xa   :  { %v382_v25 = vld [vmem:[%s861_s2 + $0x8] sm:$0xff]  ;;  %v647_v27 = vld [vmem:[%s859_s1 + $0x80] sm:$0xff]   ;;  %v387_v34 = vld [vmem:[%s861_s2 + $0x30] sm:$0xff] }
   0xb   :  { %552 = vmatpush3.bf16.msra.mxu0 %v629_v6  ;;  %615 = vmatpush3.bf16.msra.mxu1 %v629_v6  ;;  %v650_v28 = vld [vmem:[%s860_s0 + $0x8] ss:$12 sps:$4 sm:$0xff]   ;;  %v385_v30 = vld [vmem:[%s861_s2 + $0x20] sm:$0xff]  ;;  %v656_v39 = vld [vmem:[%s860_s0 + $0x30] ss:$12 sps:$4 sm:$0xff]  }
   0xc   :  { %553 = vmatprep.subr.bf16.mxu0 %v630_v7  ;;  %608 = vmatprep.subr.bf16.mxu1 %v630_v7  ;;  %v386_v29 = vld [vmem:[%s861_s2 + $0x28] sm:$0xff]  ;;  %v653_v35 = vld [vmem:[%s860_s0 + $0x34] ss:$12 sps:$4 sm:$0xff]   ;;  %v655_v36 = vld [vmem:[%s860_s0 + $0x38] ss:$12 sps:$4 sm:$0xff]  }
   0xd   :  { %406 = vperm.xlu1 %623, %v384_v24   ;;  %396 = vperm.xlu0 %622, %v382_v25   ;;  %v652_v32 = vld [vmem:[%s860_s0 + $0x20] ss:$12 sps:$4 sm:$0xff]   ;;  %v657_v40 = vld [vmem:[%s860_s0 + $0x50] ss:$12 sps:$4 sm:$0xff]  }
   0xe   :  { %v438_v37 = vld [vmem:[%s862_s3 + $0x8] sm:$0xff]  ;;  %v437_v38 = vld [vmem:[%s862_s3] sm:$0xff]  ;;  %v440_v41 = vld [vmem:[%s862_s3 + $0x18] sm:$0xff] }
   0xf   :  { %554 = vmatpush3.bf16.msra.mxu0 %v631_v8  ;;  %616 = vmatpush3.bf16.msra.mxu1 %v631_v8  ;;  %v439_v42 = vld [vmem:[%s862_s3 + $0x10] sm:$0xff]  ;;  %v442_v43 = vld [vmem:[%s862_s3 + $0x28] sm:$0xff]  ;;  %v441_v44 = vld [vmem:[%s862_s3 + $0x20] sm:$0xff] }
  0x10   :  { %555 = vmatprep.subr.bf16.mxu0 %v632_v9  ;;  %609 = vmatprep.subr.bf16.mxu1 %v632_v9  ;;  %v444_v45 = vld [vmem:[%s862_s3 + $0x38] sm:$0xff]  ;;  %v443_v46 = vld [vmem:[%s862_s3 + $0x30] sm:$0xff] }
  0x11   :  { %416 = vperm.xlu1 %623, %v386_v29   ;;  %411 = vperm.xlu0 %622, %v385_v30  }
  0x13   :  { %556 = vmatpush3.bf16.msra.mxu0 %v633_v10  ;;  %617 = vmatpush3.bf16.msra.mxu1 %v633_v10 }
  0x14   :  { %557 = vmatprep.subr.bf16.mxu0 %v634_v11  ;;  %610 = vmatprep.subr.bf16.mxu1 %v634_v11 }
  0x15   :  { %426 = vperm.xlu1 %623, %v388_v33   ;;  %421 = vperm.xlu0 %622, %v387_v34  }
  0x17   :  { %558 = vmatpush3.bf16.msra.mxu0 %v635_v14  ;;  %618 = vmatpush3.bf16.msra.mxu1 %v635_v14 }
  0x18   :  { %559 = vmatprep.subr.bf16.mxu0 %v636_v15  ;;  %611 = vmatprep.subr.bf16.mxu1 %v636_v15 }
  0x19   :  { %452 = vperm.xlu1 %623, %v438_v37   ;;  %447 = vperm.xlu0 %622, %v437_v38  }
  0x1b   :  { %560 = vmatpush3.bf16.msra.mxu0 %v637_v16  ;;  %619 = vmatpush3.bf16.msra.mxu1 %v637_v16 }
  0x1c   :  { %561 = vmatprep.subr.bf16.mxu0 %v638_v17  ;;  %612 = vmatprep.subr.bf16.mxu1 %v638_v17 }
  0x1d   :  { %462 = vperm.xlu1 %623, %v440_v41   ;;  %457 = vperm.xlu0 %622, %v439_v42  }
  0x1f   :  { %562 = vmatpush3.bf16.msra.mxu0 %v639_v18  ;;  %620 = vmatpush3.bf16.msra.mxu1 %v639_v18 }
  0x20   :  { %593 = vmatprep.subr.bf16.mxu1 %v646_v21 }
  0x21   :  { %472 = vperm.xlu1 %623, %v442_v43   ;;  %467 = vperm.xlu0 %622, %v441_v44  }
  0x22   :  { %284 = vmatmul.mubr.bf16.vlgmr.msra.gmra.mxu0 %v640_v22  ;;  %308 = vmatmul.mubr.bf16.vlgmr.msra.gmra.mxu1 %v643_v23 }
  0x23   :  { %594 = vmatpush3.bf16.msra.mxu1 %v646_v21  ;;  %291 = vmatprep.mubr.bf16.mxu0 %v648_v26 }
  0x24   :  { %595 = vmatprep.subr.bf16.mxu1 %v647_v27  ;;  %597 = vmatprep.mubr.msk.bf16.mxu1 %vm238_vm0, %v650_v28 }
  0x25   :  { %482 = vperm.xlu1 %623, %v444_v45   ;;  %477 = vperm.xlu0 %622, %v443_v46  }
  0x27   :  { %596 = vmatpush3.bf16.msra.mxu1 %v647_v27 }
  0x2a   :  { %292 = vmatmul.mubr.bf16.gmra.mxu0 %v651_v31  ;;  %598 = vmatmul.mubr.msk.bf16.vlgmr.msra.gmra.mxu1 %vm238_vm0, %v652_v32 }
  0x2b   :  { %299 = vmatprep.mubr.bf16.mxu0 %v653_v35  ;;  %601 = vmatprep.mubr.msk.bf16.mxu1 %vm238_vm0, %v655_v36 }
  0x32   :  { %300 = vmatmul.mubr.bf16.gmra.mxu0 %v656_v39  ;;  %602 = vmatmul.mubr.msk.bf16.gmra.mxu1 %vm238_vm0, %v657_v40 }
  0x84   :  { %v392_v47 = vpop.permute.xlu0 %391  ;;  %v402_v48 = vpop.permute.xlu1 %401 }
  0x88   :  { %v397_v49 = vpop.permute.xlu0 %396  ;;  %v407_v50 = vpop.permute.xlu1 %406 }
  0x8c   :  { %v826_v51 = vpop.permute.xlu0 %411  ;;  %v828_v52 = vpop.permute.xlu1 %416 }
  0x90   :  { %v422_v53 = vpop.permute.xlu0 %421  ;;  %v830_v54 = vpop.permute.xlu1 %426 }
  0x94   :  { %v448_v59 = vpop.permute.xlu0 %447  ;;  %v453_v62 = vpop.permute.xlu1 %452 }
  0x98   :  { %v458_v3 = vpop.permute.xlu0 %457  ;;  %v463_v7 = vpop.permute.xlu1 %462 }
  0x9c   :  { %v468_v17 = vpop.permute.xlu0 %467  ;;  %v473_v25 = vpop.permute.xlu1 %472 }
  0xa0   :  { %v478_v41 = vpop.permute.xlu0 %477 }
  0xe2   :  { %v563_v55 = vpop.f32.mrf.mxu0  ;;  %v581_v56 = vpop.f32.mrf.mxu1 }
  0xe4   :  { %v564_v57 = vpop.f32.mrf.mxu0  ;;  %v582_v58 = vpop.f32.mrf.mxu1 }
  0xe5   :  { %v565_v4 = vadd.f32 %v564_v57, %v563_v55  ;;  %v583_v22 = vadd.f32 %v582_v58, %v581_v56  ;;  %v483_v55 = vpop.permute.xlu1 %482 }
  0xe6   :  { %v566_v60 = vpop.f32.mrf.mxu0  ;;  %v584_v61 = vpop.f32.mrf.mxu1 }
  0xe8   :  { %v567_v63 = vpop.f32.mrf.mxu0  ;;  %v585_v0 = vpop.f32.mrf.mxu1 }
  0xe9   :  { %v568_v12 = vadd.f32 %v567_v63, %v566_v60  ;;  %v586_v30 = vadd.f32 %v585_v0, %v584_v61 }
  0xea   :  { %v569_v1 = vpop.f32.mrf.mxu0  ;;  %v599_v2 = vpop.f32.mrf.mxu1 }
  0xec   :  { %v570_v5 = vpop.f32.mrf.mxu0  ;;  %v350_v6 = vpop.f32.mrf.mxu1 }
  0xed   :  { %v571_v8 = vadd.f32 %v570_v5, %v569_v1  ;;  %v351_v9 = vadd.f32 %v565_v4, %v350_v6 }
  0xee   :  { %v572_v10 = vpop.f32.mrf.mxu0  ;;  %v600_v11 = vpop.f32.mrf.mxu1 }
  0xef   :  { %v359_v13 = vadd.f32 %v599_v2, %v571_v8  ;;  %v429_v14 = vmul.f32 %v392_v47, %v351_v9 }
  0xf0   :  { %v573_v15 = vpop.f32.mrf.mxu0  ;;  %v353_v16 = vpop.f32.mrf.mxu1 }
  0xf1   :  { %v431_v18 = vmul.f32 %v402_v48, %v359_v13  ;;  %v485_v19 = vadd.f32 %v448_v59, %v429_v14  ;;  %v574_v20 = vadd.f32 %v573_v15, %v572_v10  ;;  %v354_v21 = vadd.f32 %v568_v12, %v353_v16 }
  0xf2   :  { %v575_v23 = vpop.f32.mrf.mxu0  ;;  %v603_v24 = vpop.f32.mrf.mxu1 }
  0xf3   :  { %v487_v26 = vadd.f32 %v458_v3, %v431_v18  ;;  %v493_v27 = vmax.f32 %v485_v19, 0.0  ;;  %v362_v28 = vadd.f32 %v600_v11, %v574_v20  ;;  %v430_v29 = vmul.f32 %v397_v49, %v354_v21 }
  0xf4   :  { %v375_v31 = vadd.f32 %v603_v24, %v583_v22  ;;  %v576_v32 = vpop.f32.mrf.mxu0  ;;  %v366_v33 = vpop.f32.mrf.mxu1 }
  0xf5   :  { %v495_v34 = vmax.f32 %v487_v26, 0.0  ;;  %501 = vst [vmem:[%s863_s4] sm:$0xff] %v493_v27  ;;  %v432_v35 = vmul.f32 %v407_v50, %v362_v28  ;;  %v486_v36 = vadd.f32 %v453_v62, %v430_v29  ;;  %v577_v37 = vadd.f32 %v576_v32, %v575_v23 }
  0xf6   :  { %v435_v38 = vmul.f32 %v422_v53, %v375_v31  ;;  %v578_v39 = vpop.f32.mrf.mxu0  ;;  %v604_v40 = vpop.f32.mrf.mxu1 }
  0xf7   :  { %503 = vst [vmem:[%s863_s4 + $0x10] sm:$0xff] %v495_v34  ;;  %v488_v42 = vadd.f32 %v463_v7, %v432_v35  ;;  %v494_v43 = vmax.f32 %v486_v36, 0.0  ;;  %v367_v44 = vadd.f32 %v577_v37, %v366_v33  ;;  %v378_v45 = vadd.f32 %v604_v40, %v586_v30 }
  0xf8   :  { %v491_v46 = vadd.f32 %v478_v41, %v435_v38  ;;  %v579_v47 = vpop.f32.mrf.mxu0  ;;  %v369_v57 = vpop.f32.mrf.mxu1 }
  0xf9   :  { %v496_v48 = vmax.f32 %v488_v42, 0.0  ;;  %502 = vst [vmem:[%s863_s4 + $0x8] sm:$0xff] %v494_v43  ;;  %v433_v49 = vmul.f32 %v826_v51, %v367_v44  ;;  %v436_v50 = vmul.f32 %v830_v54, %v378_v45  ;;  %v580_v53 = vadd.f32 %v579_v47, %v578_v39 }
  0xfa   :  { %v499_v56 = vmax.f32 %v491_v46, 0.0 }
  0xfb   :  { %504 = vst [vmem:[%s863_s4 + $0x18] sm:$0xff] %v496_v48  ;;  %v489_v58 = vadd.f32 %v468_v17, %v433_v49  ;;  %v492_v59 = vadd.f32 %v483_v55, %v436_v50  ;;  %v370_v60 = vadd.f32 %v580_v53, %v369_v57 }
  0xfc   :  { %507 = vst [vmem:[%s863_s4 + $0x30] sm:$0xff] %v499_v56 }
  0xfd   :  { %v497_v61 = vmax.f32 %v489_v58, 0.0  ;;  %v500_v62 = vmax.f32 %v492_v59, 0.0  ;;  %v434_v51 = vmul.f32 %v828_v52, %v370_v60 }
  0xff   :  { %505 = vst [vmem:[%s863_s4 + $0x20] sm:$0xff] %v497_v61  ;;  %508 = vst [vmem:[%s863_s4 + $0x38] sm:$0xff] %v500_v62  ;;  %v490_v54 = vadd.f32 %v473_v25, %v434_v51 }
 0x101   :  { %v498_v63 = vmax.f32 %v490_v54, 0.0 }
 0x103   :  { %506 = vst [vmem:[%s863_s4 + $0x28] sm:$0xff] %v498_v63 }

// kernel: resnet20_forward.37
= control target key start
LH: loop header
LB: loop body
LE: loop exit
PB: predicated region body
PF: predicated region fallthrough
CT: control target
= control target key end

     0   :  { %v305_v1 = vmov 0   ;;  %vm62_vm0 = vcmask 261120   ;;  %s425_s1 = inlined_call_operand.vmem [shape: bf16[32,128], index: 1, kind: input, shape index: {}]   ;;  %s426_s0 = inlined_call_operand.vmem [shape: bf16[64,32], index: 0, kind: input, shape index: {}]   ;;  %s427_s2 = inlined_call_operand.vmem [shape: f32[64,1], index: 2, kind: input, shape index: {}]   ;;  %s428_s3 = inlined_call_operand.vmem [shape: f32[64,1], index: 3, kind: input, shape index: {}]   ;;  %s429_s4 = inlined_call_operand.vmem [shape: f32[64,128], index: 4, kind: output, shape index: {}]  }
   0x1   :  { %v299_v0 = vld [vmem:[%s425_s1 + $0x8] sm:$0xff]   ;;  %298 = vset.pattern.permute.xlu1 %v305_v1  ;;  %297 = vset.pattern.permute.xlu0 %v305_v1  ;;  %v300_v2 = vld [vmem:[%s425_s1] sm:$0xff]   ;;  %v302_v4 = vld [vmem:[%s426_s0 + $0x10] sm:$0xff]  }
   0x2   :  { %280 = vmatprep.subr.bf16.mxu0 %v299_v0  ;;  %292 = vmatprep.subr.bf16.mxu1 %v299_v0  ;;  %v301_v3 = vld [vmem:[%s426_s0] sm:$0xff]   ;;  %v303_v5 = vld [vmem:[%s426_s0 + $0x8] sm:$0xff]   ;;  %v304_v6 = vld [vmem:[%s426_s0 + $0x18] sm:$0xff]  }
   0x3   :  { %281 = vmatpush3.bf16.msra.mxu0 %v299_v0  ;;  %294 = vmatpush3.bf16.msra.mxu1 %v299_v0  ;;  %v142_v7 = vld [vmem:[%s427_s2 + $0x10] sm:$0xff]  ;;  %v140_v8 = vld [vmem:[%s427_s2] sm:$0xff]  ;;  %v143_v9 = vld [vmem:[%s427_s2 + $0x18] sm:$0xff] }
   0x4   :  { %282 = vmatprep.subr.bf16.mxu0 %v300_v2  ;;  %293 = vmatprep.subr.bf16.mxu1 %v300_v2  ;;  %v141_v10 = vld [vmem:[%s427_s2 + $0x8] sm:$0xff]  ;;  %v144_v12 = vld [vmem:[%s427_s2 + $0x20] sm:$0xff]  ;;  %v147_v13 = vld [vmem:[%s427_s2 + $0x38] sm:$0xff] }
   0x5   :  { %284 = vmatprep.mubr.msk.bf16.mxu0 %vm62_vm0, %v301_v3  ;;  %288 = vmatprep.mubr.msk.bf16.mxu1 %vm62_vm0, %v302_v4  ;;  %v145_v11 = vld [vmem:[%s427_s2 + $0x28] sm:$0xff]  ;;  %v146_v14 = vld [vmem:[%s427_s2 + $0x30] sm:$0xff]  ;;  %v196_v16 = vld [vmem:[%s428_s3] sm:$0xff] }
   0x6   :  { %160 = vperm.xlu1 %298, %v142_v7   ;;  %150 = vperm.xlu0 %297, %v140_v8   ;;  %v197_v15 = vld [vmem:[%s428_s3 + $0x8] sm:$0xff]  ;;  %v199_v17 = vld [vmem:[%s428_s3 + $0x18] sm:$0xff]  ;;  %v198_v18 = vld [vmem:[%s428_s3 + $0x10] sm:$0xff] }
   0x7   :  { %283 = vmatpush3.bf16.msra.mxu0 %v300_v2  ;;  %295 = vmatpush3.bf16.msra.mxu1 %v300_v2  ;;  %v201_v19 = vld [vmem:[%s428_s3 + $0x28] sm:$0xff]  ;;  %v200_v20 = vld [vmem:[%s428_s3 + $0x20] sm:$0xff]  ;;  %v203_v21 = vld [vmem:[%s428_s3 + $0x38] sm:$0xff] }
   0x8   :  { %v202_v22 = vld [vmem:[%s428_s3 + $0x30] sm:$0xff] }
   0xa   :  { %285 = vmatmul.mubr.msk.bf16.vlgmr.msra.gmra.mxu0 %vm62_vm0, %v303_v5  ;;  %289 = vmatmul.mubr.msk.bf16.vlgmr.msra.gmra.mxu1 %vm62_vm0, %v304_v6 }
   0xb   :  { %165 = vperm.xlu1 %298, %v143_v9   ;;  %155 = vperm.xlu0 %297, %v141_v10  }
   0xf   :  { %175 = vperm.xlu1 %298, %v145_v11   ;;  %170 = vperm.xlu0 %297, %v144_v12  }
  0x13   :  { %185 = vperm.xlu1 %298, %v147_v13   ;;  %180 = vperm.xlu0 %297, %v146_v14  }
  0x17   :  { %211 = vperm.xlu1 %298, %v197_v15   ;;  %206 = vperm.xlu0 %297, %v196_v16  }
  0x1b   :  { %221 = vperm.xlu1 %298, %v199_v17   ;;  %216 = vperm.xlu0 %297, %v198_v18  }
  0x1f   :  { %231 = vperm.xlu1 %298, %v201_v19   ;;  %226 = vperm.xlu0 %297, %v200_v20  }
  0x23   :  { %241 = vperm.xlu1 %298, %v203_v21   ;;  %236 = vperm.xlu0 %297, %v202_v22  }
  0x81   :  { %v151_v23 = vpop.permute.xlu0 %150  ;;  %v161_v24 = vpop.permute.xlu1 %160 }
  0x86   :  { %v156_v25 = vpop.permute.xlu0 %155  ;;  %v166_v26 = vpop.permute.xlu1 %165 }
  0x8a   :  { %v171_v27 = vpop.permute.xlu0 %170  ;;  %v176_v28 = vpop.permute.xlu1 %175 }
  0x8e   :  { %v181_v29 = vpop.permute.xlu0 %180  ;;  %v186_v30 = vpop.permute.xlu1 %185 }
  0x92   :  { %v207_v31 = vpop.permute.xlu0 %206  ;;  %v212_v32 = vpop.permute.xlu1 %211 }
  0x96   :  { %v217_v33 = vpop.permute.xlu0 %216  ;;  %v222_v34 = vpop.permute.xlu1 %221 }
  0x9a   :  { %v227_v35 = vpop.permute.xlu0 %226  ;;  %v232_v36 = vpop.permute.xlu1 %231 }
  0x9e   :  { %v237_v39 = vpop.permute.xlu0 %236  ;;  %v242_v50 = vpop.permute.xlu1 %241 }
  0xca   :  { %v286_v37 = vpop.f32.mrf.mxu0  ;;  %v290_v38 = vpop.f32.mrf.mxu1 }
  0xcb   :  { %v190_v40 = vmul.f32 %v286_v37, %v161_v24  ;;  %v194_v41 = vmul.f32 %v290_v38, %v181_v29 }
  0xcc   :  { %v109_v42 = vpop.f32.mrf.mxu0  ;;  %v125_v43 = vpop.f32.mrf.mxu1 }
  0xcd   :  { %v246_v44 = vadd.f32 %v217_v33, %v190_v40  ;;  %v250_v45 = vadd.f32 %v237_v39, %v194_v41  ;;  %v188_v46 = vmul.f32 %v151_v23, %v109_v42  ;;  %v192_v47 = vmul.f32 %v171_v27, %v125_v43 }
  0xce   :  { %v287_v48 = vpop.f32.mrf.mxu0  ;;  %v291_v49 = vpop.f32.mrf.mxu1 }
  0xcf   :  { %254 = vst [vmem:[%s429_s4 + $0x10] sm:$0xff] %v246_v44  ;;  %258 = vst [vmem:[%s429_s4 + $0x30] sm:$0xff] %v250_v45  ;;  %v244_v51 = vadd.f32 %v207_v31, %v188_v46  ;;  %v248_v52 = vadd.f32 %v227_v35, %v192_v47  ;;  %v191_v53 = vmul.f32 %v287_v48, %v166_v26 }
  0xd0   :  { %v195_v54 = vmul.f32 %v291_v49, %v186_v30  ;;  %v112_v55 = vpop.f32.mrf.mxu0  ;;  %v128_v56 = vpop.f32.mrf.mxu1 }
  0xd1   :  { %252 = vst [vmem:[%s429_s4] sm:$0xff] %v244_v51  ;;  %256 = vst [vmem:[%s429_s4 + $0x20] sm:$0xff] %v248_v52  ;;  %v247_v57 = vadd.f32 %v222_v34, %v191_v53  ;;  %v189_v59 = vmul.f32 %v156_v25, %v112_v55  ;;  %v193_v60 = vmul.f32 %v176_v28, %v128_v56 }
  0xd2   :  { %v251_v58 = vadd.f32 %v242_v50, %v195_v54 }
  0xd3   :  { %255 = vst [vmem:[%s429_s4 + $0x18] sm:$0xff] %v247_v57  ;;  %v245_v61 = vadd.f32 %v212_v32, %v189_v59  ;;  %v249_v62 = vadd.f32 %v232_v36, %v193_v60 }
  0xd4   :  { %259 = vst [vmem:[%s429_s4 + $0x38] sm:$0xff] %v251_v58 }
  0xd5   :  { %253 = vst [vmem:[%s429_s4 + $0x8] sm:$0xff] %v245_v61  ;;  %257 = vst [vmem:[%s429_s4 + $0x28] sm:$0xff] %v249_v62 }

// kernel: resnet20_forward.43
= control target key start
LH: loop header
LB: loop body
LE: loop exit
PB: predicated region body
PF: predicated region fallthrough
CT: control target
= control target key end

     0   :  { %vm160_vm0 = vcmask 523264   ;;  %v351_v25 = vmov 0   ;;  %vm244_vm1 = vcmask 9216   ;;  %vm242_vm2 = vcmask 15360   ;;  %s469_s1 = inlined_call_operand.vmem [shape: f32[128,2], index: 1, kind: input, shape index: {}]   ;;  %s470_s0 = inlined_call_operand.vmem [shape: f32[64,128], index: 0, kind: input, shape index: {}]   ;;  %s471_s2 = inlined_call_operand.vmem [shape: f32[10,64], index: 2, kind: input, shape index: {}]   ;;  %s472_s3 = inlined_call_operand.vmem [shape: f32[10,1], index: 3, kind: input, shape index: {}]   ;;  %s473_s4 = inlined_call_operand.vmem [shape: f32[10,2], index: 4, kind: output, shape index: {}]  }
   0x1   :  { %v40_v0 = vld [vmem:[%s469_s1 + $0x78] sm:$0xff]  ;;  %v39_v1 = vld [vmem:[%s469_s1 + $0x70] sm:$0xff]  ;;  %v38_v2 = vld [vmem:[%s469_s1 + $0x68] sm:$0xff]  ;;  %350 = vset.pattern.permute.xlu0 %v351_v25 }
   0x2   :  { %286 = vmatprep.subr.mxu0 %v40_v0  ;;  %v37_v3 = vld [vmem:[%s469_s1 + $0x60] sm:$0xff]  ;;  %v36_v5 = vld [vmem:[%s469_s1 + $0x58] sm:$0xff]  ;;  %v35_v6 = vld [vmem:[%s469_s1 + $0x50] sm:$0xff] }
   0x3   :  { %287 = vmatpush3.msra.mxu0 %v40_v0  ;;  %v17_v4 = vld [vmem:[%s470_s0] sm:$0xff]  ;;  %v34_v7 = vld [vmem:[%s469_s1 + $0x48] sm:$0xff]  ;;  %v32_v9 = vld [vmem:[%s469_s1 + $0x38] sm:$0xff] }
   0x4   :  { %288 = vmatprep.subr.mxu0 %v39_v1  ;;  %318 = vmatprep.mubr.f32.mxu0 %v17_v4  ;;  %v33_v8 = vld [vmem:[%s469_s1 + $0x40] sm:$0xff]  ;;  %v31_v10 = vld [vmem:[%s469_s1 + $0x30] sm:$0xff]  ;;  %v30_v11 = vld [vmem:[%s469_s1 + $0x28] sm:$0xff] }
   0x5   :  { %289 = vmatpush3.msra.mxu0 %v39_v1  ;;  %v29_v12 = vld [vmem:[%s469_s1 + $0x20] sm:$0xff]  ;;  %v28_v13 = vld [vmem:[%s469_s1 + $0x18] sm:$0xff]  ;;  %v27_v14 = vld [vmem:[%s469_s1 + $0x10] sm:$0xff] }
   0x6   :  { %290 = vmatprep.subr.mxu0 %v38_v2  ;;  %v26_v15 = vld [vmem:[%s469_s1 + $0x8] sm:$0xff]  ;;  %v25_v16 = vld [vmem:[%s469_s1] sm:$0xff]  ;;  %v19_v18 = vld [vmem:[%s470_s0 + $0x10] sm:$0xff] }
   0x7   :  { %291 = vmatpush3.msra.mxu0 %v38_v2  ;;  %v18_v17 = vld [vmem:[%s470_s0 + $0x8] sm:$0xff]  ;;  %v20_v19 = vld [vmem:[%s470_s0 + $0x18] sm:$0xff]  ;;  %v21_v20 = vld [vmem:[%s470_s0 + $0x20] sm:$0xff] }
   0x8   :  { %292 = vmatprep.subr.mxu0 %v37_v3  ;;  %v22_v21 = vld [vmem:[%s470_s0 + $0x28] sm:$0xff]  ;;  %v23_v22 = vld [vmem:[%s470_s0 + $0x30] sm:$0xff]  ;;  %v24_v23 = vld [vmem:[%s470_s0 + $0x38] sm:$0xff] }
   0x9   :  { %293 = vmatpush3.msra.mxu0 %v37_v3  ;;  %v146_v24 = vld [vmem:[%s471_s2] sm:$0xff]  ;;  %v149_v27 = vld [vmem:[%s472_s3 + $0x8] sm:$0x3] }
   0xa   :  { %294 = vmatprep.subr.mxu0 %v36_v5  ;;  %346 = vmatprep.mubr.msk.f32.mxu1 %vm160_vm0, %v146_v24  ;;  %v148_v26 = vld [vmem:[%s472_s3] sm:$0xff]  ;;  %v147_v36 = vld [vmem:[%s471_s2 + $0x8] sm:$0x3] }
   0xb   :  { %295 = vmatpush3.msra.mxu0 %v36_v5  ;;  %152 = vperm.xlu0 %350, %v148_v26  }
   0xc   :  { %296 = vmatprep.subr.mxu0 %v35_v6 }
   0xd   :  { %297 = vmatpush3.msra.mxu0 %v35_v6 }
   0xe   :  { %298 = vmatprep.subr.mxu0 %v34_v7 }
   0xf   :  { %299 = vmatpush3.msra.mxu0 %v34_v7  ;;  %157 = vperm.xlu0 %350, %v149_v27  }
  0x10   :  { %300 = vmatprep.subr.mxu0 %v33_v8 }
  0x11   :  { %301 = vmatpush3.msra.mxu0 %v33_v8 }
  0x12   :  { %302 = vmatprep.subr.mxu0 %v32_v9 }
  0x13   :  { %303 = vmatpush3.msra.mxu0 %v32_v9 }
  0x14   :  { %304 = vmatprep.subr.mxu0 %v31_v10 }
  0x15   :  { %305 = vmatpush3.msra.mxu0 %v31_v10 }
  0x16   :  { %306 = vmatprep.subr.mxu0 %v30_v11 }
  0x17   :  { %307 = vmatpush3.msra.mxu0 %v30_v11 }
  0x18   :  { %308 = vmatprep.subr.mxu0 %v29_v12 }
  0x19   :  { %309 = vmatpush3.msra.mxu0 %v29_v12 }
  0x1a   :  { %310 = vmatprep.subr.mxu0 %v28_v13 }
  0x1b   :  { %311 = vmatpush3.msra.mxu0 %v28_v13 }
  0x1c   :  { %312 = vmatprep.subr.mxu0 %v27_v14 }
  0x1d   :  { %313 = vmatpush3.msra.mxu0 %v27_v14 }
  0x1e   :  { %314 = vmatprep.subr.mxu0 %v26_v15 }
  0x1f   :  { %315 = vmatpush3.msra.mxu0 %v26_v15 }
  0x20   :  { %316 = vmatprep.subr.mxu0 %v25_v16 }
  0x21   :  { %317 = vmatpush3.msra.mxu0 %v25_v16 }
  0x22   :  { %319 = vmatmul.mubr.f32.vlgmr.msra.gmra.mxu0 %v18_v17 }
  0x23   :  { %321 = vmatprep.mubr.f32.mxu0 %v19_v18 }
  0x26   :  { %322 = vmatmul.mubr.f32.gmra.mxu0 %v20_v19 }
  0x27   :  { %324 = vmatprep.mubr.f32.mxu0 %v21_v20 }
  0x2a   :  { %325 = vmatmul.mubr.f32.gmra.mxu0 %v22_v21 }
  0x2b   :  { %327 = vmatprep.mubr.f32.mxu0 %v23_v22 }
  0x2e   :  { %328 = vmatmul.mubr.f32.gmra.mxu0 %v24_v23 }
  0x86   :  { %v153_v37 = vpop.permute.xlu0 %152 }
  0x8a   :  { %v158_v38 = vpop.permute.xlu0 %157 }
  0xe2   :  { %v320_v28 = vpop.f32.mrf.mxu0 }
  0xe4   :  { %v107_v29 = vpop.f32.mrf.mxu0 }
  0xe6   :  { %v323_v30 = vpop.f32.mrf.mxu0 }
  0xe8   :  { %v117_v31 = vpop.f32.mrf.mxu0 }
  0xea   :  { %v326_v32 = vpop.f32.mrf.mxu0 }
  0xec   :  { %v127_v33 = vpop.f32.mrf.mxu0 }
  0xee   :  { %v329_v34 = vpop.f32.mrf.mxu0 }
  0xef   :  { %330 = vmatprep.subr.mxu1 %v329_v34 }
  0xf0   :  { %v137_v35 = vpop.f32.mrf.mxu0  ;;  %331 = vmatpush3.msra.mxu1 %v329_v34 }
  0xf1   :  { %332 = vmatprep.subr.mxu1 %v137_v35 }
  0xf2   :  { %333 = vmatpush3.msra.mxu1 %v137_v35 }
  0xf3   :  { %334 = vmatprep.subr.mxu1 %v326_v32 }
  0xf4   :  { %335 = vmatpush3.msra.mxu1 %v326_v32 }
  0xf5   :  { %336 = vmatprep.subr.mxu1 %v127_v33 }
  0xf6   :  { %337 = vmatpush3.msra.mxu1 %v127_v33 }
  0xf7   :  { %338 = vmatprep.subr.mxu1 %v323_v30 }
  0xf8   :  { %339 = vmatpush3.msra.mxu1 %v323_v30 }
  0xf9   :  { %340 = vmatprep.subr.mxu1 %v117_v31 }
  0xfa   :  { %341 = vmatpush3.msra.mxu1 %v117_v31 }
  0xfb   :  { %342 = vmatprep.subr.mxu1 %v320_v28 }
  0xfc   :  { %343 = vmatpush3.msra.mxu1 %v320_v28 }
  0xfd   :  { %344 = vmatprep.subr.mxu1 %v107_v29 }
  0xfe   :  { %345 = vmatpush3.msra.mxu1 %v107_v29 }
  0xff   :  { %347 = vmatmul.mubr.msk.f32.vlgmr.msra.gmra.mxu1 %vm160_vm0, %v147_v36 }
 0x1bf   :  { %v348_v39 = vpop.f32.mrf.mxu1 }
 0x1c0   :  { %v239_v40 = vadd.f32 %v348_v39, %v158_v38 }
 0x1c1   :  { %v233_v41 = vpop.f32.mrf.mxu1 }
 0x1c2   :  { %245 = vst.msk [vmem:[%s473_s4 + $0x8] sm:$0x3] %vm244_vm1, %v239_v40  ;;  %v234_v42 = vadd.f32 %v233_v41, %v153_v37 }
 0x1c4   :  { %243 = vst.msk [vmem:[%s473_s4] sm:$0xff] %vm242_vm2, %v234_v42 }

// kernel: resnet20_forward.39
= control target key start
LH: loop header
LB: loop body
LE: loop exit
PB: predicated region body
PF: predicated region fallthrough
CT: control target
= control target key end

     0   :  { %v1009_v1 = vmov 0   ;;  %vm430_vm0 = vcmask 523264   ;;  %s1306_s1 = inlined_call_operand.vmem [shape: bf16[576,128], index: 1, kind: input, shape index: {}]   ;;  %s1307_s0 = inlined_call_operand.vmem [shape: bf16[64,576], index: 0, kind: input, shape index: {}]   ;;  %s1308_s2 = inlined_call_operand.vmem [shape: f32[64,1], index: 2, kind: input, shape index: {}]   ;;  %s1309_s3 = inlined_call_operand.vmem [shape: f32[64,1], index: 3, kind: input, shape index: {}]   ;;  %s1310_s4 = inlined_call_operand.vmem [shape: f32[64,128], index: 4, kind: output, shape index: {}]  }
   0x1   :  { %v945_v0 = vld [vmem:[%s1306_s1 + $0x78] sm:$0xff]   ;;  %944 = vset.pattern.permute.xlu1 %v1009_v1  ;;  %943 = vset.pattern.permute.xlu0 %v1009_v1  ;;  %v949_v5 = vld [vmem:[%s1306_s1 + $0x70] sm:$0xff]   ;;  %v953_v9 = vld [vmem:[%s1306_s1 + $0x68] sm:$0xff]  }
   0x2   :  { %v946_v2 = vld [vmem:[%s1306_s1 + $0xf8] sm:$0xff]   ;;  %830 = vmatprep.subr.bf16.mxu0 %v945_v0  ;;  %v950_v6 = vld [vmem:[%s1306_s1 + $0xf0] sm:$0xff]   ;;  %v954_v10 = vld [vmem:[%s1306_s1 + $0xe8] sm:$0xff]  }
   0x3   :  { %v947_v3 = vld [vmem:[%s1306_s1 + $0x38] sm:$0xff]   ;;  %870 = vmatprep.subr.bf16.mxu1 %v946_v2  ;;  %v951_v7 = vld [vmem:[%s1306_s1 + $0x30] sm:$0xff]   ;;  %v955_v11 = vld [vmem:[%s1306_s1 + $0x28] sm:$0xff]  }
   0x4   :  { %v948_v4 = vld [vmem:[%s1306_s1 + $0xb8] sm:$0xff]   ;;  %831 = vmatpush3.bf16.msra.mxu0 %v947_v3  ;;  %v952_v8 = vld [vmem:[%s1306_s1 + $0xb0] sm:$0xff]   ;;  %v956_v12 = vld [vmem:[%s1306_s1 + $0xa8] sm:$0xff]  }
   0x5   :  { %871 = vmatpush3.bf16.msra.mxu1 %v948_v4  ;;  %832 = vmatprep.subr.bf16.mxu0 %v949_v5  ;;  %v957_v13 = vld [vmem:[%s1306_s1 + $0x60] sm:$0xff]   ;;  %v961_v17 = vld [vmem:[%s1306_s1 + $0x58] sm:$0xff]   ;;  %v965_v21 = vld [vmem:[%s1306_s1 + $0x50] sm:$0xff]  }
   0x6   :  { %872 = vmatprep.subr.bf16.mxu1 %v950_v6  ;;  %v958_v14 = vld [vmem:[%s1306_s1 + $0xe0] sm:$0xff]   ;;  %v962_v18 = vld [vmem:[%s1306_s1 + $0xd8] sm:$0xff]   ;;  %v966_v22 = vld [vmem:[%s1306_s1 + $0xd0] sm:$0xff]  }
   0x7   :  { %v959_v15 = vld [vmem:[%s1306_s1 + $0x20] sm:$0xff]   ;;  %v963_v19 = vld [vmem:[%s1306_s1 + $0x18] sm:$0xff]   ;;  %v967_v23 = vld [vmem:[%s1306_s1 + $0x10] sm:$0xff]  }
   0x8   :  { %833 = vmatpush3.bf16.msra.mxu0 %v951_v7  ;;  %v960_v16 = vld [vmem:[%s1306_s1 + $0xa0] sm:$0xff]   ;;  %v964_v20 = vld [vmem:[%s1306_s1 + $0x98] sm:$0xff]   ;;  %v968_v24 = vld [vmem:[%s1306_s1 + $0x90] sm:$0xff]  }
   0x9   :  { %873 = vmatpush3.bf16.msra.mxu1 %v952_v8  ;;  %834 = vmatprep.subr.bf16.mxu0 %v953_v9  ;;  %v969_v25 = vld [vmem:[%s1306_s1 + $0x48] sm:$0xff]   ;;  %v973_v29 = vld [vmem:[%s1306_s1 + $0x40] sm:$0xff]   ;;  %v983_v37 = vld [vmem:[%s1306_s1 + $0x118] sm:$0xff]  }
   0xa   :  { %874 = vmatprep.subr.bf16.mxu1 %v954_v10  ;;  %v970_v26 = vld [vmem:[%s1306_s1 + $0xc8] sm:$0xff]   ;;  %v974_v30 = vld [vmem:[%s1306_s1 + $0xc0] sm:$0xff]   ;;  %v990_v40 = vld [vmem:[%s1306_s1 + $0x110] sm:$0xff]  }
   0xb   :  { %v971_v27 = vld [vmem:[%s1306_s1 + $0x8] sm:$0xff]   ;;  %v975_v31 = vld [vmem:[%s1306_s1] sm:$0xff]   ;;  %v993_v44 = vld [vmem:[%s1307_s0 + $0x5c] ss:$20 sps:$4 sm:$0xff]  }
   0xc   :  { %835 = vmatpush3.bf16.msra.mxu0 %v955_v11  ;;  %v972_v28 = vld [vmem:[%s1306_s1 + $0x88] sm:$0xff]   ;;  %v976_v32 = vld [vmem:[%s1306_s1 + $0x80] sm:$0xff]   ;;  %v998_v49 = vld [vmem:[%s1307_s0 + $0x7c] ss:$20 sps:$4 sm:$0xff]  }
   0xd   :  { %875 = vmatpush3.bf16.msra.mxu1 %v956_v12  ;;  %836 = vmatprep.subr.bf16.mxu0 %v957_v13  ;;  %v977_v33 = vld [vmem:[%s1307_s0] ss:$20 sps:$4 sm:$0xff]   ;;  %v979_v34 = vld [vmem:[%s1307_s0 + $0x4] ss:$20 sps:$4 sm:$0xff]   ;;  %v980_v35 = vld [vmem:[%s1307_s0 + $0x8] ss:$20 sps:$4 sm:$0xff]  }
   0xe   :  { %876 = vmatprep.subr.bf16.mxu1 %v958_v14  ;;  %v982_v36 = vld [vmem:[%s1307_s0 + $0xc] ss:$20 sps:$4 sm:$0xff]   ;;  %475 = vmatprep.mubr.bf16.mxu0 %v979_v34  ;;  %v986_v39 = vld [vmem:[%s1307_s0 + $0x34] ss:$20 sps:$4 sm:$0xff]   ;;  %v989_v42 = vld [vmem:[%s1307_s0 + $0x30] ss:$20 sps:$4 sm:$0xff]  }
   0xf   :  { %540 = vmatprep.mubr.bf16.mxu1 %v982_v36  ;;  %v984_v38 = vld [vmem:[%s1307_s0 + $0x2c] ss:$20 sps:$4 sm:$0xff]   ;;  %v988_v41 = vld [vmem:[%s1307_s0 + $0x28] ss:$20 sps:$4 sm:$0xff]   ;;  %v995_v47 = vld [vmem:[%s1307_s0 + $0x50] ss:$20 sps:$4 sm:$0xff]  }
  0x10   :  { %837 = vmatpush3.bf16.msra.mxu0 %v959_v15  ;;  %v991_v43 = vld [vmem:[%s1307_s0 + $0x54] ss:$20 sps:$4 sm:$0xff]   ;;  %v1004_v46 = vld [vmem:[%s1306_s1 + $0x100] sm:$0xff]   ;;  %v996_v48 = vld [vmem:[%s1307_s0 + $0x58] ss:$20 sps:$4 sm:$0xff]  }
  0x11   :  { %877 = vmatpush3.bf16.msra.mxu1 %v960_v16  ;;  %838 = vmatprep.subr.bf16.mxu0 %v961_v17  ;;  %v997_v45 = vld [vmem:[%s1306_s1 + $0x108] sm:$0xff]   ;;  %v1000_v50 = vld [vmem:[%s1307_s0 + $0x84] ss:$20 sps:$4 sm:$0xff]   ;;  %v640_v51 = vld [vmem:[%s1308_s2 + $0x10] sm:$0xff] }
  0x12   :  { %878 = vmatprep.subr.bf16.mxu1 %v962_v18  ;;  %v638_v52 = vld [vmem:[%s1308_s2] sm:$0xff]  ;;  %658 = vperm.xlu1 %944, %v640_v51   ;;  %v641_v53 = vld [vmem:[%s1308_s2 + $0x18] sm:$0xff]  ;;  %v639_v54 = vld [vmem:[%s1308_s2 + $0x8] sm:$0xff] }
  0x13   :  { %648 = vperm.xlu0 %943, %v638_v52   ;;  %v1002_v55 = vld [vmem:[%s1307_s0 + $0x78] ss:$20 sps:$4 sm:$0xff]   ;;  %v1003_v56 = vld [vmem:[%s1307_s0 + $0x80] ss:$20 sps:$4 sm:$0xff]   ;;  %v1005_v57 = vld [vmem:[%s1307_s0 + $0x10] ss:$20 sps:$4 sm:$0xff]  }
  0x14   :  { %839 = vmatpush3.bf16.msra.mxu0 %v963_v19  ;;  %v643_v58 = vld [vmem:[%s1308_s2 + $0x28] sm:$0xff]  ;;  %v1006_v59 = vld [vmem:[%s1307_s0 + $0x60] ss:$20 sps:$4 sm:$0xff]   ;;  %v645_v61 = vld [vmem:[%s1308_s2 + $0x38] sm:$0xff] }
  0x15   :  { %879 = vmatpush3.bf16.msra.mxu1 %v964_v20  ;;  %840 = vmatprep.subr.bf16.mxu0 %v965_v21  ;;  %v642_v60 = vld [vmem:[%s1308_s2 + $0x20] sm:$0xff]  ;;  %v644_v62 = vld [vmem:[%s1308_s2 + $0x30] sm:$0xff]  ;;  %v1007_v63 = vld [vmem:[%s1307_s0 + $0x38] ss:$20 sps:$4 sm:$0xff]  }
  0x16   :  { %880 = vmatprep.subr.bf16.mxu1 %v966_v22  ;;  %663 = vperm.xlu1 %944, %v641_v53   ;;  %v1008_v0 = vld [vmem:[%s1307_s0 + $0x88] ss:$20 sps:$4 sm:$0xff]   ;;  %v694_v2 = vld [vmem:[%s1309_s3] sm:$0xff]  ;;  %v696_v4 = vld [vmem:[%s1309_s3 + $0x10] sm:$0xff] }
  0x17   :  { %653 = vperm.xlu0 %943, %v639_v54   ;;  %v695_v1 = vld [vmem:[%s1309_s3 + $0x8] sm:$0xff]  ;;  %v697_v3 = vld [vmem:[%s1309_s3 + $0x18] sm:$0xff]  ;;  %v698_v6 = vld [vmem:[%s1309_s3 + $0x20] sm:$0xff] }
  0x18   :  { %841 = vmatpush3.bf16.msra.mxu0 %v967_v23  ;;  %v699_v5 = vld [vmem:[%s1309_s3 + $0x28] sm:$0xff]  ;;  %v701_v7 = vld [vmem:[%s1309_s3 + $0x38] sm:$0xff]  ;;  %v700_v8 = vld [vmem:[%s1309_s3 + $0x30] sm:$0xff] }
  0x19   :  { %881 = vmatpush3.bf16.msra.mxu1 %v968_v24  ;;  %842 = vmatprep.subr.bf16.mxu0 %v969_v25 }
  0x1a   :  { %882 = vmatprep.subr.bf16.mxu1 %v970_v26  ;;  %673 = vperm.xlu1 %944, %v643_v58  }
  0x1b   :  { %668 = vperm.xlu0 %943, %v642_v60  }
  0x1c   :  { %843 = vmatpush3.bf16.msra.mxu0 %v971_v27 }
  0x1d   :  { %883 = vmatpush3.bf16.msra.mxu1 %v972_v28  ;;  %844 = vmatprep.subr.bf16.mxu0 %v973_v29 }
  0x1e   :  { %884 = vmatprep.subr.bf16.mxu1 %v974_v30  ;;  %683 = vperm.xlu1 %944, %v645_v61  }
  0x1f   :  { %678 = vperm.xlu0 %943, %v644_v62  }
  0x20   :  { %845 = vmatpush3.bf16.msra.mxu0 %v975_v31 }
  0x21   :  { %885 = vmatpush3.bf16.msra.mxu1 %v976_v32  ;;  %918 = vmatprep.subr.bf16.mxu0 %v983_v37 }
  0x22   :  { %934 = vmatprep.subr.bf16.mxu1 %v983_v37  ;;  %709 = vperm.xlu1 %944, %v695_v1  }
  0x23   :  { %476 = vmatmul.mubr.bf16.vlgmr.msra.gmra.mxu0 %v977_v33  ;;  %704 = vperm.xlu0 %943, %v694_v2  }
  0x24   :  { %541 = vmatmul.mubr.bf16.vlgmr.msra.gmra.mxu1 %v980_v35  ;;  %919 = vmatpush3.bf16.msra.mxu0 %v983_v37 }
  0x25   :  { %938 = vmatpush3.bf16.msra.mxu1 %v983_v37  ;;  %483 = vmatprep.mubr.bf16.mxu0 %v984_v38 }
  0x26   :  { %548 = vmatprep.mubr.bf16.mxu1 %v986_v39  ;;  %920 = vmatprep.subr.bf16.mxu0 %v990_v40 }
  0x27   :  { %935 = vmatprep.subr.bf16.mxu1 %v990_v40  ;;  %719 = vperm.xlu1 %944, %v697_v3  }
  0x28   :  { %921 = vmatpush3.bf16.msra.mxu0 %v990_v40  ;;  %714 = vperm.xlu0 %943, %v696_v4  }
  0x29   :  { %939 = vmatpush3.bf16.msra.mxu1 %v990_v40  ;;  %922 = vmatprep.subr.bf16.mxu0 %v997_v45 }
  0x2a   :  { %936 = vmatprep.subr.bf16.mxu1 %v997_v45 }
  0x2b   :  { %484 = vmatmul.mubr.bf16.gmra.mxu0 %v988_v41  ;;  %729 = vperm.xlu1 %944, %v699_v5  }
  0x2c   :  { %549 = vmatmul.mubr.bf16.gmra.mxu1 %v989_v42  ;;  %491 = vmatprep.mubr.bf16.mxu0 %v991_v43 }
  0x2d   :  { %556 = vmatprep.mubr.bf16.mxu1 %v993_v44  ;;  %923 = vmatpush3.bf16.msra.mxu0 %v997_v45 }
  0x2e   :  { %940 = vmatpush3.bf16.msra.mxu1 %v997_v45  ;;  %924 = vmatprep.subr.bf16.mxu0 %v1004_v46 }
  0x2f   :  { %937 = vmatprep.subr.bf16.mxu1 %v1004_v46  ;;  %724 = vperm.xlu0 %943, %v698_v6  }
  0x30   :  { %739 = vperm.xlu1 %944, %v701_v7  }
  0x31   :  { %925 = vmatpush3.bf16.msra.mxu0 %v1004_v46 }
  0x32   :  { %941 = vmatpush3.bf16.msra.mxu1 %v1004_v46 }
  0x33   :  { %492 = vmatmul.mubr.bf16.gmra.mxu0 %v995_v47  ;;  %734 = vperm.xlu0 %943, %v700_v8  }
  0x34   :  { %557 = vmatmul.mubr.bf16.gmra.mxu1 %v996_v48  ;;  %499 = vmatprep.mubr.bf16.mxu0 %v998_v49 }
  0x35   :  { %564 = vmatprep.mubr.bf16.mxu1 %v1000_v50 }
  0x3b   :  { %500 = vmatmul.mubr.bf16.gmra.mxu0 %v1002_v55 }
  0x3c   :  { %565 = vmatmul.mubr.bf16.gmra.mxu1 %v1003_v56  ;;  %926 = vmatprep.mubr.msk.bf16.mxu0 %vm430_vm0, %v1005_v57 }
  0x3d   :  { %930 = vmatprep.mubr.msk.bf16.mxu1 %vm430_vm0, %v1006_v59 }
  0x43   :  { %927 = vmatmul.mubr.msk.bf16.vlgmr.msra.gmra.mxu0 %vm430_vm0, %v1007_v63 }
  0x44   :  { %931 = vmatmul.mubr.msk.bf16.vlgmr.msra.gmra.mxu1 %vm430_vm0, %v1008_v0 }
  0x8d   :  { %v1257_v10 = vpop.permute.xlu1 %658 }
  0x8e   :  { %v1255_v9 = vpop.permute.xlu0 %648 }
  0x91   :  { %v1261_v17 = vpop.permute.xlu1 %663 }
  0x92   :  { %v1259_v12 = vpop.permute.xlu0 %653 }
  0x95   :  { %v1265_v25 = vpop.permute.xlu1 %673 }
  0x96   :  { %v1263_v20 = vpop.permute.xlu0 %668 }
  0x99   :  { %v1267_v33 = vpop.permute.xlu1 %683 }
  0x9a   :  { %v679_v28 = vpop.permute.xlu0 %678 }
  0x9d   :  { %v1271_v41 = vpop.permute.xlu1 %709 }
  0x9e   :  { %v1269_v36 = vpop.permute.xlu0 %704 }
  0xa2   :  { %v720_v55 = vpop.permute.xlu1 %719 }
  0xa3   :  { %v715_v44 = vpop.permute.xlu0 %714 }
  0xaa   :  { %v725_v60 = vpop.permute.xlu0 %724 }
  0xe3   :  { %v846_v11 = vpop.f32.mrf.mxu0 }
  0xe4   :  { %v886_v13 = vpop.f32.mrf.mxu1 }
  0xe5   :  { %v847_v14 = vpop.f32.mrf.mxu0 }
  0xe6   :  { %v887_v15 = vpop.f32.mrf.mxu1  ;;  %v848_v53 = vadd.f32 %v847_v14, %v846_v11 }
  0xe7   :  { %v849_v16 = vpop.f32.mrf.mxu0  ;;  %v888_v54 = vadd.f32 %v887_v15, %v886_v13 }
  0xe8   :  { %v889_v18 = vpop.f32.mrf.mxu1 }
  0xe9   :  { %v850_v19 = vpop.f32.mrf.mxu0  ;;  %v543_v11 = vadd.f32 %v888_v54, %v848_v53 }
  0xea   :  { %v890_v21 = vpop.f32.mrf.mxu1  ;;  %v851_v5 = vadd.f32 %v850_v19, %v849_v16  ;;  %v735_v16 = vpop.permute.xlu0 %734 }
  0xeb   :  { %v852_v22 = vpop.f32.mrf.mxu0  ;;  %v891_v6 = vadd.f32 %v890_v21, %v889_v18 }
  0xec   :  { %v892_v23 = vpop.f32.mrf.mxu1 }
  0xed   :  { %v853_v24 = vpop.f32.mrf.mxu0 }
  0xee   :  { %v893_v26 = vpop.f32.mrf.mxu1  ;;  %v854_v47 = vadd.f32 %v853_v24, %v852_v22  ;;  %v730_v24 = vpop.permute.xlu1 %729 }
  0xef   :  { %v855_v27 = vpop.f32.mrf.mxu0  ;;  %v894_v48 = vadd.f32 %v893_v26, %v892_v23 }
  0xf0   :  { %v895_v29 = vpop.f32.mrf.mxu1 }
  0xf1   :  { %v856_v30 = vpop.f32.mrf.mxu0  ;;  %v551_v0 = vadd.f32 %v894_v48, %v854_v47 }
  0xf2   :  { %v896_v31 = vpop.f32.mrf.mxu1  ;;  %v857_v61 = vadd.f32 %v856_v30, %v855_v27 }
  0xf3   :  { %v858_v32 = vpop.f32.mrf.mxu0  ;;  %v897_v62 = vadd.f32 %v896_v31, %v895_v29 }
  0xf4   :  { %v898_v34 = vpop.f32.mrf.mxu1 }
  0xf5   :  { %v859_v35 = vpop.f32.mrf.mxu0  ;;  %v554_v30 = vadd.f32 %v897_v62, %v857_v61 }
  0xf6   :  { %v899_v37 = vpop.f32.mrf.mxu1  ;;  %v860_v57 = vadd.f32 %v859_v35, %v858_v32 }
  0xf7   :  { %v861_v38 = vpop.f32.mrf.mxu0  ;;  %v900_v58 = vadd.f32 %v899_v37, %v898_v34 }
  0xf8   :  { %v901_v39 = vpop.f32.mrf.mxu1 }
  0xf9   :  { %v862_v40 = vpop.f32.mrf.mxu0  ;;  %v559_v23 = vadd.f32 %v900_v58, %v860_v57 }
  0xfa   :  { %v902_v42 = vpop.f32.mrf.mxu1  ;;  %v863_v13 = vadd.f32 %v862_v40, %v861_v38  ;;  %v546_v38 = vadd.f32 %v891_v6, %v851_v5 }
  0xfb   :  { %v864_v43 = vpop.f32.mrf.mxu0  ;;  %v903_v14 = vadd.f32 %v902_v42, %v901_v39 }
  0xfc   :  { %v904_v45 = vpop.f32.mrf.mxu1 }
  0xfd   :  { %v865_v46 = vpop.f32.mrf.mxu0 }
  0xfe   :  { %v905_v49 = vpop.f32.mrf.mxu1  ;;  %v866_v50 = vadd.f32 %v865_v46, %v864_v43 }
  0xff   :  { %v906_v51 = vadd.f32 %v905_v49, %v904_v45  ;;  %v867_v52 = vpop.f32.mrf.mxu0 }
 0x100   :  { %v907_v56 = vpop.f32.mrf.mxu1 }
 0x101   :  { %v868_v59 = vpop.f32.mrf.mxu0  ;;  %v567_v4 = vadd.f32 %v906_v51, %v866_v50  ;;  %v740_v51 = vpop.permute.xlu1 %739 }
 0x102   :  { %v908_v63 = vpop.f32.mrf.mxu1  ;;  %v869_v1 = vadd.f32 %v868_v59, %v867_v52 }
 0x103   :  { %v909_v2 = vadd.f32 %v908_v63, %v907_v56  ;;  %v928_v3 = vpop.f32.mrf.mxu0 }
 0x104   :  { %v616_v7 = vadd.f32 %v928_v3, %v551_v0  ;;  %v932_v8 = vpop.f32.mrf.mxu1 }
 0x105   :  { %v632_v15 = vadd.f32 %v932_v8, %v567_v4  ;;  %v607_v22 = vpop.f32.mrf.mxu0  ;;  %v570_v35 = vadd.f32 %v909_v2, %v869_v1 }
 0x106   :  { %v688_v26 = vmul.f32 %v1257_v10, %v616_v7  ;;  %v608_v27 = vadd.f32 %v607_v22, %v543_v11  ;;  %v623_v29 = vpop.f32.mrf.mxu1  ;;  %v562_v10 = vadd.f32 %v903_v14, %v863_v13 }
 0x107   :  { %v692_v31 = vmul.f32 %v679_v28, %v632_v15  ;;  %v624_v32 = vadd.f32 %v623_v29, %v559_v23  ;;  %v929_v34 = vpop.f32.mrf.mxu0 }
 0x108   :  { %v744_v18 = vadd.f32 %v715_v44, %v688_v26  ;;  %v686_v19 = vmul.f32 %v1255_v9, %v608_v27  ;;  %v619_v21 = vadd.f32 %v929_v34, %v554_v30  ;;  %v933_v37 = vpop.f32.mrf.mxu1 }
 0x109   :  { %v748_v39 = vadd.f32 %v735_v16, %v692_v31  ;;  %v690_v40 = vmul.f32 %v1263_v20, %v624_v32  ;;  %v635_v42 = vadd.f32 %v933_v37, %v570_v35  ;;  %v610_v43 = vpop.f32.mrf.mxu0 }
 0x10a   :  { %v752_v45 = vmax.f32 %v744_v18, 0.0  ;;  %v742_v46 = vadd.f32 %v1269_v36, %v686_v19  ;;  %v689_v28 = vmul.f32 %v1261_v17, %v619_v21  ;;  %v611_v47 = vadd.f32 %v610_v43, %v546_v38  ;;  %v626_v48 = vpop.f32.mrf.mxu1 }
 0x10b   :  { %v756_v49 = vmax.f32 %v748_v39, 0.0  ;;  %v746_v44 = vadd.f32 %v725_v60, %v690_v40  ;;  %v693_v9 = vmul.f32 %v1267_v33, %v635_v42  ;;  %v627_v50 = vadd.f32 %v626_v48, %v562_v10 }
 0x10c   :  { %760 = vst [vmem:[%s1310_s4 + $0x10] sm:$0xff] %v752_v45  ;;  %v750_v20 = vmax.f32 %v742_v46, 0.0  ;;  %v745_v52 = vadd.f32 %v720_v55, %v689_v28  ;;  %v687_v53 = vmul.f32 %v1259_v12, %v611_v47 }
 0x10d   :  { %764 = vst [vmem:[%s1310_s4 + $0x30] sm:$0xff] %v756_v49  ;;  %v754_v17 = vmax.f32 %v746_v44, 0.0  ;;  %v749_v36 = vadd.f32 %v740_v51, %v693_v9  ;;  %v691_v54 = vmul.f32 %v1265_v25, %v627_v50 }
 0x10e   :  { %758 = vst [vmem:[%s1310_s4] sm:$0xff] %v750_v20  ;;  %v753_v33 = vmax.f32 %v745_v52, 0.0  ;;  %v743_v56 = vadd.f32 %v1271_v41, %v687_v53 }
 0x10f   :  { %762 = vst [vmem:[%s1310_s4 + $0x20] sm:$0xff] %v754_v17  ;;  %v757_v12 = vmax.f32 %v749_v36, 0.0  ;;  %v747_v55 = vadd.f32 %v730_v24, %v691_v54 }
 0x110   :  { %761 = vst [vmem:[%s1310_s4 + $0x18] sm:$0xff] %v753_v33  ;;  %v751_v57 = vmax.f32 %v743_v56, 0.0 }
 0x111   :  { %765 = vst [vmem:[%s1310_s4 + $0x38] sm:$0xff] %v757_v12  ;;  %v755_v25 = vmax.f32 %v747_v55, 0.0 }
 0x112   :  { %759 = vst [vmem:[%s1310_s4 + $0x8] sm:$0xff] %v751_v57 }
 0x113   :  { %763 = vst [vmem:[%s1310_s4 + $0x28] sm:$0xff] %v755_v25 }

// kernel: resnet20_forward.38
= control target key start
LH: loop header
LB: loop body
LE: loop exit
PB: predicated region body
PF: predicated region fallthrough
CT: control target
= control target key end

     0   :  { %v1028_v1 = vmov 0   ;;  %vm433_vm0 = vcmask 523264   ;;  %s1357_s1 = inlined_call_operand.vmem [shape: bf16[576,128], index: 1, kind: input, shape index: {}]   ;;  %s1358_s0 = inlined_call_operand.vmem [shape: bf16[64,576], index: 0, kind: input, shape index: {}]   ;;  %s1359_s2 = inlined_call_operand.vmem [shape: f32[64,1], index: 2, kind: input, shape index: {}]   ;;  %s1360_s3 = inlined_call_operand.vmem [shape: f32[64,1], index: 3, kind: input, shape index: {}]   ;;  %s1361_s4 = inlined_call_operand.vmem [shape: f32[64,128], index: 4, kind: input, shape index: {}]   ;;  %s1362_s5 = inlined_call_operand.vmem [shape: f32[64,128], index: 5, kind: output, shape index: {}]  }
   0x1   :  { %v964_v0 = vld [vmem:[%s1357_s1 + $0x78] sm:$0xff]   ;;  %963 = vset.pattern.permute.xlu1 %v1028_v1  ;;  %962 = vset.pattern.permute.xlu0 %v1028_v1  ;;  %v968_v5 = vld [vmem:[%s1357_s1 + $0x70] sm:$0xff]   ;;  %v972_v9 = vld [vmem:[%s1357_s1 + $0x68] sm:$0xff]  }
   0x2   :  { %v965_v2 = vld [vmem:[%s1357_s1 + $0xf8] sm:$0xff]   ;;  %849 = vmatprep.subr.bf16.mxu0 %v964_v0  ;;  %v969_v6 = vld [vmem:[%s1357_s1 + $0xf0] sm:$0xff]   ;;  %v973_v10 = vld [vmem:[%s1357_s1 + $0xe8] sm:$0xff]  }
   0x3   :  { %v966_v3 = vld [vmem:[%s1357_s1 + $0x38] sm:$0xff]   ;;  %889 = vmatprep.subr.bf16.mxu1 %v965_v2  ;;  %v970_v7 = vld [vmem:[%s1357_s1 + $0x30] sm:$0xff]   ;;  %v974_v11 = vld [vmem:[%s1357_s1 + $0x28] sm:$0xff]  }
   0x4   :  { %v967_v4 = vld [vmem:[%s1357_s1 + $0xb8] sm:$0xff]   ;;  %850 = vmatpush3.bf16.msra.mxu0 %v966_v3  ;;  %v971_v8 = vld [vmem:[%s1357_s1 + $0xb0] sm:$0xff]   ;;  %v975_v12 = vld [vmem:[%s1357_s1 + $0xa8] sm:$0xff]  }
   0x5   :  { %890 = vmatpush3.bf16.msra.mxu1 %v967_v4  ;;  %851 = vmatprep.subr.bf16.mxu0 %v968_v5  ;;  %v976_v13 = vld [vmem:[%s1357_s1 + $0x60] sm:$0xff]   ;;  %v980_v17 = vld [vmem:[%s1357_s1 + $0x58] sm:$0xff]   ;;  %v984_v21 = vld [vmem:[%s1357_s1 + $0x50] sm:$0xff]  }
   0x6   :  { %891 = vmatprep.subr.bf16.mxu1 %v969_v6  ;;  %v977_v14 = vld [vmem:[%s1357_s1 + $0xe0] sm:$0xff]   ;;  %v981_v18 = vld [vmem:[%s1357_s1 + $0xd8] sm:$0xff]   ;;  %v985_v22 = vld [vmem:[%s1357_s1 + $0xd0] sm:$0xff]  }
   0x7   :  { %v978_v15 = vld [vmem:[%s1357_s1 + $0x20] sm:$0xff]   ;;  %v982_v19 = vld [vmem:[%s1357_s1 + $0x18] sm:$0xff]   ;;  %v986_v23 = vld [vmem:[%s1357_s1 + $0x10] sm:$0xff]  }
   0x8   :  { %852 = vmatpush3.bf16.msra.mxu0 %v970_v7  ;;  %v979_v16 = vld [vmem:[%s1357_s1 + $0xa0] sm:$0xff]   ;;  %v983_v20 = vld [vmem:[%s1357_s1 + $0x98] sm:$0xff]   ;;  %v987_v24 = vld [vmem:[%s1357_s1 + $0x90] sm:$0xff]  }
   0x9   :  { %892 = vmatpush3.bf16.msra.mxu1 %v971_v8  ;;  %853 = vmatprep.subr.bf16.mxu0 %v972_v9  ;;  %v988_v25 = vld [vmem:[%s1357_s1 + $0x48] sm:$0xff]   ;;  %v992_v29 = vld [vmem:[%s1357_s1 + $0x40] sm:$0xff]   ;;  %v1002_v37 = vld [vmem:[%s1357_s1 + $0x118] sm:$0xff]  }
   0xa   :  { %893 = vmatprep.subr.bf16.mxu1 %v973_v10  ;;  %v989_v26 = vld [vmem:[%s1357_s1 + $0xc8] sm:$0xff]   ;;  %v993_v30 = vld [vmem:[%s1357_s1 + $0xc0] sm:$0xff]   ;;  %v1009_v40 = vld [vmem:[%s1357_s1 + $0x110] sm:$0xff]  }
   0xb   :  { %v990_v27 = vld [vmem:[%s1357_s1 + $0x8] sm:$0xff]   ;;  %v994_v31 = vld [vmem:[%s1357_s1] sm:$0xff]   ;;  %v1012_v44 = vld [vmem:[%s1358_s0 + $0x5c] ss:$20 sps:$4 sm:$0xff]  }
   0xc   :  { %854 = vmatpush3.bf16.msra.mxu0 %v974_v11  ;;  %v991_v28 = vld [vmem:[%s1357_s1 + $0x88] sm:$0xff]   ;;  %v995_v32 = vld [vmem:[%s1357_s1 + $0x80] sm:$0xff]   ;;  %v1017_v49 = vld [vmem:[%s1358_s0 + $0x7c] ss:$20 sps:$4 sm:$0xff]  }
   0xd   :  { %894 = vmatpush3.bf16.msra.mxu1 %v975_v12  ;;  %855 = vmatprep.subr.bf16.mxu0 %v976_v13  ;;  %v996_v33 = vld [vmem:[%s1358_s0] ss:$20 sps:$4 sm:$0xff]   ;;  %v998_v34 = vld [vmem:[%s1358_s0 + $0x4] ss:$20 sps:$4 sm:$0xff]   ;;  %v999_v35 = vld [vmem:[%s1358_s0 + $0x8] ss:$20 sps:$4 sm:$0xff]  }
   0xe   :  { %895 = vmatprep.subr.bf16.mxu1 %v977_v14  ;;  %v1001_v36 = vld [vmem:[%s1358_s0 + $0xc] ss:$20 sps:$4 sm:$0xff]   ;;  %478 = vmatprep.mubr.bf16.mxu0 %v998_v34  ;;  %v1005_v39 = vld [vmem:[%s1358_s0 + $0x34] ss:$20 sps:$4 sm:$0xff]   ;;  %v1008_v42 = vld [vmem:[%s1358_s0 + $0x30] ss:$20 sps:$4 sm:$0xff]  }
   0xf   :  { %543 = vmatprep.mubr.bf16.mxu1 %v1001_v36  ;;  %v1003_v38 = vld [vmem:[%s1358_s0 + $0x2c] ss:$20 sps:$4 sm:$0xff]   ;;  %v1007_v41 = vld [vmem:[%s1358_s0 + $0x28] ss:$20 sps:$4 sm:$0xff]   ;;  %v1014_v47 = vld [vmem:[%s1358_s0 + $0x50] ss:$20 sps:$4 sm:$0xff]  }
  0x10   :  { %856 = vmatpush3.bf16.msra.mxu0 %v978_v15  ;;  %v1010_v43 = vld [vmem:[%s1358_s0 + $0x54] ss:$20 sps:$4 sm:$0xff]   ;;  %v1023_v46 = vld [vmem:[%s1357_s1 + $0x100] sm:$0xff]   ;;  %v1015_v48 = vld [vmem:[%s1358_s0 + $0x58] ss:$20 sps:$4 sm:$0xff]  }
  0x11   :  { %896 = vmatpush3.bf16.msra.mxu1 %v979_v16  ;;  %857 = vmatprep.subr.bf16.mxu0 %v980_v17  ;;  %v1016_v45 = vld [vmem:[%s1357_s1 + $0x108] sm:$0xff]   ;;  %v1019_v50 = vld [vmem:[%s1358_s0 + $0x84] ss:$20 sps:$4 sm:$0xff]   ;;  %v643_v51 = vld [vmem:[%s1359_s2 + $0x10] sm:$0xff] }
  0x12   :  { %897 = vmatprep.subr.bf16.mxu1 %v981_v18  ;;  %v641_v52 = vld [vmem:[%s1359_s2] sm:$0xff]  ;;  %661 = vperm.xlu1 %963, %v643_v51   ;;  %v644_v53 = vld [vmem:[%s1359_s2 + $0x18] sm:$0xff]  ;;  %v642_v54 = vld [vmem:[%s1359_s2 + $0x8] sm:$0xff] }
  0x13   :  { %651 = vperm.xlu0 %962, %v641_v52   ;;  %v1021_v55 = vld [vmem:[%s1358_s0 + $0x78] ss:$20 sps:$4 sm:$0xff]   ;;  %v1022_v56 = vld [vmem:[%s1358_s0 + $0x80] ss:$20 sps:$4 sm:$0xff]   ;;  %v1024_v57 = vld [vmem:[%s1358_s0 + $0x10] ss:$20 sps:$4 sm:$0xff]  }
  0x14   :  { %858 = vmatpush3.bf16.msra.mxu0 %v982_v19  ;;  %v646_v58 = vld [vmem:[%s1359_s2 + $0x28] sm:$0xff]  ;;  %v1025_v59 = vld [vmem:[%s1358_s0 + $0x60] ss:$20 sps:$4 sm:$0xff]   ;;  %v648_v61 = vld [vmem:[%s1359_s2 + $0x38] sm:$0xff] }
  0x15   :  { %898 = vmatpush3.bf16.msra.mxu1 %v983_v20  ;;  %859 = vmatprep.subr.bf16.mxu0 %v984_v21  ;;  %v645_v60 = vld [vmem:[%s1359_s2 + $0x20] sm:$0xff]  ;;  %v647_v62 = vld [vmem:[%s1359_s2 + $0x30] sm:$0xff]  ;;  %v1026_v63 = vld [vmem:[%s1358_s0 + $0x38] ss:$20 sps:$4 sm:$0xff]  }
  0x16   :  { %899 = vmatprep.subr.bf16.mxu1 %v985_v22  ;;  %666 = vperm.xlu1 %963, %v644_v53   ;;  %v1027_v0 = vld [vmem:[%s1358_s0 + $0x88] ss:$20 sps:$4 sm:$0xff]   ;;  %v697_v2 = vld [vmem:[%s1360_s3] sm:$0xff]  ;;  %v699_v4 = vld [vmem:[%s1360_s3 + $0x10] sm:$0xff] }
  0x17   :  { %656 = vperm.xlu0 %962, %v642_v54   ;;  %v698_v1 = vld [vmem:[%s1360_s3 + $0x8] sm:$0xff]  ;;  %v700_v3 = vld [vmem:[%s1360_s3 + $0x18] sm:$0xff]  ;;  %v701_v6 = vld [vmem:[%s1360_s3 + $0x20] sm:$0xff] }
  0x18   :  { %860 = vmatpush3.bf16.msra.mxu0 %v986_v23  ;;  %v702_v5 = vld [vmem:[%s1360_s3 + $0x28] sm:$0xff]  ;;  %v704_v7 = vld [vmem:[%s1360_s3 + $0x38] sm:$0xff]  ;;  %v703_v8 = vld [vmem:[%s1360_s3 + $0x30] sm:$0xff] }
  0x19   :  { %900 = vmatpush3.bf16.msra.mxu1 %v987_v24  ;;  %861 = vmatprep.subr.bf16.mxu0 %v988_v25 }
  0x1a   :  { %901 = vmatprep.subr.bf16.mxu1 %v989_v26  ;;  %676 = vperm.xlu1 %963, %v646_v58  }
  0x1b   :  { %671 = vperm.xlu0 %962, %v645_v60  }
  0x1c   :  { %862 = vmatpush3.bf16.msra.mxu0 %v990_v27 }
  0x1d   :  { %902 = vmatpush3.bf16.msra.mxu1 %v991_v28  ;;  %863 = vmatprep.subr.bf16.mxu0 %v992_v29 }
  0x1e   :  { %903 = vmatprep.subr.bf16.mxu1 %v993_v30  ;;  %686 = vperm.xlu1 %963, %v648_v61  }
  0x1f   :  { %681 = vperm.xlu0 %962, %v647_v62  }
  0x20   :  { %864 = vmatpush3.bf16.msra.mxu0 %v994_v31 }
  0x21   :  { %904 = vmatpush3.bf16.msra.mxu1 %v995_v32  ;;  %937 = vmatprep.subr.bf16.mxu0 %v1002_v37 }
  0x22   :  { %953 = vmatprep.subr.bf16.mxu1 %v1002_v37  ;;  %712 = vperm.xlu1 %963, %v698_v1  }
  0x23   :  { %479 = vmatmul.mubr.bf16.vlgmr.msra.gmra.mxu0 %v996_v33  ;;  %707 = vperm.xlu0 %962, %v697_v2  }
  0x24   :  { %544 = vmatmul.mubr.bf16.vlgmr.msra.gmra.mxu1 %v999_v35  ;;  %938 = vmatpush3.bf16.msra.mxu0 %v1002_v37 }
  0x25   :  { %957 = vmatpush3.bf16.msra.mxu1 %v1002_v37  ;;  %486 = vmatprep.mubr.bf16.mxu0 %v1003_v38 }
  0x26   :  { %551 = vmatprep.mubr.bf16.mxu1 %v1005_v39  ;;  %939 = vmatprep.subr.bf16.mxu0 %v1009_v40 }
  0x27   :  { %954 = vmatprep.subr.bf16.mxu1 %v1009_v40  ;;  %722 = vperm.xlu1 %963, %v700_v3  }
  0x28   :  { %940 = vmatpush3.bf16.msra.mxu0 %v1009_v40  ;;  %717 = vperm.xlu0 %962, %v699_v4  }
  0x29   :  { %958 = vmatpush3.bf16.msra.mxu1 %v1009_v40  ;;  %941 = vmatprep.subr.bf16.mxu0 %v1016_v45 }
  0x2a   :  { %955 = vmatprep.subr.bf16.mxu1 %v1016_v45 }
  0x2b   :  { %487 = vmatmul.mubr.bf16.gmra.mxu0 %v1007_v41  ;;  %732 = vperm.xlu1 %963, %v702_v5  }
  0x2c   :  { %552 = vmatmul.mubr.bf16.gmra.mxu1 %v1008_v42  ;;  %494 = vmatprep.mubr.bf16.mxu0 %v1010_v43 }
  0x2d   :  { %559 = vmatprep.mubr.bf16.mxu1 %v1012_v44  ;;  %942 = vmatpush3.bf16.msra.mxu0 %v1016_v45 }
  0x2e   :  { %959 = vmatpush3.bf16.msra.mxu1 %v1016_v45  ;;  %943 = vmatprep.subr.bf16.mxu0 %v1023_v46 }
  0x2f   :  { %956 = vmatprep.subr.bf16.mxu1 %v1023_v46  ;;  %727 = vperm.xlu0 %962, %v701_v6  }
  0x30   :  { %742 = vperm.xlu1 %963, %v704_v7  }
  0x31   :  { %944 = vmatpush3.bf16.msra.mxu0 %v1023_v46 }
  0x32   :  { %960 = vmatpush3.bf16.msra.mxu1 %v1023_v46 }
  0x33   :  { %495 = vmatmul.mubr.bf16.gmra.mxu0 %v1014_v47  ;;  %737 = vperm.xlu0 %962, %v703_v8  }
  0x34   :  { %560 = vmatmul.mubr.bf16.gmra.mxu1 %v1015_v48  ;;  %502 = vmatprep.mubr.bf16.mxu0 %v1017_v49 }
  0x35   :  { %567 = vmatprep.mubr.bf16.mxu1 %v1019_v50 }
  0x3b   :  { %503 = vmatmul.mubr.bf16.gmra.mxu0 %v1021_v55 }
  0x3c   :  { %568 = vmatmul.mubr.bf16.gmra.mxu1 %v1022_v56  ;;  %945 = vmatprep.mubr.msk.bf16.mxu0 %vm433_vm0, %v1024_v57 }
  0x3d   :  { %949 = vmatprep.mubr.msk.bf16.mxu1 %vm433_vm0, %v1025_v59 }
  0x43   :  { %946 = vmatmul.mubr.msk.bf16.vlgmr.msra.gmra.mxu0 %vm433_vm0, %v1026_v63 }
  0x44   :  { %950 = vmatmul.mubr.msk.bf16.vlgmr.msra.gmra.mxu1 %vm433_vm0, %v1027_v0 }
  0x8d   :  { %v1281_v10 = vpop.permute.xlu1 %661 }
  0x8e   :  { %v1279_v9 = vpop.permute.xlu0 %651 }
  0x91   :  { %v1285_v17 = vpop.permute.xlu1 %666 }
  0x92   :  { %v1283_v12 = vpop.permute.xlu0 %656 }
  0x95   :  { %v1289_v25 = vpop.permute.xlu1 %676 }
  0x96   :  { %v1287_v20 = vpop.permute.xlu0 %671 }
  0x99   :  { %v1291_v33 = vpop.permute.xlu1 %686 }
  0x9a   :  { %v682_v28 = vpop.permute.xlu0 %681 }
  0x9d   :  { %v1295_v41 = vpop.permute.xlu1 %712 }
  0x9e   :  { %v1293_v36 = vpop.permute.xlu0 %707 }
  0xa2   :  { %v1297_v55 = vpop.permute.xlu1 %722 }
  0xa3   :  { %v718_v44 = vpop.permute.xlu0 %717 }
  0xaa   :  { %v728_v60 = vpop.permute.xlu0 %727 }
  0xe3   :  { %v865_v11 = vpop.f32.mrf.mxu0 }
  0xe4   :  { %v905_v13 = vpop.f32.mrf.mxu1 }
  0xe5   :  { %v866_v14 = vpop.f32.mrf.mxu0 }
  0xe6   :  { %v906_v15 = vpop.f32.mrf.mxu1  ;;  %v867_v53 = vadd.f32 %v866_v14, %v865_v11 }
  0xe7   :  { %v868_v16 = vpop.f32.mrf.mxu0  ;;  %v907_v54 = vadd.f32 %v906_v15, %v905_v13 }
  0xe8   :  { %v908_v18 = vpop.f32.mrf.mxu1 }
  0xe9   :  { %v869_v19 = vpop.f32.mrf.mxu0  ;;  %v546_v11 = vadd.f32 %v907_v54, %v867_v53 }
  0xea   :  { %v909_v21 = vpop.f32.mrf.mxu1  ;;  %v870_v5 = vadd.f32 %v869_v19, %v868_v16 }
  0xeb   :  { %v871_v22 = vpop.f32.mrf.mxu0  ;;  %v910_v6 = vadd.f32 %v909_v21, %v908_v18 }
  0xec   :  { %v911_v23 = vpop.f32.mrf.mxu1 }
  0xed   :  { %v872_v24 = vpop.f32.mrf.mxu0 }
  0xee   :  { %v912_v26 = vpop.f32.mrf.mxu1  ;;  %v873_v47 = vadd.f32 %v872_v24, %v871_v22  ;;  %v733_v24 = vpop.permute.xlu1 %732 }
  0xef   :  { %v874_v27 = vpop.f32.mrf.mxu0  ;;  %v913_v48 = vadd.f32 %v912_v26, %v911_v23 }
  0xf0   :  { %v914_v29 = vpop.f32.mrf.mxu1 }
  0xf1   :  { %v875_v30 = vpop.f32.mrf.mxu0  ;;  %v554_v0 = vadd.f32 %v913_v48, %v873_v47 }
  0xf2   :  { %v915_v31 = vpop.f32.mrf.mxu1  ;;  %v876_v61 = vadd.f32 %v875_v30, %v874_v27 }
  0xf3   :  { %v877_v32 = vpop.f32.mrf.mxu0  ;;  %v916_v62 = vadd.f32 %v915_v31, %v914_v29  ;;  %v755_v31 = vld [vmem:[%s1361_s4 + $0x10] sm:$0xff] }
  0xf4   :  { %v917_v34 = vpop.f32.mrf.mxu1 }
  0xf5   :  { %v878_v35 = vpop.f32.mrf.mxu0  ;;  %v557_v30 = vadd.f32 %v916_v62, %v876_v61 }
  0xf6   :  { %v918_v37 = vpop.f32.mrf.mxu1  ;;  %v879_v57 = vadd.f32 %v878_v35, %v877_v32  ;;  %v738_v32 = vpop.permute.xlu0 %737  ;;  %v759_v35 = vld [vmem:[%s1361_s4 + $0x30] sm:$0xff] }
  0xf7   :  { %v880_v38 = vpop.f32.mrf.mxu0  ;;  %v919_v58 = vadd.f32 %v918_v37, %v917_v34 }
  0xf8   :  { %v920_v39 = vpop.f32.mrf.mxu1 }
  0xf9   :  { %v881_v40 = vpop.f32.mrf.mxu0  ;;  %v562_v23 = vadd.f32 %v919_v58, %v879_v57 }
  0xfa   :  { %v921_v42 = vpop.f32.mrf.mxu1  ;;  %v882_v13 = vadd.f32 %v881_v40, %v880_v38 }
  0xfb   :  { %v883_v43 = vpop.f32.mrf.mxu0  ;;  %v922_v14 = vadd.f32 %v921_v42, %v920_v39  ;;  %v549_v39 = vadd.f32 %v910_v6, %v870_v5  ;;  %v753_v42 = vld [vmem:[%s1361_s4] sm:$0xff] }
  0xfc   :  { %v923_v45 = vpop.f32.mrf.mxu1 }
  0xfd   :  { %v884_v46 = vpop.f32.mrf.mxu0 }
  0xfe   :  { %v924_v49 = vpop.f32.mrf.mxu1  ;;  %v885_v50 = vadd.f32 %v884_v46, %v883_v43  ;;  %v565_v46 = vadd.f32 %v922_v14, %v882_v13 }
  0xff   :  { %v925_v51 = vadd.f32 %v924_v49, %v923_v45  ;;  %v886_v52 = vpop.f32.mrf.mxu0 }
 0x100   :  { %v926_v56 = vpop.f32.mrf.mxu1 }
 0x101   :  { %v887_v59 = vpop.f32.mrf.mxu0  ;;  %v570_v4 = vadd.f32 %v925_v51, %v885_v50 }
 0x102   :  { %v927_v63 = vpop.f32.mrf.mxu1  ;;  %v888_v1 = vadd.f32 %v887_v59, %v886_v52 }
 0x103   :  { %v928_v2 = vadd.f32 %v927_v63, %v926_v56  ;;  %v947_v3 = vpop.f32.mrf.mxu0  ;;  %v743_v56 = vpop.permute.xlu1 %742  ;;  %v754_v63 = vld [vmem:[%s1361_s4 + $0x8] sm:$0xff] }
 0x104   :  { %v619_v7 = vadd.f32 %v947_v3, %v554_v0  ;;  %v951_v8 = vpop.f32.mrf.mxu1 }
 0x105   :  { %v635_v15 = vadd.f32 %v951_v8, %v570_v4  ;;  %v610_v22 = vpop.f32.mrf.mxu0  ;;  %v573_v21 = vadd.f32 %v928_v2, %v888_v1 }
 0x106   :  { %v691_v26 = vmul.f32 %v1281_v10, %v619_v7  ;;  %v611_v27 = vadd.f32 %v610_v22, %v546_v11  ;;  %v626_v29 = vpop.f32.mrf.mxu1 }
 0x107   :  { %v695_v16 = vmul.f32 %v682_v28, %v635_v15  ;;  %v627_v18 = vadd.f32 %v626_v29, %v562_v23  ;;  %v948_v19 = vpop.f32.mrf.mxu0 }
 0x108   :  { %v747_v34 = vadd.f32 %v718_v44, %v691_v26  ;;  %v689_v37 = vmul.f32 %v1279_v9, %v611_v27  ;;  %v622_v10 = vadd.f32 %v948_v19, %v557_v30  ;;  %v952_v38 = vpop.f32.mrf.mxu1  ;;  %v757_v9 = vld [vmem:[%s1361_s4 + $0x20] sm:$0xff] }
 0x109   :  { %v751_v40 = vadd.f32 %v738_v32, %v695_v16  ;;  %v693_v28 = vmul.f32 %v1287_v20, %v627_v18  ;;  %v638_v43 = vadd.f32 %v952_v38, %v573_v21  ;;  %v613_v45 = vpop.f32.mrf.mxu0  ;;  %v756_v20 = vld [vmem:[%s1361_s4 + $0x18] sm:$0xff] }
 0x10a   :  { %v763_v44 = vadd.f32 %v755_v31, %v747_v34  ;;  %v745_v47 = vadd.f32 %v1293_v36, %v689_v37  ;;  %v692_v48 = vmul.f32 %v1285_v17, %v622_v10  ;;  %v614_v49 = vadd.f32 %v613_v45, %v549_v39  ;;  %v629_v50 = vpop.f32.mrf.mxu1  ;;  %v760_v17 = vld [vmem:[%s1361_s4 + $0x38] sm:$0xff] }
 0x10b   :  { %v767_v51 = vadd.f32 %v759_v35, %v751_v40  ;;  %v749_v52 = vadd.f32 %v728_v60, %v693_v28  ;;  %v696_v53 = vmul.f32 %v1291_v33, %v638_v43  ;;  %v630_v54 = vadd.f32 %v629_v50, %v565_v46 }
 0x10c   :  { %v771_v57 = vmax.f32 %v763_v44, 0.0  ;;  %v761_v36 = vadd.f32 %v753_v42, %v745_v47  ;;  %v748_v58 = vadd.f32 %v1297_v55, %v692_v48  ;;  %v690_v59 = vmul.f32 %v1283_v12, %v614_v49  ;;  %v758_v12 = vld [vmem:[%s1361_s4 + $0x28] sm:$0xff] }
 0x10d   :  { %v775_v61 = vmax.f32 %v767_v51, 0.0  ;;  %v765_v60 = vadd.f32 %v757_v9, %v749_v52  ;;  %v752_v62 = vadd.f32 %v743_v56, %v696_v53  ;;  %v694_v33 = vmul.f32 %v1289_v25, %v630_v54 }
 0x10e   :  { %779 = vst [vmem:[%s1362_s5 + $0x10] sm:$0xff] %v771_v57  ;;  %v769_v55 = vmax.f32 %v761_v36, 0.0  ;;  %v764_v0 = vadd.f32 %v756_v20, %v748_v58  ;;  %v746_v1 = vadd.f32 %v1295_v41, %v690_v59 }
 0x10f   :  { %783 = vst [vmem:[%s1362_s5 + $0x30] sm:$0xff] %v775_v61  ;;  %v773_v2 = vmax.f32 %v765_v60, 0.0  ;;  %v768_v3 = vadd.f32 %v760_v17, %v752_v62  ;;  %v750_v4 = vadd.f32 %v733_v24, %v694_v33 }
 0x110   :  { %777 = vst [vmem:[%s1362_s5] sm:$0xff] %v769_v55  ;;  %v772_v25 = vmax.f32 %v764_v0, 0.0  ;;  %v762_v5 = vadd.f32 %v754_v63, %v746_v1 }
 0x111   :  { %781 = vst [vmem:[%s1362_s5 + $0x20] sm:$0xff] %v773_v2  ;;  %v776_v41 = vmax.f32 %v768_v3, 0.0  ;;  %v766_v6 = vadd.f32 %v758_v12, %v750_v4 }
 0x112   :  { %780 = vst [vmem:[%s1362_s5 + $0x18] sm:$0xff] %v772_v25  ;;  %v770_v7 = vmax.f32 %v762_v5, 0.0 }
 0x113   :  { %784 = vst [vmem:[%s1362_s5 + $0x38] sm:$0xff] %v776_v41  ;;  %v774_v8 = vmax.f32 %v766_v6, 0.0 }
 0x114   :  { %778 = vst [vmem:[%s1362_s5 + $0x8] sm:$0xff] %v770_v7 }
 0x115   :  { %782 = vst [vmem:[%s1362_s5 + $0x28] sm:$0xff] %v774_v8 }

</bundles_post_ra>
